<compile_context>
chip_gen: v6e
topology: v6e:2x2x1
jax: 0.10.0
libtpu: 0.0.40
codegen_flags: <defaults>
</compile_context>

<pallas_src>
from functools import partial

import jax
import jax.numpy as jnp
from jax.experimental import pallas as pl
from jax.experimental.pallas import tpu as pltpu

CLAMP_LO = 1e-7
CLAMP_HI = 1.0 - 1e-7
NEG_PAD = -1e30          # bias value for padded class lanes -> exp() == 0


# ----------------------------------------------------------------------------
# Fused kernel: backbone + embedding + per-scale softmax head + classifier.
# grid = (N_scales, P_tiles).
# ----------------------------------------------------------------------------
def fused_kernel(x_ref, wb_ref, we_ref, be_ref, whc_ref, bf_ref, bc_ref,
                 probs_ref, cls_ref, gap_ref, *, total_p):
    s = pl.program_id(0)
    pt = pl.program_id(1)
    n_scales = pl.num_programs(0)
    n_pt = pl.num_programs(1)

    # Classifier logits accumulate directly into the resident output block.
    @pl.when(jnp.logical_and(s == 0, pt == 0))
    def _():
        cls_ref[...] = jnp.zeros_like(cls_ref)

    # Running global-average-pool sum, reset at the first P tile of each scale.
    @pl.when(pt == 0)
    def _():
        gap_ref[...] = jnp.zeros_like(gap_ref)

    x = x_ref[...]                       # (B, C, PT)  — PT lane-dense
    wb = wb_ref[...]                     # (F, C+1): cols 0..C-1 weight, col C bias
    B, C, PT = x.shape

    # ---- synthetic backbone: 1x1 conv (VPU channel mix) + ReLU ----
    # C is tiny, so the channel mix is C broadcast multiply-adds on the VPU
    # (a K=C MXU contraction would waste an entire MXU pass).
    y = wb[None, :, C:C + 1]                              # bias, (1, F, 1)
    for c in range(C):                                    # static, small C
        y = y + x[:, c:c + 1, :] * wb[None, :, c:c + 1]   # -> (B, F, PT)
    y = jnp.maximum(y, 0.0)                               # ReLU

    # Running GAP: lane-axis reduce (XLU slot, overlaps the VPU channel mix).
    gap_ref[...] += jnp.sum(y, axis=-1)                   # (B, F)

    # ---- last P tile: embedding + head + classifier partial ----
    @pl.when(pt == n_pt - 1)
    def _():
        feat = gap_ref[...] * (1.0 / total_p)             # (B, F) f32

        # embedding (dropout == inference-mode identity); bf16 MXU, f32 accum
        emb = jnp.dot(feat.astype(we_ref.dtype), we_ref[...],
                      preferred_element_type=jnp.float32) + be_ref[...]   # (B, E)

        # one fused (E, 2*Kp) matmul: head logits ++ classifier partial
        hc = jnp.dot(emb.astype(whc_ref.dtype), whc_ref[...],
                     preferred_element_type=jnp.float32)                  # (B, 2*Kp)
        Kp = probs_ref.shape[-1]

        # per-scale head: logits -> softmax -> clamp (class dim padded to 128;
        # padded weight cols are 0, padded bias lanes are NEG_PAD -> exp == 0)
        logits = hc[:, :Kp] + bf_ref[...]
        m = jnp.max(logits, axis=-1, keepdims=True)
        e = jnp.exp(logits - m)
        p = e / jnp.sum(e, axis=-1, keepdims=True)
        probs_ref[...] = jnp.clip(p, CLAMP_LO, CLAMP_HI)  # lane-dense store

        # classifier on cat(features): accumulate this scale's W_cls slice
        cls_ref[...] += hc[:, Kp:]

    # ---- final grid step: classifier softmax in place ----
    @pl.when(jnp.logical_and(s == n_scales - 1, pt == n_pt - 1))
    def _():
        lg = cls_ref[...] + bc_ref[...]
        m2 = jnp.max(lg, axis=-1, keepdims=True)
        e2 = jnp.exp(lg - m2)
        p2 = e2 / jnp.sum(e2, axis=-1, keepdims=True)
        cls_ref[...] = jnp.clip(p2, CLAMP_LO, CLAMP_HI)


# ----------------------------------------------------------------------------
# Single fused pallas_call over all scales and P tiles.
# ----------------------------------------------------------------------------
def _fused_forward(x_all, params, p_tile):
    N, B, C, P = x_all.shape
    F = params["wb"].shape[1]
    E = params["we"].shape[2]
    Kp = params["b_fc"].shape[2]
    K2 = params["whc"].shape[2]
    assert P % p_tile == 0
    n_pt = P // p_tile

    def per_scale(*block_dims):
        nd = len(block_dims)
        return pl.BlockSpec((None,) + tuple(block_dims),
                            lambda s, pt, _nd=nd: (s,) + (0,) * _nd)

    in_specs = [
        pl.BlockSpec((None, B, C, p_tile), lambda s, pt: (s, 0, 0, pt)),  # x
        per_scale(F, C + 1),                        # wb  (conv weight ++ bias, f32)
        per_scale(F, E),                            # we  (bf16)
        per_scale(1, E),                            # be
        per_scale(E, K2),                           # whc (bf16): [head | classifier]
        per_scale(1, Kp),                           # b_fc
        pl.BlockSpec((1, Kp), lambda s, pt: (0, 0)),   # b_cls (shared)
    ]
    out_specs = (
        pl.BlockSpec((None, B, Kp), lambda s, pt: (s, 0, 0)),   # per-scale probs
        pl.BlockSpec((B, Kp), lambda s, pt: (0, 0)),            # classifier probs
    )

    probs_pad, cls_pad = pl.pallas_call(
        partial(fused_kernel, total_p=P),
        out_shape=(jax.ShapeDtypeStruct((N, B, Kp), jnp.float32),
                   jax.ShapeDtypeStruct((B, Kp), jnp.float32)),
        grid_spec=pltpu.PrefetchScalarGridSpec(
            num_scalar_prefetch=0,
            grid=(N, n_pt),
            in_specs=in_specs,
            out_specs=out_specs,
            scratch_shapes=[pltpu.VMEM((B, F), jnp.float32)],   # running GAP sum
        ),
        compiler_params=pltpu.CompilerParams(
            # Both axes carry accumulation (classifier across scales, GAP across P).
            dimension_semantics=("arbitrary", "arbitrary"),
            vmem_limit_bytes=32 * 1024 * 1024,
        ),
    )(x_all, params["wb"], params["we"], params["be"],
      params["whc"], params["b_fc"], params["b_cls"])
    return probs_pad, cls_pad


def _pick_p_tile(P, max_tile=2048):
    """Largest multiple of 128 that divides P (capped); else full P (untiled)."""
    best = P
    for t in range(128, min(P, max_tile) + 1, 128):
        if P % t == 0:
            best = t
    return best


# ----------------------------------------------------------------------------
# Parameters (stacked per-scale, PyTorch-equivalent layouts, class dim padded).
# ----------------------------------------------------------------------------
def init_params(key, *, n_mag, c_in, fc_feat_in, emb_dim, n_classes):
    k_pad = ((n_classes + 127) // 128) * 128
    ks = jax.random.split(key, 8)

    def rnd(k, shape):
        return jax.random.normal(k, shape, jnp.float32) * 0.05

    # backbone 1x1 conv: weight (out=F, in=C) and bias (F, 1) merged -> (N, F, C+1)
    w_bb = rnd(ks[0], (n_mag, fc_feat_in, c_in))
    b_bb = rnd(ks[1], (n_mag, fc_feat_in, 1))
    wb = jnp.concatenate([w_bb, b_bb], axis=-1)

    pad_cols = ((0, 0), (0, 0), (0, k_pad - n_classes))
    # per-scale head Linear(E, K) and classifier slice Linear(E*N, K)[scale],
    # both column-zero-padded to k_pad and concatenated -> (N, E, 2*k_pad) bf16
    w_fc = jnp.pad(rnd(ks[4], (n_mag, emb_dim, n_classes)), pad_cols)
    w_cls = jnp.pad(rnd(ks[6], (n_mag, emb_dim, n_classes)), pad_cols)
    whc = jnp.concatenate([w_fc, w_cls], axis=-1).astype(jnp.bfloat16)

    params = dict(
        wb=wb,                                                           # f32
        we=rnd(ks[2], (n_mag, fc_feat_in, emb_dim)).astype(jnp.bfloat16),
        be=rnd(ks[3], (n_mag, 1, emb_dim)),
        whc=whc,
        b_fc=jnp.pad(rnd(ks[5], (n_mag, 1, n_classes)), pad_cols,
                     constant_values=NEG_PAD),
        b_cls=jnp.pad(rnd(ks[7], (1, n_classes)),
                      ((0, 0), (0, k_pad - n_classes)), constant_values=NEG_PAD),
        n_classes=n_classes,
    )
    return params


# ----------------------------------------------------------------------------
# Forward passes mirroring the PyTorch module's two eval modes.
# ----------------------------------------------------------------------------
def multi_scale_forward(params, x_list, *, p_tile=None):
    """x_list[i]: (B, C, H, W). Returns (output_fcn, probs) like the module."""
    B, C, H, W = x_list[0].shape
    P = H * W
    if p_tile is None:
        p_tile = _pick_p_tile(P)
    # NCHW -> (B, C, H*W) is a free reshape; stacking scales is host-side glue.
    x_all = jnp.stack([x.reshape(B, C, P) for x in x_list], axis=0)
    probs_pad, cls_pad = _fused_forward(x_all, params, p_tile)
    K = params["n_classes"]
    probs = [probs_pad[i, :, :K] for i in range(x_all.shape[0])]
    output_fcn = cls_pad[:, :K]
    return output_fcn, probs


def single_scale_forward(params, x, idx_scale, *, p_tile=None):
    """x: (B, C, H, W); returns (softmax head of idx_scale, [])."""
    B, C, H, W = x.shape
    P = H * W
    if p_tile is None:
        p_tile = _pick_p_tile(P)
    x_all = x.reshape(B, C, P)[None]
    sub = dict(params)
    for name in ("wb", "we", "be", "whc", "b_fc"):
        sub[name] = params[name][idx_scale:idx_scale + 1]
    probs_pad, _ = _fused_forward(x_all, sub, p_tile)   # classifier output unused
    K = params["n_classes"]
    return probs_pad[0, :, :K], []


# ----------------------------------------------------------------------------
if __name__ == "__main__":
    # Small shapes consistent with the module (resnet34-like head):
    B, C, H, W = 2, 3, 16, 16
    FC_FEAT_IN, E, N_CLASSES, N_MAG = 512, 128, 4, 2
    P_TILE = 128        # forces 2 P tiles at P=256 so the tiling path is exercised

    key = jax.random.PRNGKey(0)
    key, kp = jax.random.split(key)
    params = init_params(kp, n_mag=N_MAG, c_in=C, fc_feat_in=FC_FEAT_IN,
                         emb_dim=E, n_classes=N_CLASSES)

    x_list = []
    for _ in range(N_MAG):
        key, kx = jax.random.split(key)
        x_list.append(jax.random.normal(kx, (B, C, H, W), jnp.float32))

    # multi_scale mode
    out_fcn, probs = multi_scale_forward(params, x_list, p_tile=P_TILE)
    out_fcn = jax.block_until_ready(out_fcn)
    probs = [jax.block_until_ready(p) for p in probs]
    assert out_fcn.shape == (B, N_CLASSES)
    assert len(probs) == N_MAG and all(p.shape == (B, N_CLASSES) for p in probs)
    assert bool(jnp.all(jnp.abs(jnp.sum(out_fcn, axis=-1) - 1.0) < 1e-4))
    assert bool(jnp.all(jnp.abs(jnp.sum(probs[0], axis=-1) - 1.0) < 1e-4))

    # single_scale mode (must agree with the per-scale head of multi_scale)
    out_single, empty = single_scale_forward(params, x_list[0], idx_scale=0,
                                             p_tile=P_TILE)
    out_single = jax.block_until_ready(out_single)
    assert out_single.shape == (B, N_CLASSES)
    assert empty == []
    assert bool(jnp.allclose(out_single, probs[0], atol=1e-5))

    print("KERNEL_OK")
</pallas_src>

<mosaic_0001>
module attributes {stable_mosaic.version = 11 : i64} {
  func.func @fused_kernel(%arg0: i32, %arg1: i32, %arg2: memref<1x2x3x128xf32, #tpu.memory_space<vmem>>, %arg3: memref<1x512x4xf32, #tpu.memory_space<vmem>>, %arg4: memref<1x512x128xbf16, #tpu.memory_space<vmem>>, %arg5: memref<1x1x128xf32, #tpu.memory_space<vmem>>, %arg6: memref<1x128x256xbf16, #tpu.memory_space<vmem>>, %arg7: memref<1x1x128xf32, #tpu.memory_space<vmem>>, %arg8: memref<1x128xf32, #tpu.memory_space<vmem>>, %arg9: memref<1x2x128xf32, #tpu.memory_space<vmem>>, %arg10: memref<2x128xf32, #tpu.memory_space<vmem>>, %arg11: memref<2x512xf32, #tpu.memory_space<vmem>>) attributes {dimension_semantics = [#tpu.dimension_semantics<arbitrary>, #tpu.dimension_semantics<arbitrary>], iteration_bounds = array<i64: 2, 2>, scalar_prefetch = 0 : i64, scratch_operands = 1 : i64, tpu.core_type = #tpu.core_type<tc>, window_params = [{transform_indices = @transform_0, window_bounds = array<i64: 1, 2, 3, 128>}, {transform_indices = @transform_1, window_bounds = array<i64: 1, 512, 4>}, {transform_indices = @transform_2, window_bounds = array<i64: 1, 512, 128>}, {transform_indices = @transform_3, window_bounds = array<i64: 1, 1, 128>}, {transform_indices = @transform_4, window_bounds = array<i64: 1, 128, 256>}, {transform_indices = @transform_5, window_bounds = array<i64: 1, 1, 128>}, {pipeline_mode = #tpu.pipeline_mode<synchronous>, transform_indices = @transform_6, window_bounds = array<i64: 1, 128>}, {transform_indices = @transform_7, window_bounds = array<i64: 1, 2, 128>}, {pipeline_mode = #tpu.pipeline_mode<synchronous>, transform_indices = @transform_8, window_bounds = array<i64: 2, 128>}]} {
    %c0_i32 = arith.constant 0 : i32
    %0 = arith.cmpi eq, %arg0, %c0_i32 : i32
    %c0_i32_0 = arith.constant 0 : i32
    %1 = arith.cmpi eq, %arg1, %c0_i32_0 : i32
    %2 = arith.andi %0, %1 : i1
    %3 = arith.extui %2 : i1 to i32
    %c0_i32_1 = arith.constant 0 : i32
    %4 = arith.cmpi ne, %3, %c0_i32_1 : i32
    scf.if %4 {
      %cst_19 = arith.constant 0.000000e+00 : f32
      %50 = vector.broadcast %cst_19 : f32 to vector<2x128xf32>
      %c0_20 = arith.constant 0 : index
      %c0_21 = arith.constant 0 : index
      %51 = vector.load %arg10[%c0_20, %c0_21] : memref<2x128xf32, #tpu.memory_space<vmem>>, vector<2x128xf32>
      tpu.vector_store %arg10[%c0_20, %c0_21], %50 {strides = array<i32>} : memref<2x128xf32, #tpu.memory_space<vmem>>, vector<2x128xf32>,
    } else {
    }
    %c0_i32_2 = arith.constant 0 : i32
    %5 = arith.cmpi eq, %arg1, %c0_i32_2 : i32
    %6 = arith.extui %5 : i1 to i32
    %c0_i32_3 = arith.constant 0 : i32
    %7 = arith.cmpi ne, %6, %c0_i32_3 : i32
    scf.if %7 {
      %cst_19 = arith.constant 0.000000e+00 : f32
      %50 = vector.broadcast %cst_19 : f32 to vector<2x512xf32>
      %c0_20 = arith.constant 0 : index
      %c0_21 = arith.constant 0 : index
      %51 = vector.load %arg11[%c0_20, %c0_21] : memref<2x512xf32, #tpu.memory_space<vmem>>, vector<2x512xf32>
      tpu.vector_store %arg11[%c0_20, %c0_21], %50 {strides = array<i32>} : memref<2x512xf32, #tpu.memory_space<vmem>>, vector<2x512xf32>,
    } else {
    }
    %c0 = arith.constant 0 : index
    %c0_4 = arith.constant 0 : index
    %c0_5 = arith.constant 0 : index
    %c0_6 = arith.constant 0 : index
    %8 = vector.load %arg2[%c0, %c0_4, %c0_5, %c0_6] : memref<1x2x3x128xf32, #tpu.memory_space<vmem>>, vector<1x2x3x128xf32>
    %9 = vector.shape_cast %8 : vector<1x2x3x128xf32> to vector<2x3x128xf32>
    %c0_7 = arith.constant 0 : index
    %c0_8 = arith.constant 0 : index
    %c0_9 = arith.constant 0 : index
    %10 = vector.load %arg3[%c0_7, %c0_8, %c0_9] : memref<1x512x4xf32, #tpu.memory_space<vmem>>, vector<1x512x4xf32>
    %11 = vector.shape_cast %10 : vector<1x512x4xf32> to vector<512x4xf32>
    %12 = vector.extract_strided_slice %11 {offsets = [0, 3], sizes = [512, 1], strides = [1, 1]} : vector<512x4xf32> to vector<512x1xf32>
    %13 = vector.shape_cast %12 : vector<512x1xf32> to vector<1x512x1xf32>
    %14 = vector.extract_strided_slice %9 {offsets = [0, 0, 0], sizes = [2, 1, 128], strides = [1, 1, 1]} : vector<2x3x128xf32> to vector<2x1x128xf32>
    %15 = vector.extract_strided_slice %11 {offsets = [0, 0], sizes = [512, 1], strides = [1, 1]} : vector<512x4xf32> to vector<512x1xf32>
    %16 = vector.shape_cast %15 : vector<512x1xf32> to vector<1x512x1xf32>
    %17 = vector.broadcast %14 : vector<2x1x128xf32> to vector<2x512x128xf32>
    %18 = vector.broadcast %16 : vector<1x512x1xf32> to vector<2x512x128xf32>
    %19 = arith.mulf %17, %18 : vector<2x512x128xf32>
    %20 = vector.broadcast %13 : vector<1x512x1xf32> to vector<2x512x128xf32>
    %21 = arith.addf %20, %19 : vector<2x512x128xf32>
    %22 = vector.extract_strided_slice %9 {offsets = [0, 1, 0], sizes = [2, 1, 128], strides = [1, 1, 1]} : vector<2x3x128xf32> to vector<2x1x128xf32>
    %23 = vector.extract_strided_slice %11 {offsets = [0, 1], sizes = [512, 1], strides = [1, 1]} : vector<512x4xf32> to vector<512x1xf32>
    %24 = vector.shape_cast %23 : vector<512x1xf32> to vector<1x512x1xf32>
    %25 = vector.broadcast %22 : vector<2x1x128xf32> to vector<2x512x128xf32>
    %26 = vector.broadcast %24 : vector<1x512x1xf32> to vector<2x512x128xf32>
    %27 = arith.mulf %25, %26 : vector<2x512x128xf32>
    %28 = arith.addf %21, %27 : vector<2x512x128xf32>
    %29 = vector.extract_strided_slice %9 {offsets = [0, 2, 0], sizes = [2, 1, 128], strides = [1, 1, 1]} : vector<2x3x128xf32> to vector<2x1x128xf32>
    %30 = vector.extract_strided_slice %11 {offsets = [0, 2], sizes = [512, 1], strides = [1, 1]} : vector<512x4xf32> to vector<512x1xf32>
    %31 = vector.shape_cast %30 : vector<512x1xf32> to vector<1x512x1xf32>
    %32 = vector.broadcast %29 : vector<2x1x128xf32> to vector<2x512x128xf32>
    %33 = vector.broadcast %31 : vector<1x512x1xf32> to vector<2x512x128xf32>
    %34 = arith.mulf %32, %33 : vector<2x512x128xf32>
    %35 = arith.addf %28, %34 : vector<2x512x128xf32>
    %cst = arith.constant 0.000000e+00 : f32
    %36 = vector.broadcast %cst : f32 to vector<2x512x128xf32>
    %37 = arith.maximumf %35, %36 : vector<2x512x128xf32>
    %c0_10 = arith.constant 0 : index
    %c0_11 = arith.constant 0 : index
    %38 = vector.load %arg11[%c0_10, %c0_11] : memref<2x512xf32, #tpu.memory_space<vmem>>, vector<2x512xf32>
    %cst_12 = arith.constant dense<0.000000e+00> : vector<2x512xf32>
    %39 = vector.multi_reduction <add>, %37, %cst_12 [2] : vector<2x512x128xf32> to vector<2x512xf32>
    %40 = arith.addf %38, %39 : vector<2x512xf32>
    %c0_13 = arith.constant 0 : index
    %c0_14 = arith.constant 0 : index
    %41 = vector.load %arg11[%c0_13, %c0_14] : memref<2x512xf32, #tpu.memory_space<vmem>>, vector<2x512xf32>
    tpu.vector_store %arg11[%c0_13, %c0_14], %40 {strides = array<i32>} : memref<2x512xf32, #tpu.memory_space<vmem>>, vector<2x512xf32>,
    %c1_i32 = arith.constant 1 : i32
    %42 = arith.cmpi eq, %arg1, %c1_i32 : i32
    %43 = arith.extui %42 : i1 to i32
    %c0_i32_15 = arith.constant 0 : i32
    %44 = arith.cmpi ne, %43, %c0_i32_15 : i32
    scf.if %44 {
      %c0_19 = arith.constant 0 : index
      %c0_20 = arith.constant 0 : index
      %50 = vector.load %arg11[%c0_19, %c0_20] : memref<2x512xf32, #tpu.memory_space<vmem>>, vector<2x512xf32>
      %cst_21 = arith.constant 3.906250e-03 : f32
      %51 = vector.broadcast %cst_21 : f32 to vector<2x512xf32>
      %52 = arith.mulf %50, %51 : vector<2x512xf32>
      %53 = arith.truncf %52 : vector<2x512xf32> to vector<2x512xbf16>
      %c0_22 = arith.constant 0 : index
      %c0_23 = arith.constant 0 : index
      %c0_24 = arith.constant 0 : index
      %54 = vector.load %arg4[%c0_22, %c0_23, %c0_24] : memref<1x512x128xbf16, #tpu.memory_space<vmem>>, vector<1x512x128xbf16>
      %55 = vector.shape_cast %54 : vector<1x512x128xbf16> to vector<512x128xbf16>
      %cst_25 = arith.constant dense<0.000000e+00> : vector<2x128xf32>
      %56 = tpu.matmul %53, %55, %cst_25 {dimension_numbers = #tpu.dot_dimension_numbers<[1], [0], [0], [1], [0, 0, 1, 1], [], []>} : vector<2x512xbf16>, vector<512x128xbf16>, vector<2x128xf32> -> vector<2x128xf32>
      %c0_26 = arith.constant 0 : index
      %c0_27 = arith.constant 0 : index
      %c0_28 = arith.constant 0 : index
      %57 = vector.load %arg5[%c0_26, %c0_27, %c0_28] : memref<1x1x128xf32, #tpu.memory_space<vmem>>, vector<1x1x128xf32>
      %58 = vector.shape_cast %57 : vector<1x1x128xf32> to vector<1x128xf32>
      %59 = vector.broadcast %58 : vector<1x128xf32> to vector<2x128xf32>
      %60 = arith.addf %56, %59 : vector<2x128xf32>
      %61 = arith.truncf %60 : vector<2x128xf32> to vector<2x128xbf16>
      %c0_29 = arith.constant 0 : index
      %c0_30 = arith.constant 0 : index
      %c0_31 = arith.constant 0 : index
      %62 = vector.load %arg6[%c0_29, %c0_30, %c0_31] : memref<1x128x256xbf16, #tpu.memory_space<vmem>>, vector<1x128x256xbf16>
      %63 = vector.shape_cast %62 : vector<1x128x256xbf16> to vector<128x256xbf16>
      %cst_32 = arith.constant dense<0.000000e+00> : vector<2x256xf32>
      %64 = tpu.matmul %61, %63, %cst_32 {dimension_numbers = #tpu.dot_dimension_numbers<[1], [0], [0], [1], [0, 0, 1, 1], [], []>} : vector<2x128xbf16>, vector<128x256xbf16>, vector<2x256xf32> -> vector<2x256xf32>
      %65 = vector.extract_strided_slice %64 {offsets = [0, 0], sizes = [2, 128], strides = [1, 1]} : vector<2x256xf32> to vector<2x128xf32>
      %c0_33 = arith.constant 0 : index
      %c0_34 = arith.constant 0 : index
      %c0_35 = arith.constant 0 : index
      %66 = vector.load %arg7[%c0_33, %c0_34, %c0_35] : memref<1x1x128xf32, #tpu.memory_space<vmem>>, vector<1x1x128xf32>
      %67 = vector.shape_cast %66 : vector<1x1x128xf32> to vector<1x128xf32>
      %68 = vector.broadcast %67 : vector<1x128xf32> to vector<2x128xf32>
      %69 = arith.addf %65, %68 : vector<2x128xf32>
      %cst_36 = arith.constant dense<0xFF800000> : vector<2xf32>
      %70 = vector.multi_reduction <maximumf>, %69, %cst_36 [1] : vector<2x128xf32> to vector<2xf32>
      %71 = vector.shape_cast %70 : vector<2xf32> to vector<2x1xf32>
      %72 = vector.broadcast %71 : vector<2x1xf32> to vector<2x128xf32>
      %73 = arith.subf %69, %72 : vector<2x128xf32>
      %74 = math.exp %73 : vector<2x128xf32>
      %cst_37 = arith.constant dense<0.000000e+00> : vector<2xf32>
      %75 = vector.multi_reduction <add>, %74, %cst_37 [1] : vector<2x128xf32> to vector<2xf32>
      %76 = vector.shape_cast %75 : vector<2xf32> to vector<2x1xf32>
      %77 = vector.broadcast %76 : vector<2x1xf32> to vector<2x128xf32>
      %78 = arith.divf %74, %77 : vector<2x128xf32>
      %cst_38 = arith.constant 1.000000e-07 : f32
      %cst_39 = arith.constant 0.99999988 : f32
      %79 = vector.broadcast %cst_38 : f32 to vector<2x128xf32>
      %80 = arith.maximumf %79, %78 : vector<2x128xf32>
      %81 = vector.broadcast %cst_39 : f32 to vector<2x128xf32>
      %82 = arith.minimumf %81, %80 : vector<2x128xf32>
      %c0_40 = arith.constant 0 : index
      %c0_41 = arith.constant 0 : index
      %c0_42 = arith.constant 0 : index
      %83 = vector.load %arg9[%c0_40, %c0_41, %c0_42] : memref<1x2x128xf32, #tpu.memory_space<vmem>>, vector<1x2x128xf32>
      %84 = vector.shape_cast %83 : vector<1x2x128xf32> to vector<2x128xf32>
      %85 = vector.shape_cast %82 : vector<2x128xf32> to vector<1x2x128xf32>
      tpu.vector_store %arg9[%c0_40, %c0_41, %c0_42], %85 {strides = array<i32>} : memref<1x2x128xf32, #tpu.memory_space<vmem>>, vector<1x2x128xf32>,
      %c0_43 = arith.constant 0 : index
      %c0_44 = arith.constant 0 : index
      %86 = vector.load %arg10[%c0_43, %c0_44] : memref<2x128xf32, #tpu.memory_space<vmem>>, vector<2x128xf32>
      %87 = vector.extract_strided_slice %64 {offsets = [0, 128], sizes = [2, 128], strides = [1, 1]} : vector<2x256xf32> to vector<2x128xf32>
      %88 = arith.addf %86, %87 : vector<2x128xf32>
      %c0_45 = arith.constant 0 : index
      %c0_46 = arith.constant 0 : index
      %89 = vector.load %arg10[%c0_45, %c0_46] : memref<2x128xf32, #tpu.memory_space<vmem>>, vector<2x128xf32>
      tpu.vector_store %arg10[%c0_45, %c0_46], %88 {strides = array<i32>} : memref<2x128xf32, #tpu.memory_space<vmem>>, vector<2x128xf32>,
    } else {
    }
    %c1_i32_16 = arith.constant 1 : i32
    %45 = arith.cmpi eq, %arg0, %c1_i32_16 : i32
    %c1_i32_17 = arith.constant 1 : i32
    %46 = arith.cmpi eq, %arg1, %c1_i32_17 : i32
    %47 = arith.andi %45, %46 : i1
    %48 = arith.extui %47 : i1 to i32
    %c0_i32_18 = arith.constant 0 : i32
    %49 = arith.cmpi ne, %48, %c0_i32_18 : i32
    scf.if %49 {
      %c0_19 = arith.constant 0 : index
      %c0_20 = arith.constant 0 : index
      %50 = vector.load %arg10[%c0_19, %c0_20] : memref<2x128xf32, #tpu.memory_space<vmem>>, vector<2x128xf32>
      %c0_21 = arith.constant 0 : index
      %c0_22 = arith.constant 0 : index
      %51 = vector.load %arg8[%c0_21, %c0_22] : memref<1x128xf32, #tpu.memory_space<vmem>>, vector<1x128xf32>
      %52 = vector.broadcast %51 : vector<1x128xf32> to vector<2x128xf32>
      %53 = arith.addf %50, %52 : vector<2x128xf32>
      %cst_23 = arith.constant dense<0xFF800000> : vector<2xf32>
      %54 = vector.multi_reduction <maximumf>, %53, %cst_23 [1] : vector<2x128xf32> to vector<2xf32>
      %55 = vector.shape_cast %54 : vector<2xf32> to vector<2x1xf32>
      %56 = vector.broadcast %55 : vector<2x1xf32> to vector<2x128xf32>
      %57 = arith.subf %53, %56 : vector<2x128xf32>
      %58 = math.exp %57 : vector<2x128xf32>
      %cst_24 = arith.constant dense<0.000000e+00> : vector<2xf32>
      %59 = vector.multi_reduction <add>, %58, %cst_24 [1] : vector<2x128xf32> to vector<2xf32>
      %60 = vector.shape_cast %59 : vector<2xf32> to vector<2x1xf32>
      %61 = vector.broadcast %60 : vector<2x1xf32> to vector<2x128xf32>
      %62 = arith.divf %58, %61 : vector<2x128xf32>
      %cst_25 = arith.constant 1.000000e-07 : f32
      %cst_26 = arith.constant 0.99999988 : f32
      %63 = vector.broadcast %cst_25 : f32 to vector<2x128xf32>
      %64 = arith.maximumf %63, %62 : vector<2x128xf32>
      %65 = vector.broadcast %cst_26 : f32 to vector<2x128xf32>
      %66 = arith.minimumf %65, %64 : vector<2x128xf32>
      %c0_27 = arith.constant 0 : index
      %c0_28 = arith.constant 0 : index
      %67 = vector.load %arg10[%c0_27, %c0_28] : memref<2x128xf32, #tpu.memory_space<vmem>>, vector<2x128xf32>
      tpu.vector_store %arg10[%c0_27, %c0_28], %66 {strides = array<i32>} : memref<2x128xf32, #tpu.memory_space<vmem>>, vector<2x128xf32>,
    } else {
    }
    return
  }
  func.func @transform_0(%arg0: i32, %arg1: i32) -> (i32, i32, i32, i32) {
    %c0_i32 = arith.constant 0 : i32
    %c0_i32_0 = arith.constant 0 : i32
    %c0_i32_1 = arith.constant 0 : i32
    return %arg0, %c0_i32, %c0_i32_0, %arg1 : i32, i32, i32, i32
  }
  func.func @transform_1(%arg0: i32, %arg1: i32) -> (i32, i32, i32) {
    %c0_i32 = arith.constant 0 : i32
    %c0_i32_0 = arith.constant 0 : i32
    %c0_i32_1 = arith.constant 0 : i32
    return %arg0, %c0_i32, %c0_i32_0 : i32, i32, i32
  }
  func.func @transform_2(%arg0: i32, %arg1: i32) -> (i32, i32, i32) {
    %c0_i32 = arith.constant 0 : i32
    %c0_i32_0 = arith.constant 0 : i32
    %c0_i32_1 = arith.constant 0 : i32
    return %arg0, %c0_i32, %c0_i32_0 : i32, i32, i32
  }
  func.func @transform_3(%arg0: i32, %arg1: i32) -> (i32, i32, i32) {
    %c0_i32 = arith.constant 0 : i32
    %c0_i32_0 = arith.constant 0 : i32
    %c0_i32_1 = arith.constant 0 : i32
    return %arg0, %c0_i32, %c0_i32_0 : i32, i32, i32
  }
  func.func @transform_4(%arg0: i32, %arg1: i32) -> (i32, i32, i32) {
    %c0_i32 = arith.constant 0 : i32
    %c0_i32_0 = arith.constant 0 : i32
    %c0_i32_1 = arith.constant 0 : i32
    return %arg0, %c0_i32, %c0_i32_0 : i32, i32, i32
  }
  func.func @transform_5(%arg0: i32, %arg1: i32) -> (i32, i32, i32) {
    %c0_i32 = arith.constant 0 : i32
    %c0_i32_0 = arith.constant 0 : i32
    %c0_i32_1 = arith.constant 0 : i32
    return %arg0, %c0_i32, %c0_i32_0 : i32, i32, i32
  }
  func.func @transform_6(%arg0: i32, %arg1: i32) -> (i32, i32) {
    %c0_i32 = arith.constant 0 : i32
    %c0_i32_0 = arith.constant 0 : i32
    %c0_i32_1 = arith.constant 0 : i32
    return %c0_i32, %c0_i32_0 : i32, i32
  }
  func.func @transform_7(%arg0: i32, %arg1: i32) -> (i32, i32, i32) {
    %c0_i32 = arith.constant 0 : i32
    %c0_i32_0 = arith.constant 0 : i32
    %c0_i32_1 = arith.constant 0 : i32
    return %arg0, %c0_i32, %c0_i32_0 : i32, i32, i32
  }
  func.func @transform_8(%arg0: i32, %arg1: i32) -> (i32, i32) {
    %c0_i32 = arith.constant 0 : i32
    %c0_i32_0 = arith.constant 0 : i32
    %c0_i32_1 = arith.constant 0 : i32
    return %c0_i32, %c0_i32_0 : i32, i32
  }
}

</mosaic_0001>

<bundles_post_ra>
// kernel: tpu_custom_call.1
= control target key start
LH: loop header
LB: loop body
LE: loop exit
PB: predicated region body
PF: predicated region fallthrough
CT: control target
= control target key end

     0   :  { %s16445_s0 = inlined_call_operand.vmem [shape: f32[2,2,3,256], index: 0, kind: input, shape index: {}]   ;;  %s16446_s1 = inlined_call_operand.vmem [shape: f32[2,512,4], index: 1, kind: input, shape index: {}]   ;;  %s16447_s2 = inlined_call_operand.vmem [shape: bf16[2,512,128], index: 2, kind: input, shape index: {}]   ;;  %s16448_s3 = inlined_call_operand.vmem [shape: f32[2,1,128], index: 3, kind: input, shape index: {}]   ;;  %s16449_s4 = inlined_call_operand.vmem [shape: bf16[2,128,256], index: 4, kind: input, shape index: {}]   ;;  %s16450_s5 = inlined_call_operand.vmem [shape: f32[2,1,128], index: 5, kind: input, shape index: {}]   ;;  %s16451_s6 = inlined_call_operand.vmem [shape: f32[1,128], index: 6, kind: input, shape index: {}]   ;;  %s16452_s7 = inlined_call_operand.hbm [shape: f32[2,2,128], index: 7, kind: output, shape index: {0}]   ;;  %s16453_s8 = inlined_call_operand.hbm [shape: f32[2,128], index: 8, kind: output, shape index: {1}]  }
   0x1   :  { %16841 = sst [smem:[#allocation228_spill]] %s16445_s0 }
   0x2   :  { %16842 = sst [smem:[#allocation229_spill]] %s16453_s8 }
   0x3   :  { %14 = vsyncpa [#allocation5], 0 }
   0x4   :  { %16 = vsyncpa [#allocation5 + $0x1], 0 }
   0x5   :  { %17 = vsyncpa [#allocation7], 0  ;;  %s10992_s27 = smov 0   ;;  %s10994_s28 = smov 0  }
   0x6   :  { %s10996_s29 = smov 0   ;;  %s10998_s30 = smov 0  }
   0x7   :  { %s11000_s9 = smov 0   ;;  %s11002_s10 = smov 0  }
   0x8   :  { %s11004_s11 = smov 0   ;;  %s11006_s12 = smov 0  }
   0x9   :  { %s11008_s13 = smov 0   ;;  %s11010_s14 = smov 0  }
   0xa LB: > { %16843 = sst [smem:[#allocation10_spill]] %s10895_s27  ;;  %s10494_s15 = sadd.s32 4294967295, %s10931_s14   ;;  %s10931_s14 = sphi %s11010_s14, %s23_s14   ;;  %s10927_s13 = sphi %s11008_s13, %s18086_s13   ;;  %s10923_s12 = sphi %s11006_s12, %s18085_s12   ;;  %s10919_s11 = sphi %s11004_s11, %s18084_s11   ;;  %s10915_s10 = sphi %s11002_s10, %s18083_s10   ;;  %s10911_s9 = sphi %s11000_s9, %s18082_s9   ;;  %s10907_s30 = sphi %s10998_s30, %s18081_s30   ;;  %s10903_s29 = sphi %s10996_s29, %s18080_s29   ;;  %s10899_s28 = sphi %s10994_s28, %s18088_s28   ;;  %s10895_s27 = sphi %s10992_s27, %s18087_s27  }
   0xb   : > { %16844 = sst [smem:[#allocation11_spill]] %s10903_s29  ;;  %s10495_s16 = sadd.s32 4294967294, %s10931_s14  }
   0xc   : > { %16845 = sst [smem:[#allocation12_spill]] %s10911_s9  ;;  %s32_s17 = sadd.s32 1, %s10923_s12 }
   0xd   : > { %16846 = sst [smem:[#allocation13_spill]] %s10923_s12  ;;  %s35_s18 = sadd.s32 1, %s10927_s13 }
   0xe   : > { %16847 = sst [smem:[#allocation14_spill]] %s10927_s13  ;;  %p33_p0 = scmp.ge.s32.totalorder %s32_s17, 2 }
   0xf   : > { %16848 = sst [smem:[#allocation15_spill]] %s10931_s14  ;;  %s44_s19 = sadd.s32 1, %s10911_s9 }
  0x10   : > { %p51_p1 = scmp.ne.s32.totalorder %s10911_s9, %s10907_s30  ;;  %p52_p2 = scmp.eq.s32.totalorder %s10931_s14, 0 }
  0x11   : > { %s18090_s17 = smov (%p33_p0, %s32_s17), 0  ;;  %s18092_s18 = smov (!%p33_p0, %s35_s18), %s10927_s13 }
  0x12   : > { %16849 = sst [smem:[#allocation16_spill]] %s18090_s17  ;;  %s40_s20 = ssub.s32 %s10923_s12, %s18090_s17 }
  0x13   : > { %p11055_p3 = por %p52_p2, %p51_p1  ;;  %p37_p4 = scmp.ge.s32.totalorder %s18092_s18, 2 }
  0x14   : > { %s221_s22 = sadd.s32 1, %s10903_s29  ;;  %p231_p5 = scmp.ne.s32.totalorder %s10903_s29, %s10899_s28 }
  0x15   : > { %p11062_p6 = scmp.eq.s32.totalorder %s10494_s15, 3  ;;  %s18094_s18 = smov (%p37_p4, %s18092_s18), 0 }
  0x16   : > { %16853 = sst [smem:[#allocation18_spill]] %s18094_s18  ;;  %p237_p8 = scmp.ne.s32.totalorder %s10899_s28, %s10895_s27 }
  0x17   : > { %s16851_s23 = scalar_select %p11062_p6, 1, 0 }
  0x18   : > { %p11070_p7 = por %p11062_p6, %p231_p5  ;;  %s39_s25 = ssub.s32 %s10927_s13, %s18094_s18 }
  0x19   : > { %16852 = sst [smem:[#allocation17_spill]] %s16851_s23  ;;  %p238_p9 = scmp.eq.s32.totalorder %s10495_s16, 3 }
  0x1a   : > { %s41_s26 = sor.u32 %s40_s20, %s39_s25  ;;  %p219_p10 = scmp.eq.s32.totalorder %s39_s25, 0 }
  0x1b   : > { %p42_p11 = scmp.eq.s32.totalorder %s41_s26, 0  ;;  %p11078_p12 = por %p238_p9, %p237_p8 }
  0x1c   : > { %s11083_s17 = scalar_select %p219_p10, %s10903_s29, %s221_s22  }
  0x1d   : > { %s16855_s15 = scalar_select %p11078_p12, 1, 0 }
  0x1e   : > { %16857 = sst [smem:[#allocation20_spill]] %s11083_s17  ;;  %p10497_p13 = scmp.ge.s32.totalorder %s10931_s14, 4 }
  0x1f   : > { %16856 = sst [smem:[#allocation19_spill]] %s16855_s15 }
  0x20   : > { %s11086_s8 = scalar_select %p42_p11, %s10911_s9, %s44_s19  }
  0x21   : > { %278 = sbr.rel (%p10497_p13) target bundleno = 49 (0x31), region = 20 }
  0x22   : > { %16858 = sst [smem:[#allocation21_spill]] %s11086_s8 }
  0x26   : > { %281 = sbr.rel (!%p11055_p3) target bundleno = 49 (0x31), region = 24  ;;  %s283_s16 = sand.u32 (%p11055_p3), 1, %s10911_s9  }
  0x27   : > { %s10499_s20 = sshll.u32 (%p11055_p3), %s10927_s13, 2  ;;  %s10498_s25 = sshll.u32 (%p11055_p3), %s283_s16, 3 }
  0x28   : > { %s287_s26 = sadd.s32 (%p11055_p3), %s10923_s12, %s10499_s20  ;;  %s16859_s0 = sld [smem:[#allocation228_spill]] (%p11055_p3) }
  0x29   : > { %s10500_s18 = sshll.u32 (%p11055_p3), %s287_s26, 2  ;;  %s285_s19 = scalar_lea.vmem (%p11055_p3), [#allocation3], %s10498_s25 }
  0x2e   : > { %s289_s22 = scalar_lea.vmem %s16859_s0, %s10500_s18 }
  0x2f   : > { %v306_v0 = vld [vmem:[%s289_s22] sm:$0xf]  ;;  %v308_v1 = vld [vmem:[%s289_s22 + $0x8] sm:$0xf] }
  0x30   : > { %307 = vst [vmem:[%s285_s19] sm:$0xf] %v306_v0  ;;  %309 = vst [vmem:[%s285_s19 + $0x4] sm:$0xf] %v308_v1 }
  0x31 PF: > { %p10501_p0 = scmp.ge.s32.totalorder %s10931_s14, 1  ;;  %p372_p1 = scmp.lt.s32.totalorder %s10931_s14, 5 }
  0x33   : > { %p373_p2 = pnand %p10501_p0, %p372_p1 }
  0x35   : > { %376 = sbr.rel (%p373_p2) target bundleno = 2449 (0x991), region = 85 }
  0x3a   : > { %s379_s27 = sand.u32 1, %s10907_s30   ;;  %s16458_s18 = sand.u32 1, %s10899_s28  }
  0x3b   : > { %s11101_s21 = sshll.u32 %s379_s27, 3  ;;  %s11105_s15 = sshll.u32 %s16458_s18, 1 }
  0x3c   : > { %p433_p3 = scmp.lt.s32.totalorder %s10919_s11, 1  ;;  %p455_p4 = scmp.eq.s32.totalorder %s10919_s11, 0 }
  0x3d   : > { %p456_p5 = scmp.eq.s32.totalorder %s10915_s10, 0  ;;  %s381_s25 = scalar_lea.vmem [#allocation3], %s11101_s21 }
  0x3e   : > { %s11111_s16 = scalar_select %p433_p3, %s10919_s11, 1 }
  0x3f   : > { %p457_p8 = pnand %p456_p5, %p455_p4  ;;  %s430_s26 = scalar_lea.vmem [#allocation4], %s11105_s15 }
  0x40   : > { %s10569_s30 = sshll.u32 %s11111_s16, 9  ;;  %s10570_s20 = sshll.u32 %s11111_s16, 8 }
  0x41   : > { %s11118_s22 = scalar_lea.vmem %s16446_s1, %s10569_s30  ;;  %s11123_s18 = scalar_lea.vmem %s16447_s2, %s10570_s20 }
  0x42   : > { %s445_s12 = scalar_lea.vmem %s16448_s3, %s11111_s16  ;;  %s10571_s8 = sshll.u32 %s11111_s16, 7 }
  0x43   : > { %s11133_s29 = scalar_lea.vmem %s16449_s4, %s10571_s8  ;;  %s453_s30 = scalar_lea.vmem %s16450_s5, %s11111_s16 }
  0x44   : > { %460 = sbr.rel (%p457_p8) target bundleno = 75 (0x4b), region = 93 }
  0x49   : > { %v10933_v2 = vmov 0.0  }
  0x4a   : > { %461 = vst [vmem:[#allocation6] sm:$0x3] %v10933_v2 }
  0x4b PF: > { %p10510_p9 = scmp.ne.s32.totalorder %s10915_s10, 0 }
  0x4d   : > { %464 = sbr.rel (%p10510_p9) target bundleno = 84 (0x54), region = 97 }
  0x52   : > { %v10934_v3 = vmov 0.0  }
  0x53   : > { %465 = vst [vmem:[#allocation2] sm:$0xff] %v10934_v3 }
  0x54 PF: > { %v11143_v4 = vld [vmem:[%s11118_s22 + $0x10] sm:$0xff]  ;;  %v11146_v5 = vld [vmem:[%s11118_s22] sm:$0xff]  ;;  %v10935_v6 = vmov 3   ;;  %v16467_v7 = vmov 0   ;;  %v11153_v8 = vld [vmem:[%s11118_s22 + $0x18] sm:$0xff]  ;;  %v16469_v44 = vmov 1  }
  0x55   : > { %10723 = vset.pattern.permute.xlu0 %v10935_v6  ;;  %10722 = vset.pattern.permute.xlu1 %v16467_v7  ;;  %v11158_v9 = vld [vmem:[%s11118_s22 + $0x28] sm:$0xff]  ;;  %v11163_v10 = vld [vmem:[%s11118_s22 + $0x38] sm:$0xff]  ;;  %v11323_v45 = vld [vmem:[%s11118_s22 + $0x20] sm:$0xff]  ;;  %vm9080_vm0 = vcmask 130112   ;;  %vm9087_vm1 = vcmask 195712   ;;  %vm9094_vm2 = vcmask 261312  }
  0x56   : > { %552 = vperm.xlu1 %10722, %v11143_v4   ;;  %989 = vperm.xlu0 %10723, %v11146_v5   ;;  %v11168_v11 = vld [vmem:[%s11118_s22 + $0x48] sm:$0xff]  ;;  %v11173_v12 = vld [vmem:[%s11118_s22 + $0x58] sm:$0xff]  ;;  %v11332_v48 = vld [vmem:[%s11118_s22 + $0x30] sm:$0xff]  ;;  %vm9101_vm3 = vcmask 326912   ;;  %vm9108_vm4 = vcmask 392512   ;;  %vm9115_vm5 = vcmask 458112  }
  0x57   : > { %v11178_v13 = vld [vmem:[%s11118_s22 + $0x68] sm:$0xff]  ;;  %v11183_v14 = vld [vmem:[%s11118_s22 + $0x78] sm:$0xff]  ;;  %v11341_v51 = vld [vmem:[%s11118_s22 + $0x40] sm:$0xff]  ;;  %vm9122_vm6 = vcmask 523712   ;;  %vm9129_vm7 = vcmask 589312   ;;  %vm9136_vm8 = vcmask 654912  }
  0x58   : > { %v11188_v15 = vld [vmem:[%s11118_s22 + $0x88] sm:$0xff]  ;;  %v11193_v16 = vld [vmem:[%s11118_s22 + $0x98] sm:$0xff]  ;;  %v11350_v54 = vld [vmem:[%s11118_s22 + $0x50] sm:$0xff]  ;;  %vm9143_vm9 = vcmask 720512   ;;  %vm9150_vm10 = vcmask 786112   ;;  %vm9157_vm11 = vcmask 851712  }
  0x59   : > { %v11198_v17 = vld [vmem:[%s11118_s22 + $0xa8] sm:$0xff]  ;;  %v11203_v18 = vld [vmem:[%s11118_s22 + $0xb8] sm:$0xff]  ;;  %v11359_v57 = vld [vmem:[%s11118_s22 + $0x60] sm:$0xff]  ;;  %vm9164_vm12 = vcmask 917312   ;;  %vm9171_vm13 = vcmask 982912   ;;  %vm9178_vm14 = vcmask 1048512  }
  0x5a   : > { %557 = vperm.xlu1 %10722, %v11153_v8   ;;  %1001 = vperm.xlu0 %10723, %v11153_v8   ;;  %v11208_v19 = vld [vmem:[%s11118_s22 + $0xc8] sm:$0xff]  ;;  %v11213_v20 = vld [vmem:[%s11118_s22 + $0xd8] sm:$0xff]  ;;  %v11368_v60 = vld [vmem:[%s11118_s22 + $0x70] sm:$0xff]  ;;  %p9758_p10 = scmp.eq.s32.totalorder %s10915_s10, 1  ;;  %vm9733_vm15 = vcmask 1041409   ;;  %p10511_p11 = scmp.ne.s32.totalorder %s10915_s10, 1 }
  0x5b   : > { %v11218_v21 = vld [vmem:[%s11118_s22 + $0xe8] sm:$0xff]  ;;  %v11223_v22 = vld [vmem:[%s11118_s22 + $0xf8] sm:$0xff]  ;;  %v11377_v63 = vld [vmem:[%s11118_s22 + $0x80] sm:$0xff] }
  0x5c   : > { %v11228_v23 = vld [vmem:[%s11118_s22 + $0x108] sm:$0xff]  ;;  %v11233_v24 = vld [vmem:[%s11118_s22 + $0x118] sm:$0xff]  ;;  %v11386_v2 = vld [vmem:[%s11118_s22 + $0x90] sm:$0xff] }
  0x5d   : > { %v11238_v25 = vld [vmem:[%s11118_s22 + $0x128] sm:$0xff]  ;;  %v11243_v26 = vld [vmem:[%s11118_s22 + $0x138] sm:$0xff]  ;;  %v11395_v7 = vld [vmem:[%s11118_s22 + $0xa0] sm:$0xff] }
  0x5e   : > { %567 = vperm.xlu1 %10722, %v11158_v9   ;;  %1009 = vperm.xlu0 %10723, %v11158_v9   ;;  %v11248_v27 = vld [vmem:[%s11118_s22 + $0x148] sm:$0xff]  ;;  %v11253_v28 = vld [vmem:[%s11118_s22 + $0x158] sm:$0xff] }
  0x5f   : > { %v11258_v29 = vld [vmem:[%s11118_s22 + $0x168] sm:$0xff]  ;;  %v11263_v30 = vld [vmem:[%s11118_s22 + $0x178] sm:$0xff] }
  0x60   : > { %v11268_v31 = vld [vmem:[%s11118_s22 + $0x188] sm:$0xff]  ;;  %v11273_v32 = vld [vmem:[%s11118_s22 + $0x198] sm:$0xff] }
  0x61   : > { %v11278_v33 = vld [vmem:[%s11118_s22 + $0x1a8] sm:$0xff]  ;;  %v11283_v34 = vld [vmem:[%s11118_s22 + $0x1b8] sm:$0xff] }
  0x62   : > { %577 = vperm.xlu1 %10722, %v11163_v10   ;;  %1017 = vperm.xlu0 %10723, %v11163_v10   ;;  %v11288_v35 = vld [vmem:[%s11118_s22 + $0x1c8] sm:$0xff]  ;;  %v11293_v36 = vld [vmem:[%s11118_s22 + $0x1d8] sm:$0xff] }
  0x63   : > { %v11298_v37 = vld [vmem:[%s11118_s22 + $0x1e8] sm:$0xff]  ;;  %v11303_v38 = vld [vmem:[%s11118_s22 + $0x1f8] sm:$0xff] }
  0x64   : > { %v11312_v41 = vld [vmem:[%s11118_s22 + $0x8] sm:$0xff] }
  0x66   : > { %587 = vperm.xlu1 %10722, %v11168_v11   ;;  %1025 = vperm.xlu0 %10723, %v11168_v11  }
  0x6a   : > { %597 = vperm.xlu1 %10722, %v11173_v12   ;;  %1033 = vperm.xlu0 %10723, %v11173_v12  }
  0x6e   : > { %607 = vperm.xlu1 %10722, %v11178_v13   ;;  %1041 = vperm.xlu0 %10723, %v11178_v13  }
  0x72   : > { %617 = vperm.xlu1 %10722, %v11183_v14   ;;  %1049 = vperm.xlu0 %10723, %v11183_v14  }
  0x76   : > { %627 = vperm.xlu1 %10722, %v11188_v15   ;;  %1057 = vperm.xlu0 %10723, %v11188_v15  }
  0x7a   : > { %637 = vperm.xlu1 %10722, %v11193_v16   ;;  %1065 = vperm.xlu0 %10723, %v11193_v16  }
  0x7e   : > { %647 = vperm.xlu1 %10722, %v11198_v17   ;;  %1073 = vperm.xlu0 %10723, %v11198_v17  }
  0x82   : > { %657 = vperm.xlu1 %10722, %v11203_v18   ;;  %1081 = vperm.xlu0 %10723, %v11203_v18  }
  0x86   : > { %667 = vperm.xlu1 %10722, %v11208_v19   ;;  %1089 = vperm.xlu0 %10723, %v11208_v19  }
  0x8a   : > { %677 = vperm.xlu1 %10722, %v11213_v20   ;;  %1097 = vperm.xlu0 %10723, %v11213_v20  }
  0x8e   : > { %687 = vperm.xlu1 %10722, %v11218_v21   ;;  %1105 = vperm.xlu0 %10723, %v11218_v21  }
  0x92   : > { %697 = vperm.xlu1 %10722, %v11223_v22   ;;  %1113 = vperm.xlu0 %10723, %v11223_v22  }
  0x96   : > { %707 = vperm.xlu1 %10722, %v11228_v23   ;;  %1121 = vperm.xlu0 %10723, %v11228_v23  }
  0x9a   : > { %717 = vperm.xlu1 %10722, %v11233_v24   ;;  %1129 = vperm.xlu0 %10723, %v11233_v24  }
  0x9e   : > { %727 = vperm.xlu1 %10722, %v11238_v25   ;;  %1137 = vperm.xlu0 %10723, %v11238_v25  }
  0xa2   : > { %737 = vperm.xlu1 %10722, %v11243_v26   ;;  %1145 = vperm.xlu0 %10723, %v11243_v26  }
  0xa6   : > { %747 = vperm.xlu1 %10722, %v11248_v27   ;;  %1153 = vperm.xlu0 %10723, %v11248_v27  }
  0xaa   : > { %757 = vperm.xlu1 %10722, %v11253_v28   ;;  %1161 = vperm.xlu0 %10723, %v11253_v28  }
  0xae   : > { %767 = vperm.xlu1 %10722, %v11258_v29   ;;  %1169 = vperm.xlu0 %10723, %v11258_v29  }
  0xb2   : > { %777 = vperm.xlu1 %10722, %v11263_v30   ;;  %1177 = vperm.xlu0 %10723, %v11263_v30  }
  0xb6   : > { %787 = vperm.xlu1 %10722, %v11268_v31   ;;  %1185 = vperm.xlu0 %10723, %v11268_v31  }
  0xba   : > { %797 = vperm.xlu1 %10722, %v11273_v32   ;;  %1193 = vperm.xlu0 %10723, %v11273_v32  }
  0xbe   : > { %807 = vperm.xlu1 %10722, %v11278_v33   ;;  %1201 = vperm.xlu0 %10723, %v11278_v33  }
  0xc2   : > { %817 = vperm.xlu1 %10722, %v11283_v34   ;;  %1209 = vperm.xlu0 %10723, %v11283_v34  }
  0xc6   : > { %827 = vperm.xlu1 %10722, %v11288_v35   ;;  %1217 = vperm.xlu0 %10723, %v11288_v35  }
  0xca   : > { %837 = vperm.xlu1 %10722, %v11293_v36   ;;  %1225 = vperm.xlu0 %10723, %v11293_v36  }
  0xce   : > { %847 = vperm.xlu1 %10722, %v11298_v37   ;;  %1233 = vperm.xlu0 %10723, %v11298_v37  }
  0xd1   : > { %v11305_v39 = vpop.permute.xlu1 %552  ;;  %v11307_v40 = vpop.permute.xlu0 %989 }
  0xd2   : > { %16860 = vst [vmem:[#allocation22_spill] sm:$0xff] %v11305_v39  ;;  %16861 = vst [vmem:[#allocation23_spill] sm:$0xff] %v11307_v40  ;;  %857 = vperm.xlu1 %10722, %v11303_v38   ;;  %1241 = vperm.xlu0 %10723, %v11303_v38   ;;  %v11530_v39 = vld [vmem:[%s11118_s22 + $0x190] sm:$0xff] }
  0xd3   : > { %16912 = vst [vmem:[#allocation74_spill] sm:$0xff] %v11530_v39 }
  0xd5   : > { %v11314_v42 = vpop.permute.xlu1 %557  ;;  %v11316_v43 = vpop.permute.xlu0 %1001 }
  0xd6   : > { %16862 = vst [vmem:[#allocation24_spill] sm:$0xff] %v11314_v42  ;;  %16863 = vst [vmem:[#allocation25_spill] sm:$0xff] %v11316_v43  ;;  %10724 = vset.pattern.permute.xlu1 %v10935_v6  ;;  %10726 = vset.pattern.permute.xlu0 %v16469_v44  ;;  %v11503_v43 = vld [vmem:[%s11118_s22 + $0x160] sm:$0xff]  ;;  %v11548_v42 = vld [vmem:[%s11118_s22 + $0x1b0] sm:$0xff] }
  0xd7   : > { %993 = vperm.xlu1 %10724, %v11312_v41   ;;  %1385 = vperm.xlu0 %10726, %v11312_v41   ;;  %16918 = vst [vmem:[#allocation80_spill] sm:$0xff] %v11548_v42 }
  0xd9   : > { %v11325_v46 = vpop.permute.xlu1 %567  ;;  %v11327_v47 = vpop.permute.xlu0 %1009 }
  0xda   : > { %16864 = vst [vmem:[#allocation26_spill] sm:$0xff] %v11325_v46  ;;  %16865 = vst [vmem:[#allocation27_spill] sm:$0xff] %v11327_v47  ;;  %v11485_v47 = vld [vmem:[%s11118_s22 + $0x140] sm:$0xff] }
  0xdb   : > { %997 = vperm.xlu1 %10724, %v11143_v4   ;;  %1397 = vperm.xlu0 %10726, %v11323_v45   ;;  %v11539_v46 = vld [vmem:[%s11118_s22 + $0x1a0] sm:$0xff] }
  0xdc   : > { %16915 = vst [vmem:[#allocation77_spill] sm:$0xff] %v11539_v46 }
  0xdd   : > { %v11334_v49 = vpop.permute.xlu1 %577  ;;  %v11336_v50 = vpop.permute.xlu0 %1017 }
  0xde   : > { %16866 = vst [vmem:[#allocation28_spill] sm:$0xff] %v11334_v49  ;;  %16867 = vst [vmem:[#allocation29_spill] sm:$0xff] %v11336_v50  ;;  %v11467_v50 = vld [vmem:[%s11118_s22 + $0x120] sm:$0xff] }
  0xdf   : > { %1005 = vperm.xlu1 %10724, %v11323_v45   ;;  %1405 = vperm.xlu0 %10726, %v11332_v48   ;;  %v11521_v49 = vld [vmem:[%s11118_s22 + $0x180] sm:$0xff] }
  0xe0   : > { %16909 = vst [vmem:[#allocation71_spill] sm:$0xff] %v11521_v49 }
  0xe1   : > { %v11343_v52 = vpop.permute.xlu1 %587  ;;  %v11345_v53 = vpop.permute.xlu0 %1025 }
  0xe2   : > { %16868 = vst [vmem:[#allocation30_spill] sm:$0xff] %v11343_v52  ;;  %16869 = vst [vmem:[#allocation31_spill] sm:$0xff] %v11345_v53  ;;  %v11449_v53 = vld [vmem:[%s11118_s22 + $0x100] sm:$0xff]  ;;  %v11512_v52 = vld [vmem:[%s11118_s22 + $0x170] sm:$0xff] }
  0xe3   : > { %1013 = vperm.xlu1 %10724, %v11332_v48   ;;  %1413 = vperm.xlu0 %10726, %v11341_v51   ;;  %16906 = vst [vmem:[#allocation68_spill] sm:$0xff] %v11512_v52 }
  0xe5   : > { %v11352_v55 = vpop.permute.xlu1 %597  ;;  %v11354_v56 = vpop.permute.xlu0 %1033 }
  0xe6   : > { %16870 = vst [vmem:[#allocation32_spill] sm:$0xff] %v11352_v55  ;;  %16871 = vst [vmem:[#allocation33_spill] sm:$0xff] %v11354_v56  ;;  %v11431_v56 = vld [vmem:[%s11118_s22 + $0xe0] sm:$0xff]  ;;  %v11494_v55 = vld [vmem:[%s11118_s22 + $0x150] sm:$0xff] }
  0xe7   : > { %1021 = vperm.xlu1 %10724, %v11341_v51   ;;  %1421 = vperm.xlu0 %10726, %v11350_v54  }
  0xe9   : > { %v11361_v58 = vpop.permute.xlu1 %607  ;;  %v11363_v59 = vpop.permute.xlu0 %1041 }
  0xea   : > { %16872 = vst [vmem:[#allocation34_spill] sm:$0xff] %v11361_v58  ;;  %16873 = vst [vmem:[#allocation35_spill] sm:$0xff] %v11363_v59  ;;  %v11413_v59 = vld [vmem:[%s11118_s22 + $0xc0] sm:$0xff]  ;;  %v11476_v58 = vld [vmem:[%s11118_s22 + $0x130] sm:$0xff] }
  0xeb   : > { %1029 = vperm.xlu1 %10724, %v11350_v54   ;;  %1429 = vperm.xlu0 %10726, %v11359_v57  }
  0xed   : > { %v11370_v61 = vpop.permute.xlu1 %617  ;;  %v11372_v62 = vpop.permute.xlu0 %1049 }
  0xee   : > { %16874 = vst [vmem:[#allocation36_spill] sm:$0xff] %v11370_v61  ;;  %16875 = vst [vmem:[#allocation37_spill] sm:$0xff] %v11372_v62  ;;  %v11458_v61 = vld [vmem:[%s11118_s22 + $0x110] sm:$0xff] }
  0xef   : > { %1037 = vperm.xlu1 %10724, %v11359_v57   ;;  %1437 = vperm.xlu0 %10726, %v11368_v60  }
  0xf1   : > { %v11379_v0 = vpop.permute.xlu1 %627  ;;  %v11381_v1 = vpop.permute.xlu0 %1057 }
  0xf2   : > { %16876 = vst [vmem:[#allocation38_spill] sm:$0xff] %v11379_v0  ;;  %16877 = vst [vmem:[#allocation39_spill] sm:$0xff] %v11381_v1  ;;  %v11404_v1 = vld [vmem:[%s11118_s22 + $0xb0] sm:$0xff] }
  0xf3   : > { %1045 = vperm.xlu1 %10724, %v11368_v60   ;;  %1445 = vperm.xlu0 %10726, %v11377_v63   ;;  %v11440_v0 = vld [vmem:[%s11118_s22 + $0xf0] sm:$0xff] }
  0xf5   : > { %v11388_v3 = vpop.permute.xlu1 %637  ;;  %v11390_v6 = vpop.permute.xlu0 %1065 }
  0xf6   : > { %16878 = vst [vmem:[#allocation40_spill] sm:$0xff] %v11388_v3  ;;  %16879 = vst [vmem:[#allocation41_spill] sm:$0xff] %v11390_v6  ;;  %v11422_v3 = vld [vmem:[%s11118_s22 + $0xd0] sm:$0xff] }
  0xf7   : > { %1053 = vperm.xlu1 %10724, %v11377_v63   ;;  %1453 = vperm.xlu0 %10726, %v11386_v2  }
  0xf9   : > { %v11397_v44 = vpop.permute.xlu1 %647  ;;  %v11399_v40 = vpop.permute.xlu0 %1073 }
  0xfa   : > { %16880 = vst [vmem:[#allocation42_spill] sm:$0xff] %v11397_v44  ;;  %16881 = vst [vmem:[#allocation43_spill] sm:$0xff] %v11399_v40 }
  0xfb   : > { %1061 = vperm.xlu1 %10724, %v11386_v2   ;;  %1461 = vperm.xlu0 %10726, %v11395_v7  }
  0xfd   : > { %v11406_v62 = vpop.permute.xlu1 %657  ;;  %v11408_v6 = vpop.permute.xlu0 %1081 }
  0xfe   : > { %16882 = vst [vmem:[#allocation44_spill] sm:$0xff] %v11406_v62  ;;  %16883 = vst [vmem:[#allocation45_spill] sm:$0xff] %v11408_v6 }
  0xff   : > { %1069 = vperm.xlu1 %10724, %v11395_v7   ;;  %1469 = vperm.xlu0 %10726, %v11404_v1  }
 0x101   : > { %v11415_v44 = vpop.permute.xlu1 %667  ;;  %v11417_v40 = vpop.permute.xlu0 %1089 }
 0x102   : > { %16884 = vst [vmem:[#allocation46_spill] sm:$0xff] %v11415_v44  ;;  %16885 = vst [vmem:[#allocation47_spill] sm:$0xff] %v11417_v40 }
 0x103   : > { %1077 = vperm.xlu1 %10724, %v11404_v1   ;;  %1477 = vperm.xlu0 %10726, %v11413_v59  }
 0x105   : > { %v11424_v62 = vpop.permute.xlu1 %677  ;;  %v11426_v6 = vpop.permute.xlu0 %1097 }
 0x106   : > { %16886 = vst [vmem:[#allocation48_spill] sm:$0xff] %v11424_v62  ;;  %16887 = vst [vmem:[#allocation49_spill] sm:$0xff] %v11426_v6 }
 0x107   : > { %1085 = vperm.xlu1 %10724, %v11413_v59   ;;  %1485 = vperm.xlu0 %10726, %v11422_v3  }
 0x109   : > { %v11433_v44 = vpop.permute.xlu1 %687  ;;  %v11435_v40 = vpop.permute.xlu0 %1105 }
 0x10a   : > { %16888 = vst [vmem:[#allocation50_spill] sm:$0xff] %v11433_v44  ;;  %16889 = vst [vmem:[#allocation51_spill] sm:$0xff] %v11435_v40 }
 0x10b   : > { %1093 = vperm.xlu1 %10724, %v11422_v3   ;;  %1493 = vperm.xlu0 %10726, %v11431_v56  }
 0x10d   : > { %v11442_v62 = vpop.permute.xlu1 %697  ;;  %v11444_v6 = vpop.permute.xlu0 %1113 }
 0x10e   : > { %16890 = vst [vmem:[#allocation52_spill] sm:$0xff] %v11442_v62  ;;  %16891 = vst [vmem:[#allocation53_spill] sm:$0xff] %v11444_v6 }
 0x10f   : > { %1101 = vperm.xlu1 %10724, %v11431_v56   ;;  %1501 = vperm.xlu0 %10726, %v11440_v0  }
 0x111   : > { %v11451_v44 = vpop.permute.xlu1 %707  ;;  %v11453_v40 = vpop.permute.xlu0 %1121 }
 0x112   : > { %16892 = vst [vmem:[#allocation54_spill] sm:$0xff] %v11451_v44  ;;  %16893 = vst [vmem:[#allocation55_spill] sm:$0xff] %v11453_v40 }
 0x113   : > { %1109 = vperm.xlu1 %10724, %v11440_v0   ;;  %1509 = vperm.xlu0 %10726, %v11449_v53  }
 0x115   : > { %v11460_v62 = vpop.permute.xlu1 %717  ;;  %v11462_v6 = vpop.permute.xlu0 %1129 }
 0x116   : > { %16894 = vst [vmem:[#allocation56_spill] sm:$0xff] %v11460_v62  ;;  %16895 = vst [vmem:[#allocation57_spill] sm:$0xff] %v11462_v6 }
 0x117   : > { %1117 = vperm.xlu1 %10724, %v11449_v53   ;;  %1517 = vperm.xlu0 %10726, %v11458_v61  }
 0x119   : > { %v11469_v44 = vpop.permute.xlu1 %727  ;;  %v11471_v40 = vpop.permute.xlu0 %1137 }
 0x11a   : > { %16896 = vst [vmem:[#allocation58_spill] sm:$0xff] %v11469_v44  ;;  %16897 = vst [vmem:[#allocation59_spill] sm:$0xff] %v11471_v40 }
 0x11b   : > { %1125 = vperm.xlu1 %10724, %v11458_v61   ;;  %1525 = vperm.xlu0 %10726, %v11467_v50  }
 0x11d   : > { %v11478_v62 = vpop.permute.xlu1 %737  ;;  %v11480_v6 = vpop.permute.xlu0 %1145 }
 0x11e   : > { %16898 = vst [vmem:[#allocation60_spill] sm:$0xff] %v11478_v62  ;;  %16899 = vst [vmem:[#allocation61_spill] sm:$0xff] %v11480_v6 }
 0x11f   : > { %1133 = vperm.xlu1 %10724, %v11467_v50   ;;  %1533 = vperm.xlu0 %10726, %v11476_v58  }
 0x121   : > { %v11487_v44 = vpop.permute.xlu1 %747  ;;  %v11489_v40 = vpop.permute.xlu0 %1153 }
 0x122   : > { %16900 = vst [vmem:[#allocation62_spill] sm:$0xff] %v11487_v44  ;;  %16901 = vst [vmem:[#allocation63_spill] sm:$0xff] %v11489_v40 }
 0x123   : > { %1141 = vperm.xlu1 %10724, %v11476_v58   ;;  %1541 = vperm.xlu0 %10726, %v11485_v47  }
 0x125   : > { %v11496_v62 = vpop.permute.xlu1 %757  ;;  %v11498_v6 = vpop.permute.xlu0 %1161 }
 0x126   : > { %16902 = vst [vmem:[#allocation64_spill] sm:$0xff] %v11496_v62  ;;  %16903 = vst [vmem:[#allocation65_spill] sm:$0xff] %v11498_v6 }
 0x127   : > { %1149 = vperm.xlu1 %10724, %v11485_v47   ;;  %1549 = vperm.xlu0 %10726, %v11494_v55  }
 0x129   : > { %v11505_v44 = vpop.permute.xlu1 %767  ;;  %v11507_v40 = vpop.permute.xlu0 %1169 }
 0x12a   : > { %16904 = vst [vmem:[#allocation66_spill] sm:$0xff] %v11505_v44  ;;  %16905 = vst [vmem:[#allocation67_spill] sm:$0xff] %v11507_v40 }
 0x12b   : > { %1157 = vperm.xlu1 %10724, %v11494_v55   ;;  %1557 = vperm.xlu0 %10726, %v11503_v43  }
 0x12d   : > { %v11514_v62 = vpop.permute.xlu1 %777  ;;  %v11516_v6 = vpop.permute.xlu0 %1177 }
 0x12e   : > { %16907 = vst [vmem:[#allocation69_spill] sm:$0xff] %v11514_v62  ;;  %16908 = vst [vmem:[#allocation70_spill] sm:$0xff] %v11516_v6 }
 0x12f   : > { %1165 = vperm.xlu1 %10724, %v11503_v43   ;;  %1565 = vperm.xlu0 %10726, %v11512_v52  }
 0x131   : > { %v11523_v44 = vpop.permute.xlu1 %787  ;;  %v11525_v40 = vpop.permute.xlu0 %1185 }
 0x132   : > { %16910 = vst [vmem:[#allocation72_spill] sm:$0xff] %v11523_v44  ;;  %16911 = vst [vmem:[#allocation73_spill] sm:$0xff] %v11525_v40 }
 0x133   : > { %1173 = vperm.xlu1 %10724, %v11512_v52   ;;  %1573 = vperm.xlu0 %10726, %v11521_v49  }
 0x135   : > { %v11532_v62 = vpop.permute.xlu1 %797  ;;  %v11534_v6 = vpop.permute.xlu0 %1193 }
 0x136   : > { %16913 = vst [vmem:[#allocation75_spill] sm:$0xff] %v11532_v62  ;;  %16914 = vst [vmem:[#allocation76_spill] sm:$0xff] %v11534_v6 }
 0x137   : > { %1181 = vperm.xlu1 %10724, %v11521_v49   ;;  %1581 = vperm.xlu0 %10726, %v11530_v39   ;;  %v11557_v49 = vld [vmem:[%s11118_s22 + $0x1c0] sm:$0xff] }
 0x138   : > { %16921 = vst [vmem:[#allocation83_spill] sm:$0xff] %v11557_v49 }
 0x139   : > { %v11541_v44 = vpop.permute.xlu1 %807  ;;  %v11543_v40 = vpop.permute.xlu0 %1201 }
 0x13a   : > { %16916 = vst [vmem:[#allocation78_spill] sm:$0xff] %v11541_v44  ;;  %16917 = vst [vmem:[#allocation79_spill] sm:$0xff] %v11543_v40 }
 0x13b   : > { %1189 = vperm.xlu1 %10724, %v11530_v39   ;;  %1589 = vperm.xlu0 %10726, %v11539_v46   ;;  %v11566_v39 = vld [vmem:[%s11118_s22 + $0x1d0] sm:$0xff] }
 0x13d   : > { %v11550_v62 = vpop.permute.xlu1 %817  ;;  %v11552_v6 = vpop.permute.xlu0 %1209 }
 0x13e   : > { %16919 = vst [vmem:[#allocation81_spill] sm:$0xff] %v11550_v62  ;;  %16920 = vst [vmem:[#allocation82_spill] sm:$0xff] %v11552_v6 }
 0x13f   : > { %1197 = vperm.xlu1 %10724, %v11539_v46   ;;  %1597 = vperm.xlu0 %10726, %v11548_v42   ;;  %v11575_v46 = vld [vmem:[%s11118_s22 + $0x1e0] sm:$0xff] }
 0x141   : > { %v11559_v44 = vpop.permute.xlu1 %827  ;;  %v11561_v40 = vpop.permute.xlu0 %1217 }
 0x142   : > { %16922 = vst [vmem:[#allocation84_spill] sm:$0xff] %v11559_v44  ;;  %16923 = vst [vmem:[#allocation85_spill] sm:$0xff] %v11561_v40  ;;  %v11584_v40 = vld [vmem:[%s11118_s22 + $0x1f0] sm:$0xff] }
 0x143   : > { %1205 = vperm.xlu1 %10724, %v11548_v42   ;;  %1605 = vperm.xlu0 %10726, %v11557_v49   ;;  %16928 = vst [vmem:[#allocation90_spill] sm:$0xff] %v11584_v40 }
 0x145   : > { %v11568_v62 = vpop.permute.xlu1 %837  ;;  %v11570_v6 = vpop.permute.xlu0 %1225 }
 0x146   : > { %16924 = vst [vmem:[#allocation86_spill] sm:$0xff] %v11568_v62  ;;  %16925 = vst [vmem:[#allocation87_spill] sm:$0xff] %v11570_v6 }
 0x147   : > { %1213 = vperm.xlu1 %10724, %v11557_v49   ;;  %1613 = vperm.xlu0 %10726, %v11566_v39  }
 0x149   : > { %v11577_v52 = vpop.permute.xlu1 %847  ;;  %v11579_v44 = vpop.permute.xlu0 %1233 }
 0x14a   : > { %16926 = vst [vmem:[#allocation88_spill] sm:$0xff] %v11577_v52  ;;  %16927 = vst [vmem:[#allocation89_spill] sm:$0xff] %v11579_v44  ;;  %v16548_v44 = vmov 2  }
 0x14b   : > { %1221 = vperm.xlu1 %10724, %v11566_v39   ;;  %1621 = vperm.xlu0 %10726, %v11575_v46  }
 0x14d   : > { %v11586_v42 = vpop.permute.xlu1 %857  ;;  %v11588_v62 = vpop.permute.xlu0 %1241 }
 0x14e   : > { %16929 = vst [vmem:[#allocation91_spill] sm:$0xff] %v11586_v42  ;;  %16930 = vst [vmem:[#allocation92_spill] sm:$0xff] %v11588_v62  ;;  %v16935_v62 = vmov 1  }
 0x14f   : > { %1229 = vperm.xlu1 %10724, %v11575_v46   ;;  %1629 = vperm.xlu0 %10726, %v11584_v40  }
 0x152   : > { %v11592_v6 = vpop.permute.xlu1 %993  ;;  %v11594_v49 = vpop.permute.xlu0 %1385 }
 0x153   : > { %16931 = vst [vmem:[#allocation93_spill] sm:$0xff] %v11592_v6  ;;  %16932 = vst [vmem:[#allocation94_spill] sm:$0xff] %v11594_v49  ;;  %1237 = vperm.xlu1 %10724, %v11584_v40   ;;  %10727 = vset.pattern.permute.xlu0 %v16548_v44 }
 0x154   : > { %1901 = vperm.xlu0 %10727, %v11146_v5  }
 0x156   : > { %v11599_v52 = vpop.permute.xlu1 %997  ;;  %v11601_v42 = vpop.permute.xlu0 %1397 }
 0x157   : > { %16933 = vst [vmem:[#allocation95_spill] sm:$0xff] %v11599_v52  ;;  %16934 = vst [vmem:[#allocation96_spill] sm:$0xff] %v11601_v42  ;;  %10725 = vset.pattern.permute.xlu1 %v16935_v62 }
 0x158   : > { %1381 = vperm.xlu1 %10725, %v11146_v5   ;;  %1913 = vperm.xlu0 %10727, %v11153_v8  }
 0x15a   : > { %v11606_v6 = vpop.permute.xlu1 %1005  ;;  %v11608_v49 = vpop.permute.xlu0 %1405 }
 0x15b   : > { %16936 = vst [vmem:[#allocation97_spill] sm:$0xff] %v11606_v6  ;;  %16937 = vst [vmem:[#allocation98_spill] sm:$0xff] %v11608_v49 }
 0x15c   : > { %1389 = vperm.xlu1 %10725, %v11143_v4   ;;  %1921 = vperm.xlu0 %10727, %v11158_v9  }
 0x15e   : > { %v11612_v44 = vpop.permute.xlu1 %1013  ;;  %v11614_v40 = vpop.permute.xlu0 %1413 }
 0x15f   : > { %16938 = vst [vmem:[#allocation99_spill] sm:$0xff] %v11612_v44  ;;  %16939 = vst [vmem:[#allocation100_spill] sm:$0xff] %v11614_v40 }
 0x160   : > { %1393 = vperm.xlu1 %10725, %v11153_v8   ;;  %1929 = vperm.xlu0 %10727, %v11163_v10  }
 0x162   : > { %v11618_v62 = vpop.permute.xlu1 %1021  ;;  %v11620_v42 = vpop.permute.xlu0 %1421 }
 0x163   : > { %16940 = vst [vmem:[#allocation101_spill] sm:$0xff] %v11618_v62  ;;  %16941 = vst [vmem:[#allocation102_spill] sm:$0xff] %v11620_v42 }
 0x164   : > { %1401 = vperm.xlu1 %10725, %v11158_v9   ;;  %1937 = vperm.xlu0 %10727, %v11168_v11  }
 0x166   : > { %v11624_v49 = vpop.permute.xlu1 %1029  ;;  %v11626_v6 = vpop.permute.xlu0 %1429 }
 0x167   : > { %16942 = vst [vmem:[#allocation103_spill] sm:$0xff] %v11624_v49  ;;  %16943 = vst [vmem:[#allocation104_spill] sm:$0xff] %v11626_v6 }
 0x168   : > { %1409 = vperm.xlu1 %10725, %v11163_v10   ;;  %1945 = vperm.xlu0 %10727, %v11173_v12  }
 0x16a   : > { %v11630_v40 = vpop.permute.xlu1 %1037  ;;  %v11632_v8 = vpop.permute.xlu0 %1437 }
 0x16b   : > { %16944 = vst [vmem:[#allocation105_spill] sm:$0xff] %v11630_v40  ;;  %16945 = vst [vmem:[#allocation106_spill] sm:$0xff] %v11632_v8 }
 0x16c   : > { %1417 = vperm.xlu1 %10725, %v11168_v11   ;;  %1953 = vperm.xlu0 %10727, %v11178_v13  }
 0x16e   : > { %v11636_v42 = vpop.permute.xlu1 %1045  ;;  %v11638_v9 = vpop.permute.xlu0 %1445 }
 0x16f   : > { %16946 = vst [vmem:[#allocation107_spill] sm:$0xff] %v11636_v42  ;;  %16947 = vst [vmem:[#allocation108_spill] sm:$0xff] %v11638_v9 }
 0x170   : > { %1425 = vperm.xlu1 %10725, %v11173_v12   ;;  %1961 = vperm.xlu0 %10727, %v11183_v14  }
 0x172   : > { %v11642_v6 = vpop.permute.xlu1 %1053  ;;  %v11644_v10 = vpop.permute.xlu0 %1453 }
 0x173   : > { %16948 = vst [vmem:[#allocation109_spill] sm:$0xff] %v11642_v6  ;;  %16949 = vst [vmem:[#allocation110_spill] sm:$0xff] %v11644_v10 }
 0x174   : > { %1433 = vperm.xlu1 %10725, %v11178_v13   ;;  %1969 = vperm.xlu0 %10727, %v11188_v15  }
 0x176   : > { %v11648_v8 = vpop.permute.xlu1 %1061  ;;  %v11650_v11 = vpop.permute.xlu0 %1461 }
 0x177   : > { %16950 = vst [vmem:[#allocation111_spill] sm:$0xff] %v11648_v8  ;;  %16951 = vst [vmem:[#allocation112_spill] sm:$0xff] %v11650_v11 }
 0x178   : > { %1441 = vperm.xlu1 %10725, %v11183_v14   ;;  %1977 = vperm.xlu0 %10727, %v11193_v16  }
 0x17a   : > { %v11654_v9 = vpop.permute.xlu1 %1069  ;;  %v11656_v12 = vpop.permute.xlu0 %1469 }
 0x17b   : > { %16952 = vst [vmem:[#allocation113_spill] sm:$0xff] %v11654_v9  ;;  %16953 = vst [vmem:[#allocation114_spill] sm:$0xff] %v11656_v12  ;;  %v17135_v9 = vld [vmem:[#allocation51_spill] sm:$0xff] }
 0x17c   : > { %1449 = vperm.xlu1 %10725, %v11188_v15   ;;  %1985 = vperm.xlu0 %10727, %v11198_v17  }
 0x17e   : > { %v11660_v10 = vpop.permute.xlu1 %1077  ;;  %v11662_v13 = vpop.permute.xlu0 %1477 }
 0x17f   : > { %16954 = vst [vmem:[#allocation115_spill] sm:$0xff] %v11660_v10  ;;  %16955 = vst [vmem:[#allocation116_spill] sm:$0xff] %v11662_v13 }
 0x180   : > { %1457 = vperm.xlu1 %10725, %v11193_v16   ;;  %1993 = vperm.xlu0 %10727, %v11203_v18  }
 0x182   : > { %v11666_v11 = vpop.permute.xlu1 %1085  ;;  %v11668_v14 = vpop.permute.xlu0 %1485 }
 0x183   : > { %16956 = vst [vmem:[#allocation117_spill] sm:$0xff] %v11666_v11  ;;  %16957 = vst [vmem:[#allocation118_spill] sm:$0xff] %v11668_v14 }
 0x184   : > { %1465 = vperm.xlu1 %10725, %v11198_v17   ;;  %2001 = vperm.xlu0 %10727, %v11208_v19  }
 0x186   : > { %v11672_v12 = vpop.permute.xlu1 %1093  ;;  %v11674_v15 = vpop.permute.xlu0 %1493 }
 0x187   : > { %16958 = vst [vmem:[#allocation119_spill] sm:$0xff] %v11672_v12  ;;  %16959 = vst [vmem:[#allocation120_spill] sm:$0xff] %v11674_v15 }
 0x188   : > { %1473 = vperm.xlu1 %10725, %v11203_v18   ;;  %2009 = vperm.xlu0 %10727, %v11213_v20  }
 0x18a   : > { %v11678_v13 = vpop.permute.xlu1 %1101  ;;  %v11680_v16 = vpop.permute.xlu0 %1501 }
 0x18b   : > { %16960 = vst [vmem:[#allocation121_spill] sm:$0xff] %v11678_v13  ;;  %16961 = vst [vmem:[#allocation122_spill] sm:$0xff] %v11680_v16 }
 0x18c   : > { %1481 = vperm.xlu1 %10725, %v11208_v19   ;;  %2017 = vperm.xlu0 %10727, %v11218_v21  }
 0x18e   : > { %v11684_v14 = vpop.permute.xlu1 %1109  ;;  %v11686_v17 = vpop.permute.xlu0 %1509 }
 0x18f   : > { %16962 = vst [vmem:[#allocation123_spill] sm:$0xff] %v11684_v14  ;;  %16963 = vst [vmem:[#allocation124_spill] sm:$0xff] %v11686_v17 }
 0x190   : > { %1489 = vperm.xlu1 %10725, %v11213_v20   ;;  %2025 = vperm.xlu0 %10727, %v11223_v22  }
 0x192   : > { %v11690_v15 = vpop.permute.xlu1 %1117  ;;  %v11692_v18 = vpop.permute.xlu0 %1517 }
 0x193   : > { %16964 = vst [vmem:[#allocation125_spill] sm:$0xff] %v11690_v15  ;;  %16965 = vst [vmem:[#allocation126_spill] sm:$0xff] %v11692_v18 }
 0x194   : > { %1497 = vperm.xlu1 %10725, %v11218_v21   ;;  %2033 = vperm.xlu0 %10727, %v11228_v23  }
 0x196   : > { %v11696_v16 = vpop.permute.xlu1 %1125  ;;  %v11698_v19 = vpop.permute.xlu0 %1525 }
 0x197   : > { %16966 = vst [vmem:[#allocation127_spill] sm:$0xff] %v11696_v16  ;;  %16967 = vst [vmem:[#allocation128_spill] sm:$0xff] %v11698_v19 }
 0x198   : > { %1505 = vperm.xlu1 %10725, %v11223_v22   ;;  %2041 = vperm.xlu0 %10727, %v11233_v24  }
 0x19a   : > { %v11702_v17 = vpop.permute.xlu1 %1133  ;;  %v11704_v20 = vpop.permute.xlu0 %1533 }
 0x19b   : > { %16968 = vst [vmem:[#allocation129_spill] sm:$0xff] %v11702_v17  ;;  %16969 = vst [vmem:[#allocation130_spill] sm:$0xff] %v11704_v20 }
 0x19c   : > { %1513 = vperm.xlu1 %10725, %v11228_v23   ;;  %2049 = vperm.xlu0 %10727, %v11238_v25  }
 0x19e   : > { %v11708_v18 = vpop.permute.xlu1 %1141  ;;  %v11710_v21 = vpop.permute.xlu0 %1541 }
 0x19f   : > { %16970 = vst [vmem:[#allocation131_spill] sm:$0xff] %v11708_v18  ;;  %16971 = vst [vmem:[#allocation132_spill] sm:$0xff] %v11710_v21 }
 0x1a0   : > { %1521 = vperm.xlu1 %10725, %v11233_v24   ;;  %2057 = vperm.xlu0 %10727, %v11243_v26  }
 0x1a2   : > { %v11714_v19 = vpop.permute.xlu1 %1149  ;;  %v11716_v22 = vpop.permute.xlu0 %1549 }
 0x1a3   : > { %16972 = vst [vmem:[#allocation133_spill] sm:$0xff] %v11714_v19  ;;  %16973 = vst [vmem:[#allocation134_spill] sm:$0xff] %v11716_v22 }
 0x1a4   : > { %1529 = vperm.xlu1 %10725, %v11238_v25   ;;  %2065 = vperm.xlu0 %10727, %v11248_v27  }
 0x1a6   : > { %v11720_v20 = vpop.permute.xlu1 %1157  ;;  %v11722_v23 = vpop.permute.xlu0 %1557 }
 0x1a7   : > { %16974 = vst [vmem:[#allocation135_spill] sm:$0xff] %v11720_v20  ;;  %16975 = vst [vmem:[#allocation136_spill] sm:$0xff] %v11722_v23 }
 0x1a8   : > { %1537 = vperm.xlu1 %10725, %v11243_v26   ;;  %2073 = vperm.xlu0 %10727, %v11253_v28  }
 0x1aa   : > { %v11726_v21 = vpop.permute.xlu1 %1165  ;;  %v11728_v24 = vpop.permute.xlu0 %1565 }
 0x1ab   : > { %16976 = vst [vmem:[#allocation137_spill] sm:$0xff] %v11726_v21  ;;  %16977 = vst [vmem:[#allocation138_spill] sm:$0xff] %v11728_v24 }
 0x1ac   : > { %1545 = vperm.xlu1 %10725, %v11248_v27   ;;  %2081 = vperm.xlu0 %10727, %v11258_v29  }
 0x1ae   : > { %v11732_v22 = vpop.permute.xlu1 %1173  ;;  %v11734_v25 = vpop.permute.xlu0 %1573 }
 0x1af   : > { %16978 = vst [vmem:[#allocation139_spill] sm:$0xff] %v11732_v22  ;;  %16979 = vst [vmem:[#allocation140_spill] sm:$0xff] %v11734_v25 }
 0x1b0   : > { %1553 = vperm.xlu1 %10725, %v11253_v28   ;;  %2089 = vperm.xlu0 %10727, %v11263_v30  }
 0x1b2   : > { %v11738_v23 = vpop.permute.xlu1 %1181  ;;  %v11740_v26 = vpop.permute.xlu0 %1581 }
 0x1b3   : > { %16980 = vst [vmem:[#allocation141_spill] sm:$0xff] %v11738_v23  ;;  %16981 = vst [vmem:[#allocation142_spill] sm:$0xff] %v11740_v26 }
 0x1b4   : > { %1561 = vperm.xlu1 %10725, %v11258_v29   ;;  %2097 = vperm.xlu0 %10727, %v11268_v31  }
 0x1b6   : > { %v11744_v24 = vpop.permute.xlu1 %1189  ;;  %v11746_v27 = vpop.permute.xlu0 %1589 }
 0x1b7   : > { %16982 = vst [vmem:[#allocation143_spill] sm:$0xff] %v11744_v24  ;;  %16983 = vst [vmem:[#allocation144_spill] sm:$0xff] %v11746_v27 }
 0x1b8   : > { %1569 = vperm.xlu1 %10725, %v11263_v30   ;;  %2105 = vperm.xlu0 %10727, %v11273_v32  }
 0x1ba   : > { %v11750_v25 = vpop.permute.xlu1 %1197  ;;  %v11752_v28 = vpop.permute.xlu0 %1597 }
 0x1bb   : > { %16984 = vst [vmem:[#allocation145_spill] sm:$0xff] %v11750_v25  ;;  %16985 = vst [vmem:[#allocation146_spill] sm:$0xff] %v11752_v28 }
 0x1bc   : > { %1577 = vperm.xlu1 %10725, %v11268_v31   ;;  %2113 = vperm.xlu0 %10727, %v11278_v33  }
 0x1be   : > { %v11756_v26 = vpop.permute.xlu1 %1205  ;;  %v11758_v29 = vpop.permute.xlu0 %1605 }
 0x1bf   : > { %16986 = vst [vmem:[#allocation147_spill] sm:$0xff] %v11756_v26  ;;  %16987 = vst [vmem:[#allocation148_spill] sm:$0xff] %v11758_v29 }
 0x1c0   : > { %1585 = vperm.xlu1 %10725, %v11273_v32   ;;  %2121 = vperm.xlu0 %10727, %v11283_v34  }
 0x1c2   : > { %v11762_v27 = vpop.permute.xlu1 %1213  ;;  %v11764_v30 = vpop.permute.xlu0 %1613 }
 0x1c3   : > { %16988 = vst [vmem:[#allocation149_spill] sm:$0xff] %v11762_v27  ;;  %16989 = vst [vmem:[#allocation150_spill] sm:$0xff] %v11764_v30 }
 0x1c4   : > { %1593 = vperm.xlu1 %10725, %v11278_v33   ;;  %2129 = vperm.xlu0 %10727, %v11288_v35  }
 0x1c6   : > { %v11768_v28 = vpop.permute.xlu1 %1221  ;;  %v11770_v31 = vpop.permute.xlu0 %1621 }
 0x1c7   : > { %16990 = vst [vmem:[#allocation151_spill] sm:$0xff] %v11768_v28  ;;  %16991 = vst [vmem:[#allocation152_spill] sm:$0xff] %v11770_v31  ;;  %v17002_v31 = vmov 2  }
 0x1c8   : > { %1601 = vperm.xlu1 %10725, %v11283_v34   ;;  %2137 = vperm.xlu0 %10727, %v11293_v36  }
 0x1ca   : > { %v11774_v26 = vpop.permute.xlu1 %1229  ;;  %v11776_v32 = vpop.permute.xlu0 %1629 }
 0x1cb   : > { %16992 = vst [vmem:[#allocation153_spill] sm:$0xff] %v11774_v26  ;;  %16993 = vst [vmem:[#allocation154_spill] sm:$0xff] %v11776_v32  ;;  %v16997_v26 = vmov 0  }
 0x1cc   : > { %1609 = vperm.xlu1 %10725, %v11288_v35   ;;  %2145 = vperm.xlu0 %10727, %v11298_v37  }
 0x1ce   : > { %v11780_v27 = vpop.permute.xlu1 %1237 }
 0x1cf   : > { %16994 = vst [vmem:[#allocation155_spill] sm:$0xff] %v11780_v27  ;;  %v11782_v33 = vpop.permute.xlu0 %1901 }
 0x1d0   : > { %1617 = vperm.xlu1 %10725, %v11293_v36   ;;  %2153 = vperm.xlu0 %10727, %v11303_v38  }
 0x1d3   : > { %v11786_v28 = vpop.permute.xlu1 %1381  ;;  %v11788_v34 = vpop.permute.xlu0 %1913 }
 0x1d4   : > { %16995 = vst [vmem:[#allocation156_spill] sm:$0xff] %v11786_v28  ;;  %16996 = vst [vmem:[#allocation157_spill] sm:$0xff] %v11788_v34  ;;  %1625 = vperm.xlu1 %10725, %v11298_v37   ;;  %10729 = vset.pattern.permute.xlu0 %v16997_v26 }
 0x1d5   : > { %542 = vperm.xlu0 %10729, %v11146_v5  }
 0x1d7   : > { %v11793_v35 = vpop.permute.xlu1 %1389  ;;  %v11795_v32 = vpop.permute.xlu0 %1921 }
 0x1d8   : > { %16998 = vst [vmem:[#allocation158_spill] sm:$0xff] %v11793_v35  ;;  %16999 = vst [vmem:[#allocation159_spill] sm:$0xff] %v11795_v32  ;;  %1633 = vperm.xlu1 %10725, %v11303_v38  }
 0x1d9   : > { %547 = vperm.xlu0 %10729, %v11312_v41  }
 0x1db   : > { %v11799_v36 = vpop.permute.xlu1 %1393  ;;  %v11801_v27 = vpop.permute.xlu0 %1929 }
 0x1dc   : > { %17000 = vst [vmem:[#allocation160_spill] sm:$0xff] %v11799_v36  ;;  %17001 = vst [vmem:[#allocation161_spill] sm:$0xff] %v11801_v27  ;;  %10728 = vset.pattern.permute.xlu1 %v17002_v31 }
 0x1dd   : > { %1905 = vperm.xlu1 %10728, %v11312_v41   ;;  %562 = vperm.xlu0 %10729, %v11323_v45  }
 0x1df   : > { %v11806_v37 = vpop.permute.xlu1 %1401  ;;  %v11808_v5 = vpop.permute.xlu0 %1937 }
 0x1e0   : > { %17003 = vst [vmem:[#allocation162_spill] sm:$0xff] %v11806_v37  ;;  %17004 = vst [vmem:[#allocation163_spill] sm:$0xff] %v11808_v5 }
 0x1e1   : > { %1909 = vperm.xlu1 %10728, %v11143_v4   ;;  %572 = vperm.xlu0 %10729, %v11332_v48  }
 0x1e3   : > { %v11812_v38 = vpop.permute.xlu1 %1409  ;;  %v11814_v30 = vpop.permute.xlu0 %1945 }
 0x1e4   : > { %17005 = vst [vmem:[#allocation164_spill] sm:$0xff] %v11812_v38  ;;  %17006 = vst [vmem:[#allocation165_spill] sm:$0xff] %v11814_v30 }
 0x1e5   : > { %1917 = vperm.xlu1 %10728, %v11323_v45   ;;  %582 = vperm.xlu0 %10729, %v11341_v51  }
 0x1e7   : > { %v11818_v31 = vpop.permute.xlu1 %1417  ;;  %v11820_v41 = vpop.permute.xlu0 %1953 }
 0x1e8   : > { %17007 = vst [vmem:[#allocation166_spill] sm:$0xff] %v11818_v31  ;;  %17008 = vst [vmem:[#allocation167_spill] sm:$0xff] %v11820_v41 }
 0x1e9   : > { %1925 = vperm.xlu1 %10728, %v11332_v48   ;;  %592 = vperm.xlu0 %10729, %v11350_v54  }
 0x1eb   : > { %v11824_v29 = vpop.permute.xlu1 %1425  ;;  %v11826_v4 = vpop.permute.xlu0 %1961 }
 0x1ec   : > { %17009 = vst [vmem:[#allocation168_spill] sm:$0xff] %v11824_v29  ;;  %17010 = vst [vmem:[#allocation169_spill] sm:$0xff] %v11826_v4  ;;  %v17107_v4 = vld [vmem:[#allocation39_spill] sm:$0xff] }
 0x1ed   : > { %1933 = vperm.xlu1 %10728, %v11341_v51   ;;  %602 = vperm.xlu0 %10729, %v11359_v57  }
 0x1ef   : > { %v11830_v25 = vpop.permute.xlu1 %1433  ;;  %v11832_v45 = vpop.permute.xlu0 %1969 }
 0x1f0   : > { %17011 = vst [vmem:[#allocation170_spill] sm:$0xff] %v11830_v25  ;;  %17012 = vst [vmem:[#allocation171_spill] sm:$0xff] %v11832_v45 }
 0x1f1   : > { %1941 = vperm.xlu1 %10728, %v11350_v54   ;;  %612 = vperm.xlu0 %10729, %v11368_v60  }
 0x1f3   : > { %v11836_v24 = vpop.permute.xlu1 %1441  ;;  %v11838_v48 = vpop.permute.xlu0 %1977 }
 0x1f4   : > { %17013 = vst [vmem:[#allocation172_spill] sm:$0xff] %v11836_v24  ;;  %17014 = vst [vmem:[#allocation173_spill] sm:$0xff] %v11838_v48 }
 0x1f5   : > { %1949 = vperm.xlu1 %10728, %v11359_v57   ;;  %622 = vperm.xlu0 %10729, %v11377_v63  }
 0x1f7   : > { %v11842_v23 = vpop.permute.xlu1 %1449  ;;  %v11844_v51 = vpop.permute.xlu0 %1985 }
 0x1f8   : > { %17015 = vst [vmem:[#allocation174_spill] sm:$0xff] %v11842_v23  ;;  %17016 = vst [vmem:[#allocation175_spill] sm:$0xff] %v11844_v51 }
 0x1f9   : > { %1957 = vperm.xlu1 %10728, %v11368_v60   ;;  %632 = vperm.xlu0 %10729, %v11386_v2  }
 0x1fb   : > { %v11848_v22 = vpop.permute.xlu1 %1457  ;;  %v11850_v54 = vpop.permute.xlu0 %1993 }
 0x1fc   : > { %17017 = vst [vmem:[#allocation176_spill] sm:$0xff] %v11848_v22  ;;  %17018 = vst [vmem:[#allocation177_spill] sm:$0xff] %v11850_v54  ;;  %v17102_v22 = vld [vmem:[#allocation37_spill] sm:$0xff] }
 0x1fd   : > { %1965 = vperm.xlu1 %10728, %v11377_v63   ;;  %642 = vperm.xlu0 %10729, %v11395_v7  }
 0x1ff   : > { %v11854_v21 = vpop.permute.xlu1 %1465  ;;  %v11856_v57 = vpop.permute.xlu0 %2001 }
 0x200   : > { %17019 = vst [vmem:[#allocation178_spill] sm:$0xff] %v11854_v21  ;;  %17020 = vst [vmem:[#allocation179_spill] sm:$0xff] %v11856_v57  ;;  %v17078_v57 = vld [vmem:[#allocation30_spill] sm:$0xff]  ;;  %v17096_v21 = vld [vmem:[#allocation40_spill] sm:$0xff] }
 0x201   : > { %1973 = vperm.xlu1 %10728, %v11386_v2   ;;  %652 = vperm.xlu0 %10729, %v11404_v1  }
 0x203   : > { %v11860_v20 = vpop.permute.xlu1 %1473  ;;  %v11862_v60 = vpop.permute.xlu0 %2009 }
 0x204   : > { %17021 = vst [vmem:[#allocation180_spill] sm:$0xff] %v11860_v20  ;;  %17022 = vst [vmem:[#allocation181_spill] sm:$0xff] %v11862_v60  ;;  %v17075_v60 = vld [vmem:[#allocation28_spill] sm:$0xff] }
 0x205   : > { %1981 = vperm.xlu1 %10728, %v11395_v7   ;;  %662 = vperm.xlu0 %10729, %v11413_v59  }
 0x207   : > { %v11866_v19 = vpop.permute.xlu1 %1481  ;;  %v11868_v63 = vpop.permute.xlu0 %2017 }
 0x208   : > { %17023 = vst [vmem:[#allocation182_spill] sm:$0xff] %v11866_v19  ;;  %17024 = vst [vmem:[#allocation183_spill] sm:$0xff] %v11868_v63 }
 0x209   : > { %1989 = vperm.xlu1 %10728, %v11404_v1   ;;  %672 = vperm.xlu0 %10729, %v11422_v3  }
 0x20b   : > { %v11872_v18 = vpop.permute.xlu1 %1489  ;;  %v11874_v2 = vpop.permute.xlu0 %2025 }
 0x20c   : > { %17025 = vst [vmem:[#allocation184_spill] sm:$0xff] %v11872_v18  ;;  %17026 = vst [vmem:[#allocation185_spill] sm:$0xff] %v11874_v2 }
 0x20d   : > { %1997 = vperm.xlu1 %10728, %v11413_v59   ;;  %682 = vperm.xlu0 %10729, %v11431_v56  }
 0x20f   : > { %v11878_v17 = vpop.permute.xlu1 %1497  ;;  %v11880_v7 = vpop.permute.xlu0 %2033 }
 0x210   : > { %17027 = vst [vmem:[#allocation186_spill] sm:$0xff] %v11878_v17  ;;  %17028 = vst [vmem:[#allocation187_spill] sm:$0xff] %v11880_v7 }
 0x211   : > { %2005 = vperm.xlu1 %10728, %v11422_v3   ;;  %692 = vperm.xlu0 %10729, %v11440_v0  }
 0x213   : > { %v11884_v63 = vpop.permute.xlu1 %1505  ;;  %v11886_v1 = vpop.permute.xlu0 %2041 }
 0x214   : > { %17029 = vst [vmem:[#allocation188_spill] sm:$0xff] %v11884_v63  ;;  %17030 = vst [vmem:[#allocation189_spill] sm:$0xff] %v11886_v1 }
 0x215   : > { %2013 = vperm.xlu1 %10728, %v11431_v56   ;;  %702 = vperm.xlu0 %10729, %v11449_v53  }
 0x217   : > { %v11890_v2 = vpop.permute.xlu1 %1513  ;;  %v11892_v59 = vpop.permute.xlu0 %2049 }
 0x218   : > { %17031 = vst [vmem:[#allocation190_spill] sm:$0xff] %v11890_v2  ;;  %17032 = vst [vmem:[#allocation191_spill] sm:$0xff] %v11892_v59 }
 0x219   : > { %2021 = vperm.xlu1 %10728, %v11440_v0   ;;  %712 = vperm.xlu0 %10729, %v11458_v61  }
 0x21b   : > { %v11896_v7 = vpop.permute.xlu1 %1521  ;;  %v11898_v3 = vpop.permute.xlu0 %2057 }
 0x21c   : > { %17033 = vst [vmem:[#allocation192_spill] sm:$0xff] %v11896_v7  ;;  %17034 = vst [vmem:[#allocation193_spill] sm:$0xff] %v11898_v3 }
 0x21d   : > { %2029 = vperm.xlu1 %10728, %v11449_v53   ;;  %722 = vperm.xlu0 %10729, %v11467_v50  }
 0x21f   : > { %v11902_v1 = vpop.permute.xlu1 %1529  ;;  %v11904_v56 = vpop.permute.xlu0 %2065 }
 0x220   : > { %17035 = vst [vmem:[#allocation194_spill] sm:$0xff] %v11902_v1  ;;  %17036 = vst [vmem:[#allocation195_spill] sm:$0xff] %v11904_v56  ;;  %v17072_v1 = vld [vmem:[#allocation24_spill] sm:$0xff] }
 0x221   : > { %2037 = vperm.xlu1 %10728, %v11458_v61   ;;  %732 = vperm.xlu0 %10729, %v11476_v58  }
 0x223   : > { %v11908_v59 = vpop.permute.xlu1 %1537  ;;  %v11910_v0 = vpop.permute.xlu0 %2073 }
 0x224   : > { %17037 = vst [vmem:[#allocation196_spill] sm:$0xff] %v11908_v59  ;;  %17038 = vst [vmem:[#allocation197_spill] sm:$0xff] %v11910_v0 }
 0x225   : > { %2045 = vperm.xlu1 %10728, %v11467_v50   ;;  %742 = vperm.xlu0 %10729, %v11485_v47  }
 0x227   : > { %v11914_v3 = vpop.permute.xlu1 %1545  ;;  %v11916_v53 = vpop.permute.xlu0 %2081 }
 0x228   : > { %17039 = vst [vmem:[#allocation198_spill] sm:$0xff] %v11914_v3  ;;  %17040 = vst [vmem:[#allocation199_spill] sm:$0xff] %v11916_v53  ;;  %v17045_v3 = vld [vmem:[#allocation68_spill] sm:$0xff] }
 0x229   : > { %2053 = vperm.xlu1 %10728, %v11476_v58   ;;  %752 = vperm.xlu0 %10729, %v11494_v55  }
 0x22b   : > { %v11920_v56 = vpop.permute.xlu1 %1553  ;;  %v11922_v61 = vpop.permute.xlu0 %2089 }
 0x22c   : > { %17041 = vst [vmem:[#allocation200_spill] sm:$0xff] %v11920_v56  ;;  %17042 = vst [vmem:[#allocation201_spill] sm:$0xff] %v11922_v61  ;;  %v17048_v56 = vld [vmem:[#allocation71_spill] sm:$0xff] }
 0x22d   : > { %2061 = vperm.xlu1 %10728, %v11485_v47   ;;  %762 = vperm.xlu0 %10729, %v11503_v43  }
 0x22f   : > { %v11926_v0 = vpop.permute.xlu1 %1561  ;;  %v11928_v50 = vpop.permute.xlu0 %2097 }
 0x230   : > { %17043 = vst [vmem:[#allocation202_spill] sm:$0xff] %v11926_v0  ;;  %17044 = vst [vmem:[#allocation203_spill] sm:$0xff] %v11928_v50  ;;  %v17051_v0 = vld [vmem:[#allocation74_spill] sm:$0xff] }
 0x231   : > { %2069 = vperm.xlu1 %10728, %v11494_v55   ;;  %772 = vperm.xlu0 %10729, %v17045_v3  }
 0x233   : > { %v11932_v53 = vpop.permute.xlu1 %1569  ;;  %v11934_v58 = vpop.permute.xlu0 %2105 }
 0x234   : > { %17046 = vst [vmem:[#allocation68_spill] sm:$0xff] %v11932_v53  ;;  %17047 = vst [vmem:[#allocation204_spill] sm:$0xff] %v11934_v58  ;;  %v17054_v53 = vld [vmem:[#allocation77_spill] sm:$0xff] }
 0x235   : > { %2077 = vperm.xlu1 %10728, %v11503_v43   ;;  %782 = vperm.xlu0 %10729, %v17048_v56  }
 0x237   : > { %v11938_v61 = vpop.permute.xlu1 %1577  ;;  %v11940_v47 = vpop.permute.xlu0 %2113 }
 0x238   : > { %17049 = vst [vmem:[#allocation71_spill] sm:$0xff] %v11938_v61  ;;  %17050 = vst [vmem:[#allocation205_spill] sm:$0xff] %v11940_v47  ;;  %v17057_v61 = vld [vmem:[#allocation80_spill] sm:$0xff] }
 0x239   : > { %2085 = vperm.xlu1 %10728, %v17045_v3   ;;  %792 = vperm.xlu0 %10729, %v17051_v0  }
 0x23b   : > { %v11944_v50 = vpop.permute.xlu1 %1585  ;;  %v11946_v55 = vpop.permute.xlu0 %2121 }
 0x23c   : > { %17052 = vst [vmem:[#allocation74_spill] sm:$0xff] %v11944_v50  ;;  %17053 = vst [vmem:[#allocation206_spill] sm:$0xff] %v11946_v55  ;;  %v17060_v55 = vld [vmem:[#allocation83_spill] sm:$0xff] }
 0x23d   : > { %2093 = vperm.xlu1 %10728, %v17048_v56   ;;  %802 = vperm.xlu0 %10729, %v17054_v53  }
 0x23f   : > { %v11950_v58 = vpop.permute.xlu1 %1593  ;;  %v11952_v43 = vpop.permute.xlu0 %2129 }
 0x240   : > { %17055 = vst [vmem:[#allocation77_spill] sm:$0xff] %v11950_v58  ;;  %17056 = vst [vmem:[#allocation207_spill] sm:$0xff] %v11952_v43  ;;  %v16622_v58 = vlaneseq }
 0x241   : > { %2101 = vperm.xlu1 %10728, %v17051_v0   ;;  %812 = vperm.xlu0 %10729, %v17057_v61  }
 0x243   : > { %v11956_v47 = vpop.permute.xlu1 %1601  ;;  %v11958_v3 = vpop.permute.xlu0 %2137 }
 0x244   : > { %17058 = vst [vmem:[#allocation80_spill] sm:$0xff] %v11956_v47  ;;  %17059 = vst [vmem:[#allocation208_spill] sm:$0xff] %v11958_v3  ;;  %v11973_v3 = vshrl.u32 %v16622_v58, 7  ;;  %v17069_v58 = vld [vmem:[#allocation90_spill] sm:$0xff] }
 0x245   : > { %2109 = vperm.xlu1 %10728, %v17054_v53   ;;  %822 = vperm.xlu0 %10729, %v17060_v55  }
 0x246   : > { %17065 = vst [vmem:[#allocation212_spill] sm:$0xff] %v11973_v3  ;;  %v1374_v47 = vsub.s32 1, %v11973_v3 }
 0x247   : > { %v11962_v56 = vpop.permute.xlu1 %1609  ;;  %v11964_v50 = vpop.permute.xlu0 %2145 }
 0x248   : > { %17061 = vst [vmem:[#allocation83_spill] sm:$0xff] %v11962_v56  ;;  %17062 = vst [vmem:[#allocation209_spill] sm:$0xff] %v11964_v50  ;;  %v534_v50 = vsub.s32 0, %v11973_v3  ;;  %v11982_v56 = vld [vmem:[%s381_s25] sm:$0x7] }
 0x249   : > { %2117 = vperm.xlu1 %10728, %v17057_v61   ;;  %832 = vperm.xlu0 %10729, %v11566_v39   ;;  %v11986_v61 = vld [vmem:[%s381_s25 + $0x4] sm:$0x7]  ;;  %v12031_v14 = vrot.slane %v11982_v56, %v1374_v47 }
 0x24a   : > { %17067 = vst [vmem:[#allocation214_spill] sm:$0xff] %v11986_v61  ;;  %v12045_v51 = vrot.slane %v11986_v61, %v1374_v47 }
 0x24b   : > { %v11968_v0 = vpop.permute.xlu1 %1617  ;;  %v11970_v43 = vpop.permute.xlu0 %2153 }
 0x24c   : > { %17063 = vst [vmem:[#allocation210_spill] sm:$0xff] %v11968_v0  ;;  %17064 = vst [vmem:[#allocation211_spill] sm:$0xff] %v11970_v43 }
 0x24d   : > { %2125 = vperm.xlu1 %10728, %v17060_v55   ;;  %842 = vperm.xlu0 %10729, %v11575_v46   ;;  %v11995_v55 = vrot.slane %v11982_v56, %v534_v50  ;;  %17083 = vst [vmem:[#allocation30_spill] sm:$0xff] %v12045_v51 }
 0x24f   : > { %v11977_v53 = vpop.permute.xlu1 %1625  ;;  %v863_v7 = vmul.f32 %v17072_v1, %v11995_v55  ;;  %v867_v17 = vmul.f32 %v17075_v60, %v11995_v55  ;;  %v869_v18 = vmul.f32 %v17078_v57, %v11995_v55 }
 0x250   : > { %17066 = vst [vmem:[#allocation213_spill] sm:$0xff] %v11977_v53  ;;  %v11988_v0 = vpop.permute.xlu0 %542  ;;  %v11998_v53 = vrot.slane %v11986_v61, %v534_v50  ;;  %v17074_v50 = vld [vmem:[#allocation22_spill] sm:$0xff] }
 0x251   : > { %17068 = vst [vmem:[#allocation215_spill] sm:$0xff] %v11988_v0  ;;  %2133 = vperm.xlu1 %10728, %v11566_v39   ;;  %852 = vperm.xlu0 %10729, %v17069_v58   ;;  %v12014_v16 = vmul.f32 %v17074_v50, %v11995_v55 }
 0x252   : > { %v927_v39 = vmul.f32 %v17072_v1, %v11998_v53  ;;  %v12024_v1 = vmul.f32 %v17074_v50, %v11998_v53  ;;  %v17082_v50 = vld [vmem:[#allocation32_spill] sm:$0xff] }
 0x253   : > { %v11992_v43 = vpop.permute.xlu1 %1633 }
 0x254   : > { %17070 = vst [vmem:[#allocation90_spill] sm:$0xff] %v11992_v43  ;;  %v12001_v59 = vpop.permute.xlu0 %547  ;;  %v17073_v43 = vld [vmem:[#allocation26_spill] sm:$0xff] }
 0x255   : > { %17071 = vst [vmem:[#allocation216_spill] sm:$0xff] %v12001_v59  ;;  %2141 = vperm.xlu1 %10728, %v11575_v46   ;;  %v865_v2 = vmul.f32 %v17073_v43, %v11995_v55  ;;  %v929_v63 = vmul.f32 %v17073_v43, %v11998_v53  ;;  %v931_v46 = vmul.f32 %v17075_v60, %v11998_v53  ;;  %17077 = vst [vmem:[#allocation26_spill] sm:$0xff] %v12024_v1  ;;  %v17080_v60 = vld [vmem:[#allocation25_spill] sm:$0xff] }
 0x256   : > { %v933_v43 = vmul.f32 %v17078_v57, %v11998_v53  ;;  %v12037_v19 = vadd.f32 %v17080_v60, %v863_v7  ;;  %v12040_v13 = vadd.f32 %v17080_v60, %v927_v39  ;;  %v871_v1 = vmul.f32 %v17082_v50, %v11995_v55  ;;  %v17084_v57 = vld [vmem:[#allocation27_spill] sm:$0xff]  ;;  %v17086_v7 = vld [vmem:[#allocation34_spill] sm:$0xff]  ;;  %v17087_v39 = vld [vmem:[#allocation29_spill] sm:$0xff] }
 0x257   : > { %v12048_v20 = vadd.f32 %v17084_v57, %v865_v2  ;;  %v12051_v12 = vadd.f32 %v17084_v57, %v929_v63  ;;  %v873_v48 = vmul.f32 %v17086_v7, %v11995_v55  ;;  %v12058_v60 = vadd.f32 %v17087_v39, %v867_v17  ;;  %v17089_v2 = vld [vmem:[#allocation36_spill] sm:$0xff]  ;;  %v17091_v57 = vld [vmem:[#allocation31_spill] sm:$0xff] }
 0x258   : > { %v12020_v15 = vpop.permute.xlu1 %1905  ;;  %v12033_v54 = vpop.permute.xlu0 %562  ;;  %17081 = vst [vmem:[#allocation28_spill] sm:$0xff] %v12040_v13  ;;  %v12061_v13 = vadd.f32 %v17087_v39, %v931_v46  ;;  %v937_v47 = vmul.f32 %v17086_v7, %v11998_v53  ;;  %v875_v51 = vmul.f32 %v17089_v2, %v11995_v55  ;;  %v939_v17 = vmul.f32 %v17089_v2, %v11998_v53  ;;  %v17093_v46 = vld [vmem:[#allocation38_spill] sm:$0xff]  ;;  %v17095_v7 = vld [vmem:[#allocation33_spill] sm:$0xff] }
 0x259   : > { %17076 = vst [vmem:[#allocation24_spill] sm:$0xff] %v12020_v15  ;;  %17079 = vst [vmem:[#allocation22_spill] sm:$0xff] %v12033_v54  ;;  %2149 = vperm.xlu1 %10728, %v17069_v58   ;;  %v935_v58 = vmul.f32 %v17082_v50, %v11998_v53  ;;  %v12073_v50 = vadd.f32 %v17091_v57, %v933_v43  ;;  %v877_v39 = vmul.f32 %v17093_v46, %v11995_v55 }
 0x25a   : > { %17085 = vst [vmem:[#allocation25_spill] sm:$0xff] %v12051_v12  ;;  %17088 = vst [vmem:[#allocation32_spill] sm:$0xff] %v12061_v13  ;;  %v12070_v12 = vadd.f32 %v17091_v57, %v869_v18  ;;  %v12083_v61 = vadd.f32 %v17095_v7, %v871_v1  ;;  %v941_v18 = vmul.f32 %v17093_v46, %v11998_v53 }
 0x25b   : > { %17092 = vst [vmem:[#allocation34_spill] sm:$0xff] %v12073_v50  ;;  %v879_v43 = vmul.f32 %v17096_v21, %v11995_v55  ;;  %v943_v57 = vmul.f32 %v17096_v21, %v11998_v53  ;;  %v12092_v2 = vadd.f32 %v17095_v7, %v935_v58  ;;  %v17098_v50 = vld [vmem:[#allocation35_spill] sm:$0xff]  ;;  %v861_v1 = vmul.f32 %v12001_v59, %v11995_v55  ;;  %v17104_v58 = vld [vmem:[#allocation44_spill] sm:$0xff] }
 0x25c   : > { %v12067_v63 = vpop.permute.xlu1 %1909  ;;  %v12079_v13 = vpop.permute.xlu0 %572  ;;  %v12095_v11 = vadd.f32 %v17098_v50, %v873_v48  ;;  %v12102_v46 = vadd.f32 %v17098_v50, %v937_v47  ;;  %v12105_v10 = vadd.f32 %v17102_v22, %v875_v51  ;;  %v883_v7 = vmul.f32 %v17104_v58, %v11995_v55  ;;  %v17117_v51 = vld [vmem:[#allocation48_spill] sm:$0xff] }
 0x25d   : > { %17090 = vst [vmem:[#allocation27_spill] sm:$0xff] %v12067_v63  ;;  %17094 = vst [vmem:[#allocation29_spill] sm:$0xff] %v12079_v13  ;;  %10730 = vset.pattern.permute.xlu1 %v16997_v26  ;;  %v17100_v26 = vld [vmem:[#allocation42_spill] sm:$0xff]  ;;  %v12117_v23 = vadd.f32 %v17107_v4, %v877_v39  ;;  %v947_v47 = vmul.f32 %v17104_v58, %v11998_v53  ;;  %v17115_v39 = vld [vmem:[#allocation43_spill] sm:$0xff] }
 0x25e   : > { %17097 = vst [vmem:[#allocation36_spill] sm:$0xff] %v12092_v2  ;;  %17099 = vst [vmem:[#allocation31_spill] sm:$0xff] %v12095_v11  ;;  %v881_v45 = vmul.f32 %v17100_v26, %v11995_v55  ;;  %v945_v21 = vmul.f32 %v17100_v26, %v11998_v53  ;;  %v12114_v2 = vadd.f32 %v17102_v22, %v939_v17  ;;  %v17114_v22 = vld [vmem:[#allocation46_spill] sm:$0xff]  ;;  %v17137_v11 = vld [vmem:[#allocation56_spill] sm:$0xff] }
 0x25f   : > { %17101 = vst [vmem:[#allocation38_spill] sm:$0xff] %v12102_v46  ;;  %17103 = vst [vmem:[#allocation33_spill] sm:$0xff] %v12105_v10  ;;  %v12125_v26 = vadd.f32 %v17107_v4, %v941_v18  ;;  %v17111_v46 = vld [vmem:[#allocation41_spill] sm:$0xff]  ;;  %v885_v17 = vmul.f32 %v17114_v22, %v11995_v55  ;;  %v949_v58 = vmul.f32 %v17114_v22, %v11998_v53 }
 0x260   : > { %v12111_v48 = vpop.permute.xlu1 %1917  ;;  %17106 = vst [vmem:[#allocation35_spill] sm:$0xff] %v12114_v2  ;;  %17108 = vst [vmem:[#allocation42_spill] sm:$0xff] %v12117_v23  ;;  %v12122_v50 = vpop.permute.xlu0 %582  ;;  %v12128_v59 = vadd.f32 %v17111_v46, %v879_v43  ;;  %v12131_v10 = vadd.f32 %v17111_v46, %v943_v57  ;;  %v12136_v2 = vadd.f32 %v17115_v39, %v881_v45  ;;  %v17118_v4 = vld [vmem:[#allocation93_spill] sm:$0xff]  ;;  %v17122_v45 = vld [vmem:[#allocation50_spill] sm:$0xff] }
 0x261   : > { %17105 = vst [vmem:[#allocation40_spill] sm:$0xff] %v12111_v48  ;;  %17109 = vst [vmem:[#allocation37_spill] sm:$0xff] %v12122_v50  ;;  %v887_v23 = vmul.f32 %v17117_v51, %v11995_v55  ;;  %v1245_v18 = vadd.f32 %v17118_v4, %v861_v1  ;;  %v12144_v43 = vadd.f32 %v17115_v39, %v945_v21  ;;  %v17125_v21 = vld [vmem:[#allocation94_spill] sm:$0xff]  ;;  %v17128_v4 = vld [vmem:[#allocation47_spill] sm:$0xff] }
 0x262   : > { %17110 = vst [vmem:[#allocation44_spill] sm:$0xff] %v12125_v26  ;;  %17112 = vst [vmem:[#allocation39_spill] sm:$0xff] %v12128_v59  ;;  %v17120_v26 = vld [vmem:[#allocation45_spill] sm:$0xff]  ;;  %v951_v46 = vmul.f32 %v17117_v51, %v11998_v53  ;;  %v953_v1 = vmul.f32 %v17122_v45, %v11998_v53  ;;  %v1637_v39 = vmul.f32 %v17125_v21, %v12031_v14  ;;  %v17130_v59 = vld [vmem:[#allocation52_spill] sm:$0xff] }
 0x263   : > { %17113 = vst [vmem:[#allocation41_spill] sm:$0xff] %v12131_v10  ;;  %17116 = vst [vmem:[#allocation46_spill] sm:$0xff] %v12136_v2  ;;  %v12147_v57 = vadd.f32 %v17120_v26, %v883_v7  ;;  %v889_v10 = vmul.f32 %v17122_v45, %v11995_v55  ;;  %v12156_v22 = vadd.f32 %v17120_v26, %v947_v47  ;;  %v17126_v7 = vsub.s32 2, %v11973_v3  ;;  %v17131_v45 = vld [vmem:[#allocation54_spill] sm:$0xff]  ;;  %v17133_v3 = vld [vmem:[#allocation49_spill] sm:$0xff] }
 0x264   : > { %17119 = vst [vmem:[#allocation43_spill] sm:$0xff] %v12144_v43  ;;  %v12153_v2 = vpop.permute.xlu1 %1925  ;;  %v12167_v51 = vpop.permute.xlu0 %592  ;;  %v891_v47 = vmul.f32 %v17130_v59, %v11995_v55  ;;  %v955_v26 = vmul.f32 %v17130_v59, %v11998_v53  ;;  %v12179_v21 = vadd.f32 %v17128_v4, %v949_v58  ;;  %v957_v59 = vmul.f32 %v17131_v45, %v11998_v53 }
 0x265   : > { %17121 = vst [vmem:[#allocation48_spill] sm:$0xff] %v12147_v57  ;;  %17123 = vst [vmem:[#allocation45_spill] sm:$0xff] %v12153_v2  ;;  %v12165_v43 = vrot.slane %v11982_v56, %v17126_v7  ;;  %v12170_v57 = vadd.f32 %v17128_v4, %v885_v17  ;;  %v12182_v56 = vadd.f32 %v17133_v3, %v887_v23 }
 0x266   : > { %17124 = vst [vmem:[#allocation50_spill] sm:$0xff] %v12156_v22  ;;  %17127 = vst [vmem:[#allocation217_spill] sm:$0xff] %v12167_v51  ;;  %v893_v22 = vmul.f32 %v17131_v45, %v11995_v55  ;;  %v1765_v17 = vadd.f32 %v1637_v39, %v1245_v18  ;;  %v12190_v24 = vadd.f32 %v17135_v9, %v889_v10  ;;  %v17141_v39 = vld [vmem:[#allocation53_spill] sm:$0xff] }
 0x267   : > { %17129 = vst [vmem:[#allocation47_spill] sm:$0xff] %v12170_v57  ;;  %17132 = vst [vmem:[#allocation52_spill] sm:$0xff] %v12179_v21  ;;  %v2157_v7 = vmul.f32 %v12020_v15, %v12165_v43  ;;  %v12187_v57 = vadd.f32 %v17133_v3, %v951_v46  ;;  %v895_v58 = vmul.f32 %v17137_v11, %v11995_v55  ;;  %v17144_v21 = vld [vmem:[#allocation55_spill] sm:$0xff] }
 0x268   : > { %17136 = vst [vmem:[#allocation49_spill] sm:$0xff] %v12190_v24  ;;  %v12196_v4 = vpop.permute.xlu1 %1933  ;;  %v12199_v23 = vadd.f32 %v17135_v9, %v953_v1  ;;  %v959_v18 = vmul.f32 %v17137_v11, %v11998_v53  ;;  %v1638_v3 = vmul.f32 %v11793_v35, %v12031_v14  ;;  %v864_v10 = vmul.f32 %v12033_v54, %v11995_v55  ;;  %v12207_v46 = vpop.permute.xlu0 %602  ;;  %v17146_v1 = vld [vmem:[#allocation58_spill] sm:$0xff] }
 0x269   : > { %17134 = vst [vmem:[#allocation54_spill] sm:$0xff] %v12187_v57  ;;  %17138 = vst [vmem:[#allocation51_spill] sm:$0xff] %v12196_v4  ;;  %v12210_v45 = vadd.f32 %v17141_v39, %v891_v47  ;;  %v12213_v57 = vadd.f32 %v17141_v39, %v955_v26  ;;  %v12216_v9 = vadd.f32 %v17144_v21, %v893_v22  ;;  %v17148_v26 = vld [vmem:[#allocation57_spill] sm:$0xff] }
 0x26a   : > { %17139 = vst [vmem:[#allocation56_spill] sm:$0xff] %v12199_v23  ;;  %17140 = vst [vmem:[#allocation218_spill] sm:$0xff] %v12207_v46  ;;  %v897_v11 = vmul.f32 %v17146_v1, %v11995_v55  ;;  %v1246_v23 = vadd.f32 %v11599_v52, %v12014_v16  ;;  %v860_v15 = vmul.f32 %v11988_v0, %v11995_v55  ;;  %v17162_v52 = vld [vmem:[#allocation64_spill] sm:$0xff] }
 0x26b   : > { %17142 = vst [vmem:[#allocation53_spill] sm:$0xff] %v12210_v45  ;;  %17143 = vst [vmem:[#allocation219_spill] sm:$0xff] %v12213_v57  ;;  %v2158_v54 = vmul.f32 %v12067_v63, %v12165_v43  ;;  %v2285_v47 = vadd.f32 %v2157_v7, %v1765_v17  ;;  %v12227_v35 = vadd.f32 %v17144_v21, %v957_v59  ;;  %v17150_v57 = vld [vmem:[#allocation60_spill] sm:$0xff]  ;;  %v17153_v63 = vld [vmem:[#allocation97_spill] sm:$0xff] }
 0x26c   : > { %17145 = vst [vmem:[#allocation55_spill] sm:$0xff] %v12216_v9  ;;  %v12230_v39 = vadd.f32 %v17148_v26, %v895_v58  ;;  %v961_v22 = vmul.f32 %v17146_v1, %v11998_v53  ;;  %v899_v9 = vmul.f32 %v17150_v57, %v11995_v55  ;;  %v12236_v16 = vpop.permute.xlu1 %1941  ;;  %v12239_v0 = vadd.f32 %v17148_v26, %v959_v18  ;;  %v12244_v17 = vpop.permute.xlu0 %612  ;;  %v17155_v59 = vld [vmem:[#allocation59_spill] sm:$0xff]  ;;  %v17158_v18 = vld [vmem:[#allocation96_spill] sm:$0xff] }
 0x26d   : > { %17147 = vst [vmem:[#allocation58_spill] sm:$0xff] %v12227_v35  ;;  %17151 = vst [vmem:[#allocation60_spill] sm:$0xff] %v12236_v16  ;;  %v1766_v45 = vadd.f32 %v1638_v3, %v1246_v23  ;;  %v1248_v7 = vadd.f32 %v17153_v63, %v864_v10  ;;  %v866_v21 = vmul.f32 %v12079_v13, %v11995_v55  ;;  %v17157_v35 = vld [vmem:[#allocation62_spill] sm:$0xff]  ;;  %v17159_v23 = vld [vmem:[#allocation23_spill] sm:$0xff] }
 0x26e   : > { %17149 = vst [vmem:[#allocation57_spill] sm:$0xff] %v12230_v39  ;;  %17152 = vst [vmem:[#allocation220_spill] sm:$0xff] %v12239_v0  ;;  %v12247_v58 = vadd.f32 %v17155_v59, %v897_v11  ;;  %v963_v1 = vmul.f32 %v17150_v57, %v11998_v53  ;;  %v901_v39 = vmul.f32 %v17157_v35, %v11995_v55  ;;  %v2413_v0 = vmax.f32 %v2285_v47, 0.0  ;;  %v17161_v11 = vld [vmem:[#allocation61_spill] sm:$0xff] }
 0x26f   : > { %17154 = vst [vmem:[#allocation221_spill] sm:$0xff] %v12244_v17  ;;  %v1640_v26 = vmul.f32 %v17158_v18, %v12031_v14  ;;  %v1244_v3 = vadd.f32 %v17159_v23, %v860_v15  ;;  %v2160_v10 = vmul.f32 %v12111_v48, %v12165_v43  ;;  %v2286_v13 = vadd.f32 %v2158_v54, %v1766_v45 }
 0x270   : > { %17156 = vst [vmem:[#allocation59_spill] sm:$0xff] %v12247_v58  ;;  %v12259_v63 = vadd.f32 %v17155_v59, %v961_v22  ;;  %v12262_v58 = vadd.f32 %v17161_v11, %v899_v9  ;;  %v965_v57 = vmul.f32 %v17157_v35, %v11998_v53  ;;  %v903_v24 = vmul.f32 %v17162_v52, %v11995_v55  ;;  %v12268_v18 = vpop.permute.xlu1 %1949  ;;  %v12275_v45 = vpop.permute.xlu0 %622  ;;  %v17166_v35 = vld [vmem:[#allocation63_spill] sm:$0xff] }
 0x271   : > { %17163 = vst [vmem:[#allocation61_spill] sm:$0xff] %v12268_v18  ;;  %v1636_v15 = vmul.f32 %v11786_v28, %v12031_v14  ;;  %v1250_v47 = vadd.f32 %v11612_v44, %v866_v21  ;;  %v868_v54 = vmul.f32 %v12122_v50, %v11995_v55  ;;  %17164 = vst [vmem:[#allocation64_spill] sm:$0xff] %v12275_v45  ;;  %2543 = vadd.xlane.f32.xlu0 %v2413_v0 }
 0x272   : > { %17160 = vst [vmem:[#allocation62_spill] sm:$0xff] %v12259_v63  ;;  %v1768_v9 = vadd.f32 %v1640_v26, %v1248_v7  ;;  %v12278_v22 = vadd.f32 %v17161_v11, %v963_v1  ;;  %v12281_v59 = vadd.f32 %v17166_v35, %v901_v39  ;;  %v17167_v63 = vld [vmem:[#allocation98_spill] sm:$0xff]  ;;  %v1639_v23 = vmul.f32 %v11799_v36, %v12031_v14  ;;  %v17169_v39 = vld [vmem:[#allocation65_spill] sm:$0xff] }
 0x273   : > { %v1642_v48 = vmul.f32 %v17167_v63, %v12031_v14  ;;  %v2162_v21 = vmul.f32 %v12153_v2, %v12165_v43  ;;  %v2414_v50 = vmax.f32 %v2286_v13, 0.0  ;;  %v1764_v28 = vadd.f32 %v1636_v15, %v1244_v3  ;;  %v17170_v26 = vld [vmem:[#allocation66_spill] sm:$0xff] }
 0x274   : > { %17165 = vst [vmem:[#allocation222_spill] sm:$0xff] %v12278_v22  ;;  %v2288_v44 = vadd.f32 %v2160_v10, %v1768_v9  ;;  %v12290_v0 = vadd.f32 %v17166_v35, %v965_v57  ;;  %v967_v7 = vmul.f32 %v17162_v52, %v11998_v53  ;;  %v12295_v1 = vadd.f32 %v17169_v39, %v903_v24  ;;  %v12299_v22 = vpop.permute.xlu1 %1957  ;;  %v12306_v10 = vpop.permute.xlu0 %632  ;;  %v17173_v24 = vld [vmem:[#allocation100_spill] sm:$0xff] }
 0x275   : > { %v905_v11 = vmul.f32 %v17170_v26, %v11995_v55  ;;  %17171 = vst [vmem:[#allocation98_spill] sm:$0xff] %v12299_v22  ;;  %v2156_v2 = vmul.f32 %v11782_v33, %v12165_v43  ;;  %v1252_v13 = vadd.f32 %v11618_v62, %v868_v54  ;;  %v870_v3 = vmul.f32 %v12167_v51, %v11995_v55 }
 0x276   : > { %17168 = vst [vmem:[#allocation63_spill] sm:$0xff] %v12290_v0  ;;  %17172 = vst [vmem:[#allocation65_spill] sm:$0xff] %v12306_v10  ;;  %2545 = vadd.xlane.f32.xlu0 %v2414_v50  ;;  %v1770_v52 = vadd.f32 %v1642_v48, %v1250_v47  ;;  %v1644_v57 = vmul.f32 %v17173_v24, %v12031_v14  ;;  %v2159_v15 = vmul.f32 %v11788_v34, %v12165_v43  ;;  %v17175_v47 = vld [vmem:[#allocation67_spill] sm:$0xff] }
 0x277   : > { %v1767_v9 = vadd.f32 %v1639_v23, %v12037_v19  ;;  %v1641_v35 = vmul.f32 %v11806_v37, %v12031_v14  ;;  %v2164_v54 = vmul.f32 %v12196_v4, %v12165_v43  ;;  %v2416_v0 = vmax.f32 %v2288_v44, 0.0  ;;  %v17176_v19 = vld [vmem:[#allocation69_spill] sm:$0xff]  ;;  %v17178_v37 = vld [vmem:[#allocation102_spill] sm:$0xff] }
 0x278   : > { %v2290_v51 = vadd.f32 %v2162_v21, %v1770_v52  ;;  %v2284_v62 = vadd.f32 %v2156_v2, %v1764_v28  ;;  %v12318_v50 = vadd.f32 %v17169_v39, %v967_v7  ;;  %v969_v48 = vmul.f32 %v17170_v26, %v11998_v53  ;;  %v12327_v34 = vpop.permute.xlu1 %1965  ;;  %v12334_v2 = vpop.permute.xlu0 %642 }
 0x279   : > { %v12323_v36 = vadd.f32 %v17175_v47, %v905_v11  ;;  %v907_v23 = vmul.f32 %v17176_v19, %v11995_v55  ;;  %17177 = vst [vmem:[#allocation100_spill] sm:$0xff] %v12327_v34  ;;  %v1646_v4 = vmul.f32 %v17178_v37, %v12031_v14  ;;  %v1254_v44 = vadd.f32 %v11624_v49, %v870_v3 }
 0x27a   : > { %17174 = vst [vmem:[#allocation66_spill] sm:$0xff] %v12318_v50  ;;  %v872_v28 = vmul.f32 %v12207_v46, %v11995_v55  ;;  %17179 = vst [vmem:[#allocation67_spill] sm:$0xff] %v12334_v2  ;;  %2549 = vadd.xlane.f32.xlu0 %v2416_v0  ;;  %v1772_v21 = vadd.f32 %v1644_v57, %v1252_v13  ;;  %v2161_v7 = vmul.f32 %v11795_v32, %v12165_v43  ;;  %v17181_v13 = vld [vmem:[#allocation70_spill] sm:$0xff] }
 0x27b   : > { %v1769_v39 = vadd.f32 %v1641_v35, %v12048_v20  ;;  %v1643_v26 = vmul.f32 %v11812_v38, %v12031_v14  ;;  %v2287_v11 = vadd.f32 %v2159_v15, %v1767_v9  ;;  %v2166_v52 = vmul.f32 %v12236_v16, %v12165_v43  ;;  %v17182_v20 = vld [vmem:[#allocation104_spill] sm:$0xff] }
 0x27c   : > { %v2418_v3 = vmax.f32 %v2290_v51, 0.0  ;;  %v2412_v50 = vmax.f32 %v2284_v62, 0.0  ;;  %v2292_v49 = vadd.f32 %v2164_v54, %v1772_v21  ;;  %v12344_v46 = vadd.f32 %v17175_v47, %v969_v48  ;;  %v12353_v38 = vpop.permute.xlu1 %1973  ;;  %v12358_v51 = vpop.permute.xlu0 %652 }
 0x27d   : > { %v971_v0 = vmul.f32 %v17176_v19, %v11998_v53  ;;  %v12349_v57 = vadd.f32 %v17181_v13, %v907_v23  ;;  %v1648_v35 = vmul.f32 %v17182_v20, %v12031_v14  ;;  %17183 = vst [vmem:[#allocation102_spill] sm:$0xff] %v12353_v38  ;;  %v1256_v15 = vadd.f32 %v11630_v40, %v872_v28 }
 0x27e   : > { %17180 = vst [vmem:[#allocation69_spill] sm:$0xff] %v12344_v46  ;;  %v874_v62 = vmul.f32 %v12244_v17, %v11995_v55  ;;  %17184 = vst [vmem:[#allocation70_spill] sm:$0xff] %v12358_v51  ;;  %2553 = vadd.xlane.f32.xlu0 %v2418_v3  ;;  %2541 = vadd.xlane.f32.xlu1 %v2412_v50  ;;  %v1774_v9 = vadd.f32 %v1646_v4, %v1254_v44  ;;  %v2415_v47 = vmax.f32 %v2287_v11, 0.0  ;;  %v17186_v4 = vld [vmem:[#allocation72_spill] sm:$0xff] }
 0x27f   : > { %v2163_v54 = vmul.f32 %v11801_v27, %v12165_v43  ;;  %v1771_v48 = vadd.f32 %v1643_v26, %v12058_v60  ;;  %v2289_v19 = vadd.f32 %v2161_v7, %v1769_v39  ;;  %v1645_v23 = vmul.f32 %v11818_v31, %v12031_v14  ;;  %v17187_v60 = vld [vmem:[#allocation106_spill] sm:$0xff] }
 0x280   : > { %v2168_v28 = vmul.f32 %v12268_v18, %v12165_v43  ;;  %v2420_v21 = vmax.f32 %v2292_v49, 0.0  ;;  %v2294_v46 = vadd.f32 %v2166_v52, %v1774_v9  ;;  %v12368_v17 = vadd.f32 %v17181_v13, %v971_v0  ;;  %v12376_v39 = vpop.permute.xlu1 %1981  ;;  %v12381_v11 = vpop.permute.xlu0 %662 }
 0x281   : > { %v909_v50 = vmul.f32 %v17186_v4, %v11995_v55  ;;  %v973_v44 = vmul.f32 %v17186_v4, %v11998_v53  ;;  %v1650_v7 = vmul.f32 %v17187_v60, %v12031_v14  ;;  %17188 = vst [vmem:[#allocation72_spill] sm:$0xff] %v12376_v39  ;;  %v1258_v26 = vadd.f32 %v11636_v42, %v874_v62  ;;  %v17190_v42 = vld [vmem:[#allocation73_spill] sm:$0xff] }
 0x282   : > { %17185 = vst [vmem:[#allocation104_spill] sm:$0xff] %v12368_v17  ;;  %v876_v49 = vmul.f32 %v12275_v45, %v11995_v55  ;;  %17189 = vst [vmem:[#allocation106_spill] sm:$0xff] %v12381_v11  ;;  %2557 = vadd.xlane.f32.xlu0 %v2420_v21  ;;  %2547 = vadd.xlane.f32.xlu1 %v2415_v47  ;;  %v1776_v52 = vadd.f32 %v1648_v35, %v1256_v15  ;;  %v2417_v13 = vmax.f32 %v2289_v19, 0.0  ;;  %v17192_v15 = vld [vmem:[#allocation75_spill] sm:$0xff]  ;;  %v17193_v21 = vld [vmem:[#allocation108_spill] sm:$0xff] }
 0x283   : > { %v2165_v3 = vmul.f32 %v11808_v5, %v12165_v43  ;;  %v1647_v0 = vmul.f32 %v11824_v29, %v12031_v14  ;;  %v2291_v9 = vadd.f32 %v2163_v54, %v1771_v48  ;;  %v1773_v4 = vadd.f32 %v1645_v23, %v12070_v12 }
 0x284   : > { %v2170_v62 = vmul.f32 %v12299_v22, %v12165_v43  ;;  %v2422_v17 = vmax.f32 %v2294_v46, 0.0  ;;  %v2296_v45 = vadd.f32 %v2168_v28, %v1776_v52  ;;  %v12391_v18 = vadd.f32 %v17190_v42, %v909_v50  ;;  %v12400_v54 = vpop.permute.xlu1 %1989  ;;  %v12405_v48 = vpop.permute.xlu0 %672 }
 0x285   : > { %v12394_v35 = vadd.f32 %v17190_v42, %v973_v44  ;;  %v911_v47 = vmul.f32 %v17192_v15, %v11995_v55  ;;  %v1652_v19 = vmul.f32 %v17193_v21, %v12031_v14  ;;  %17194 = vst [vmem:[#allocation75_spill] sm:$0xff] %v12400_v54  ;;  %v1260_v12 = vadd.f32 %v11642_v6, %v876_v49 }
 0x286   : > { %v878_v46 = vmul.f32 %v12306_v10, %v11995_v55  ;;  %17195 = vst [vmem:[#allocation108_spill] sm:$0xff] %v12405_v48  ;;  %2561 = vadd.xlane.f32.xlu0 %v2422_v17  ;;  %2551 = vadd.xlane.f32.xlu1 %v2417_v13  ;;  %v1778_v23 = vadd.f32 %v1650_v7, %v1258_v26  ;;  %v2419_v44 = vmax.f32 %v2291_v9, 0.0  ;;  %v2424_v52 = vmax.f32 %v2296_v45, 0.0  ;;  %v17196_v13 = vld [vmem:[#allocation76_spill] sm:$0xff]  ;;  %v17197_v26 = vld [vmem:[#allocation78_spill] sm:$0xff] }
 0x287   : > { %17191 = vst [vmem:[#allocation73_spill] sm:$0xff] %v12394_v35  ;;  %v2167_v42 = vmul.f32 %v11814_v30, %v12165_v43  ;;  %v1775_v28 = vadd.f32 %v1647_v0, %v12083_v61  ;;  %v1649_v50 = vmul.f32 %v11830_v25, %v12031_v14  ;;  %v2172_v49 = vmul.f32 %v12327_v34, %v12165_v43  ;;  %v17198_v61 = vld [vmem:[#allocation110_spill] sm:$0xff] }
 0x288   : > { %v2298_v35 = vadd.f32 %v2170_v62, %v1778_v23  ;;  %v2293_v10 = vadd.f32 %v2165_v3, %v1773_v4  ;;  %v975_v17 = vmul.f32 %v17192_v15, %v11998_v53  ;;  %v12417_v7 = vadd.f32 %v17196_v13, %v911_v47  ;;  %v12423_v22 = vpop.permute.xlu1 %1997  ;;  %v12428_v3 = vpop.permute.xlu0 %682  ;;  %v17201_v15 = vld [vmem:[#allocation31_spill] sm:$0xff]  ;;  %v17202_v23 = vld [vmem:[#allocation172_spill] sm:$0xff] }
 0x289   : > { %v913_v6 = vmul.f32 %v17197_v26, %v11995_v55  ;;  %v1654_v0 = vmul.f32 %v17198_v61, %v12031_v14  ;;  %17199 = vst [vmem:[#allocation76_spill] sm:$0xff] %v12423_v22  ;;  %v1262_v9 = vadd.f32 %v11648_v8, %v878_v46  ;;  %v880_v45 = vmul.f32 %v12334_v2, %v11995_v55 }
 0x28a   : > { %17200 = vst [vmem:[#allocation78_spill] sm:$0xff] %v12428_v3  ;;  %2565 = vadd.xlane.f32.xlu0 %v2424_v52  ;;  %2555 = vadd.xlane.f32.xlu1 %v2419_v44  ;;  %v1780_v4 = vadd.f32 %v1652_v19, %v1260_v12  ;;  %v2169_v62 = vmul.f32 %v11820_v41, %v12165_v43  ;;  %v2426_v8 = vmax.f32 %v2298_v35, 0.0  ;;  %v2421_v16 = vmax.f32 %v2293_v10, 0.0  ;;  %v17204_v12 = vld [vmem:[#allocation79_spill] sm:$0xff]  ;;  %v17230_v41 = vld [vmem:[#allocation85_spill] sm:$0xff] }
 0x28b   : > { %v1777_v47 = vadd.f32 %v1649_v50, %v17201_v15  ;;  %v1651_v34 = vmul.f32 %v17202_v23, %v12031_v14  ;;  %v2295_v40 = vadd.f32 %v2167_v42, %v1775_v28  ;;  %v2174_v46 = vmul.f32 %v12353_v38, %v12165_v43  ;;  %v17205_v50 = vld [vmem:[#allocation81_spill] sm:$0xff]  ;;  %v17211_v38 = vld [vmem:[#allocation174_spill] sm:$0xff] }
 0x28c   : > { %v2300_v2 = vadd.f32 %v2172_v49, %v1780_v4  ;;  %v12438_v25 = vadd.f32 %v17196_v13, %v975_v17  ;;  %v977_v19 = vmul.f32 %v17197_v26, %v11998_v53  ;;  %v12443_v44 = vadd.f32 %v17204_v12, %v913_v6  ;;  %v12447_v15 = vpop.permute.xlu1 %2005  ;;  %v17207_v42 = vld [vmem:[#allocation113_spill] sm:$0xff]  ;;  %v12452_v35 = vpop.permute.xlu0 %692  ;;  %v17209_v17 = vld [vmem:[#allocation112_spill] sm:$0xff] }
 0x28d   : > { %v915_v52 = vmul.f32 %v17205_v50, %v11995_v55  ;;  %17206 = vst [vmem:[#allocation31_spill] sm:$0xff] %v12447_v15  ;;  %v1264_v28 = vadd.f32 %v17207_v42, %v880_v45  ;;  %v882_v10 = vmul.f32 %v12358_v51, %v11995_v55  ;;  %17208 = vst [vmem:[#allocation79_spill] sm:$0xff] %v12452_v35  ;;  %v17210_v6 = vld [vmem:[#allocation33_spill] sm:$0xff]  ;;  %v2423_v4 = vmax.f32 %v2295_v40, 0.0 }
 0x28e   : > { %17203 = vst [vmem:[#allocation110_spill] sm:$0xff] %v12438_v25  ;;  %2569 = vadd.xlane.f32.xlu0 %v2426_v8  ;;  %2559 = vadd.xlane.f32.xlu1 %v2421_v16  ;;  %v1782_v49 = vadd.f32 %v1654_v0, %v1262_v9  ;;  %v1656_v13 = vmul.f32 %v17209_v17, %v12031_v14  ;;  %v2428_v42 = vmax.f32 %v2300_v2, 0.0  ;;  %v17213_v16 = vld [vmem:[#allocation82_spill] sm:$0xff]  ;;  %v17214_v40 = vld [vmem:[#allocation169_spill] sm:$0xff] }
 0x28f   : > { %v1779_v26 = vadd.f32 %v1651_v34, %v17210_v6  ;;  %v2297_v25 = vadd.f32 %v2169_v62, %v1777_v47  ;;  %v1653_v23 = vmul.f32 %v17211_v38, %v12031_v14  ;;  %v2176_v45 = vmul.f32 %v12376_v39, %v12165_v43  ;;  %v17216_v62 = vld [vmem:[#allocation115_spill] sm:$0xff]  ;;  %v17220_v39 = vld [vmem:[#allocation42_spill] sm:$0xff] }
 0x290   : > { %v2302_v51 = vadd.f32 %v2174_v46, %v1782_v49  ;;  %v12462_v29 = vadd.f32 %v17204_v12, %v977_v19  ;;  %v979_v8 = vmul.f32 %v17205_v50, %v11998_v53  ;;  %v12467_v0 = vadd.f32 %v17213_v16, %v915_v52  ;;  %v12471_v9 = vpop.permute.xlu1 %2013  ;;  %v12476_v46 = vpop.permute.xlu0 %702  ;;  %v17218_v12 = vld [vmem:[#allocation114_spill] sm:$0xff]  ;;  %v17219_v52 = vld [vmem:[#allocation176_spill] sm:$0xff] }
 0x291   : > { %v2171_v34 = vmul.f32 %v17214_v40, %v12165_v43  ;;  %17215 = vst [vmem:[#allocation112_spill] sm:$0xff] %v12471_v9  ;;  %v1266_v47 = vadd.f32 %v17216_v62, %v882_v10  ;;  %v884_v2 = vmul.f32 %v12381_v11, %v11995_v55  ;;  %17217 = vst [vmem:[#allocation33_spill] sm:$0xff] %v12476_v46  ;;  %v2425_v6 = vmax.f32 %v2297_v25, 0.0 }
 0x292   : > { %17212 = vst [vmem:[#allocation81_spill] sm:$0xff] %v12462_v29  ;;  %2573 = vadd.xlane.f32.xlu0 %v2428_v42  ;;  %2563 = vadd.xlane.f32.xlu1 %v2423_v4  ;;  %v1784_v19 = vadd.f32 %v1656_v13, %v1264_v28  ;;  %v1658_v50 = vmul.f32 %v17218_v12, %v12031_v14  ;;  %v2430_v62 = vmax.f32 %v2302_v51, 0.0  ;;  %v17222_v42 = vld [vmem:[#allocation84_spill] sm:$0xff]  ;;  %v17223_v4 = vld [vmem:[#allocation171_spill] sm:$0xff] }
 0x293   : > { %v1655_v49 = vmul.f32 %v17219_v52, %v12031_v14  ;;  %v2299_v29 = vadd.f32 %v2171_v34, %v1779_v26  ;;  %v1781_v38 = vadd.f32 %v1653_v23, %v17220_v39  ;;  %v2178_v10 = vmul.f32 %v12400_v54, %v12165_v43  ;;  %v17225_v39 = vld [vmem:[#allocation117_spill] sm:$0xff] }
 0x294   : > { %v2304_v11 = vadd.f32 %v2176_v45, %v1784_v19  ;;  %v12486_v40 = vadd.f32 %v17213_v16, %v979_v8  ;;  %v917_v28 = vmul.f32 %v17222_v42, %v11995_v55  ;;  %v981_v13 = vmul.f32 %v17222_v42, %v11998_v53  ;;  %v12494_v26 = vpop.permute.xlu1 %2021  ;;  %v12499_v45 = vpop.permute.xlu0 %712  ;;  %v17227_v16 = vld [vmem:[#allocation116_spill] sm:$0xff]  ;;  %v17228_v19 = vld [vmem:[#allocation39_spill] sm:$0xff] }
 0x295   : > { %v2173_v25 = vmul.f32 %v17223_v4, %v12165_v43  ;;  %17224 = vst [vmem:[#allocation114_spill] sm:$0xff] %v12494_v26  ;;  %v1268_v23 = vadd.f32 %v17225_v39, %v884_v2  ;;  %v886_v51 = vmul.f32 %v12405_v48, %v11995_v55  ;;  %17226 = vst [vmem:[#allocation42_spill] sm:$0xff] %v12499_v45  ;;  %v2427_v52 = vmax.f32 %v2299_v29, 0.0  ;;  %v17236_v29 = vld [vmem:[#allocation119_spill] sm:$0xff] }
 0x296   : > { %17221 = vst [vmem:[#allocation82_spill] sm:$0xff] %v12486_v40  ;;  %2577 = vadd.xlane.f32.xlu0 %v2430_v62  ;;  %2567 = vadd.xlane.f32.xlu1 %v2425_v6  ;;  %v1786_v8 = vadd.f32 %v1658_v50, %v1266_v47  ;;  %v1660_v34 = vmul.f32 %v17227_v16, %v12031_v14  ;;  %v17229_v40 = vld [vmem:[#allocation178_spill] sm:$0xff]  ;;  %v2432_v39 = vmax.f32 %v2304_v11, 0.0 }
 0x297   : > { %v1783_v42 = vadd.f32 %v1655_v49, %v17228_v19  ;;  %v1657_v54 = vmul.f32 %v17229_v40, %v12031_v14  ;;  %v2180_v2 = vmul.f32 %v12423_v22, %v12165_v43  ;;  %v2301_v48 = vadd.f32 %v2173_v25, %v1781_v38  ;;  %v17233_v47 = vld [vmem:[#allocation86_spill] sm:$0xff]  ;;  %v17234_v49 = vld [vmem:[#allocation173_spill] sm:$0xff] }
 0x298   : > { %v2306_v4 = vadd.f32 %v2178_v10, %v1786_v8  ;;  %v12509_v30 = vadd.f32 %v17230_v41, %v917_v28  ;;  %v12512_v62 = vadd.f32 %v17230_v41, %v981_v13  ;;  %v919_v50 = vmul.f32 %v17233_v47, %v11995_v55  ;;  %v12518_v19 = vpop.permute.xlu1 %2029  ;;  %v12523_v38 = vpop.permute.xlu0 %722  ;;  %v17238_v41 = vld [vmem:[#allocation118_spill] sm:$0xff]  ;;  %v17240_v8 = vld [vmem:[#allocation180_spill] sm:$0xff] }
 0x299   : > { %v2175_v6 = vmul.f32 %v17234_v49, %v12165_v43  ;;  %17235 = vst [vmem:[#allocation39_spill] sm:$0xff] %v12518_v19  ;;  %v1270_v40 = vadd.f32 %v17236_v29, %v886_v51  ;;  %v888_v11 = vmul.f32 %v12428_v3, %v11995_v55  ;;  %17237 = vst [vmem:[#allocation85_spill] sm:$0xff] %v12523_v38  ;;  %v17239_v13 = vld [vmem:[#allocation46_spill] sm:$0xff]  ;;  %v2429_v49 = vmax.f32 %v2301_v48, 0.0 }
 0x29a   : > { %17231 = vst [vmem:[#allocation84_spill] sm:$0xff] %v12509_v30  ;;  %17232 = vst [vmem:[#allocation116_spill] sm:$0xff] %v12512_v62  ;;  %2581 = vadd.xlane.f32.xlu0 %v2432_v39  ;;  %2571 = vadd.xlane.f32.xlu1 %v2427_v52  ;;  %v1788_v10 = vadd.f32 %v1660_v34, %v1268_v23  ;;  %v1662_v28 = vmul.f32 %v17238_v41, %v12031_v14  ;;  %v2434_v29 = vmax.f32 %v2306_v4, 0.0  ;;  %v17241_v52 = vld [vmem:[#allocation87_spill] sm:$0xff]  ;;  %v17243_v34 = vld [vmem:[#allocation88_spill] sm:$0xff] }
 0x29b   : > { %v1785_v25 = vadd.f32 %v1657_v54, %v17239_v13  ;;  %v1659_v62 = vmul.f32 %v17240_v8, %v12031_v14  ;;  %v2303_v22 = vadd.f32 %v2175_v6, %v1783_v42  ;;  %v2182_v51 = vmul.f32 %v12447_v15, %v12165_v43  ;;  %v17244_v54 = vld [vmem:[#allocation175_spill] sm:$0xff]  ;;  %v17246_v42 = vld [vmem:[#allocation121_spill] sm:$0xff] }
 0x29c   : > { %v2308_v3 = vadd.f32 %v2180_v2, %v1788_v10  ;;  %v983_v39 = vmul.f32 %v17233_v47, %v11998_v53  ;;  %v12535_v23 = vadd.f32 %v17241_v52, %v919_v50  ;;  %v921_v5 = vmul.f32 %v17243_v34, %v11995_v55  ;;  %v12541_v8 = vpop.permute.xlu1 %2037  ;;  %v12546_v4 = vpop.permute.xlu0 %732  ;;  %v17248_v47 = vld [vmem:[#allocation120_spill] sm:$0xff] }
 0x29d   : > { %v2177_v13 = vmul.f32 %v17244_v54, %v12165_v43  ;;  %17245 = vst [vmem:[#allocation118_spill] sm:$0xff] %v12541_v8  ;;  %v1272_v6 = vadd.f32 %v17246_v42, %v888_v11  ;;  %v890_v48 = vmul.f32 %v12452_v35, %v11995_v55  ;;  %17247 = vst [vmem:[#allocation46_spill] sm:$0xff] %v12546_v4  ;;  %v17249_v10 = vld [vmem:[#allocation48_spill] sm:$0xff]  ;;  %v17250_v54 = vld [vmem:[#allocation182_spill] sm:$0xff] }
 0x29e   : > { %17242 = vst [vmem:[#allocation86_spill] sm:$0xff] %v12535_v23  ;;  %2585 = vadd.xlane.f32.xlu0 %v2434_v29  ;;  %2575 = vadd.xlane.f32.xlu1 %v2429_v49  ;;  %v1790_v2 = vadd.f32 %v1662_v28, %v1270_v40  ;;  %v1664_v50 = vmul.f32 %v17248_v47, %v12031_v14  ;;  %v2431_v23 = vmax.f32 %v2303_v22, 0.0  ;;  %v2436_v42 = vmax.f32 %v2308_v3, 0.0  ;;  %v17252_v49 = vld [vmem:[#allocation89_spill] sm:$0xff] }
 0x29f   : > { %v1787_v15 = vadd.f32 %v1659_v62, %v17249_v10  ;;  %v2305_v31 = vadd.f32 %v2177_v13, %v1785_v25  ;;  %v1661_v27 = vmul.f32 %v17250_v54, %v12031_v14  ;;  %v2184_v11 = vmul.f32 %v12471_v9, %v12165_v43  ;;  %v17254_v22 = vld [vmem:[#allocation177_spill] sm:$0xff]  ;;  %v17256_v25 = vld [vmem:[#allocation123_spill] sm:$0xff] }
 0x2a0   : > { %v2310_v35 = vadd.f32 %v2182_v51, %v1790_v2  ;;  %v12556_v30 = vadd.f32 %v17241_v52, %v983_v39  ;;  %v985_v40 = vmul.f32 %v17243_v34, %v11998_v53  ;;  %v12561_v29 = vadd.f32 %v17252_v49, %v921_v5  ;;  %v12565_v28 = vpop.permute.xlu1 %2045  ;;  %v12570_v51 = vpop.permute.xlu0 %742  ;;  %v17258_v52 = vld [vmem:[#allocation122_spill] sm:$0xff]  ;;  %v17259_v5 = vld [vmem:[#allocation184_spill] sm:$0xff]  ;;  %v17260_v9 = vld [vmem:[#allocation47_spill] sm:$0xff] }
 0x2a1   : > { %v2179_v62 = vmul.f32 %v17254_v22, %v12165_v43  ;;  %17255 = vst [vmem:[#allocation120_spill] sm:$0xff] %v12565_v28  ;;  %v1274_v13 = vadd.f32 %v17256_v25, %v890_v48  ;;  %v892_v3 = vmul.f32 %v12476_v46, %v11995_v55  ;;  %17257 = vst [vmem:[#allocation48_spill] sm:$0xff] %v12570_v51  ;;  %v2433_v10 = vmax.f32 %v2305_v31, 0.0 }
 0x2a2   : > { %17251 = vst [vmem:[#allocation87_spill] sm:$0xff] %v12556_v30  ;;  %17253 = vst [vmem:[#allocation88_spill] sm:$0xff] %v12561_v29  ;;  %2589 = vadd.xlane.f32.xlu0 %v2436_v42  ;;  %2579 = vadd.xlane.f32.xlu1 %v2431_v23  ;;  %v1792_v39 = vadd.f32 %v1664_v50, %v1272_v6  ;;  %v1666_v34 = vmul.f32 %v17258_v52, %v12031_v14  ;;  %v2438_v25 = vmax.f32 %v2310_v35, 0.0  ;;  %v17262_v23 = vld [vmem:[#allocation91_spill] sm:$0xff] }
 0x2a3   : > { %v1663_v2 = vmul.f32 %v17259_v5, %v12031_v14  ;;  %v2307_v30 = vadd.f32 %v2179_v62, %v1787_v15  ;;  %v1789_v22 = vadd.f32 %v1661_v27, %v17260_v9  ;;  %v2186_v48 = vmul.f32 %v12494_v26, %v12165_v43  ;;  %v17263_v50 = vld [vmem:[#allocation179_spill] sm:$0xff]  ;;  %v17265_v27 = vld [vmem:[#allocation125_spill] sm:$0xff]  ;;  %v17269_v5 = vld [vmem:[#allocation92_spill] sm:$0xff] }
 0x2a4   : > { %v2312_v46 = vadd.f32 %v2184_v11, %v1792_v39  ;;  %v12580_v54 = vadd.f32 %v17252_v49, %v985_v40  ;;  %v923_v42 = vmul.f32 %v17262_v23, %v11995_v55  ;;  %v987_v6 = vmul.f32 %v17262_v23, %v11998_v53  ;;  %v12588_v15 = vpop.permute.xlu1 %2053  ;;  %v12593_v11 = vpop.permute.xlu0 %752  ;;  %v17267_v49 = vld [vmem:[#allocation124_spill] sm:$0xff]  ;;  %v17268_v23 = vld [vmem:[#allocation186_spill] sm:$0xff] }
 0x2a5   : > { %v2181_v31 = vmul.f32 %v17263_v50, %v12165_v43  ;;  %17264 = vst [vmem:[#allocation122_spill] sm:$0xff] %v12588_v15  ;;  %v1276_v9 = vadd.f32 %v17265_v27, %v892_v3  ;;  %v894_v35 = vmul.f32 %v12499_v45, %v11995_v55  ;;  %17266 = vst [vmem:[#allocation47_spill] sm:$0xff] %v12593_v11  ;;  %v2435_v26 = vmax.f32 %v2307_v30, 0.0 }
 0x2a6   : > { %17261 = vst [vmem:[#allocation89_spill] sm:$0xff] %v12580_v54  ;;  %2593 = vadd.xlane.f32.xlu0 %v2438_v25  ;;  %2583 = vadd.xlane.f32.xlu1 %v2433_v10  ;;  %v1794_v40 = vadd.f32 %v1666_v34, %v1274_v13  ;;  %v1668_v62 = vmul.f32 %v17267_v49, %v12031_v14  ;;  %v2440_v27 = vmax.f32 %v2312_v46, 0.0  ;;  %v17272_v13 = vld [vmem:[#allocation212_spill] sm:$0xff]  ;;  %v17274_v10 = vld [vmem:[#allocation214_spill] sm:$0xff] }
 0x2a7   : > { %v1791_v39 = vadd.f32 %v1663_v2, %v12182_v56  ;;  %v1665_v54 = vmul.f32 %v17268_v23, %v12031_v14  ;;  %v2188_v3 = vmul.f32 %v12518_v19, %v12165_v43  ;;  %v2309_v45 = vadd.f32 %v2181_v31, %v1789_v22  ;;  %v17275_v2 = vld [vmem:[#allocation181_spill] sm:$0xff]  ;;  %v17277_v19 = vld [vmem:[#allocation127_spill] sm:$0xff] }
 0x2a8   : > { %v2314_v50 = vadd.f32 %v2186_v48, %v1794_v40  ;;  %v12603_v29 = vadd.f32 %v17269_v5, %v923_v42  ;;  %v12606_v25 = vadd.f32 %v17269_v5, %v987_v6  ;;  %v17273_v34 = vsub.s32 2, %v17272_v13  ;;  %v12615_v23 = vpop.permute.xlu1 %2061  ;;  %v12620_v48 = vpop.permute.xlu0 %762  ;;  %v17279_v42 = vld [vmem:[#allocation126_spill] sm:$0xff]  ;;  %v17280_v31 = vld [vmem:[#allocation49_spill] sm:$0xff] }
 0x2a9   : > { %v2183_v30 = vmul.f32 %v17275_v2, %v12165_v43  ;;  %17276 = vst [vmem:[#allocation92_spill] sm:$0xff] %v12615_v23  ;;  %v1278_v46 = vadd.f32 %v17277_v19, %v894_v35  ;;  %v896_v22 = vmul.f32 %v12523_v38, %v11995_v55  ;;  %17278 = vst [vmem:[#allocation214_spill] sm:$0xff] %v12620_v48  ;;  %v17282_v2 = vld [vmem:[#allocation30_spill] sm:$0xff] }
 0x2aa   : > { %17270 = vst [vmem:[#allocation91_spill] sm:$0xff] %v12603_v29  ;;  %17271 = vst [vmem:[#allocation124_spill] sm:$0xff] %v12606_v25  ;;  %v12611_v56 = vrot.slane %v17274_v10, %v17273_v34  ;;  %2597 = vadd.xlane.f32.xlu0 %v2440_v27  ;;  %2587 = vadd.xlane.f32.xlu1 %v2435_v26  ;;  %v1796_v5 = vadd.f32 %v1668_v62, %v1276_v9  ;;  %v17281_v34 = vld [vmem:[#allocation188_spill] sm:$0xff]  ;;  %v2442_v19 = vmax.f32 %v2314_v50, 0.0  ;;  %v17283_v29 = vld [vmem:[#allocation94_spill] sm:$0xff] }
 0x2ab   : > { %v1670_v6 = vmul.f32 %v17279_v42, %v12031_v14  ;;  %v1793_v40 = vadd.f32 %v1665_v54, %v17280_v31  ;;  %v1667_v10 = vmul.f32 %v17281_v34, %v12031_v14  ;;  %v2311_v13 = vadd.f32 %v2183_v30, %v1791_v39  ;;  %v17285_v26 = vld [vmem:[#allocation26_spill] sm:$0xff]  ;;  %v17286_v9 = vld [vmem:[#allocation95_spill] sm:$0xff]  ;;  %v17287_v54 = vld [vmem:[#allocation96_spill] sm:$0xff] }
 0x2ac   : > { %v2190_v35 = vmul.f32 %v12541_v8, %v12165_v43  ;;  %v2437_v25 = vmax.f32 %v2309_v45, 0.0  ;;  %v2316_v38 = vadd.f32 %v2188_v3, %v1796_v5  ;;  %v12631_v27 = vmul.f32 %v17283_v29, %v17282_v2  ;;  %v17289_v39 = vld [vmem:[#allocation183_spill] sm:$0xff]  ;;  %v12643_v34 = vpop.permute.xlu1 %2069  ;;  %v17291_v50 = vld [vmem:[#allocation129_spill] sm:$0xff]  ;;  %v12648_v29 = vpop.permute.xlu0 %772 }
 0x2ad   : > { %v12635_v62 = vadd.f32 %v17286_v9, %v17285_v26  ;;  %v12639_v31 = vmul.f32 %v17287_v54, %v17282_v2  ;;  %v2185_v30 = vmul.f32 %v17289_v39, %v12165_v43  ;;  %17290 = vst [vmem:[#allocation30_spill] sm:$0xff] %v12643_v34  ;;  %v1280_v45 = vadd.f32 %v17291_v50, %v896_v22  ;;  %v17293_v26 = vld [vmem:[#allocation128_spill] sm:$0xff]  ;;  %v17294_v54 = vld [vmem:[#allocation53_spill] sm:$0xff]  ;;  %v17295_v39 = vld [vmem:[#allocation190_spill] sm:$0xff] }
 0x2ae   : > { %17284 = vst [vmem:[#allocation126_spill] sm:$0xff] %v12631_v27  ;;  %v898_v3 = vmul.f32 %v12546_v4, %v11995_v55  ;;  %17292 = vst [vmem:[#allocation94_spill] sm:$0xff] %v12648_v29  ;;  %2601 = vadd.xlane.f32.xlu0 %v2442_v19  ;;  %2591 = vadd.xlane.f32.xlu1 %v2437_v25  ;;  %v1798_v5 = vadd.f32 %v1670_v6, %v1278_v46  ;;  %v2439_v27 = vmax.f32 %v2311_v13, 0.0  ;;  %v17297_v46 = vld [vmem:[#allocation185_spill] sm:$0xff] }
 0x2af   : > { %17288 = vst [vmem:[#allocation49_spill] sm:$0xff] %v12639_v31  ;;  %v1672_v9 = vmul.f32 %v17293_v26, %v12031_v14  ;;  %v1795_v8 = vadd.f32 %v1667_v10, %v17294_v54  ;;  %v2313_v31 = vadd.f32 %v2185_v30, %v1793_v40  ;;  %v1669_v32 = vmul.f32 %v17295_v39, %v12031_v14  ;;  %v17299_v10 = vld [vmem:[#allocation131_spill] sm:$0xff]  ;;  %v17301_v30 = vld [vmem:[#allocation130_spill] sm:$0xff] }
 0x2b0   : > { %v2192_v22 = vmul.f32 %v12565_v28, %v12165_v43  ;;  %v2444_v50 = vmax.f32 %v2316_v38, 0.0  ;;  %v2318_v4 = vadd.f32 %v2190_v35, %v1798_v5  ;;  %v12659_v19 = vmul.f32 %v17167_v63, %v17282_v2  ;;  %v12671_v40 = vpop.permute.xlu1 %2077  ;;  %v12676_v63 = vpop.permute.xlu0 %782  ;;  %v17303_v39 = vld [vmem:[#allocation55_spill] sm:$0xff] }
 0x2b1   : > { %v12663_v25 = vmul.f32 %v17173_v24, %v17282_v2  ;;  %v12667_v13 = vmul.f32 %v17178_v37, %v17282_v2  ;;  %v2187_v6 = vmul.f32 %v17297_v46, %v12165_v43  ;;  %17298 = vst [vmem:[#allocation95_spill] sm:$0xff] %v12671_v40  ;;  %v1282_v38 = vadd.f32 %v17299_v10, %v898_v3  ;;  %v17302_v37 = vld [vmem:[#allocation192_spill] sm:$0xff] }
 0x2b2   : > { %v900_v35 = vmul.f32 %v12570_v51, %v11995_v55  ;;  %17300 = vst [vmem:[#allocation96_spill] sm:$0xff] %v12676_v63  ;;  %2605 = vadd.xlane.f32.xlu0 %v2444_v50  ;;  %2595 = vadd.xlane.f32.xlu1 %v2439_v27  ;;  %v1800_v24 = vadd.f32 %v1672_v9, %v1280_v45  ;;  %v2441_v28 = vmax.f32 %v2313_v31, 0.0  ;;  %v2446_v10 = vmax.f32 %v2318_v4, 0.0 }
 0x2b3   : > { %17296 = vst [vmem:[#allocation26_spill] sm:$0xff] %v12667_v13  ;;  %v1674_v5 = vmul.f32 %v17301_v30, %v12031_v14  ;;  %v1671_v54 = vmul.f32 %v17302_v37, %v12031_v14  ;;  %v2315_v46 = vadd.f32 %v2187_v6, %v1795_v8  ;;  %v1797_v13 = vadd.f32 %v1669_v32, %v17303_v39  ;;  %v17306_v8 = vld [vmem:[#allocation187_spill] sm:$0xff]  ;;  %v17308_v39 = vld [vmem:[#allocation133_spill] sm:$0xff] }
 0x2b4   : > { %v2194_v3 = vmul.f32 %v12588_v15, %v12165_v43  ;;  %v2320_v51 = vadd.f32 %v2192_v22, %v1800_v24  ;;  %v12687_v50 = vmul.f32 %v17182_v20, %v17282_v2  ;;  %v12691_v27 = vmul.f32 %v17187_v60, %v17282_v2  ;;  %v12699_v31 = vpop.permute.xlu1 %2085  ;;  %v17309_v60 = vld [vmem:[#allocation132_spill] sm:$0xff]  ;;  %v17310_v6 = vld [vmem:[#allocation57_spill] sm:$0xff] }
 0x2b5   : > { %v12695_v45 = vmul.f32 %v17193_v21, %v17282_v2  ;;  %v2189_v32 = vmul.f32 %v17306_v8, %v12165_v43  ;;  %17307 = vst [vmem:[#allocation130_spill] sm:$0xff] %v12699_v31  ;;  %v1284_v4 = vadd.f32 %v17308_v39, %v900_v35  ;;  %v902_v9 = vmul.f32 %v12593_v11, %v11995_v55  ;;  %v17311_v21 = vld [vmem:[#allocation194_spill] sm:$0xff] }
 0x2b6   : > { %17304 = vst [vmem:[#allocation128_spill] sm:$0xff] %v12691_v27  ;;  %2609 = vadd.xlane.f32.xlu0 %v2446_v10  ;;  %2599 = vadd.xlane.f32.xlu1 %v2441_v28  ;;  %v1802_v20 = vadd.f32 %v1674_v5, %v1282_v38  ;;  %v1676_v22 = vmul.f32 %v17309_v60, %v12031_v14  ;;  %v2443_v8 = vmax.f32 %v2315_v46, 0.0  ;;  %v2448_v39 = vmax.f32 %v2320_v51, 0.0  ;;  %v17316_v46 = vld [vmem:[#allocation189_spill] sm:$0xff]  ;;  %v17318_v51 = vld [vmem:[#allocation135_spill] sm:$0xff] }
 0x2b7   : > { %17305 = vst [vmem:[#allocation53_spill] sm:$0xff] %v12695_v45  ;;  %v1799_v24 = vadd.f32 %v1671_v54, %v17310_v6  ;;  %v1673_v15 = vmul.f32 %v17311_v21, %v12031_v14  ;;  %v12709_v45 = vpop.permute.xlu0 %792  ;;  %v2196_v35 = vmul.f32 %v12615_v23, %v12165_v43  ;;  %v2317_v11 = vadd.f32 %v2189_v32, %v1797_v13 }
 0x2b8   : > { %17312 = vst [vmem:[#allocation192_spill] sm:$0xff] %v12709_v45  ;;  %v2322_v27 = vadd.f32 %v2194_v3, %v1802_v20  ;;  %v12715_v28 = vmul.f32 %v17198_v61, %v17282_v2  ;;  %v12719_v10 = vmul.f32 %v17209_v17, %v17282_v2  ;;  %v12723_v38 = vmul.f32 %v17218_v12, %v17282_v2  ;;  %v12727_v54 = vpop.permute.xlu1 %2093  ;;  %v17319_v17 = vld [vmem:[#allocation134_spill] sm:$0xff]  ;;  %v17320_v20 = vld [vmem:[#allocation59_spill] sm:$0xff]  ;;  %v17321_v12 = vld [vmem:[#allocation196_spill] sm:$0xff] }
 0x2b9   : > { %v2191_v5 = vmul.f32 %v17316_v46, %v12165_v43  ;;  %17317 = vst [vmem:[#allocation194_spill] sm:$0xff] %v12727_v54  ;;  %v1286_v3 = vadd.f32 %v17318_v51, %v902_v9  ;;  %v904_v13 = vmul.f32 %v12620_v48, %v11995_v55  ;;  %v1804_v61 = vadd.f32 %v1676_v22, %v1284_v4  ;;  %v17325_v4 = vld [vmem:[#allocation191_spill] sm:$0xff]  ;;  %v17330_v48 = vld [vmem:[#allocation198_spill] sm:$0xff] }
 0x2ba   : > { %17313 = vst [vmem:[#allocation55_spill] sm:$0xff] %v12715_v28  ;;  %17314 = vst [vmem:[#allocation132_spill] sm:$0xff] %v12719_v10  ;;  %2613 = vadd.xlane.f32.xlu0 %v2448_v39  ;;  %2603 = vadd.xlane.f32.xlu1 %v2443_v8  ;;  %v1678_v32 = vmul.f32 %v17319_v17, %v12031_v14  ;;  %v1801_v6 = vadd.f32 %v1673_v15, %v17320_v20  ;;  %v2450_v28 = vmax.f32 %v2322_v27, 0.0 }
 0x2bb   : > { %17315 = vst [vmem:[#allocation57_spill] sm:$0xff] %v12723_v38  ;;  %v1675_v23 = vmul.f32 %v17321_v12, %v12031_v14  ;;  %v2319_v38 = vadd.f32 %v2191_v5, %v1799_v24  ;;  %v2198_v10 = vmul.f32 %v12643_v34, %v12165_v43  ;;  %v2445_v9 = vmax.f32 %v2317_v11, 0.0  ;;  %v12753_v24 = vpop.permute.xlu0 %802  ;;  %v17328_v11 = vld [vmem:[#allocation137_spill] sm:$0xff]  ;;  %v17329_v5 = vld [vmem:[#allocation136_spill] sm:$0xff] }
 0x2bc   : > { %v2324_v51 = vadd.f32 %v2196_v35, %v1804_v61  ;;  %v12741_v39 = vmul.f32 %v17227_v16, %v17282_v2  ;;  %v12745_v8 = vmul.f32 %v17238_v41, %v17282_v2  ;;  %v12749_v15 = vmul.f32 %v17248_v47, %v17282_v2  ;;  %17326 = vst [vmem:[#allocation196_spill] sm:$0xff] %v12753_v24  ;;  %v12755_v27 = vpop.permute.xlu1 %2101 }
 0x2bd   : > { %v2193_v22 = vmul.f32 %v17325_v4, %v12165_v43  ;;  %17327 = vst [vmem:[#allocation191_spill] sm:$0xff] %v12755_v27  ;;  %v1288_v35 = vadd.f32 %v17328_v11, %v904_v13  ;;  %v906_v16 = vmul.f32 %v12648_v29, %v11995_v55  ;;  %v1806_v41 = vadd.f32 %v1678_v32, %v1286_v3  ;;  %v17335_v32 = vld [vmem:[#allocation139_spill] sm:$0xff] }
 0x2be   : > { %17322 = vst [vmem:[#allocation189_spill] sm:$0xff] %v12741_v39  ;;  %17323 = vst [vmem:[#allocation134_spill] sm:$0xff] %v12745_v8  ;;  %2617 = vadd.xlane.f32.xlu0 %v2450_v28  ;;  %2607 = vadd.xlane.f32.xlu1 %v2445_v9  ;;  %v1680_v61 = vmul.f32 %v17329_v5, %v12031_v14  ;;  %v1803_v47 = vadd.f32 %v1675_v23, %v12262_v58  ;;  %v2447_v20 = vmax.f32 %v2319_v38, 0.0  ;;  %v17334_v23 = vld [vmem:[#allocation193_spill] sm:$0xff] }
 0x2bf   : > { %17324 = vst [vmem:[#allocation59_spill] sm:$0xff] %v12749_v15  ;;  %v2321_v34 = vadd.f32 %v2193_v22, %v1801_v6  ;;  %v1677_v15 = vmul.f32 %v17330_v48, %v12031_v14  ;;  %v2200_v8 = vmul.f32 %v12671_v40, %v12165_v43  ;;  %v2452_v13 = vmax.f32 %v2324_v51, 0.0  ;;  %v17336_v51 = vld [vmem:[#allocation138_spill] sm:$0xff] }
 0x2c0   : > { %v2326_v11 = vadd.f32 %v2198_v10, %v1806_v41  ;;  %v12769_v28 = vmul.f32 %v17258_v52, %v17282_v2  ;;  %v12773_v3 = vmul.f32 %v17267_v49, %v17282_v2  ;;  %v12777_v58 = vmul.f32 %v17279_v42, %v17282_v2  ;;  %v17337_v49 = vld [vmem:[#allocation200_spill] sm:$0xff]  ;;  %v12788_v41 = vpop.permute.xlu0 %812  ;;  %v12790_v42 = vpop.permute.xlu1 %2109 }
 0x2c1   : > { %v2195_v38 = vmul.f32 %v17334_v23, %v12165_v43  ;;  %v1290_v6 = vadd.f32 %v17335_v32, %v906_v16  ;;  %v908_v10 = vmul.f32 %v12676_v63, %v11995_v55  ;;  %v1808_v52 = vadd.f32 %v1680_v61, %v1288_v35  ;;  %17338 = vst [vmem:[#allocation193_spill] sm:$0xff] %v12788_v41 }
 0x2c2   : > { %17331 = vst [vmem:[#allocation136_spill] sm:$0xff] %v12769_v28  ;;  %17332 = vst [vmem:[#allocation198_spill] sm:$0xff] %v12773_v3  ;;  %2621 = vadd.xlane.f32.xlu0 %v2452_v13  ;;  %2611 = vadd.xlane.f32.xlu1 %v2447_v20  ;;  %v1682_v9 = vmul.f32 %v17336_v51, %v12031_v14  ;;  %v1679_v22 = vmul.f32 %v17337_v49, %v12031_v14  ;;  %v2449_v40 = vmax.f32 %v2321_v34, 0.0  ;;  %v17343_v34 = vld [vmem:[#allocation195_spill] sm:$0xff]  ;;  %v17393_v28 = vld [vmem:[#allocation153_spill] sm:$0xff] }
 0x2c3   : > { %17333 = vst [vmem:[#allocation223_spill] sm:$0xff] %v12777_v58  ;;  %17339 = vst [vmem:[#allocation138_spill] sm:$0xff] %v12790_v42  ;;  %v2323_v29 = vadd.f32 %v2195_v38, %v1803_v47  ;;  %v1805_v16 = vadd.f32 %v1677_v15, %v12281_v59  ;;  %v2202_v32 = vmul.f32 %v12699_v31, %v12165_v43  ;;  %v2454_v13 = vmax.f32 %v2326_v11, 0.0  ;;  %v17344_v15 = vld [vmem:[#allocation141_spill] sm:$0xff]  ;;  %v17345_v11 = vld [vmem:[#allocation140_spill] sm:$0xff] }
 0x2c4   : > { %v2328_v20 = vadd.f32 %v2200_v8, %v1808_v52  ;;  %v12797_v35 = vmul.f32 %v17293_v26, %v17282_v2  ;;  %v12801_v61 = vmul.f32 %v17301_v30, %v17282_v2  ;;  %v12805_v63 = vmul.f32 %v17309_v60, %v17282_v2  ;;  %v17346_v52 = vld [vmem:[#allocation202_spill] sm:$0xff] }
 0x2c5   : > { %v2197_v59 = vmul.f32 %v17343_v34, %v12165_v43  ;;  %v1292_v47 = vadd.f32 %v17344_v15, %v908_v10  ;;  %v910_v8 = vmul.f32 %v12709_v45, %v11995_v55  ;;  %v1810_v26 = vadd.f32 %v1682_v9, %v1290_v6  ;;  %v12833_v9 = vpop.permute.xlu0 %822 }
 0x2c6   : > { %17340 = vst [vmem:[#allocation200_spill] sm:$0xff] %v12797_v35  ;;  %17341 = vst [vmem:[#allocation224_spill] sm:$0xff] %v12801_v61  ;;  %2625 = vadd.xlane.f32.xlu0 %v2454_v13  ;;  %2615 = vadd.xlane.f32.xlu1 %v2449_v40  ;;  %v1684_v38 = vmul.f32 %v17345_v11, %v12031_v14  ;;  %v1807_v30 = vadd.f32 %v1679_v22, %v12295_v1  ;;  %v2451_v31 = vmax.f32 %v2323_v29, 0.0  ;;  %v17350_v29 = vld [vmem:[#allocation197_spill] sm:$0xff]  ;;  %v12835_v22 = vpop.permute.xlu1 %2117 }
 0x2c7   : > { %17342 = vst [vmem:[#allocation225_spill] sm:$0xff] %v12805_v63  ;;  %v1681_v60 = vmul.f32 %v17346_v52, %v12031_v14  ;;  %v2204_v63 = vmul.f32 %v12727_v54, %v12165_v43  ;;  %v2456_v61 = vmax.f32 %v2328_v20, 0.0  ;;  %v2330_v10 = vadd.f32 %v2202_v32, %v1810_v26  ;;  %17351 = vst [vmem:[#allocation197_spill] sm:$0xff] %v12833_v9  ;;  %v17353_v32 = vld [vmem:[#allocation143_spill] sm:$0xff]  ;;  %v17354_v20 = vld [vmem:[#allocation142_spill] sm:$0xff] }
 0x2c8   : > { %v2325_v15 = vadd.f32 %v2197_v59, %v1805_v16  ;;  %v12821_v13 = vmul.f32 %v17319_v17, %v17282_v2  ;;  %v12825_v40 = vmul.f32 %v17329_v5, %v17282_v2  ;;  %v12829_v1 = vmul.f32 %v17336_v51, %v17282_v2  ;;  %17352 = vst [vmem:[#allocation226_spill] sm:$0xff] %v12835_v22  ;;  %v17355_v26 = vld [vmem:[#allocation68_spill] sm:$0xff] }
 0x2c9   : > { %v2199_v6 = vmul.f32 %v17350_v29, %v12165_v43  ;;  %v1294_v16 = vadd.f32 %v17353_v32, %v910_v8  ;;  %v912_v17 = vmul.f32 %v12753_v24, %v11995_v55  ;;  %v1812_v5 = vadd.f32 %v1684_v38, %v1292_v47  ;;  %v17359_v38 = vld [vmem:[#allocation199_spill] sm:$0xff] }
 0x2ca   : > { %17347 = vst [vmem:[#allocation195_spill] sm:$0xff] %v12821_v13  ;;  %17348 = vst [vmem:[#allocation140_spill] sm:$0xff] %v12825_v40  ;;  %2629 = vadd.xlane.f32.xlu0 %v2456_v61  ;;  %2619 = vadd.xlane.f32.xlu1 %v2451_v31  ;;  %v1686_v59 = vmul.f32 %v17354_v20, %v12031_v14  ;;  %v1809_v51 = vadd.f32 %v1681_v60, %v12323_v36  ;;  %v2458_v13 = vmax.f32 %v2330_v10, 0.0  ;;  %v17358_v36 = vld [vmem:[#allocation144_spill] sm:$0xff]  ;;  %v17360_v60 = vld [vmem:[#allocation145_spill] sm:$0xff] }
 0x2cb   : > { %17349 = vst [vmem:[#allocation202_spill] sm:$0xff] %v12829_v1  ;;  %v1683_v1 = vmul.f32 %v17355_v26, %v12031_v14  ;;  %v2327_v54 = vadd.f32 %v2199_v6, %v1807_v30  ;;  %v2206_v40 = vmul.f32 %v12755_v27, %v12165_v43  ;;  %v2453_v8 = vmax.f32 %v2325_v15, 0.0 }
 0x2cc   : > { %v2332_v32 = vadd.f32 %v2204_v63, %v1812_v5  ;;  %v12849_v61 = vmul.f32 %v17345_v11, %v17282_v2  ;;  %v12853_v31 = vmul.f32 %v17354_v20, %v17282_v2  ;;  %v1688_v47 = vmul.f32 %v17358_v36, %v12031_v14  ;;  %v12867_v5 = vpop.permute.xlu0 %832  ;;  %v12869_v20 = vpop.permute.xlu1 %2125 }
 0x2cd   : > { %v2201_v30 = vmul.f32 %v17359_v38, %v12165_v43  ;;  %v1296_v6 = vadd.f32 %v17360_v60, %v912_v17  ;;  %v914_v15 = vmul.f32 %v12788_v41, %v11995_v55  ;;  %v1814_v63 = vadd.f32 %v1686_v59, %v1294_v16  ;;  %17362 = vst [vmem:[#allocation199_spill] sm:$0xff] %v12867_v5  ;;  %v17364_v17 = vld [vmem:[#allocation71_spill] sm:$0xff]  ;;  %v17365_v59 = vld [vmem:[#allocation146_spill] sm:$0xff] }
 0x2ce   : > { %17356 = vst [vmem:[#allocation142_spill] sm:$0xff] %v12849_v61  ;;  %17357 = vst [vmem:[#allocation68_spill] sm:$0xff] %v12853_v31  ;;  %2633 = vadd.xlane.f32.xlu0 %v2458_v13  ;;  %2623 = vadd.xlane.f32.xlu1 %v2453_v8  ;;  %v12864_v11 = vmul.f32 %v17358_v36, %v17282_v2  ;;  %v1811_v10 = vadd.f32 %v1683_v1, %v12349_v57  ;;  %v2455_v31 = vmax.f32 %v2327_v54, 0.0  ;;  %v17367_v1 = vld [vmem:[#allocation148_spill] sm:$0xff]  ;;  %v17368_v54 = vld [vmem:[#allocation201_spill] sm:$0xff] }
 0x2cf   : > { %17363 = vst [vmem:[#allocation227_spill] sm:$0xff] %v12869_v20  ;;  %v2329_v61 = vadd.f32 %v2201_v30, %v1809_v51  ;;  %v1685_v27 = vmul.f32 %v17364_v17, %v12031_v14  ;;  %v2208_v13 = vmul.f32 %v12790_v42, %v12165_v43  ;;  %v2460_v8 = vmax.f32 %v2332_v32, 0.0  ;;  %v17369_v30 = vld [vmem:[#allocation147_spill] sm:$0xff] }
 0x2d0   : > { %17361 = vst [vmem:[#allocation144_spill] sm:$0xff] %v12864_v11  ;;  %v2334_v16 = vadd.f32 %v2206_v40, %v1814_v63  ;;  %v1690_v36 = vmul.f32 %v17365_v59, %v12031_v14  ;;  %v12879_v57 = vmul.f32 %v17365_v59, %v17282_v2  ;;  %v1692_v11 = vmul.f32 %v17367_v1, %v12031_v14  ;;  %v17371_v63 = vld [vmem:[#allocation74_spill] sm:$0xff] }
 0x2d1   : > { %v2203_v51 = vmul.f32 %v17368_v54, %v12165_v43  ;;  %v1298_v60 = vadd.f32 %v17369_v30, %v914_v15  ;;  %v916_v42 = vmul.f32 %v12833_v9, %v11995_v55  ;;  %v1816_v40 = vadd.f32 %v1688_v47, %v1296_v6  ;;  %v17374_v6 = vld [vmem:[#allocation152_spill] sm:$0xff] }
 0x2d2   : > { %17366 = vst [vmem:[#allocation71_spill] sm:$0xff] %v12879_v57  ;;  %2637 = vadd.xlane.f32.xlu0 %v2460_v8  ;;  %2627 = vadd.xlane.f32.xlu1 %v2455_v31  ;;  %v12890_v32 = vmul.f32 %v17367_v1, %v17282_v2  ;;  %v1687_v59 = vmul.f32 %v17371_v63, %v12031_v14  ;;  %v2457_v57 = vmax.f32 %v2329_v61, 0.0  ;;  %v2462_v30 = vmax.f32 %v2334_v16, 0.0  ;;  %v17372_v8 = vld [vmem:[#allocation150_spill] sm:$0xff]  ;;  %v17375_v61 = vld [vmem:[#allocation203_spill] sm:$0xff] }
 0x2d3   : > { %v2331_v41 = vadd.f32 %v2203_v51, %v1811_v10  ;;  %v1813_v24 = vadd.f32 %v1685_v27, %v12391_v18  ;;  %v2210_v15 = vmul.f32 %v12835_v22, %v12165_v43  ;;  %v2336_v45 = vadd.f32 %v2208_v13, %v1816_v40  ;;  %v12907_v51 = vpop.permute.xlu0 %842  ;;  %v12909_v18 = vpop.permute.xlu1 %2133  ;;  %v17378_v27 = vld [vmem:[#allocation149_spill] sm:$0xff] }
 0x2d4   : > { %17370 = vst [vmem:[#allocation146_spill] sm:$0xff] %v12890_v32  ;;  %v1694_v31 = vmul.f32 %v17372_v8, %v12031_v14  ;;  %v12901_v47 = vmul.f32 %v17372_v8, %v17282_v2  ;;  %v1696_v1 = vmul.f32 %v17374_v6, %v12031_v14  ;;  %v2205_v10 = vmul.f32 %v17375_v61, %v12165_v43  ;;  %v17380_v32 = vld [vmem:[#allocation77_spill] sm:$0xff] }
 0x2d5   : > { %17376 = vst [vmem:[#allocation201_spill] sm:$0xff] %v12907_v51  ;;  %17377 = vst [vmem:[#allocation74_spill] sm:$0xff] %v12909_v18  ;;  %v1300_v16 = vadd.f32 %v17378_v27, %v916_v42  ;;  %v918_v13 = vmul.f32 %v12867_v5, %v11995_v55  ;;  %v1818_v40 = vadd.f32 %v1690_v36, %v1298_v60  ;;  %v2459_v9 = vmax.f32 %v2331_v41, 0.0  ;;  %v17383_v36 = vld [vmem:[#allocation204_spill] sm:$0xff]  ;;  %v17392_v5 = vld [vmem:[#allocation205_spill] sm:$0xff] }
 0x2d6   : > { %17373 = vst [vmem:[#allocation148_spill] sm:$0xff] %v12901_v47  ;;  %2641 = vadd.xlane.f32.xlu0 %v2462_v30  ;;  %2631 = vadd.xlane.f32.xlu1 %v2457_v57  ;;  %v12916_v8 = vmul.f32 %v17374_v6, %v17282_v2  ;;  %v1815_v47 = vadd.f32 %v1687_v59, %v12417_v7  ;;  %v2464_v42 = vmax.f32 %v2336_v45, 0.0  ;;  %v17381_v30 = vld [vmem:[#allocation154_spill] sm:$0xff]  ;;  %v17384_v59 = vld [vmem:[#allocation151_spill] sm:$0xff] }
 0x2d7   : > { %v1689_v22 = vmul.f32 %v17380_v32, %v12031_v14  ;;  %v2212_v35 = vmul.f32 %v12869_v20, %v12165_v43  ;;  %v2338_v27 = vadd.f32 %v2210_v15, %v1818_v40  ;;  %v2333_v58 = vadd.f32 %v2205_v10, %v1813_v24  ;;  %v17385_v15 = vld [vmem:[#allocation156_spill] sm:$0xff] }
 0x2d8   : > { %17379 = vst [vmem:[#allocation150_spill] sm:$0xff] %v12916_v8  ;;  %v1698_v57 = vmul.f32 %v17381_v30, %v12031_v14  ;;  %v12927_v60 = vmul.f32 %v17381_v30, %v17282_v2  ;;  %v12931_v7 = vmul.f32 %v11782_v33, %v12611_v56  ;;  %v2207_v41 = vmul.f32 %v17383_v36, %v12165_v43  ;;  %v17386_v30 = vld [vmem:[#allocation80_spill] sm:$0xff]  ;;  %v12945_v8 = vpop.permute.xlu1 %2141 }
 0x2d9   : > { %v1302_v6 = vadd.f32 %v17384_v59, %v918_v13  ;;  %v920_v45 = vmul.f32 %v12907_v51, %v11995_v55  ;;  %v1820_v24 = vadd.f32 %v1692_v11, %v1300_v16  ;;  %v1700_v10 = vmul.f32 %v17385_v15, %v17282_v2  ;;  %17388 = vst [vmem:[#allocation77_spill] sm:$0xff] %v12945_v8  ;;  %v17389_v11 = vld [vmem:[#allocation157_spill] sm:$0xff]  ;;  %v17390_v15 = vld [vmem:[#allocation158_spill] sm:$0xff] }
 0x2da   : > { %17382 = vst [vmem:[#allocation152_spill] sm:$0xff] %v12927_v60  ;;  %2645 = vadd.xlane.f32.xlu0 %v2464_v42  ;;  %2635 = vadd.xlane.f32.xlu1 %v2459_v9  ;;  %v1817_v40 = vadd.f32 %v1689_v22, %v12443_v44  ;;  %v1691_v33 = vmul.f32 %v17386_v30, %v12031_v14  ;;  %v12943_v60 = vpop.permute.xlu0 %852  ;;  %v2466_v59 = vmax.f32 %v2338_v27, 0.0  ;;  %v2461_v42 = vmax.f32 %v2333_v58, 0.0  ;;  %v17391_v22 = vld [vmem:[#allocation160_spill] sm:$0xff]  ;;  %v17394_v27 = vld [vmem:[#allocation83_spill] sm:$0xff] }
 0x2db   : > { %17387 = vst [vmem:[#allocation203_spill] sm:$0xff] %v12943_v60  ;;  %v2335_v20 = vadd.f32 %v2207_v41, %v1815_v47  ;;  %v2214_v13 = vmul.f32 %v12909_v18, %v12165_v43  ;;  %v2340_v9 = vadd.f32 %v2212_v35, %v1820_v24  ;;  %v2223_v16 = vmul.f32 %v17389_v11, %v12611_v56 }
 0x2dc   : > { %v1702_v44 = vmul.f32 %v17390_v15, %v17282_v2  ;;  %v1703_v51 = vmul.f32 %v17391_v22, %v17282_v2  ;;  %v2209_v3 = vmul.f32 %v17392_v5, %v12165_v43  ;;  %v1304_v47 = vadd.f32 %v17393_v28, %v920_v45  ;;  %v17395_v22 = vld [vmem:[#allocation215_spill] sm:$0xff] }
 0x2dd   : > { %v922_v41 = vmul.f32 %v12943_v60, %v11995_v55  ;;  %v1822_v58 = vadd.f32 %v1694_v31, %v1302_v6  ;;  %v1819_v35 = vadd.f32 %v1691_v33, %v12467_v0  ;;  %v1693_v24 = vmul.f32 %v17394_v27, %v12031_v14  ;;  %v17396_v31 = vld [vmem:[#allocation159_spill] sm:$0xff]  ;;  %v17397_v0 = vld [vmem:[#allocation162_spill] sm:$0xff]  ;;  %v17400_v33 = vld [vmem:[#allocation28_spill] sm:$0xff] }
 0x2de   : > { %2649 = vadd.xlane.f32.xlu0 %v2466_v59  ;;  %2639 = vadd.xlane.f32.xlu1 %v2461_v42  ;;  %v2463_v11 = vmax.f32 %v2335_v20, 0.0  ;;  %v2337_v15 = vadd.f32 %v2209_v3, %v1817_v40  ;;  %v924_v18 = vmul.f32 %v17395_v22, %v11998_v53  ;;  %v2216_v5 = vmul.f32 %v12945_v8, %v12165_v43  ;;  %v17398_v20 = vld [vmem:[#allocation206_spill] sm:$0xff]  ;;  %v12976_v40 = vpop.permute.xlu1 %2149  ;;  %v17401_v22 = vld [vmem:[#allocation155_spill] sm:$0xff] }
 0x2df   : > { %v2468_v45 = vmax.f32 %v2340_v9, 0.0  ;;  %v2342_v28 = vadd.f32 %v2214_v13, %v1822_v58  ;;  %v12968_v55 = vadd.f32 %v1702_v44, %v12635_v62  ;;  %v2225_v59 = vmul.f32 %v17396_v31, %v12611_v56  ;;  %17399 = vst [vmem:[#allocation154_spill] sm:$0xff] %v12976_v40  ;;  %v17402_v62 = vld [vmem:[#allocation84_spill] sm:$0xff]  ;;  %v17403_v44 = vld [vmem:[#allocation210_spill] sm:$0xff] }
 0x2e0   : > { %v1705_v6 = vmul.f32 %v17397_v0, %v17282_v2  ;;  %v2211_v3 = vmul.f32 %v17398_v20, %v12165_v43  ;;  %v1831_v42 = vadd.f32 %v1703_v51, %v17400_v33  ;;  %v1306_v8 = vadd.f32 %v17401_v22, %v922_v41  ;;  %v17404_v0 = vld [vmem:[#allocation23_spill] sm:$0xff]  ;;  %v17405_v51 = vld [vmem:[#allocation161_spill] sm:$0xff] }
 0x2e1   : > { %v1824_v13 = vadd.f32 %v1696_v1, %v1304_v47  ;;  %v1821_v9 = vadd.f32 %v1693_v24, %v17402_v62  ;;  %v1695_v58 = vmul.f32 %v17403_v44, %v12031_v14  ;;  %v2465_v31 = vmax.f32 %v2337_v15, 0.0  ;;  %v17407_v1 = vld [vmem:[#allocation164_spill] sm:$0xff]  ;;  %v17408_v24 = vld [vmem:[#allocation207_spill] sm:$0xff] }
 0x2e2   : > { %2653 = vadd.xlane.f32.xlu0 %v2468_v45  ;;  %2643 = vadd.xlane.f32.xlu1 %v2463_v11  ;;  %v2339_v60 = vadd.f32 %v2211_v3, %v1819_v35  ;;  %v1308_v27 = vadd.f32 %v17404_v0, %v924_v18  ;;  %v2218_v20 = vmul.f32 %v12976_v40, %v12165_v43  ;;  %v2470_v39 = vmax.f32 %v2342_v28, 0.0  ;;  %v17406_v45 = vld [vmem:[#allocation25_spill] sm:$0xff]  ;;  %v17409_v35 = vld [vmem:[#allocation166_spill] sm:$0xff]  ;;  %v17410_v28 = vld [vmem:[#allocation163_spill] sm:$0xff] }
 0x2e3   : > { %v2344_v36 = vadd.f32 %v2216_v5, %v1824_v13  ;;  %v2227_v41 = vmul.f32 %v17405_v51, %v12611_v56  ;;  %v1833_v11 = vadd.f32 %v1705_v6, %v17406_v45  ;;  %v1707_v47 = vmul.f32 %v17407_v1, %v17282_v2  ;;  %v17411_v13 = vld [vmem:[#allocation86_spill] sm:$0xff]  ;;  %v17412_v6 = vld [vmem:[#allocation213_spill] sm:$0xff] }
 0x2e4   : > { %v2213_v33 = vmul.f32 %v17408_v24, %v12165_v43  ;;  %v1709_v15 = vmul.f32 %v17409_v35, %v17282_v2  ;;  %v1826_v18 = vadd.f32 %v1698_v57, %v1306_v8  ;;  %v12995_v3 = vadd.f32 %v2223_v16, %v1831_v42  ;;  %v17413_v24 = vld [vmem:[#allocation32_spill] sm:$0xff] }
 0x2e5   : > { %v2229_v5 = vmul.f32 %v17410_v28, %v12611_v56  ;;  %v1823_v62 = vadd.f32 %v1695_v58, %v17411_v13  ;;  %v1697_v0 = vmul.f32 %v17412_v6, %v12031_v14  ;;  %v2472_v45 = vmax.f32 %v2344_v36, 0.0  ;;  %v17415_v57 = vld [vmem:[#allocation208_spill] sm:$0xff]  ;;  %v17417_v28 = vld [vmem:[#allocation167_spill] sm:$0xff]  ;;  %v17418_v36 = vld [vmem:[#allocation22_spill] sm:$0xff] }
 0x2e6   : > { %2657 = vadd.xlane.f32.xlu0 %v2470_v39  ;;  %2647 = vadd.xlane.f32.xlu1 %v2465_v31  ;;  %v2341_v51 = vadd.f32 %v2213_v33, %v1821_v9  ;;  %v2467_v1 = vmax.f32 %v2339_v60, 0.0  ;;  %v2346_v40 = vadd.f32 %v2218_v20, %v1826_v18  ;;  %v1828_v22 = vadd.f32 %v1700_v10, %v1308_v27  ;;  %v17414_v39 = vld [vmem:[#allocation165_spill] sm:$0xff]  ;;  %v17416_v31 = vld [vmem:[#allocation34_spill] sm:$0xff]  ;;  %v17419_v27 = vld [vmem:[#allocation88_spill] sm:$0xff] }
 0x2e7   : > { %v1835_v35 = vadd.f32 %v1707_v47, %v17413_v24  ;;  %v2231_v8 = vmul.f32 %v17414_v39, %v12611_v56  ;;  %v2215_v16 = vmul.f32 %v17415_v57, %v12165_v43  ;;  %v13007_v42 = vadd.f32 %v2225_v59, %v1833_v11  ;;  %v17420_v9 = vld [vmem:[#allocation90_spill] sm:$0xff]  ;;  %v17421_v11 = vld [vmem:[#allocation216_spill] sm:$0xff] }
 0x2e8   : > { %v1837_v58 = vadd.f32 %v1709_v15, %v17416_v31  ;;  %v2233_v13 = vmul.f32 %v17417_v28, %v12611_v56  ;;  %v928_v60 = vmul.f32 %v17418_v36, %v11998_v53  ;;  %v1825_v20 = vadd.f32 %v1697_v0, %v17419_v27  ;;  %v17422_v15 = vld [vmem:[#allocation27_spill] sm:$0xff]  ;;  %v17424_v28 = vld [vmem:[#allocation170_spill] sm:$0xff]  ;;  %v17425_v36 = vld [vmem:[#allocation209_spill] sm:$0xff] }
 0x2e9   : > { %v1699_v47 = vmul.f32 %v17420_v9, %v12031_v14  ;;  %v2469_v24 = vmax.f32 %v2341_v51, 0.0  ;;  %v2343_v59 = vadd.f32 %v2215_v16, %v1823_v62  ;;  %v925_v33 = vmul.f32 %v17421_v11, %v11998_v53  ;;  %v17426_v62 = vld [vmem:[#allocation169_spill] sm:$0xff]  ;;  %v17431_v6 = vld [vmem:[#allocation40_spill] sm:$0xff] }
 0x2ea   : > { %2661 = vadd.xlane.f32.xlu0 %v2472_v45  ;;  %2651 = vadd.xlane.f32.xlu1 %v2467_v1  ;;  %v2222_v18 = vmul.f32 %v17422_v15, %v12611_v56  ;;  %v2474_v39 = vmax.f32 %v2346_v40, 0.0  ;;  %v2348_v31 = vadd.f32 %v12931_v7, %v1828_v22  ;;  %v17423_v45 = vld [vmem:[#allocation168_spill] sm:$0xff]  ;;  %v1713_v0 = vmul.f32 %v17424_v28, %v17282_v2  ;;  %v17427_v27 = vld [vmem:[#allocation97_spill] sm:$0xff]  ;;  %v17429_v22 = vld [vmem:[#allocation91_spill] sm:$0xff] }
 0x2eb   : > { %v1711_v1 = vmul.f32 %v17423_v45, %v17282_v2  ;;  %v2217_v14 = vmul.f32 %v17425_v36, %v12165_v43  ;;  %v13029_v51 = vadd.f32 %v2227_v41, %v1835_v35  ;;  %v2235_v16 = vmul.f32 %v17426_v62, %v12611_v56  ;;  %v17428_v40 = vld [vmem:[#allocation29_spill] sm:$0xff]  ;;  %v17434_v7 = vld [vmem:[#allocation172_spill] sm:$0xff] }
 0x2ec   : > { %v1312_v11 = vadd.f32 %v17427_v27, %v928_v60  ;;  %v930_v15 = vmul.f32 %v17428_v40, %v11998_v53  ;;  %v1827_v45 = vadd.f32 %v1699_v47, %v17429_v22  ;;  %v2471_v28 = vmax.f32 %v2343_v59, 0.0  ;;  %v17430_v41 = vld [vmem:[#allocation93_spill] sm:$0xff]  ;;  %v17432_v27 = vld [vmem:[#allocation36_spill] sm:$0xff]  ;;  %v17435_v47 = vld [vmem:[#allocation211_spill] sm:$0xff] }
 0x2ed   : > { %v2345_v10 = vadd.f32 %v2217_v14, %v1825_v20  ;;  %v13038_v9 = vadd.f32 %v2229_v5, %v1837_v58  ;;  %v1309_v35 = vadd.f32 %v17430_v41, %v925_v33  ;;  %v2224_v62 = vmul.f32 %v17431_v6, %v12611_v56  ;;  %v17436_v5 = vld [vmem:[#allocation99_spill] sm:$0xff]  ;;  %v17437_v59 = vld [vmem:[#allocation37_spill] sm:$0xff] }
 0x2ee   : > { %2665 = vadd.xlane.f32.xlu0 %v2474_v39  ;;  %2655 = vadd.xlane.f32.xlu1 %v2469_v24  ;;  %v2476_v36 = vmax.f32 %v2348_v31, 0.0  ;;  %v2350_v60 = vadd.f32 %v2222_v18, %v12968_v55  ;;  %v1839_v40 = vadd.f32 %v1711_v1, %v17432_v27  ;;  %v17433_v39 = vld [vmem:[#allocation38_spill] sm:$0xff]  ;;  %v1715_v57 = vmul.f32 %v17434_v7, %v17282_v2  ;;  %v17438_v6 = vld [vmem:[#allocation49_spill] sm:$0xff] }
 0x2ef   : > { %v1841_v24 = vadd.f32 %v1713_v0, %v17433_v39  ;;  %v2219_v20 = vmul.f32 %v17435_v47, %v12165_v43  ;;  %v1314_v58 = vadd.f32 %v17436_v5, %v930_v15  ;;  %v932_v33 = vmul.f32 %v17437_v59, %v11998_v53  ;;  %v17439_v18 = vld [vmem:[#allocation174_spill] sm:$0xff]  ;;  %v17440_v0 = vld [vmem:[#allocation24_spill] sm:$0xff]  ;;  %v17441_v43 = vld [vmem:[#allocation45_spill] sm:$0xff] }
 0x2f0   : > { %v1832_v31 = vadd.f32 %v17438_v6, %v1312_v11  ;;  %v1717_v1 = vmul.f32 %v17439_v18, %v17282_v2  ;;  %v2221_v14 = vmul.f32 %v17440_v0, %v12611_v56  ;;  %v2473_v7 = vmax.f32 %v2345_v10, 0.0  ;;  %v17442_v39 = vld [vmem:[#allocation126_spill] sm:$0xff]  ;;  %v17444_v5 = vld [vmem:[#allocation35_spill] sm:$0xff]  ;;  %v17445_v6 = vld [vmem:[#allocation176_spill] sm:$0xff] }
 0x2f1   : > { %v2347_v22 = vadd.f32 %v2219_v20, %v1827_v45  ;;  %v2226_v15 = vmul.f32 %v17441_v43, %v12611_v56  ;;  %v2478_v41 = vmax.f32 %v2350_v60, 0.0  ;;  %v1843_v59 = vadd.f32 %v1715_v57, %v17444_v5  ;;  %v17446_v0 = vld [vmem:[#allocation101_spill] sm:$0xff]  ;;  %v17448_v60 = vld [vmem:[#allocation44_spill] sm:$0xff]  ;;  %v17449_v57 = vld [vmem:[#allocation178_spill] sm:$0xff] }
 0x2f2   : > { %2669 = vadd.xlane.f32.xlu0 %v2476_v36  ;;  %2659 = vadd.xlane.f32.xlu1 %v2471_v28  ;;  %v2352_v27 = vadd.f32 %v2224_v62, %v1832_v31  ;;  %v1829_v36 = vadd.f32 %v17442_v39, %v1309_v35  ;;  %v17443_v28 = vld [vmem:[#allocation171_spill] sm:$0xff]  ;;  %v1719_v18 = vmul.f32 %v17445_v6, %v17282_v2  ;;  %v17447_v45 = vld [vmem:[#allocation217_spill] sm:$0xff] }
 0x2f3   : > { %v2237_v11 = vmul.f32 %v17443_v28, %v12611_v56  ;;  %v13067_v55 = vadd.f32 %v2231_v8, %v1839_v40  ;;  %v1316_v10 = vadd.f32 %v17446_v0, %v932_v33  ;;  %v934_v20 = vmul.f32 %v17447_v45, %v11998_v53  ;;  %v17450_v8 = vld [vmem:[#allocation51_spill] sm:$0xff]  ;;  %v17453_v0 = vld [vmem:[#allocation180_spill] sm:$0xff] }
 0x2f4   : > { %v1834_v62 = vadd.f32 %v12659_v19, %v1314_v58  ;;  %v1845_v31 = vadd.f32 %v1717_v1, %v17448_v60  ;;  %v1721_v43 = vmul.f32 %v17449_v57, %v17282_v2  ;;  %v2475_v39 = vmax.f32 %v2347_v22, 0.0  ;;  %v17452_v19 = vld [vmem:[#allocation41_spill] sm:$0xff]  ;;  %v17454_v60 = vld [vmem:[#allocation103_spill] sm:$0xff] }
 0x2f5   : > { %v13077_v28 = vadd.f32 %v2233_v13, %v1841_v24  ;;  %v2228_v40 = vmul.f32 %v17450_v8, %v12611_v56  ;;  %v2480_v33 = vmax.f32 %v2352_v27, 0.0  ;;  %v2349_v6 = vadd.f32 %v2221_v14, %v1829_v36  ;;  %v17455_v13 = vld [vmem:[#allocation218_spill] sm:$0xff]  ;;  %v17456_v27 = vld [vmem:[#allocation43_spill] sm:$0xff] }
 0x2f6   : > { %2673 = vadd.xlane.f32.xlu0 %v2478_v41  ;;  %2663 = vadd.xlane.f32.xlu1 %v2473_v7  ;;  %v2354_v5 = vadd.f32 %v2226_v15, %v1834_v62  ;;  %v17451_v7 = vld [vmem:[#allocation173_spill] sm:$0xff]  ;;  %v1847_v58 = vadd.f32 %v1719_v18, %v17452_v19  ;;  %v1723_v1 = vmul.f32 %v17453_v0, %v17282_v2  ;;  %v17457_v18 = vld [vmem:[#allocation182_spill] sm:$0xff]  ;;  %v17461_v0 = vld [vmem:[#allocation184_spill] sm:$0xff] }
 0x2f7   : > { %v2239_v41 = vmul.f32 %v17451_v7, %v12611_v56  ;;  %v13086_v45 = vadd.f32 %v2235_v16, %v1843_v59  ;;  %v1318_v22 = vadd.f32 %v17454_v60, %v934_v20  ;;  %v936_v24 = vmul.f32 %v17455_v13, %v11998_v53  ;;  %v17458_v20 = vld [vmem:[#allocation60_spill] sm:$0xff]  ;;  %v17460_v19 = vld [vmem:[#allocation50_spill] sm:$0xff] }
 0x2f8   : > { %v1836_v15 = vadd.f32 %v12663_v25, %v1316_v10  ;;  %v1849_v36 = vadd.f32 %v1721_v43, %v17456_v27  ;;  %v1725_v62 = vmul.f32 %v17457_v18, %v17282_v2  ;;  %v13099_v59 = vadd.f32 %v2237_v11, %v1845_v31  ;;  %v17459_v25 = vld [vmem:[#allocation175_spill] sm:$0xff]  ;;  %v17462_v27 = vld [vmem:[#allocation105_spill] sm:$0xff] }
 0x2f9   : > { %v2230_v8 = vmul.f32 %v17458_v20, %v12611_v56  ;;  %v2241_v10 = vmul.f32 %v17459_v25, %v12611_v56  ;;  %v1851_v43 = vadd.f32 %v1723_v1, %v17460_v19  ;;  %v1727_v60 = vmul.f32 %v17461_v0, %v17282_v2  ;;  %v17463_v11 = vld [vmem:[#allocation221_spill] sm:$0xff]  ;;  %v17466_v1 = vld [vmem:[#allocation52_spill] sm:$0xff] }
 0x2fa   : > { %2677 = vadd.xlane.f32.xlu0 %v2480_v33  ;;  %2667 = vadd.xlane.f32.xlu1 %v2475_v39  ;;  %v13096_v57 = vpop.xlane.xlu0 %2543  ;;  %v2482_v33 = vmax.f32 %v2354_v5, 0.0  ;;  %v2477_v39 = vmax.f32 %v2349_v6, 0.0  ;;  %v2356_v7 = vadd.f32 %v2228_v40, %v1836_v15  ;;  %v13108_v13 = vadd.f32 %v2239_v41, %v1847_v58  ;;  %v17464_v5 = vld [vmem:[#allocation26_spill] sm:$0xff]  ;;  %v17465_v15 = vld [vmem:[#allocation177_spill] sm:$0xff]  ;;  %v17473_v41 = vld [vmem:[#allocation64_spill] sm:$0xff] }
 0x2fb   : > { %v1320_v18 = vadd.f32 %v17462_v27, %v936_v24  ;;  %v938_v31 = vmul.f32 %v17463_v11, %v11998_v53  ;;  %v1838_v6 = vadd.f32 %v17464_v5, %v1318_v22  ;;  %v2243_v20 = vmul.f32 %v17465_v15, %v12611_v56  ;;  %v17467_v24 = vld [vmem:[#allocation186_spill] sm:$0xff]  ;;  %v17469_v11 = vld [vmem:[#allocation179_spill] sm:$0xff] }
 0x2fc   : > { %v1853_v25 = vadd.f32 %v1725_v62, %v17466_v1  ;;  %v13121_v58 = vadd.f32 %v2241_v10, %v1849_v36  ;;  %v1729_v0 = vmul.f32 %v17467_v24, %v17282_v2  ;;  %v2484_v22 = vmax.f32 %v2356_v7, 0.0  ;;  %v17470_v15 = vld [vmem:[#allocation54_spill] sm:$0xff]  ;;  %v17471_v62 = vld [vmem:[#allocation188_spill] sm:$0xff]  ;;  %v17472_v36 = vld [vmem:[#allocation107_spill] sm:$0xff] }
 0x2fd   : > { %v2358_v27 = vadd.f32 %v2230_v8, %v1838_v6  ;;  %v2245_v5 = vmul.f32 %v17469_v11, %v12611_v56  ;;  %v1855_v40 = vadd.f32 %v1727_v60, %v17470_v15  ;;  %v1731_v1 = vmul.f32 %v17471_v62, %v17282_v2  ;;  %v17475_v60 = vld [vmem:[#allocation181_spill] sm:$0xff]  ;;  %v17476_v11 = vld [vmem:[#allocation190_spill] sm:$0xff] }
 0x2fe   : > { %2681 = vadd.xlane.f32.xlu0 %v2482_v33  ;;  %2671 = vadd.xlane.f32.xlu1 %v2477_v39  ;;  %v17468_v33 = vld [vmem:[#allocation61_spill] sm:$0xff]  ;;  %v13132_v16 = vadd.f32 %v2243_v20, %v1851_v43  ;;  %v1322_v10 = vadd.f32 %v17472_v36, %v938_v31  ;;  %v940_v24 = vmul.f32 %v17473_v41, %v11998_v53  ;;  %v17477_v41 = vld [vmem:[#allocation56_spill] sm:$0xff]  ;;  %v17479_v36 = vld [vmem:[#allocation183_spill] sm:$0xff] }
 0x2ff   : > { %v13118_v19 = vpop.xlane.xlu0 %2545  ;;  %v2232_v39 = vmul.f32 %v17468_v33, %v12611_v56  ;;  %v17474_v33 = vmax.f32 %v12995_v3, 0.0  ;;  %v1840_v8 = vadd.f32 %v12687_v50, %v1320_v18  ;;  %v2247_v6 = vmul.f32 %v17475_v60, %v12611_v56  ;;  %v17478_v3 = vld [vmem:[#allocation98_spill] sm:$0xff]  ;;  %v17480_v60 = vld [vmem:[#allocation219_spill] sm:$0xff]  ;;  %v17481_v31 = vld [vmem:[#allocation109_spill] sm:$0xff] }
 0x300   : > { %v1733_v43 = vmul.f32 %v17476_v11, %v17282_v2  ;;  %v13148_v15 = vadd.f32 %v2245_v5, %v1853_v25  ;;  %v2234_v62 = vmul.f32 %v17478_v3, %v12611_v56  ;;  %v2486_v50 = vmax.f32 %v2358_v27, 0.0  ;;  %v17482_v5 = vld [vmem:[#allocation65_spill] sm:$0xff] }
 0x301   : > { %v2360_v18 = vadd.f32 %v2232_v39, %v1840_v8  ;;  %v1859_v7 = vadd.f32 %v1731_v1, %v17480_v60  ;;  %v1735_v11 = vmul.f32 %v17302_v37, %v17282_v2  ;;  %v13158_v14 = vadd.f32 %v2247_v6, %v1855_v40  ;;  %v17484_v39 = vld [vmem:[#allocation128_spill] sm:$0xff]  ;;  %v17485_v1 = vld [vmem:[#allocation185_spill] sm:$0xff]  ;;  %v17491_v8 = vld [vmem:[#allocation111_spill] sm:$0xff] }
 0x302   : > { %2685 = vadd.xlane.f32.xlu0 %v2484_v22  ;;  %2675 = vadd.xlane.f32.xlu1 %v17474_v33  ;;  %v1857_v22 = vadd.f32 %v1729_v0, %v17477_v41  ;;  %v2249_v33 = vmul.f32 %v17479_v36, %v12611_v56  ;;  %v1324_v25 = vadd.f32 %v17481_v31, %v940_v24  ;;  %v17483_v41 = vmax.f32 %v13007_v42, 0.0  ;;  %v17486_v36 = vld [vmem:[#allocation58_spill] sm:$0xff]  ;;  %v17488_v42 = vld [vmem:[#allocation100_spill] sm:$0xff]  ;;  %v17492_v31 = vld [vmem:[#allocation67_spill] sm:$0xff] }
 0x303   : > { %v13145_v20 = vpop.xlane.xlu0 %2549  ;;  %v942_v0 = vmul.f32 %v17482_v5, %v11998_v53  ;;  %v1842_v27 = vadd.f32 %v17484_v39, %v1322_v10  ;;  %v2251_v3 = vmul.f32 %v17485_v1, %v12611_v56  ;;  %v1861_v37 = vadd.f32 %v1733_v43, %v17486_v36  ;;  %v17490_v43 = vld [vmem:[#allocation220_spill] sm:$0xff] }
 0x304   : > { %v1737_v40 = vmul.f32 %v17311_v21, %v17282_v2  ;;  %v2488_v10 = vmax.f32 %v2360_v18, 0.0  ;;  %v13179_v5 = vadd.f32 %v2249_v33, %v1857_v22  ;;  %v1863_v1 = vadd.f32 %v1735_v11, %v17490_v43  ;;  %v17494_v22 = vld [vmem:[#allocation53_spill] sm:$0xff] }
 0x305   : > { %v2362_v60 = vadd.f32 %v2234_v62, %v1842_v27  ;;  %v1739_v21 = vmul.f32 %v17321_v12, %v17282_v2  ;;  %v13186_v36 = vadd.f32 %v2251_v3, %v1859_v7  ;;  %v1326_v35 = vadd.f32 %v17491_v8, %v942_v0  ;;  %v17495_v27 = vld [vmem:[#allocation62_spill] sm:$0xff] }
 0x306   : > { %2689 = vadd.xlane.f32.xlu0 %v2486_v50  ;;  %2679 = vadd.xlane.f32.xlu1 %v17483_v41  ;;  %v2236_v50 = vmul.f32 %v17488_v42, %v12611_v56  ;;  %v17489_v41 = vld [vmem:[#allocation187_spill] sm:$0xff]  ;;  %v17493_v62 = vmax.f32 %v13029_v51, 0.0  ;;  %v1844_v18 = vadd.f32 %v17494_v22, %v1324_v25  ;;  %v2255_v11 = vmul.f32 %v17316_v46, %v12611_v56  ;;  %v17496_v51 = vld [vmem:[#allocation102_spill] sm:$0xff] }
 0x307   : > { %v13172_v24 = vpop.xlane.xlu0 %2553  ;;  %v13174_v6 = vpop.xlane.xlu1 %2541  ;;  %v2253_v39 = vmul.f32 %v17489_v41, %v12611_v56  ;;  %v1865_v12 = vadd.f32 %v1737_v40, %v17495_v27  ;;  %v1741_v7 = vmul.f32 %v17330_v48, %v17282_v2  ;;  %v2490_v25 = vmax.f32 %v2362_v60, 0.0  ;;  %v17497_v40 = vld [vmem:[#allocation222_spill] sm:$0xff]  ;;  %v17501_v60 = vld [vmem:[#allocation55_spill] sm:$0xff] }
 0x308   : > { %17487 = vst [vmem:[#allocation156_spill] sm:$0xff] %v13172_v24  ;;  %v944_v24 = vmul.f32 %v17492_v31, %v11998_v53  ;;  %v2238_v31 = vmul.f32 %v17496_v51, %v12611_v56  ;;  %v2364_v42 = vadd.f32 %v2236_v50, %v1844_v18  ;;  %v2257_v46 = vmul.f32 %v17325_v4, %v12611_v56  ;;  %v17502_v27 = vld [vmem:[#allocation63_spill] sm:$0xff] }
 0x309   : > { %v13204_v3 = vadd.f32 %v2253_v39, %v1861_v37  ;;  %v1867_v41 = vadd.f32 %v1739_v21, %v17497_v40  ;;  %v1743_v48 = vmul.f32 %v17337_v49, %v17282_v2  ;;  %v13214_v43 = vadd.f32 %v2255_v11, %v1863_v1  ;;  %v17499_v39 = vld [vmem:[#allocation70_spill] sm:$0xff]  ;;  %v17544_v4 = vld [vmem:[#allocation123_spill] sm:$0xff] }
 0x30a   : > { %2693 = vadd.xlane.f32.xlu0 %v2488_v10  ;;  %2683 = vadd.xlane.f32.xlu1 %v17493_v62  ;;  %v17498_v62 = vld [vmem:[#allocation113_spill] sm:$0xff]  ;;  %v946_v22 = vmul.f32 %v17499_v39, %v11998_v53  ;;  %v17500_v50 = vmax.f32 %v13038_v9, 0.0  ;;  %v1846_v18 = vadd.f32 %v17501_v60, %v1326_v35  ;;  %v2259_v21 = vmul.f32 %v17334_v23, %v12611_v56  ;;  %v17503_v35 = vld [vmem:[#allocation72_spill] sm:$0xff] }
 0x30b   : > { %v13200_v0 = vpop.xlane.xlu0 %2557  ;;  %v13202_v8 = vpop.xlane.xlu1 %2547  ;;  %v1328_v37 = vadd.f32 %v17498_v62, %v944_v24  ;;  %v1869_v49 = vadd.f32 %v1741_v7, %v17502_v27  ;;  %v13231_v51 = vadd.f32 %v2257_v46, %v1865_v12  ;;  %v2261_v9 = vmul.f32 %v17343_v34, %v12611_v56  ;;  %v17504_v7 = vld [vmem:[#allocation66_spill] sm:$0xff]  ;;  %v17505_v12 = vld [vmem:[#allocation115_spill] sm:$0xff] }
 0x30c   : > { %v2492_v40 = vmax.f32 %v2364_v42, 0.0  ;;  %v2366_v62 = vadd.f32 %v2238_v31, %v1846_v18  ;;  %v2263_v23 = vmul.f32 %v17350_v29, %v12611_v56  ;;  %v1871_v39 = vadd.f32 %v1743_v48, %v17504_v7  ;;  %v17506_v27 = vld [vmem:[#allocation106_spill] sm:$0xff]  ;;  %v17508_v31 = vld [vmem:[#allocation132_spill] sm:$0xff] }
 0x30d   : > { %v13242_v60 = vadd.f32 %v2259_v21, %v1867_v41  ;;  %v1330_v46 = vadd.f32 %v17505_v12, %v946_v22  ;;  %v948_v34 = vmul.f32 %v17506_v27, %v11998_v53  ;;  %v1848_v42 = vadd.f32 %v17508_v31, %v1328_v37  ;;  %v17509_v37 = vld [vmem:[#allocation75_spill] sm:$0xff]  ;;  %v17512_v18 = vld [vmem:[#allocation108_spill] sm:$0xff] }
 0x30e   : > { %2697 = vadd.xlane.f32.xlu0 %v2490_v25  ;;  %2687 = vadd.xlane.f32.xlu1 %v17500_v50  ;;  %v2240_v25 = vmul.f32 %v17503_v35, %v12611_v56  ;;  %v1745_v50 = vmul.f32 %v17346_v52, %v17282_v2  ;;  %v17507_v35 = vmax.f32 %v13067_v55, 0.0  ;;  %v1747_v48 = vmul.f32 %v17355_v26, %v17282_v2 }
 0x30f   : > { %v13226_v1 = vpop.xlane.xlu0 %2561  ;;  %v13228_v11 = vpop.xlane.xlu1 %2551  ;;  %v1749_v52 = vmul.f32 %v17364_v17, %v17282_v2  ;;  %v13260_v21 = vadd.f32 %v2261_v9, %v1869_v49  ;;  %v2265_v55 = vmul.f32 %v17359_v38, %v12611_v56  ;;  %v2494_v7 = vmax.f32 %v2366_v62, 0.0  ;;  %v17510_v17 = vld [vmem:[#allocation69_spill] sm:$0xff] }
 0x310   : > { %v2368_v12 = vadd.f32 %v2240_v25, %v1848_v42  ;;  %v2267_v26 = vmul.f32 %v17368_v54, %v12611_v56  ;;  %v1873_v27 = vadd.f32 %v1745_v50, %v17510_v17  ;;  %v13271_v31 = vadd.f32 %v2263_v23, %v1871_v39  ;;  %v17511_v49 = vld [vmem:[#allocation117_spill] sm:$0xff]  ;;  %v17515_v42 = vld [vmem:[#allocation104_spill] sm:$0xff]  ;;  %v17521_v54 = vld [vmem:[#allocation78_spill] sm:$0xff] }
 0x311   : > { %v1332_v9 = vadd.f32 %v17511_v49, %v948_v34  ;;  %v950_v38 = vmul.f32 %v17512_v18, %v11998_v53  ;;  %v17514_v25 = vld [vmem:[#allocation57_spill] sm:$0xff]  ;;  %v1875_v50 = vadd.f32 %v1747_v48, %v17515_v42  ;;  %v2269_v48 = vmul.f32 %v17375_v61, %v12611_v56 }
 0x312   : > { %2701 = vadd.xlane.f32.xlu0 %v2492_v40  ;;  %2691 = vadd.xlane.f32.xlu1 %v17507_v35  ;;  %v2242_v40 = vmul.f32 %v17509_v37, %v12611_v56  ;;  %v1751_v35 = vmul.f32 %v17371_v63, %v17282_v2  ;;  %v17513_v37 = vmax.f32 %v13077_v28, 0.0  ;;  %v1850_v62 = vadd.f32 %v17514_v25, %v1330_v46  ;;  %v17516_v17 = vld [vmem:[#allocation73_spill] sm:$0xff]  ;;  %v17517_v46 = vld [vmem:[#allocation76_spill] sm:$0xff] }
 0x313   : > { %v13255_v41 = vpop.xlane.xlu0 %2565  ;;  %v13257_v22 = vpop.xlane.xlu1 %2555  ;;  %v1877_v29 = vadd.f32 %v1749_v52, %v17516_v17  ;;  %v1753_v63 = vmul.f32 %v17380_v32, %v17282_v2  ;;  %v1755_v28 = vmul.f32 %v17386_v30, %v17282_v2  ;;  %v2244_v18 = vmul.f32 %v17517_v46, %v12611_v56  ;;  %v17518_v52 = vld [vmem:[#allocation204_spill] sm:$0xff]  ;;  %v17520_v17 = vld [vmem:[#allocation119_spill] sm:$0xff] }
 0x314   : > { %v2370_v49 = vadd.f32 %v2242_v40, %v1850_v62  ;;  %v2271_v32 = vmul.f32 %v17518_v52, %v12611_v56  ;;  %v13298_v42 = vadd.f32 %v2265_v55, %v1873_v27  ;;  %v1334_v34 = vadd.f32 %v17520_v17, %v950_v38  ;;  %v17523_v40 = vld [vmem:[#allocation189_spill] sm:$0xff]  ;;  %v17525_v52 = vld [vmem:[#allocation83_spill] sm:$0xff] }
 0x315   : > { %v952_v30 = vmul.f32 %v17521_v54, %v11998_v53  ;;  %v17522_v46 = vmax.f32 %v13086_v45, 0.0  ;;  %v17524_v62 = vld [vmem:[#allocation81_spill] sm:$0xff]  ;;  %v13314_v38 = vadd.f32 %v2267_v26, %v1875_v50  ;;  %v13316_v54 = vadd.f32 %v2269_v48, %v1877_v29 }
 0x316   : > { %2705 = vadd.xlane.f32.xlu0 %v2494_v7  ;;  %2695 = vadd.xlane.f32.xlu1 %v17513_v37  ;;  %v2496_v7 = vmax.f32 %v2368_v12, 0.0  ;;  %v17519_v37 = vld [vmem:[#allocation110_spill] sm:$0xff]  ;;  %v1852_v12 = vadd.f32 %v17523_v40, %v1332_v9  ;;  %v1881_v24 = vadd.f32 %v1753_v63, %v17524_v62  ;;  %v2498_v17 = vmax.f32 %v2370_v49, 0.0  ;;  %v17528_v63 = vld [vmem:[#allocation205_spill] sm:$0xff] }
 0x317   : > { %v13284_v23 = vpop.xlane.xlu0 %2569  ;;  %v13286_v39 = vpop.xlane.xlu1 %2559  ;;  %v1879_v25 = vadd.f32 %v1751_v35, %v17519_v37  ;;  %v1757_v35 = vmul.f32 %v17525_v52, %v17282_v2  ;;  %v17527_v37 = vld [vmem:[#allocation31_spill] sm:$0xff]  ;;  %v2273_v40 = vmul.f32 %v17528_v63, %v12611_v56  ;;  %v17529_v62 = vld [vmem:[#allocation206_spill] sm:$0xff]  ;;  %v1759_v61 = vmul.f32 %v17403_v44, %v17282_v2  ;;  %v17531_v29 = vld [vmem:[#allocation121_spill] sm:$0xff] }
 0x318   : > { %v2246_v9 = vmul.f32 %v17527_v37, %v12611_v56  ;;  %v2275_v52 = vmul.f32 %v17529_v62, %v12611_v56  ;;  %v1336_v50 = vadd.f32 %v17531_v29, %v952_v30  ;;  %v17533_v49 = vmax.f32 %v13099_v59, 0.0  ;;  %v17535_v37 = vld [vmem:[#allocation116_spill] sm:$0xff] }
 0x319   : > { %v13327_v26 = vadd.f32 %v2271_v32, %v1879_v25  ;;  %v1885_v63 = vadd.f32 %v1757_v35, %v17535_v37  ;;  %v13343_v30 = vadd.f32 %v2273_v40, %v1881_v24  ;;  %v17543_v24 = vld [vmem:[#allocation87_spill] sm:$0xff]  ;;  %v10939_v33 = vmov 269488144  }
 0x31a   : > { %2709 = vadd.xlane.f32.xlu0 %v2496_v7  ;;  %2699 = vadd.xlane.f32.xlu1 %v17522_v46  ;;  %v17526_v7 = vld [vmem:[#allocation82_spill] sm:$0xff]  ;;  %v2372_v46 = vadd.f32 %v2244_v18, %v1852_v12  ;;  %v1887_v40 = vadd.f32 %v1759_v61, %v17543_v24  ;;  %v17560_v61 = vld [vmem:[#allocation39_spill] sm:$0xff] }
 0x31b   : > { %v13310_v55 = vpop.xlane.xlu0 %2573  ;;  %v13312_v27 = vpop.xlane.xlu1 %2563  ;;  %v1883_v45 = vadd.f32 %v1755_v28, %v17526_v7  ;;  %17530 = vst [vmem:[#allocation80_spill] sm:$0xff] %v13327_v26  ;;  %v17532_v28 = vld [vmem:[#allocation79_spill] sm:$0xff]  ;;  %v17534_v18 = vld [vmem:[#allocation134_spill] sm:$0xff]  ;;  %17537 = vst [vmem:[#allocation158_spill] sm:$0xff] %v13343_v30  ;;  %v10941_v30 = vmov 1414812756  }
 0x31c   : > { %v954_v48 = vmul.f32 %v17532_v28, %v11998_v53  ;;  %v1854_v12 = vadd.f32 %v17534_v18, %v1334_v34  ;;  %v2500_v29 = vmax.f32 %v2372_v46, 0.0  ;;  %v17541_v18 = vld [vmem:[#allocation208_spill] sm:$0xff]  ;;  %v17542_v7 = vld [vmem:[#allocation33_spill] sm:$0xff] }
 0x31d   : > { %v13347_v34 = vadd.f32 %v2275_v52, %v1883_v45  ;;  %v2279_v37 = vmul.f32 %v17541_v18, %v12611_v56  ;;  %v956_v32 = vmul.f32 %v17542_v7, %v11998_v53  ;;  %v17546_v45 = vld [vmem:[#allocation59_spill] sm:$0xff]  ;;  %v17547_v52 = vld [vmem:[#allocation209_spill] sm:$0xff] }
 0x31e   : > { %2713 = vadd.xlane.f32.xlu0 %v2498_v17  ;;  %2703 = vadd.xlane.f32.xlu1 %v17533_v49  ;;  %v17538_v17 = vld [vmem:[#allocation112_spill] sm:$0xff]  ;;  %v2374_v28 = vadd.f32 %v2246_v9, %v1854_v12  ;;  %v17540_v49 = vld [vmem:[#allocation207_spill] sm:$0xff]  ;;  %v1338_v10 = vadd.f32 %v17544_v4, %v954_v48  ;;  %v17545_v9 = vmax.f32 %v13108_v13, 0.0  ;;  %v1856_v46 = vadd.f32 %v17546_v45, %v1336_v50  ;;  %v17552_v4 = vld [vmem:[#allocation114_spill] sm:$0xff] }
 0x31f   : > { %v13337_v62 = vpop.xlane.xlu0 %2577  ;;  %v13339_v44 = vpop.xlane.xlu1 %2567  ;;  %v2248_v59 = vmul.f32 %v17538_v17, %v12611_v56  ;;  %17539 = vst [vmem:[#allocation160_spill] sm:$0xff] %v13347_v34  ;;  %v2277_v35 = vmul.f32 %v17540_v49, %v12611_v56  ;;  %v2281_v12 = vmul.f32 %v17547_v52, %v12611_v56  ;;  %v17548_v17 = vld [vmem:[#allocation213_spill] sm:$0xff]  ;;  %v2250_v13 = vmul.f32 %v17552_v4, %v12611_v56  ;;  %v17553_v45 = vld [vmem:[#allocation90_spill] sm:$0xff]  ;;  %v17566_v34 = vld [vmem:[#allocation127_spill] sm:$0xff] }
 0x320   : > { %17536 = vst [vmem:[#allocation157_spill] sm:$0xff] %v13339_v44  ;;  %v1761_v49 = vmul.f32 %v17548_v17, %v17282_v2  ;;  %v2502_v48 = vmax.f32 %v2374_v28, 0.0  ;;  %v1763_v52 = vmul.f32 %v17553_v45, %v17282_v2  ;;  %v17554_v17 = vld [vmem:[#allocation125_spill] sm:$0xff]  ;;  %v17556_v4 = vmax.f32 %v13121_v58, 0.0 }
 0x321   : > { %v13370_v24 = vadd.f32 %v2277_v35, %v1885_v63  ;;  %v1340_v25 = vadd.f32 %v17554_v17, %v956_v32  ;;  %v17555_v63 = vld [vmem:[#allocation42_spill] sm:$0xff]  ;;  %v17559_v50 = vld [vmem:[#allocation89_spill] sm:$0xff]  ;;  %v2252_v2 = vmul.f32 %v17560_v61, %v12611_v56 }
 0x322   : > { %2717 = vadd.xlane.f32.xlu0 %v2500_v29  ;;  %2707 = vadd.xlane.f32.xlu1 %v17545_v9  ;;  %v2376_v29 = vadd.f32 %v2248_v59, %v1856_v46  ;;  %v2283_v9 = vmul.f32 %v17435_v47, %v12611_v56  ;;  %v958_v35 = vmul.f32 %v17555_v63, %v11998_v53  ;;  %v17557_v59 = vld [vmem:[#allocation136_spill] sm:$0xff]  ;;  %v17623_v44 = vld [vmem:[#allocation149_spill] sm:$0xff] }
 0x323   : > { %v13365_v18 = vpop.xlane.xlu0 %2581  ;;  %v13367_v7 = vpop.xlane.xlu1 %2571  ;;  %17551 = vst [vmem:[#allocation162_spill] sm:$0xff] %v13370_v24  ;;  %v1858_v28 = vadd.f32 %v17557_v59, %v1338_v10  ;;  %v13385_v46 = vadd.f32 %v2279_v37, %v1887_v40  ;;  %v1889_v47 = vadd.f32 %v1761_v49, %v17559_v50  ;;  %v10940_v40 = vmov 842150450   ;;  %v17565_v49 = vld [vmem:[#allocation198_spill] sm:$0xff] }
 0x324   : > { %17549 = vst [vmem:[#allocation215_spill] sm:$0xff] %v13365_v18  ;;  %17550 = vst [vmem:[#allocation159_spill] sm:$0xff] %v13367_v7  ;;  %v2926_v7 = vunpack.c.l.s4 %v10939_v33  ;;  %v2504_v58 = vmax.f32 %v2376_v29, 0.0  ;;  %v2933_v59 = vunpack.c.l.s4 %v10940_v40  ;;  %v1860_v50 = vadd.f32 %v17565_v49, %v1340_v25  ;;  %v17568_v29 = vld [vmem:[#allocation46_spill] sm:$0xff]  ;;  %v17575_v49 = vld [vmem:[#allocation212_spill] sm:$0xff] }
 0x325   : > { %17558 = vst [vmem:[#allocation28_spill] sm:$0xff] %v13385_v46  ;;  %v2378_v63 = vadd.f32 %v2250_v13, %v1858_v28  ;;  %v1342_v61 = vadd.f32 %v17566_v34, %v958_v35  ;;  %v962_v13 = vmul.f32 %v17568_v29, %v11998_v53  ;;  %v10942_v28 = vmov 1987475062   ;;  %v17572_v34 = vld [vmem:[#allocation129_spill] sm:$0xff]  ;;  %v17573_v35 = vld [vmem:[#allocation118_spill] sm:$0xff]  ;;  %v17621_v18 = vld [vmem:[#allocation147_spill] sm:$0xff] }
 0x326   : > { %2721 = vadd.xlane.f32.xlu0 %v2502_v48  ;;  %2711 = vadd.xlane.f32.xlu1 %v17556_v4  ;;  %v17563_v48 = vld [vmem:[#allocation85_spill] sm:$0xff]  ;;  %v17564_v4 = vld [vmem:[#allocation124_spill] sm:$0xff]  ;;  %v2927_v37 = vunpack.c.0.s8 %v2926_v7  ;;  %v2380_v25 = vadd.f32 %v2252_v2, %v1860_v50  ;;  %v10943_v46 = vmov 1983009808   ;;  %v17578_v2 = vld [vmem:[#allocation47_spill] sm:$0xff] }
 0x327   : > { %v13390_v45 = vpop.xlane.xlu0 %2585  ;;  %v13392_v32 = vpop.xlane.xlu1 %2575  ;;  %v960_v17 = vmul.f32 %v17563_v48, %v11998_v53  ;;  %v1891_v10 = vadd.f32 %v1763_v52, %v17564_v4  ;;  %v2947_v52 = vunpack.c.l.s4 %v10942_v28  ;;  %v13409_v4 = vadd.f32 %v2281_v12, %v1889_v47  ;;  %v17577_v12 = vld [vmem:[#allocation120_spill] sm:$0xff] }
 0x328   : > { %17561 = vst [vmem:[#allocation84_spill] sm:$0xff] %v13390_v45  ;;  %17562 = vst [vmem:[#allocation210_spill] sm:$0xff] %v13392_v32  ;;  %v2940_v45 = vunpack.c.l.s4 %v10941_v30  ;;  %v17567_v32 = vmax.f32 %v13132_v16, 0.0  ;;  %v2254_v16 = vmul.f32 %v17573_v35, %v12611_v56  ;;  %v2506_v40 = vmax.f32 %v2378_v63, 0.0  ;;  %v17580_v63 = vld [vmem:[#allocation223_spill] sm:$0xff] }
 0x329   : > { %17571 = vst [vmem:[#allocation25_spill] sm:$0xff] %v13409_v4  ;;  %v1344_v30 = vadd.f32 %v17572_v34, %v960_v17  ;;  %v13417_v29 = vsub.s32 %v2927_v37, %v17575_v49  ;;  %v2934_v28 = vunpack.c.0.s8 %v2933_v59  ;;  %v13419_v33 = vadd.f32 %v2283_v9, %v1891_v10  ;;  %v17581_v37 = vld [vmem:[#allocation131_spill] sm:$0xff]  ;;  %v17582_v9 = vld [vmem:[#allocation214_spill] sm:$0xff] }
 0x32a   : > { %2725 = vadd.xlane.f32.xlu0 %v2504_v58  ;;  %2715 = vadd.xlane.f32.xlu1 %v17567_v32  ;;  %v17574_v32 = vld [vmem:[#allocation48_spill] sm:$0xff]  ;;  %v6512_v24 = vunpack.c.l.s4 %v10943_v46  ;;  %v2256_v47 = vmul.f32 %v17577_v12, %v12611_v56  ;;  %v966_v17 = vmul.f32 %v17578_v2, %v11998_v53  ;;  %v2941_v50 = vunpack.c.0.s8 %v2940_v45  ;;  %v17586_v45 = vld [vmem:[#allocation94_spill] sm:$0xff] }
 0x32b   : > { %v13405_v7 = vpop.xlane.xlu0 %2589  ;;  %v13407_v48 = vpop.xlane.xlu1 %2579  ;;  %v964_v58 = vmul.f32 %v17574_v32, %v11998_v53  ;;  %17576 = vst [vmem:[#allocation164_spill] sm:$0xff] %v13419_v33  ;;  %v17579_v34 = vmax.f32 %v13148_v15, 0.0  ;;  %v1862_v35 = vadd.f32 %v17580_v63, %v1342_v61  ;;  %v1346_v32 = vadd.f32 %v17581_v37, %v962_v13  ;;  %v17588_v61 = vld [vmem:[#allocation122_spill] sm:$0xff]  ;;  %v17589_v63 = vld [vmem:[#allocation96_spill] sm:$0xff] }
 0x32c   : > { %17569 = vst [vmem:[#allocation23_spill] sm:$0xff] %v13405_v7  ;;  %17570 = vst [vmem:[#allocation161_spill] sm:$0xff] %v13407_v48  ;;  %v968_v10 = vmul.f32 %v17582_v9, %v11998_v53  ;;  %v2948_v59 = vunpack.c.0.s8 %v2947_v52  ;;  %v2508_v12 = vmax.f32 %v2380_v25, 0.0  ;;  %v17585_v48 = vld [vmem:[#allocation133_spill] sm:$0xff]  ;;  %v2258_v13 = vmul.f32 %v17588_v61, %v12611_v56  ;;  %v17594_v61 = vld [vmem:[#allocation192_spill] sm:$0xff] }
 0x32d   : > { %v1348_v2 = vadd.f32 %v17585_v48, %v964_v58  ;;  %v2382_v15 = vadd.f32 %v2254_v16, %v1862_v35  ;;  %v972_v37 = vmul.f32 %v17589_v63, %v11998_v53  ;;  %v13444_v52 = vsub.s32 %v2934_v28, %v17575_v49  ;;  %v17591_v48 = vld [vmem:[#allocation92_spill] sm:$0xff] }
 0x32e   : > { %2729 = vadd.xlane.f32.xlu0 %v2506_v40  ;;  %2719 = vadd.xlane.f32.xlu1 %v17579_v34  ;;  %v970_v40 = vmul.f32 %v17586_v45, %v11998_v53  ;;  %v17587_v34 = vld [vmem:[#allocation200_spill] sm:$0xff]  ;;  %v6513_v9 = vunpack.c.0.s8 %v6512_v24  ;;  %v2260_v58 = vmul.f32 %v17591_v48, %v12611_v56  ;;  %v17592_v16 = vmax.f32 %v13158_v14, 0.0  ;;  %v17593_v45 = vld [vmem:[#allocation137_spill] sm:$0xff]  ;;  %v17598_v48 = vld [vmem:[#allocation139_spill] sm:$0xff] }
 0x32f   : > { %v13431_v46 = vpop.xlane.xlu0 %2593  ;;  %v13433_v33 = vpop.xlane.xlu1 %2583  ;;  %v1864_v7 = vadd.f32 %v17587_v34, %v1344_v30  ;;  %v1352_v34 = vadd.f32 %v17593_v45, %v968_v10  ;;  %v974_v63 = vmul.f32 %v17594_v61, %v11998_v53  ;;  %v13456_v28 = vsub.s32 %v2941_v50, %v17575_v49  ;;  %v17600_v45 = vld [vmem:[#allocation141_spill] sm:$0xff]  ;;  %v17601_v61 = vld [vmem:[#allocation196_spill] sm:$0xff] }
 0x330   : > { %17583 = vst [vmem:[#allocation166_spill] sm:$0xff] %v13431_v46  ;;  %17584 = vst [vmem:[#allocation163_spill] sm:$0xff] %v13433_v33  ;;  %v17590_v46 = vld [vmem:[#allocation135_spill] sm:$0xff]  ;;  %v1354_v14 = vadd.f32 %v17598_v48, %v970_v40  ;;  %v1356_v35 = vadd.f32 %v17600_v45, %v972_v37  ;;  %v976_v50 = vmul.f32 %v17601_v61, %v11998_v53  ;;  %v17603_v40 = vmax.f32 %v13179_v5, 0.0  ;;  %v17611_v5 = vld [vmem:[#allocation194_spill] sm:$0xff] }
 0x331   : > { %v1350_v25 = vadd.f32 %v17590_v46, %v966_v17  ;;  %v2384_v30 = vadd.f32 %v2256_v47, %v1864_v7  ;;  %v17597_v46 = vld [vmem:[#allocation224_spill] sm:$0xff]  ;;  %v13465_v7 = vsub.s32 %v2948_v59, %v17575_v49  ;;  %v2510_v47 = vmax.f32 %v2382_v15, 0.0  ;;  %v17605_v37 = vld [vmem:[#allocation95_spill] sm:$0xff] }
 0x332   : > { %2733 = vadd.xlane.f32.xlu0 %v2508_v12  ;;  %2723 = vadd.xlane.f32.xlu1 %v17592_v16  ;;  %v1866_v12 = vadd.f32 %v17597_v46, %v1346_v32  ;;  %v17599_v16 = vld [vmem:[#allocation225_spill] sm:$0xff]  ;;  %v17604_v46 = vld [vmem:[#allocation195_spill] sm:$0xff]  ;;  %v2264_v48 = vmul.f32 %v17605_v37, %v12611_v56 }
 0x333   : > { %v13458_v24 = vpop.xlane.xlu0 %2597  ;;  %v13460_v17 = vpop.xlane.xlu1 %2587  ;;  %v1868_v10 = vadd.f32 %v17599_v16, %v1348_v2  ;;  %v2512_v59 = vmax.f32 %v2384_v30, 0.0  ;;  %v1870_v2 = vadd.f32 %v17604_v46, %v1350_v25  ;;  %v17606_v16 = vld [vmem:[#allocation130_spill] sm:$0xff]  ;;  %v2268_v30 = vmul.f32 %v17611_v5, %v12611_v56 }
 0x334   : > { %17595 = vst [vmem:[#allocation86_spill] sm:$0xff] %v13458_v24  ;;  %17596 = vst [vmem:[#allocation32_spill] sm:$0xff] %v13460_v17  ;;  %v2386_v4 = vadd.f32 %v2258_v13, %v1866_v12  ;;  %v13472_v24 = vsub.s32 %v6513_v9, %v17575_v49  ;;  %v17602_v17 = vld [vmem:[#allocation30_spill] sm:$0xff]  ;;  %v2266_v13 = vmul.f32 %v17606_v16, %v12611_v56  ;;  %v17607_v12 = vld [vmem:[#allocation143_spill] sm:$0xff] }
 0x335   : > { %v2262_v32 = vmul.f32 %v17602_v17, %v12611_v56  ;;  %v2388_v15 = vadd.f32 %v2260_v58, %v1868_v10  ;;  %v1358_v9 = vadd.f32 %v17607_v12, %v974_v63  ;;  %v17610_v17 = vld [vmem:[#allocation140_spill] sm:$0xff]  ;;  %v17612_v58 = vld [vmem:[#allocation193_spill] sm:$0xff]  ;;  %v17614_v46 = vld [vmem:[#allocation202_spill] sm:$0xff]  ;;  %v2966_v5 = vrot.slane %v13096_v57, %v13444_v52 }
 0x336   : > { %2737 = vadd.xlane.f32.xlu0 %v2510_v47  ;;  %2727 = vadd.xlane.f32.xlu1 %v17603_v40  ;;  %v1872_v47 = vadd.f32 %v17610_v17, %v1352_v34  ;;  %v978_v25 = vmul.f32 %v17612_v58, %v11998_v53  ;;  %v17613_v10 = vld [vmem:[#allocation197_spill] sm:$0xff]  ;;  %v1874_v37 = vadd.f32 %v17614_v46, %v1354_v14  ;;  %v17616_v63 = vld [vmem:[#allocation191_spill] sm:$0xff]  ;;  %v17617_v34 = vld [vmem:[#allocation142_spill] sm:$0xff]  ;;  %v17618_v14 = vmax.f32 %v13186_v36, 0.0 }
 0x337   : > { %v13484_v45 = vpop.xlane.xlu0 %2601  ;;  %v13486_v61 = vpop.xlane.xlu1 %2591  ;;  %v980_v40 = vmul.f32 %v17613_v10, %v11998_v53  ;;  %v17615_v16 = vld [vmem:[#allocation145_spill] sm:$0xff]  ;;  %v2270_v12 = vmul.f32 %v17616_v63, %v12611_v56  ;;  %v1876_v17 = vadd.f32 %v17617_v34, %v1356_v35  ;;  %v2973_v58 = vrot.slane %v13096_v57, %v13456_v28 }
 0x338   : > { %17608 = vst [vmem:[#allocation165_spill] sm:$0xff] %v13484_v45  ;;  %17609 = vst [vmem:[#allocation34_spill] sm:$0xff] %v13486_v61  ;;  %v1360_v49 = vadd.f32 %v17615_v16, %v976_v50  ;;  %v2959_v45 = vrot.slane %v13096_v57, %v13417_v29  ;;  %v2980_v10 = vrot.slane %v13096_v57, %v13465_v7  ;;  %v2514_v50 = vmax.f32 %v2386_v4, 0.0  ;;  %v17620_v61 = vld [vmem:[#allocation68_spill] sm:$0xff]  ;;  %v17622_v57 = vld [vmem:[#allocation138_spill] sm:$0xff] }
 0x339   : > { %v2390_v63 = vadd.f32 %v2262_v32, %v1870_v2  ;;  %v13514_v35 = vadd.f32 %v2264_v48, %v1872_v47  ;;  %v13516_v34 = vadd.f32 %v2266_v13, %v1874_v37  ;;  %v1878_v33 = vadd.f32 %v17620_v61, %v1358_v9  ;;  %v17624_v4 = vld [vmem:[#allocation199_spill] sm:$0xff]  ;;  %v17625_v32 = vld [vmem:[#allocation201_spill] sm:$0xff]  ;;  %v17627_v47 = vld [vmem:[#allocation144_spill] sm:$0xff] }
 0x33a   : > { %2741 = vadd.xlane.f32.xlu0 %v2512_v59  ;;  %2731 = vadd.xlane.f32.xlu1 %v17618_v14  ;;  %v1362_v26 = vadd.f32 %v17621_v18, %v978_v25  ;;  %v2272_v59 = vmul.f32 %v17622_v57, %v12611_v56  ;;  %v1364_v36 = vadd.f32 %v17623_v44, %v980_v40  ;;  %v17626_v48 = vld [vmem:[#allocation203_spill] sm:$0xff]  ;;  %v17628_v25 = vmax.f32 %v13204_v3, 0.0  ;;  %v17631_v3 = vld [vmem:[#allocation226_spill] sm:$0xff] }
 0x33b   : > { %v13510_v46 = vpop.xlane.xlu0 %2605  ;;  %v13512_v16 = vpop.xlane.xlu1 %2595  ;;  %v13523_v14 = vadd.f32 %v2268_v30, %v1876_v17  ;;  %v984_v2 = vmul.f32 %v17625_v32, %v11998_v53  ;;  %v986_v13 = vmul.f32 %v17626_v48, %v11998_v53  ;;  %v1880_v9 = vadd.f32 %v17627_v47, %v1360_v49  ;;  %v17636_v48 = vld [vmem:[#allocation153_spill] sm:$0xff]  ;;  %v17637_v47 = vld [vmem:[#allocation155_spill] sm:$0xff] }
 0x33c   : > { %17619 = vst [vmem:[#allocation167_spill] sm:$0xff] %v13510_v46  ;;  %v982_v46 = vmul.f32 %v17624_v4, %v11998_v53  ;;  %v6526_v61 = vcombine.low %v2959_v45, %v2966_v5  ;;  %v6527_v18 = vcombine.low %v2973_v58, %v2980_v10  ;;  %v2516_v44 = vmax.f32 %v2388_v15, 0.0  ;;  %v17633_v58 = vld [vmem:[#allocation146_spill] sm:$0xff]  ;;  %v17635_v4 = vld [vmem:[#allocation227_spill] sm:$0xff] }
 0x33d   : > { %v13534_v30 = vadd.f32 %v2270_v12, %v1878_v33  ;;  %v2987_v40 = vrot.slane %v13118_v19, %v13417_v29  ;;  %v2994_v37 = vrot.slane %v13118_v19, %v13444_v52  ;;  %v3001_v53 = vrot.slane %v13118_v19, %v13456_v28  ;;  %v17632_v12 = vld [vmem:[#allocation71_spill] sm:$0xff] }
 0x33e   : > { %2745 = vadd.xlane.f32.xlu0 %v2514_v50  ;;  %2735 = vadd.xlane.f32.xlu1 %v17628_v25  ;;  %v3008_v49 = vrot.slane %v13118_v19, %v13465_v7  ;;  %v2274_v33 = vmul.f32 %v17631_v3, %v12611_v56  ;;  %v13550_v15 = vadd.f32 %v2272_v59, %v1880_v9  ;;  %v17634_v50 = vld [vmem:[#allocation151_spill] sm:$0xff]  ;;  %v17639_v3 = vld [vmem:[#allocation77_spill] sm:$0xff]  ;;  %v17640_v9 = vld [vmem:[#allocation154_spill] sm:$0xff] }
 0x33f   : > { %v13544_v45 = vpop.xlane.xlu0 %2609  ;;  %v13546_v17 = vpop.xlane.xlu1 %2599  ;;  %v1882_v5 = vadd.f32 %v17632_v12, %v1362_v26  ;;  %v1884_v10 = vadd.f32 %v17633_v58, %v1364_v36  ;;  %v1366_v57 = vadd.f32 %v17634_v50, %v982_v46  ;;  %v2276_v32 = vmul.f32 %v17635_v4, %v12611_v56 }
 0x340   : > { %17629 = vst [vmem:[#allocation22_spill] sm:$0xff] %v13544_v45  ;;  %17630 = vst [vmem:[#allocation88_spill] sm:$0xff] %v13546_v17  ;;  %v1368_v19 = vadd.f32 %v17636_v48, %v984_v2  ;;  %v1370_v25 = vadd.f32 %v17637_v47, %v986_v13  ;;  %v17638_v17 = vld [vmem:[#allocation74_spill] sm:$0xff]  ;;  %v2280_v59 = vmul.f32 %v17639_v3, %v12611_v56  ;;  %v17641_v36 = vmax.f32 %v13214_v43, 0.0 }
 0x341   : > { %v2278_v45 = vmul.f32 %v17638_v17, %v12611_v56  ;;  %v2282_v26 = vmul.f32 %v17640_v9, %v12611_v56  ;;  %v2518_v46 = vmax.f32 %v2390_v63, 0.0  ;;  %v6543_v12 = vcombine.low %v2987_v40, %v2994_v37  ;;  %v17642_v40 = vld [vmem:[#allocation148_spill] sm:$0xff] }
 0x342   : > { %2749 = vadd.xlane.f32.xlu0 %v2516_v44  ;;  %2739 = vadd.xlane.f32.xlu1 %v17641_v36  ;;  %v6544_v58 = vcombine.low %v3001_v53, %v3008_v49  ;;  %v6534_v13 = vrot.slane %v6526_v61, %v13472_v24  ;;  %v6541_v17 = vrot.slane %v6527_v18, %v13472_v24  ;;  %v17643_v53 = vld [vmem:[#allocation150_spill] sm:$0xff]  ;;  %v17644_v49 = vld [vmem:[#allocation152_spill] sm:$0xff]  ;;  %v17645_v3 = vmax.f32 %v13231_v51, 0.0 }
 0x343   : > { %v13567_v50 = vpop.xlane.xlu0 %2613  ;;  %v13569_v2 = vpop.xlane.xlu1 %2603  ;;  %v3043_v4 = vrot.slane %v13145_v20, %v13417_v29  ;;  %v3050_v56 = vrot.slane %v13145_v20, %v13444_v52  ;;  %v3057_v43 = vrot.slane %v13145_v20, %v13456_v28  ;;  %v3064_v63 = vrot.slane %v13145_v20, %v13465_v7 }
 0x344   : > { %v13581_v44 = vadd.f32 %v2274_v33, %v1882_v5  ;;  %v1886_v37 = vadd.f32 %v17642_v40, %v1366_v57  ;;  %v1888_v61 = vadd.f32 %v17643_v53, %v1368_v19  ;;  %v1890_v18 = vadd.f32 %v17644_v49, %v1370_v25 }
 0x345   : > { %v2931_v48 = vrot.slane %v13174_v6, %v13417_v29  ;;  %v2938_v47 = vrot.slane %v13174_v6, %v13444_v52  ;;  %v2520_v20 = vmax.f32 %v13514_v35, 0.0  ;;  %v13593_v33 = vadd.f32 %v2276_v32, %v1884_v10  ;;  %v17647_v10 = vld [vmem:[#allocation156_spill] sm:$0xff] }
 0x346   : > { %2753 = vadd.xlane.f32.xlu0 %v2518_v46  ;;  %2743 = vadd.xlane.f32.xlu1 %v17645_v3  ;;  %v13599_v19 = vadd.f32 %v2278_v45, %v1886_v37  ;;  %v13601_v25 = vadd.f32 %v2280_v59, %v1888_v61  ;;  %v13603_v9 = vadd.f32 %v2282_v26, %v1890_v18 }
 0x347   : > { %v13595_v5 = vpop.xlane.xlu0 %2617  ;;  %v13597_v57 = vpop.xlane.xlu1 %2607  ;;  %v13605_v36 = vcombine.low %v6534_v13, %v6541_v17  ;;  %v6577_v46 = vcombine.low %v3043_v4, %v3050_v56  ;;  %v6578_v40 = vcombine.low %v3057_v43, %v3064_v63  ;;  %v6551_v51 = vrot.slane %v6543_v12, %v13472_v24 }
 0x348   : > { %v6558_v35 = vrot.slane %v6544_v58, %v13472_v24  ;;  %v3099_v32 = vrot.slane %v17647_v10, %v13417_v29  ;;  %v3106_v53 = vrot.slane %v17647_v10, %v13444_v52  ;;  %v2945_v45 = vrot.slane %v13174_v6, %v13456_v28 }
 0x349   : > { %17646 = vst [vmem:[#allocation216_spill] sm:$0xff] %v13605_v36  ;;  %v2952_v59 = vrot.slane %v13174_v6, %v13465_v7  ;;  %v3113_v26 = vrot.slane %v17647_v10, %v13456_v28  ;;  %v3120_v12 = vrot.slane %v17647_v10, %v13465_v7  ;;  %v13621_v13 = vcombine.low %v2931_v48, %v2938_v47 }
 0x34a   : > { %2757 = vadd.xlane.f32.xlu0 %v2520_v20  ;;  %v17648_v58 = vmax.f32 %v13242_v60, 0.0  ;;  %v2522_v17 = vmax.f32 %v13516_v34, 0.0  ;;  %v3015_v4 = vrot.slane %v13202_v8, %v13417_v29  ;;  %v3022_v6 = vrot.slane %v13202_v8, %v13444_v52 }
 0x34b   : > { %v3029_v56 = vrot.slane %v13202_v8, %v13456_v28  ;;  %v3036_v43 = vrot.slane %v13202_v8, %v13465_v7  ;;  %v13634_v63 = vpop.xlane.xlu0 %2621  ;;  %v13636_v37 = vpop.xlane.xlu1 %2611  ;;  %v3155_v60 = vrot.slane %v13200_v0, %v13417_v29  ;;  %v3162_v34 = vrot.slane %v13200_v0, %v13444_v52 }
 0x34c   : > { %2747 = vadd.xlane.f32.xlu1 %v17648_v58  ;;  %v3169_v61 = vrot.slane %v13200_v0, %v13456_v28  ;;  %v3176_v49 = vrot.slane %v13200_v0, %v13465_v7  ;;  %v6510_v18 = vcombine.low %v2945_v45, %v2952_v59  ;;  %v13646_v48 = vcombine.low %v6551_v51, %v6558_v35 }
 0x34d   : > { %v6585_v8 = vrot.slane %v6577_v46, %v13472_v24  ;;  %v6592_v47 = vrot.slane %v6578_v40, %v13472_v24  ;;  %v13650_v3 = vcombine.low %v3099_v32, %v3106_v53  ;;  %v3071_v20 = vrot.slane %v13228_v11, %v13417_v29 }
 0x34e   : > { %17649 = vst [vmem:[#allocation27_spill] sm:$0xff] %v13646_v48  ;;  %v3078_v10 = vrot.slane %v13228_v11, %v13444_v52  ;;  %2761 = vadd.xlane.f32.xlu0 %v2522_v17  ;;  %v17650_v58 = vmax.f32 %v13260_v21, 0.0  ;;  %v2524_v0 = vmax.f32 %v13523_v14, 0.0  ;;  %v6560_v51 = vcombine.low %v3015_v4, %v3022_v6 }
 0x34f   : > { %v6561_v35 = vcombine.low %v3029_v56, %v3036_v43  ;;  %v3085_v46 = vrot.slane %v13228_v11, %v13456_v28  ;;  %v3092_v40 = vrot.slane %v13228_v11, %v13465_v7  ;;  %v13663_v32 = vpop.xlane.xlu0 %2625  ;;  %v13665_v53 = vpop.xlane.xlu1 %2615  ;;  %v13667_v45 = vcombine.low %v3113_v26, %v3120_v12 }
 0x350   : > { %2751 = vadd.xlane.f32.xlu1 %v17650_v58  ;;  %17651 = vst [vmem:[#allocation168_spill] sm:$0xff] %v13663_v32  ;;  %17652 = vst [vmem:[#allocation170_spill] sm:$0xff] %v13665_v53  ;;  %v13669_v59 = vcombine.low %v3155_v60, %v3162_v34  ;;  %v13671_v21 = vcombine.low %v3169_v61, %v3176_v49  ;;  %v6517_v14 = vrot.slane %v13621_v13, %v13472_v24 }
 0x351   : > { %v3211_v17 = vrot.slane %v13226_v1, %v13417_v29  ;;  %v3218_v4 = vrot.slane %v13226_v1, %v13444_v52  ;;  %v6524_v11 = vrot.slane %v6510_v18, %v13472_v24  ;;  %v13680_v6 = vcombine.low %v6585_v8, %v6592_v47 }
 0x352   : > { %v3225_v26 = vrot.slane %v13226_v1, %v13456_v28  ;;  %v3232_v12 = vrot.slane %v13226_v1, %v13465_v7  ;;  %v13686_v56 = vcombine.low %v3071_v20, %v3078_v10  ;;  %2765 = vadd.xlane.f32.xlu0 %v2524_v0  ;;  %v17654_v13 = vmax.f32 %v13271_v31, 0.0 }
 0x353   : > { %17653 = vst [vmem:[#allocation169_spill] sm:$0xff] %v13680_v6  ;;  %v2526_v43 = vmax.f32 %v13534_v30, 0.0  ;;  %v13691_v60 = vcombine.low %v3085_v46, %v3092_v40  ;;  %v3267_v34 = vrot.slane %v13255_v41, %v13417_v29  ;;  %v13695_v61 = vpop.xlane.xlu0 %2629  ;;  %v13697_v49 = vpop.xlane.xlu1 %2619  ;;  %v6568_v18 = vrot.slane %v6560_v51, %v13472_v24 }
 0x354   : > { %2755 = vadd.xlane.f32.xlu1 %v17654_v13  ;;  %17655 = vst [vmem:[#allocation97_spill] sm:$0xff] %v13695_v61  ;;  %17656 = vst [vmem:[#allocation29_spill] sm:$0xff] %v13697_v49  ;;  %v6575_v1 = vrot.slane %v6561_v35, %v13472_v24  ;;  %v3274_v8 = vrot.slane %v13255_v41, %v13444_v52  ;;  %v3281_v31 = vrot.slane %v13255_v41, %v13456_v28 }
 0x355   : > { %v3288_v30 = vrot.slane %v13255_v41, %v13465_v7  ;;  %v3127_v47 = vrot.slane %v13257_v22, %v13417_v29  ;;  %v3134_v20 = vrot.slane %v13257_v22, %v13444_v52  ;;  %v3141_v10 = vrot.slane %v13257_v22, %v13456_v28 }
 0x356   : > { %v3148_v58 = vrot.slane %v13257_v22, %v13465_v7  ;;  %v3323_v0 = vrot.slane %v13284_v23, %v13417_v29  ;;  %v3330_v51 = vrot.slane %v13284_v23, %v13444_v52  ;;  %v3337_v41 = vrot.slane %v13284_v23, %v13456_v28  ;;  %2769 = vadd.xlane.f32.xlu0 %v2526_v43 }
 0x357   : > { %v3344_v35 = vrot.slane %v13284_v23, %v13465_v7  ;;  %v17657_v46 = vmax.f32 %v13298_v42, 0.0  ;;  %v2528_v40 = vmax.f32 %v13550_v15, 0.0  ;;  %v3183_v22 = vrot.slane %v13286_v39, %v13417_v29  ;;  %v13734_v61 = vpop.xlane.xlu0 %2633  ;;  %v13736_v23 = vpop.xlane.xlu1 %2623 }
 0x358   : > { %v3190_v13 = vrot.slane %v13286_v39, %v13444_v52  ;;  %v3197_v6 = vrot.slane %v13286_v39, %v13456_v28  ;;  %v3204_v49 = vrot.slane %v13286_v39, %v13465_v7  ;;  %v13738_v42 = vcombine.low %v3211_v17, %v3218_v4 }
 0x359   : > { %2759 = vadd.xlane.f32.xlu1 %v17657_v46  ;;  %v13740_v43 = vcombine.low %v3225_v26, %v3232_v12  ;;  %v13742_v15 = vcombine.low %v3267_v34, %v3274_v8  ;;  %v13744_v46 = vcombine.low %v6517_v14, %v6524_v11  ;;  %v13746_v48 = vcombine.low %v3281_v31, %v3288_v30 }
 0x35a   : > { %v13748_v53 = vcombine.low %v3127_v47, %v3134_v20  ;;  %v13750_v32 = vcombine.low %v3141_v10, %v3148_v58  ;;  %v13752_v36 = vcombine.low %v6568_v18, %v6575_v1  ;;  %v13754_v39 = vcombine.low %v3323_v0, %v3330_v51  ;;  %2773 = vadd.xlane.f32.xlu0 %v2528_v40  ;;  %v17664_v0 = vld [vmem:[#allocation157_spill] sm:$0xff] }
 0x35b   : > { %v17659_v17 = vmax.f32 %v13314_v38, 0.0  ;;  %v2530_v4 = vmax.f32 %v13581_v44, 0.0  ;;  %v6602_v14 = vrot.slane %v13686_v56, %v13472_v24  ;;  %v6609_v11 = vrot.slane %v13691_v60, %v13472_v24  ;;  %v13769_v18 = vpop.xlane.xlu0 %2637  ;;  %v13771_v1 = vpop.xlane.xlu1 %2627 }
 0x35c   : > { %17658 = vst [vmem:[#allocation91_spill] sm:$0xff] %v13754_v39  ;;  %v13763_v26 = vcombine.low %v3337_v41, %v3344_v35  ;;  %v13765_v12 = vcombine.low %v3183_v22, %v3190_v13  ;;  %v13767_v34 = vcombine.low %v3197_v6, %v3204_v49  ;;  %17661 = vst [vmem:[#allocation40_spill] sm:$0xff] %v13769_v18  ;;  %v2532_v20 = vmax.f32 %v13593_v33, 0.0 }
 0x35d   : > { %2763 = vadd.xlane.f32.xlu1 %v17659_v17  ;;  %17662 = vst [vmem:[#allocation36_spill] sm:$0xff] %v13771_v1  ;;  %v6619_v38 = vrot.slane %v13650_v3, %v13472_v24  ;;  %v3379_v44 = vrot.slane %v13310_v55, %v13417_v29  ;;  %v3386_v56 = vrot.slane %v13310_v55, %v13444_v52 }
 0x35e   : > { %17660 = vst [vmem:[#allocation93_spill] sm:$0xff] %v13763_v26  ;;  %v3393_v60 = vrot.slane %v13310_v55, %v13456_v28  ;;  %v3400_v6 = vrot.slane %v13310_v55, %v13465_v7  ;;  %v3239_v49 = vrot.slane %v13312_v27, %v13417_v29  ;;  %v3246_v8 = vrot.slane %v13312_v27, %v13444_v52 }
 0x35f   : > { %v3253_v3 = vrot.slane %v13312_v27, %v13456_v28  ;;  %v3260_v31 = vrot.slane %v13312_v27, %v13465_v7  ;;  %v3435_v30 = vrot.slane %v13337_v62, %v13417_v29  ;;  %v3442_v47 = vrot.slane %v13337_v62, %v13444_v52  ;;  %2777 = vadd.xlane.f32.xlu0 %v2530_v4  ;;  %v13808_v35 = vpop.xlane.xlu0 %2641 }
 0x360   : > { %v17663_v55 = vmax.f32 %v13316_v54, 0.0  ;;  %v6626_v10 = vrot.slane %v13667_v45, %v13472_v24  ;;  %v3449_v58 = vrot.slane %v13337_v62, %v13456_v28  ;;  %v3456_v27 = vrot.slane %v13337_v62, %v13465_v7  ;;  %17665 = vst [vmem:[#allocation38_spill] sm:$0xff] %v13808_v35  ;;  %v13810_v54 = vpop.xlane.xlu1 %2631 }
 0x361   : > { %v3295_v51 = vrot.slane %v17664_v0, %v13417_v29  ;;  %v3302_v41 = vrot.slane %v17664_v0, %v13444_v52  ;;  %17666 = vst [vmem:[#allocation172_spill] sm:$0xff] %v13810_v54  ;;  %v13812_v33 = vcombine.low %v3379_v44, %v3386_v56  ;;  %v13814_v40 = vcombine.low %v3393_v60, %v3400_v6  ;;  %v17671_v44 = vld [vmem:[#allocation80_spill] sm:$0xff] }
 0x362   : > { %2767 = vadd.xlane.f32.xlu1 %v17663_v55  ;;  %v6670_v45 = vrot.slane %v13765_v12, %v13472_v24  ;;  %v13818_v22 = vcombine.low %v6602_v14, %v6609_v11  ;;  %v6696_v62 = vcombine.low %v3239_v49, %v3246_v8  ;;  %v6697_v13 = vcombine.low %v3253_v3, %v3260_v31  ;;  %v17675_v49 = vld [vmem:[#allocation215_spill] sm:$0xff] }
 0x363   : > { %17667 = vst [vmem:[#allocation211_spill] sm:$0xff] %v13812_v33  ;;  %17668 = vst [vmem:[#allocation99_spill] sm:$0xff] %v13814_v40  ;;  %v3309_v17 = vrot.slane %v17664_v0, %v13456_v28  ;;  %v3316_v4 = vrot.slane %v17664_v0, %v13465_v7  ;;  %v13824_v55 = vcombine.low %v3435_v30, %v3442_v47  ;;  %2781 = vadd.xlane.f32.xlu0 %v2532_v20  ;;  %v13839_v31 = vpop.xlane.xlu0 %2645 }
 0x364   : > { %17669 = vst [vmem:[#allocation37_spill] sm:$0xff] %v13818_v22  ;;  %v17672_v56 = vmax.f32 %v17671_v44, 0.0  ;;  %v2534_v60 = vmax.f32 %v13599_v19, 0.0  ;;  %v6677_v14 = vrot.slane %v13767_v34, %v13472_v24  ;;  %v13831_v11 = vcombine.low %v6619_v38, %v6626_v10  ;;  %17676 = vst [vmem:[#allocation45_spill] sm:$0xff] %v13839_v31  ;;  %v13841_v30 = vpop.xlane.xlu1 %2635  ;;  %v17678_v19 = vld [vmem:[#allocation159_spill] sm:$0xff] }
 0x365   : > { %17670 = vst [vmem:[#allocation49_spill] sm:$0xff] %v13824_v55  ;;  %v13833_v12 = vcombine.low %v3449_v58, %v3456_v27  ;;  %v6730_v6 = vcombine.low %v3295_v51, %v3302_v41  ;;  %v3491_v8 = vrot.slane %v17675_v49, %v13417_v29  ;;  %v3498_v3 = vrot.slane %v17675_v49, %v13444_v52  ;;  %v17679_v41 = vld [vmem:[#allocation84_spill] sm:$0xff] }
 0x366   : > { %2771 = vadd.xlane.f32.xlu1 %v17672_v56  ;;  %17673 = vst [vmem:[#allocation174_spill] sm:$0xff] %v13831_v11  ;;  %17677 = vst [vmem:[#allocation126_spill] sm:$0xff] %v13841_v30  ;;  %v3351_v47 = vrot.slane %v17678_v19, %v13417_v29  ;;  %v3358_v34 = vrot.slane %v17678_v19, %v13444_v52  ;;  %v3365_v38 = vrot.slane %v17678_v19, %v13456_v28 }
 0x367   : > { %17674 = vst [vmem:[#allocation24_spill] sm:$0xff] %v13833_v12  ;;  %v3372_v20 = vrot.slane %v17678_v19, %v13465_v7  ;;  %v6731_v10 = vcombine.low %v3309_v17, %v3316_v4  ;;  %v3505_v58 = vrot.slane %v17675_v49, %v13456_v28  ;;  %v6704_v27 = vrot.slane %v6696_v62, %v13472_v24  ;;  %v17680_v12 = vld [vmem:[#allocation158_spill] sm:$0xff]  ;;  %v13872_v40 = vpop.xlane.xlu0 %2649 }
 0x368   : > { %v6711_v0 = vrot.slane %v6697_v13, %v13472_v24  ;;  %v3512_v51 = vrot.slane %v17675_v49, %v13465_v7  ;;  %v3547_v44 = vrot.slane %v17679_v41, %v13417_v29  ;;  %v3554_v56 = vrot.slane %v17679_v41, %v13444_v52  ;;  %2785 = vadd.xlane.f32.xlu0 %v2534_v60  ;;  %v17682_v4 = vld [vmem:[#allocation210_spill] sm:$0xff]  ;;  %v13874_v60 = vpop.xlane.xlu1 %2639 }
 0x369   : > { %v17681_v19 = vmax.f32 %v17680_v12, 0.0  ;;  %v2536_v17 = vmax.f32 %v13601_v25, 0.0  ;;  %v3407_v62 = vrot.slane %v17682_v4, %v13417_v29  ;;  %v3414_v13 = vrot.slane %v17682_v4, %v13444_v52  ;;  %17683 = vst [vmem:[#allocation171_spill] sm:$0xff] %v13872_v40  ;;  %17684 = vst [vmem:[#allocation35_spill] sm:$0xff] %v13874_v60 }
 0x36a   : > { %v3421_v49 = vrot.slane %v17682_v4, %v13456_v28  ;;  %v3428_v55 = vrot.slane %v17682_v4, %v13465_v7  ;;  %v13876_v12 = vcombine.low %v3491_v8, %v3498_v3  ;;  %v13880_v25 = vcombine.low %v3365_v38, %v3372_v20  ;;  %v17687_v8 = vld [vmem:[#allocation23_spill] sm:$0xff] }
 0x36b   : > { %2775 = vadd.xlane.f32.xlu1 %v17681_v19  ;;  %v13878_v19 = vcombine.low %v3351_v47, %v3358_v34  ;;  %v13882_v33 = vcombine.low %v6670_v45, %v6677_v14  ;;  %v3561_v30 = vrot.slane %v17679_v41, %v13456_v28  ;;  %v3568_v31 = vrot.slane %v17679_v41, %v13465_v7  ;;  %v17688_v45 = vld [vmem:[#allocation160_spill] sm:$0xff]  ;;  %v17693_v41 = vld [vmem:[#allocation161_spill] sm:$0xff] }
 0x36c   : > { %17685 = vst [vmem:[#allocation176_spill] sm:$0xff] %v13876_v12  ;;  %v6738_v4 = vrot.slane %v6730_v6, %v13472_v24  ;;  %v6745_v40 = vrot.slane %v6731_v10, %v13472_v24  ;;  %v13890_v11 = vcombine.low %v3505_v58, %v3512_v51  ;;  %v3603_v3 = vrot.slane %v17687_v8, %v13417_v29  ;;  %v13903_v10 = vpop.xlane.xlu0 %2653  ;;  %v13905_v58 = vpop.xlane.xlu1 %2643 }
 0x36d   : > { %v3610_v47 = vrot.slane %v17687_v8, %v13444_v52  ;;  %2789 = vadd.xlane.f32.xlu0 %v2536_v17  ;;  %v17689_v14 = vmax.f32 %v17688_v45, 0.0  ;;  %v2538_v34 = vmax.f32 %v13603_v9, 0.0  ;;  %v13899_v38 = vcombine.low %v3547_v44, %v3554_v56  ;;  %17691 = vst [vmem:[#allocation44_spill] sm:$0xff] %v13903_v10  ;;  %17692 = vst [vmem:[#allocation178_spill] sm:$0xff] %v13905_v58  ;;  %v17696_v45 = vld [vmem:[#allocation162_spill] sm:$0xff] }
 0x36e   : > { %17686 = vst [vmem:[#allocation101_spill] sm:$0xff] %v13890_v11  ;;  %v13901_v20 = vcombine.low %v3407_v62, %v3414_v13  ;;  %v6799_v6 = vcombine.low %v3421_v49, %v3428_v55  ;;  %v13907_v51 = vcombine.low %v6704_v27, %v6711_v0  ;;  %v3463_v11 = vrot.slane %v17693_v41, %v13417_v29  ;;  %v17706_v58 = vld [vmem:[#allocation86_spill] sm:$0xff] }
 0x36f   : > { %2779 = vadd.xlane.f32.xlu1 %v17689_v14  ;;  %17690 = vst [vmem:[#allocation217_spill] sm:$0xff] %v13899_v38  ;;  %v3470_v17 = vrot.slane %v17693_v41, %v13444_v52  ;;  %v3477_v9 = vrot.slane %v17693_v41, %v13456_v28  ;;  %v3484_v44 = vrot.slane %v17693_v41, %v13465_v7 }
 0x370   : > { %v13917_v56 = vcombine.low %v3561_v30, %v3568_v31  ;;  %v13919_v55 = vcombine.low %v6738_v4, %v6745_v40  ;;  %v6772_v27 = vrot.slane %v13878_v19, %v13472_v24  ;;  %v6779_v0 = vrot.slane %v13880_v25, %v13472_v24  ;;  %v17698_v40 = vld [vmem:[#allocation164_spill] sm:$0xff]  ;;  %v17699_v4 = vld [vmem:[#allocation163_spill] sm:$0xff] }
 0x371   : > { %v3617_v62 = vrot.slane %v17687_v8, %v13456_v28  ;;  %v3624_v13 = vrot.slane %v17687_v8, %v13465_v7  ;;  %v13929_v49 = vcombine.low %v3603_v3, %v3610_v47  ;;  %2793 = vadd.xlane.f32.xlu0 %v2538_v34  ;;  %v17697_v31 = vmax.f32 %v17696_v45, 0.0  ;;  %v13942_v3 = vpop.xlane.xlu0 %2657  ;;  %v13944_v47 = vpop.xlane.xlu1 %2647 }
 0x372   : > { %17694 = vst [vmem:[#allocation51_spill] sm:$0xff] %v13917_v56  ;;  %v2539_v30 = vmax.f32 %v17698_v40, 0.0  ;;  %v3519_v19 = vrot.slane %v17699_v4, %v13417_v29  ;;  %v3526_v25 = vrot.slane %v17699_v4, %v13444_v52  ;;  %v3533_v14 = vrot.slane %v17699_v4, %v13456_v28  ;;  %17700 = vst [vmem:[#allocation41_spill] sm:$0xff] %v13942_v3  ;;  %v17702_v40 = vld [vmem:[#allocation32_spill] sm:$0xff] }
 0x373   : > { %17695 = vst [vmem:[#allocation173_spill] sm:$0xff] %v13929_v49  ;;  %2783 = vadd.xlane.f32.xlu1 %v17697_v31  ;;  %v3540_v8 = vrot.slane %v17699_v4, %v13465_v7  ;;  %17701 = vst [vmem:[#allocation180_spill] sm:$0xff] %v13944_v47  ;;  %v6832_v34 = vcombine.low %v3463_v11, %v3470_v17  ;;  %v6833_v41 = vcombine.low %v3477_v9, %v3484_v44  ;;  %v17703_v11 = vld [vmem:[#allocation166_spill] sm:$0xff]  ;;  %v17704_v44 = vld [vmem:[#allocation28_spill] sm:$0xff] }
 0x374   : > { %v6806_v45 = vrot.slane %v13901_v20, %v13472_v24  ;;  %v6813_v31 = vrot.slane %v6799_v6, %v13472_v24  ;;  %v3575_v49 = vrot.slane %v17702_v40, %v13417_v29  ;;  %v3582_v56 = vrot.slane %v17702_v40, %v13444_v52 }
 0x375   : > { %v3589_v4 = vrot.slane %v17702_v40, %v13456_v28  ;;  %v3596_v38 = vrot.slane %v17702_v40, %v13465_v7  ;;  %v3659_v17 = vrot.slane %v17703_v11, %v13417_v29  ;;  %v3666_v20 = vrot.slane %v17703_v11, %v13444_v52  ;;  %v13971_v60 = vpop.xlane.xlu0 %2661  ;;  %v13973_v26 = vpop.xlane.xlu1 %2651 }
 0x376   : > { %v3673_v6 = vrot.slane %v17703_v11, %v13456_v28  ;;  %v3680_v9 = vrot.slane %v17703_v11, %v13465_v7  ;;  %v17705_v12 = vmax.f32 %v17704_v44, 0.0  ;;  %v6866_v47 = vcombine.low %v3519_v19, %v3526_v25  ;;  %17707 = vst [vmem:[#allocation103_spill] sm:$0xff] %v13971_v60  ;;  %17708 = vst [vmem:[#allocation218_spill] sm:$0xff] %v13973_v26  ;;  %v17710_v60 = vld [vmem:[#allocation34_spill] sm:$0xff] }
 0x377   : > { %v6867_v3 = vcombine.low %v3533_v14, %v3540_v8  ;;  %v3715_v40 = vrot.slane %v17706_v58, %v13417_v29  ;;  %v3722_v10 = vrot.slane %v17706_v58, %v13444_v52  ;;  %v3729_v39 = vrot.slane %v17706_v58, %v13456_v28 }
 0x378   : > { %2787 = vadd.xlane.f32.xlu1 %v17705_v12  ;;  %v3736_v11 = vrot.slane %v17706_v58, %v13465_v7  ;;  %v6840_v12 = vrot.slane %v6832_v34, %v13472_v24  ;;  %v6847_v19 = vrot.slane %v6833_v41, %v13472_v24  ;;  %v13981_v25 = vcombine.low %v3617_v62, %v3624_v13  ;;  %v17711_v34 = vld [vmem:[#allocation25_spill] sm:$0xff] }
 0x379   : > { %v6900_v14 = vcombine.low %v3575_v49, %v3582_v56  ;;  %v6901_v8 = vcombine.low %v3589_v4, %v3596_v38  ;;  %v13983_v44 = vcombine.low %v6772_v27, %v6779_v0  ;;  %v3631_v54 = vrot.slane %v17710_v60, %v13417_v29  ;;  %v14001_v27 = vpop.xlane.xlu0 %2665  ;;  %v14003_v0 = vpop.xlane.xlu1 %2655 }
 0x37a   : > { %17709 = vst [vmem:[#allocation43_spill] sm:$0xff] %v13981_v25  ;;  %v3638_v26 = vrot.slane %v17710_v60, %v13444_v52  ;;  %v3645_v22 = vrot.slane %v17710_v60, %v13456_v28  ;;  %v3652_v58 = vrot.slane %v17710_v60, %v13465_v7  ;;  %v17712_v41 = vmax.f32 %v17711_v34, 0.0  ;;  %17716 = vst [vmem:[#allocation50_spill] sm:$0xff] %v14001_v27 }
 0x37b   : > { %v13995_v62 = vcombine.low %v3659_v17, %v3666_v20  ;;  %v13997_v38 = vcombine.low %v3673_v6, %v3680_v9  ;;  %v13999_v56 = vcombine.low %v3715_v40, %v3722_v10  ;;  %17717 = vst [vmem:[#allocation184_spill] sm:$0xff] %v14003_v0  ;;  %v14005_v13 = vcombine.low %v6806_v45, %v6813_v31  ;;  %v17720_v17 = vld [vmem:[#allocation165_spill] sm:$0xff]  ;;  %v17721_v9 = vld [vmem:[#allocation167_spill] sm:$0xff] }
 0x37c   : > { %2791 = vadd.xlane.f32.xlu1 %v17712_v41  ;;  %v14007_v49 = vcombine.low %v3729_v39, %v3736_v11  ;;  %v14009_v4 = vcombine.low %v6840_v12, %v6847_v19  ;;  %v6874_v60 = vrot.slane %v6866_v47, %v13472_v24  ;;  %v6881_v34 = vrot.slane %v6867_v3, %v13472_v24 }
 0x37d   : > { %17713 = vst [vmem:[#allocation182_spill] sm:$0xff] %v13995_v62  ;;  %17714 = vst [vmem:[#allocation60_spill] sm:$0xff] %v13997_v38  ;;  %v3771_v20 = vrot.slane %v17720_v17, %v13417_v29  ;;  %v3778_v10 = vrot.slane %v17720_v17, %v13444_v52  ;;  %v3785_v6 = vrot.slane %v17720_v17, %v13456_v28 }
 0x37e   : > { %17715 = vst [vmem:[#allocation175_spill] sm:$0xff] %v13999_v56  ;;  %17718 = vst [vmem:[#allocation105_spill] sm:$0xff] %v14007_v49  ;;  %v3792_v45 = vrot.slane %v17720_v17, %v13465_v7  ;;  %v14021_v39 = vcombine.low %v3631_v54, %v3638_v26  ;;  %v14023_v31 = vcombine.low %v3645_v22, %v3652_v58  ;;  %v14035_v54 = vpop.xlane.xlu0 %2669  ;;  %v14037_v22 = vpop.xlane.xlu1 %2659  ;;  %v17724_v58 = vld [vmem:[#allocation22_spill] sm:$0xff]  ;;  %v17725_v56 = vld [vmem:[#allocation88_spill] sm:$0xff] }
 0x37f   : > { %17719 = vst [vmem:[#allocation221_spill] sm:$0xff] %v14009_v4  ;;  %v6908_v47 = vrot.slane %v6900_v14, %v13472_v24  ;;  %v6915_v3 = vrot.slane %v6901_v8, %v13472_v24  ;;  %v3827_v40 = vrot.slane %v17721_v9, %v13417_v29  ;;  %v3834_v11 = vrot.slane %v17721_v9, %v13444_v52 }
 0x380   : > { %2795 = vadd.xlane.f32.xlu1 %v2539_v30  ;;  %v3841_v12 = vrot.slane %v17721_v9, %v13456_v28  ;;  %v3848_v26 = vrot.slane %v17721_v9, %v13465_v7  ;;  %17722 = vst [vmem:[#allocation26_spill] sm:$0xff] %v14035_v54  ;;  %17723 = vst [vmem:[#allocation177_spill] sm:$0xff] %v14037_v22  ;;  %v3687_v30 = vrot.slane %v13512_v16, %v13417_v29 }
 0x381   : > { %v3694_v19 = vrot.slane %v13512_v16, %v13444_v52  ;;  %v3701_v14 = vrot.slane %v13512_v16, %v13456_v28  ;;  %v3708_v8 = vrot.slane %v13512_v16, %v13465_v7  ;;  %v3883_v41 = vrot.slane %v17724_v58, %v13417_v29 }
 0x382   : > { %v3890_v17 = vrot.slane %v17724_v58, %v13444_v52  ;;  %v3897_v9 = vrot.slane %v17724_v58, %v13456_v28  ;;  %v3904_v49 = vrot.slane %v17724_v58, %v13465_v7  ;;  %v3743_v38 = vrot.slane %v17725_v56, %v13417_v29  ;;  %v14069_v27 = vpop.xlane.xlu0 %2673  ;;  %v14071_v58 = vpop.xlane.xlu1 %2663 }
 0x383   : > { %v3750_v62 = vrot.slane %v17725_v56, %v13444_v52  ;;  %v6636_v16 = vrot.slane %v13748_v53, %v13472_v24  ;;  %v6643_v25 = vrot.slane %v13750_v32, %v13472_v24  ;;  %v14063_v22 = vcombine.low %v3771_v20, %v3778_v10  ;;  %17729 = vst [vmem:[#allocation179_spill] sm:$0xff] %v14071_v58  ;;  %v17742_v58 = vld [vmem:[#allocation216_spill] sm:$0xff] }
 0x384   : > { %v14065_v54 = vcombine.low %v3785_v6, %v3792_v45  ;;  %v14067_v0 = vcombine.low %v3827_v40, %v3834_v11  ;;  %v14073_v4 = vcombine.low %v6874_v60, %v6881_v34  ;;  %v14075_v35 = vcombine.low %v3841_v12, %v3848_v26 }
 0x385   : > { %17726 = vst [vmem:[#allocation52_spill] sm:$0xff] %v14063_v22  ;;  %v14077_v1 = vcombine.low %v3687_v30, %v3694_v19  ;;  %v14079_v53 = vcombine.low %v3701_v14, %v3708_v8  ;;  %v14081_v18 = vcombine.low %v6908_v47, %v6915_v3  ;;  %v14083_v32 = vcombine.low %v3883_v41, %v3890_v17 }
 0x386   : > { %17727 = vst [vmem:[#allocation186_spill] sm:$0xff] %v14065_v54  ;;  %17728 = vst [vmem:[#allocation61_spill] sm:$0xff] %v14067_v0  ;;  %v14085_v20 = vcombine.low %v3897_v9, %v3904_v49  ;;  %v3757_v10 = vrot.slane %v17725_v56, %v13456_v28  ;;  %v3764_v6 = vrot.slane %v17725_v56, %v13465_v7 }
 0x387   : > { %17730 = vst [vmem:[#allocation54_spill] sm:$0xff] %v14075_v35  ;;  %17731 = vst [vmem:[#allocation188_spill] sm:$0xff] %v14083_v32  ;;  %v14091_v60 = vcombine.low %v3743_v38, %v3750_v62  ;;  %v14093_v34 = vcombine.low %v6636_v16, %v6643_v25  ;;  %v6942_v45 = vrot.slane %v14021_v39, %v13472_v24  ;;  %v14107_v25 = vpop.xlane.xlu0 %2677  ;;  %v14109_v38 = vpop.xlane.xlu1 %2667  ;;  %8686 = vperm.xlu0 %10729, %v13744_v46  }
 0x388   : > { %17732 = vst [vmem:[#allocation107_spill] sm:$0xff] %v14085_v20  ;;  %v6949_v47 = vrot.slane %v14023_v31, %v13472_v24  ;;  %v3939_v49 = vrot.slane %v13567_v50, %v13417_v29  ;;  %v3946_v3 = vrot.slane %v13567_v50, %v13444_v52  ;;  %v3953_v40 = vrot.slane %v13567_v50, %v13456_v28 }
 0x389   : > { %v3960_v62 = vrot.slane %v13567_v50, %v13465_v7  ;;  %17733 = vst [vmem:[#allocation64_spill] sm:$0xff] %v14107_v25  ;;  %17734 = vst [vmem:[#allocation181_spill] sm:$0xff] %v14109_v38  ;;  %v3799_v56 = vrot.slane %v13569_v2, %v13417_v29  ;;  %v3806_v39 = vrot.slane %v13569_v2, %v13444_v52 }
 0x38a   : > { %v3813_v31 = vrot.slane %v13569_v2, %v13456_v28  ;;  %v3820_v11 = vrot.slane %v13569_v2, %v13465_v7  ;;  %v3995_v50 = vrot.slane %v13595_v5, %v13417_v29  ;;  %v4002_v12 = vrot.slane %v13595_v5, %v13444_v52 }
 0x38b   : > { %v6653_v26 = vrot.slane %v13669_v59, %v13472_v24  ;;  %v6660_v30 = vrot.slane %v13671_v21, %v13472_v24  ;;  %v4009_v19 = vrot.slane %v13595_v5, %v13456_v28  ;;  %v4016_v2 = vrot.slane %v13595_v5, %v13465_v7  ;;  %v14140_v41 = vpop.xlane.xlu0 %2681  ;;  %v14142_v21 = vpop.xlane.xlu1 %2671  ;;  %8713 = vperm.xlu0 %10729, %v13882_v33  }
 0x38c   : > { %v3855_v46 = vrot.slane %v13597_v57, %v13417_v29  ;;  %v3862_v14 = vrot.slane %v13597_v57, %v13444_v52  ;;  %v3869_v8 = vrot.slane %v13597_v57, %v13456_v28  ;;  %v3876_v59 = vrot.slane %v13597_v57, %v13465_v7  ;;  %17735 = vst [vmem:[#allocation190_spill] sm:$0xff] %v14140_v41 }
 0x38d   : > { %17736 = vst [vmem:[#allocation56_spill] sm:$0xff] %v14142_v21  ;;  %v6976_v17 = vrot.slane %v14077_v1, %v13472_v24  ;;  %v6983_v5 = vrot.slane %v14079_v53, %v13472_v24  ;;  %v4051_v9 = vrot.slane %v13634_v63, %v13417_v29  ;;  %v4058_v16 = vrot.slane %v13634_v63, %v13444_v52 }
 0x38e   : > { %v4065_v20 = vrot.slane %v13634_v63, %v13456_v28  ;;  %v4072_v57 = vrot.slane %v13634_v63, %v13465_v7  ;;  %v3911_v1 = vrot.slane %v13636_v37, %v13417_v29  ;;  %v3918_v53 = vrot.slane %v13636_v37, %v13444_v52 }
 0x38f   : > { %v3925_v32 = vrot.slane %v13636_v37, %v13456_v28  ;;  %v3932_v35 = vrot.slane %v13636_v37, %v13465_v7  ;;  %v7003_v0 = vcombine.low %v3757_v10, %v3764_v6  ;;  %v14165_v54 = vcombine.low %v3939_v49, %v3946_v3  ;;  %v14179_v25 = vpop.xlane.xlu0 %2685  ;;  %v14182_v37 = vpop.xlane.xlu1 %2675  ;;  %8719 = vperm.xlu0 %10729, %v13907_v51  }
 0x390   : > { %v14167_v22 = vcombine.low %v3953_v40, %v3960_v62  ;;  %v14169_v63 = vcombine.low %v6942_v45, %v6949_v47  ;;  %v14171_v33 = vcombine.low %v3799_v56, %v3806_v39  ;;  %v14173_v21 = vcombine.low %v3813_v31, %v3820_v11  ;;  %17741 = vst [vmem:[#allocation65_spill] sm:$0xff] %v14179_v25 }
 0x391   : > { %17737 = vst [vmem:[#allocation98_spill] sm:$0xff] %v14165_v54  ;;  %v14175_v41 = vcombine.low %v3995_v50, %v4002_v12  ;;  %v14177_v38 = vcombine.low %v4009_v19, %v4016_v2  ;;  %8689 = vperm.xlu1 %10730, %v17742_v58   ;;  %17743 = vst [vmem:[#allocation128_spill] sm:$0xff] %v14182_v37  ;;  %v14184_v10 = vcombine.low %v3855_v46, %v3862_v14  ;;  %v17746_v58 = vld [vmem:[#allocation168_spill] sm:$0xff]  ;;  %v17751_v46 = vld [vmem:[#allocation97_spill] sm:$0xff] }
 0x392   : > { %17738 = vst [vmem:[#allocation183_spill] sm:$0xff] %v14167_v22  ;;  %v14186_v6 = vcombine.low %v3869_v8, %v3876_v59  ;;  %v14188_v45 = vcombine.low %v4051_v9, %v4058_v16  ;;  %v14191_v47 = vcombine.low %v6653_v26, %v6660_v30  ;;  %v14193_v49 = vcombine.low %v4065_v20, %v4072_v57  ;;  %v17749_v26 = vld [vmem:[#allocation27_spill] sm:$0xff] }
 0x393   : > { %17739 = vst [vmem:[#allocation219_spill] sm:$0xff] %v14175_v41  ;;  %17740 = vst [vmem:[#allocation109_spill] sm:$0xff] %v14177_v38  ;;  %v14195_v3 = vcombine.low %v3911_v1, %v3918_v53  ;;  %v14197_v40 = vcombine.low %v3925_v32, %v3932_v35  ;;  %v14199_v62 = vcombine.low %v6976_v17, %v6983_v5  ;;  %v17747_v32 = vld [vmem:[#allocation170_spill] sm:$0xff]  ;;  %v14217_v12 = vpop.xlane.xlu0 %2689  ;;  %8725 = vperm.xlu0 %10729, %v13919_v55   ;;  %v17752_v5 = vld [vmem:[#allocation29_spill] sm:$0xff] }
 0x394   : > { %17744 = vst [vmem:[#allocation185_spill] sm:$0xff] %v14188_v45  ;;  %17745 = vst [vmem:[#allocation58_spill] sm:$0xff] %v14193_v49  ;;  %v4107_v56 = vrot.slane %v17746_v58, %v13417_v29  ;;  %v4114_v39 = vrot.slane %v17746_v58, %v13444_v52  ;;  %v6687_v31 = vrot.slane %v13738_v42, %v13472_v24  ;;  %v14220_v42 = vpop.xlane.xlu1 %2679  ;;  %v17772_v49 = vld [vmem:[#allocation91_spill] sm:$0xff]  ;;  %v17773_v38 = vld [vmem:[#allocation93_spill] sm:$0xff] }
 0x395   : > { %v6694_v51 = vrot.slane %v13740_v43, %v13472_v24  ;;  %v4121_v20 = vrot.slane %v17746_v58, %v13456_v28  ;;  %v4128_v35 = vrot.slane %v17746_v58, %v13465_v7  ;;  %v3967_v11 = vrot.slane %v17747_v32, %v13417_v29  ;;  %17748 = vst [vmem:[#allocation100_spill] sm:$0xff] %v14217_v12 }
 0x396   : > { %v3974_v50 = vrot.slane %v17747_v32, %v13444_v52  ;;  %8692 = vperm.xlu1 %10730, %v17749_v26   ;;  %17750 = vst [vmem:[#allocation187_spill] sm:$0xff] %v14220_v42  ;;  %v3981_v43 = vrot.slane %v17747_v32, %v13456_v28  ;;  %v3988_v30 = vrot.slane %v17747_v32, %v13465_v7 }
 0x397   : > { %v7010_v19 = vrot.slane %v14091_v60, %v13472_v24  ;;  %v7017_v2 = vrot.slane %v7003_v0, %v13472_v24  ;;  %v4163_v14 = vrot.slane %v17751_v46, %v13417_v29  ;;  %v4170_v8 = vrot.slane %v17751_v46, %v13444_v52  ;;  %v14252_v53 = vpop.xlane.xlu0 %2693  ;;  %8731 = vperm.xlu0 %10729, %v13983_v44  }
 0x398   : > { %v4177_v59 = vrot.slane %v17751_v46, %v13456_v28  ;;  %v4184_v17 = vrot.slane %v17751_v46, %v13465_v7  ;;  %v4023_v55 = vrot.slane %v17752_v5, %v13417_v29  ;;  %v4030_v60 = vrot.slane %v17752_v5, %v13444_v52  ;;  %17755 = vst [vmem:[#allocation67_spill] sm:$0xff] %v14252_v53  ;;  %v14255_v58 = vpop.xlane.xlu1 %2683 }
 0x399   : > { %v4037_v0 = vrot.slane %v17752_v5, %v13456_v28  ;;  %v4044_v9 = vrot.slane %v17752_v5, %v13465_v7  ;;  %v14246_v16 = vcombine.low %v4107_v56, %v4114_v39  ;;  %v14248_v57 = vcombine.low %v4121_v20, %v4128_v35  ;;  %17756 = vst [vmem:[#allocation53_spill] sm:$0xff] %v14255_v58 }
 0x39a   : > { %v14250_v1 = vcombine.low %v3967_v11, %v3974_v50  ;;  %8695 = vperm.xlu1 %10730, %v13752_v36   ;;  %v14257_v32 = vcombine.low %v6687_v31, %v6694_v51  ;;  %v4219_v26 = vrot.slane %v13734_v61, %v13417_v29  ;;  %v4226_v46 = vrot.slane %v13734_v61, %v13444_v52 }
 0x39b   : > { %17753 = vst [vmem:[#allocation220_spill] sm:$0xff] %v14246_v16  ;;  %17754 = vst [vmem:[#allocation111_spill] sm:$0xff] %v14248_v57  ;;  %v4233_v56 = vrot.slane %v13734_v61, %v13456_v28  ;;  %v4240_v39 = vrot.slane %v13734_v61, %v13465_v7  ;;  %v14268_v20 = vcombine.low %v3981_v43, %v3988_v30  ;;  %8737 = vperm.xlu0 %10729, %v14005_v13   ;;  %v17765_v13 = vld [vmem:[#allocation36_spill] sm:$0xff]  ;;  %v17771_v16 = vld [vmem:[#allocation221_spill] sm:$0xff] }
 0x39c   : > { %v14270_v36 = vcombine.low %v4163_v14, %v4170_v8  ;;  %v14272_v31 = vcombine.low %v4177_v59, %v4184_v17  ;;  %v14274_v51 = vcombine.low %v7010_v19, %v7017_v2  ;;  %v14276_v35 = vcombine.low %v4023_v55, %v4030_v60  ;;  %v14292_v2 = vpop.xlane.xlu0 %2697  ;;  %v17760_v14 = vld [vmem:[#allocation169_spill] sm:$0xff] }
 0x39d   : > { %v14278_v11 = vcombine.low %v4037_v0, %v4044_v9  ;;  %v6721_v50 = vrot.slane %v13742_v15, %v13472_v24  ;;  %v6728_v61 = vrot.slane %v13746_v48, %v13472_v24  ;;  %v4079_v44 = vrot.slane %v13736_v23, %v13417_v29  ;;  %17759 = vst [vmem:[#allocation222_spill] sm:$0xff] %v14292_v2  ;;  %v14295_v15 = vpop.xlane.xlu1 %2687 }
 0x39e   : > { %17757 = vst [vmem:[#allocation62_spill] sm:$0xff] %v14270_v36  ;;  %17758 = vst [vmem:[#allocation102_spill] sm:$0xff] %v14272_v31  ;;  %v4086_v43 = vrot.slane %v13736_v23, %v13444_v52  ;;  %v4093_v30 = vrot.slane %v13736_v23, %v13456_v28  ;;  %v4100_v19 = vrot.slane %v13736_v23, %v13465_v7  ;;  %8698 = vperm.xlu1 %10730, %v17760_v14   ;;  %v17764_v23 = vld [vmem:[#allocation40_spill] sm:$0xff] }
 0x39f   : > { %17761 = vst [vmem:[#allocation113_spill] sm:$0xff] %v14295_v15  ;;  %v14297_v8 = vcombine.low %v4219_v26, %v4226_v46  ;;  %v14299_v48 = vcombine.low %v4233_v56, %v4240_v39  ;;  %v7044_v59 = vrot.slane %v14171_v33, %v13472_v24  ;;  %v7051_v17 = vrot.slane %v14173_v21, %v13472_v24  ;;  %v17766_v46 = vld [vmem:[#allocation38_spill] sm:$0xff] }
 0x3a0   : > { %v4275_v5 = vrot.slane %v17764_v23, %v13417_v29  ;;  %v4282_v55 = vrot.slane %v17764_v23, %v13444_v52  ;;  %v4289_v60 = vrot.slane %v17764_v23, %v13456_v28  ;;  %v4296_v0 = vrot.slane %v17764_v23, %v13465_v7  ;;  %8743 = vperm.xlu0 %10729, %v17771_v16  }
 0x3a1   : > { %17762 = vst [vmem:[#allocation70_spill] sm:$0xff] %v14297_v8  ;;  %17763 = vst [vmem:[#allocation55_spill] sm:$0xff] %v14299_v48  ;;  %v4135_v9 = vrot.slane %v17765_v13, %v13417_v29  ;;  %v4142_v33 = vrot.slane %v17765_v13, %v13444_v52  ;;  %v4149_v21 = vrot.slane %v17765_v13, %v13456_v28  ;;  %v14330_v48 = vpop.xlane.xlu0 %2701  ;;  %v17768_v8 = vld [vmem:[#allocation37_spill] sm:$0xff]  ;;  %v14333_v31 = vpop.xlane.xlu1 %2691 }
 0x3a2   : > { %v4156_v26 = vrot.slane %v17765_v13, %v13465_v7  ;;  %v4331_v56 = vrot.slane %v17766_v46, %v13417_v29  ;;  %v4338_v39 = vrot.slane %v17766_v46, %v13444_v52  ;;  %v4345_v14 = vrot.slane %v17766_v46, %v13456_v28  ;;  %17767 = vst [vmem:[#allocation63_spill] sm:$0xff] %v14330_v48  ;;  %v17770_v13 = vld [vmem:[#allocation172_spill] sm:$0xff] }
 0x3a3   : > { %v4352_v23 = vrot.slane %v17766_v46, %v13465_v7  ;;  %8701 = vperm.xlu1 %10730, %v17768_v8   ;;  %17769 = vst [vmem:[#allocation72_spill] sm:$0xff] %v14333_v31  ;;  %v4191_v36 = vrot.slane %v17770_v13, %v13417_v29  ;;  %v4198_v57 = vrot.slane %v17770_v13, %v13444_v52 }
 0x3a4   : > { %v6755_v45 = vrot.slane %v17772_v49, %v13472_v24  ;;  %v6762_v46 = vrot.slane %v17773_v38, %v13472_v24  ;;  %v14344_v41 = vcombine.low %v4079_v44, %v4086_v43  ;;  %v14346_v22 = vcombine.low %v4093_v30, %v4100_v19  ;;  %8749 = vperm.xlu0 %10729, %v14073_v4  }
 0x3a5   : > { %v14348_v8 = vcombine.low %v4275_v5, %v4282_v55  ;;  %v14350_v31 = vcombine.low %v6721_v50, %v6728_v61  ;;  %v14352_v54 = vcombine.low %v4289_v60, %v4296_v0  ;;  %v14354_v48 = vcombine.low %v4135_v9, %v4142_v33  ;;  %v14368_v50 = vpop.xlane.xlu0 %2705  ;;  %v17779_v61 = vld [vmem:[#allocation174_spill] sm:$0xff]  ;;  %v14371_v43 = vpop.xlane.xlu1 %2695  ;;  %v17781_v5 = vld [vmem:[#allocation45_spill] sm:$0xff]  ;;  %v17783_v9 = vld [vmem:[#allocation171_spill] sm:$0xff] }
 0x3a6   : > { %v14356_v15 = vcombine.low %v4149_v21, %v4156_v26  ;;  %v14358_v16 = vcombine.low %v7044_v59, %v7051_v17  ;;  %v14360_v49 = vcombine.low %v4331_v56, %v4338_v39  ;;  %v14362_v2 = vcombine.low %v4345_v14, %v4352_v23  ;;  %17778 = vst [vmem:[#allocation75_spill] sm:$0xff] %v14368_v50  ;;  %v17786_v39 = vld [vmem:[#allocation211_spill] sm:$0xff] }
 0x3a7   : > { %17774 = vst [vmem:[#allocation66_spill] sm:$0xff] %v14348_v8  ;;  %17775 = vst [vmem:[#allocation115_spill] sm:$0xff] %v14352_v54  ;;  %v4205_v38 = vrot.slane %v17770_v13, %v13456_v28  ;;  %v4212_v44 = vrot.slane %v17770_v13, %v13465_v7  ;;  %8704 = vperm.xlu1 %10730, %v17779_v61   ;;  %v14373_v30 = vcombine.low %v4191_v36, %v4198_v57  ;;  %v17787_v23 = vld [vmem:[#allocation99_spill] sm:$0xff] }
 0x3a8   : > { %17776 = vst [vmem:[#allocation106_spill] sm:$0xff] %v14360_v49  ;;  %17777 = vst [vmem:[#allocation132_spill] sm:$0xff] %v14362_v2  ;;  %v14376_v19 = vcombine.low %v6755_v45, %v6762_v46  ;;  %v7078_v59 = vrot.slane %v14184_v10, %v13472_v24  ;;  %v7085_v17 = vrot.slane %v14186_v6, %v13472_v24  ;;  %v17782_v45 = vld [vmem:[#allocation126_spill] sm:$0xff]  ;;  %8755 = vperm.xlu0 %10729, %v14081_v18   ;;  %v17789_v49 = vld [vmem:[#allocation44_spill] sm:$0xff] }
 0x3a9   : > { %17780 = vst [vmem:[#allocation69_spill] sm:$0xff] %v14371_v43  ;;  %v4387_v55 = vrot.slane %v17781_v5, %v13417_v29  ;;  %v4394_v60 = vrot.slane %v17781_v5, %v13444_v52  ;;  %v4401_v57 = vrot.slane %v17781_v5, %v13456_v28  ;;  %v4408_v4 = vrot.slane %v17781_v5, %v13465_v7  ;;  %v14402_v26 = vpop.xlane.xlu0 %2709  ;;  %v14405_v56 = vpop.xlane.xlu1 %2699  ;;  %v17788_v5 = vld [vmem:[#allocation35_spill] sm:$0xff] }
 0x3aa   : > { %v4247_v36 = vrot.slane %v17782_v45, %v13417_v29  ;;  %v4254_v10 = vrot.slane %v17782_v45, %v13444_v52  ;;  %v4261_v6 = vrot.slane %v17782_v45, %v13456_v28  ;;  %v4268_v0 = vrot.slane %v17782_v45, %v13465_v7  ;;  %17784 = vst [vmem:[#allocation117_spill] sm:$0xff] %v14402_v26 }
 0x3ab   : > { %v4443_v33 = vrot.slane %v17783_v9, %v13417_v29  ;;  %v4450_v21 = vrot.slane %v17783_v9, %v13444_v52  ;;  %8707 = vperm.xlu1 %10730, %v14093_v34   ;;  %17785 = vst [vmem:[#allocation108_spill] sm:$0xff] %v14405_v56  ;;  %v6789_v14 = vrot.slane %v17786_v39, %v13472_v24 }
 0x3ac   : > { %v6796_v13 = vrot.slane %v17787_v23, %v13472_v24  ;;  %v4457_v46 = vrot.slane %v17783_v9, %v13456_v28  ;;  %v4464_v61 = vrot.slane %v17783_v9, %v13465_v7  ;;  %v4303_v45 = vrot.slane %v17788_v5, %v13417_v29  ;;  %8761 = vperm.xlu0 %10729, %v14169_v63  }
 0x3ad   : > { %v4310_v34 = vrot.slane %v17788_v5, %v13444_v52  ;;  %v4317_v39 = vrot.slane %v17788_v5, %v13456_v28  ;;  %v4324_v23 = vrot.slane %v17788_v5, %v13465_v7  ;;  %v7112_v2 = vrot.slane %v14195_v3, %v13472_v24  ;;  %v17790_v5 = vld [vmem:[#allocation178_spill] sm:$0xff]  ;;  %v14444_v50 = vpop.xlane.xlu0 %2713  ;;  %v14447_v58 = vpop.xlane.xlu1 %2703 }
 0x3ae   : > { %v7119_v9 = vrot.slane %v14197_v40, %v13472_v24  ;;  %v4499_v54 = vrot.slane %v17789_v49, %v13417_v29  ;;  %v4506_v8 = vrot.slane %v17789_v49, %v13444_v52  ;;  %v4513_v18 = vrot.slane %v17789_v49, %v13456_v28  ;;  %17791 = vst [vmem:[#allocation57_spill] sm:$0xff] %v14444_v50 }
 0x3af   : > { %v4520_v56 = vrot.slane %v17789_v49, %v13465_v7  ;;  %v4359_v26 = vrot.slane %v17790_v5, %v13417_v29  ;;  %v4366_v3 = vrot.slane %v17790_v5, %v13444_v52  ;;  %v4373_v40 = vrot.slane %v17790_v5, %v13456_v28  ;;  %8710 = vperm.xlu1 %10730, %v14191_v47  }
 0x3b0   : > { %v4380_v43 = vrot.slane %v17790_v5, %v13465_v7  ;;  %v14449_v53 = vcombine.low %v4205_v38, %v4212_v44  ;;  %v14451_v49 = vcombine.low %v4387_v55, %v4394_v60  ;;  %v14453_v42 = vcombine.low %v4401_v57, %v4408_v4  ;;  %8767 = vperm.xlu0 %10729, %v14199_v62  }
 0x3b1   : > { %v14456_v12 = vcombine.low %v7078_v59, %v7085_v17  ;;  %v14458_v37 = vcombine.low %v4247_v36, %v4254_v10  ;;  %v14460_v25 = vcombine.low %v4261_v6, %v4268_v0  ;;  %v14462_v5 = vcombine.low %v4443_v33, %v4450_v21  ;;  %v14480_v17 = vpop.xlane.xlu0 %2717  ;;  %v14483_v57 = vpop.xlane.xlu1 %2707  ;;  %v17798_v36 = vld [vmem:[#allocation41_spill] sm:$0xff]  ;;  %v17800_v6 = vld [vmem:[#allocation24_spill] sm:$0xff] }
 0x3b2   : > { %17792 = vst [vmem:[#allocation104_spill] sm:$0xff] %v14451_v49  ;;  %17793 = vst [vmem:[#allocation73_spill] sm:$0xff] %v14453_v42  ;;  %v14464_v50 = vcombine.low %v4457_v46, %v4464_v61  ;;  %v14466_v47 = vcombine.low %v4303_v45, %v4310_v34  ;;  %v14468_v38 = vcombine.low %v4317_v39, %v4324_v23  ;;  %v17799_v10 = vld [vmem:[#allocation49_spill] sm:$0xff]  ;;  %v17801_v33 = vld [vmem:[#allocation180_spill] sm:$0xff] }
 0x3b3   : > { %17794 = vst [vmem:[#allocation76_spill] sm:$0xff] %v14462_v5  ;;  %v14470_v44 = vcombine.low %v4499_v54, %v4506_v8  ;;  %v14472_v55 = vcombine.low %v6789_v14, %v6796_v13  ;;  %v14474_v60 = vcombine.low %v4513_v18, %v4520_v56  ;;  %v14476_v63 = vcombine.low %v4359_v26, %v4366_v3  ;;  %v17802_v46 = vld [vmem:[#allocation103_spill] sm:$0xff] }
 0x3b4   : > { %17795 = vst [vmem:[#allocation204_spill] sm:$0xff] %v14464_v50  ;;  %v14478_v59 = vcombine.low %v4373_v40, %v4380_v43  ;;  %8716 = vperm.xlu1 %10730, %v14257_v32   ;;  %v14485_v4 = vcombine.low %v7112_v2, %v7119_v9  ;;  %v4555_v54 = vrot.slane %v17798_v36, %v13417_v29 }
 0x3b5   : > { %17796 = vst [vmem:[#allocation110_spill] sm:$0xff] %v14470_v44  ;;  %17797 = vst [vmem:[#allocation119_spill] sm:$0xff] %v14474_v60  ;;  %v4562_v8 = vrot.slane %v17798_v36, %v13444_v52  ;;  %v6823_v43 = vrot.slane %v17799_v10, %v13472_v24  ;;  %v6830_v0 = vrot.slane %v17800_v6, %v13472_v24  ;;  %v14520_v23 = vpop.xlane.xlu0 %2721  ;;  %8773 = vperm.xlu0 %10729, %v14274_v51  }
 0x3b6   : > { %v4569_v32 = vrot.slane %v17798_v36, %v13456_v28  ;;  %v4576_v2 = vrot.slane %v17798_v36, %v13465_v7  ;;  %v4415_v21 = vrot.slane %v17801_v33, %v13417_v29  ;;  %v4422_v26 = vrot.slane %v17801_v33, %v13444_v52 }
 0x3b7   : > { %v4429_v62 = vrot.slane %v17801_v33, %v13456_v28  ;;  %v4436_v56 = vrot.slane %v17801_v33, %v13465_v7  ;;  %v7146_v14 = vrot.slane %v14250_v1, %v13472_v24  ;;  %v7153_v13 = vrot.slane %v14268_v20, %v13472_v24  ;;  %v14523_v1 = vpop.xlane.xlu1 %2711  ;;  %v17803_v20 = vld [vmem:[#allocation218_spill] sm:$0xff] }
 0x3b8   : > { %v4611_v61 = vrot.slane %v17802_v46, %v13417_v29  ;;  %v4618_v45 = vrot.slane %v17802_v46, %v13444_v52  ;;  %v4625_v34 = vrot.slane %v17802_v46, %v13456_v28  ;;  %v4632_v39 = vrot.slane %v17802_v46, %v13465_v7  ;;  %8722 = vperm.xlu1 %10730, %v14350_v31   ;;  %v17806_v33 = vld [vmem:[#allocation50_spill] sm:$0xff] }
 0x3b9   : > { %v4471_v9 = vrot.slane %v17803_v20, %v13417_v29  ;;  %v4478_v18 = vrot.slane %v17803_v20, %v13444_v52  ;;  %v4485_v3 = vrot.slane %v17803_v20, %v13456_v28  ;;  %v4492_v40 = vrot.slane %v17803_v20, %v13465_v7  ;;  %8779 = vperm.xlu0 %10729, %v14358_v16  }
 0x3ba   : > { %v14534_v36 = vcombine.low %v4555_v54, %v4562_v8  ;;  %v14536_v10 = vcombine.low %v4569_v32, %v4576_v2  ;;  %v14538_v31 = vcombine.low %v4415_v21, %v4422_v26  ;;  %v6831_v6 = vcombine.low %v6823_v43, %v6830_v0  ;;  %v14554_v32 = vpop.xlane.xlu0 %2725  ;;  %v17811_v0 = vld [vmem:[#allocation176_spill] sm:$0xff] }
 0x3bb   : > { %v4667_v46 = vrot.slane %v17806_v33, %v13417_v29  ;;  %v4674_v60 = vrot.slane %v17806_v33, %v13444_v52  ;;  %v4681_v44 = vrot.slane %v17806_v33, %v13456_v28  ;;  %v4688_v20 = vrot.slane %v17806_v33, %v13465_v7  ;;  %17809 = vst [vmem:[#allocation82_spill] sm:$0xff] %v14554_v32  ;;  %v14557_v43 = vpop.xlane.xlu1 %2715 }
 0x3bc   : > { %17804 = vst [vmem:[#allocation78_spill] sm:$0xff] %v14534_v36  ;;  %17805 = vst [vmem:[#allocation189_spill] sm:$0xff] %v14536_v10  ;;  %v14548_v51 = vcombine.low %v4429_v62, %v4436_v56  ;;  %v14550_v54 = vcombine.low %v4611_v61, %v4618_v45  ;;  %v14552_v8 = vcombine.low %v4625_v34, %v4632_v39  ;;  %8728 = vperm.xlu1 %10730, %v14376_v19   ;;  %v17812_v56 = vld [vmem:[#allocation101_spill] sm:$0xff]  ;;  %v17813_v45 = vld [vmem:[#allocation184_spill] sm:$0xff] }
 0x3bd   : > { %17810 = vst [vmem:[#allocation31_spill] sm:$0xff] %v14557_v43  ;;  %v6857_v2 = vrot.slane %v17811_v0, %v13472_v24  ;;  %v14561_v21 = vcombine.low %v4471_v9, %v4478_v18  ;;  %v14563_v26 = vcombine.low %v4485_v3, %v4492_v40  ;;  %v7154_v62 = vcombine.low %v7146_v14, %v7153_v13  ;;  %v17816_v13 = vld [vmem:[#allocation26_spill] sm:$0xff] }
 0x3be   : > { %17807 = vst [vmem:[#allocation81_spill] sm:$0xff] %v14550_v54  ;;  %17808 = vst [vmem:[#allocation83_spill] sm:$0xff] %v14552_v8  ;;  %v6864_v61 = vrot.slane %v17812_v56, %v13472_v24  ;;  %v4527_v34 = vrot.slane %v17813_v45, %v13417_v29  ;;  %v4534_v19 = vrot.slane %v17813_v45, %v13444_v52  ;;  %8785 = vperm.xlu0 %10729, %v14456_v12  }
 0x3bf   : > { %v7180_v39 = vrot.slane %v14276_v35, %v13472_v24  ;;  %v7187_v9 = vrot.slane %v14278_v11, %v13472_v24  ;;  %v14576_v18 = vcombine.low %v4667_v46, %v4674_v60  ;;  %v14578_v3 = vcombine.low %v4681_v44, %v4688_v20  ;;  %v14588_v35 = vpop.xlane.xlu0 %2729  ;;  %v14591_v11 = vpop.xlane.xlu1 %2719  ;;  %v17819_v44 = vld [vmem:[#allocation217_spill] sm:$0xff]  ;;  %v17820_v46 = vld [vmem:[#allocation51_spill] sm:$0xff] }
 0x3c0   : > { %v4541_v16 = vrot.slane %v17813_v45, %v13456_v28  ;;  %v4548_v14 = vrot.slane %v17813_v45, %v13465_v7  ;;  %v4723_v40 = vrot.slane %v17816_v13, %v13417_v29  ;;  %v4730_v33 = vrot.slane %v17816_v13, %v13444_v52  ;;  %17817 = vst [vmem:[#allocation121_spill] sm:$0xff] %v14588_v35  ;;  %v17821_v45 = vld [vmem:[#allocation177_spill] sm:$0xff] }
 0x3c1   : > { %17814 = vst [vmem:[#allocation205_spill] sm:$0xff] %v14576_v18  ;;  %17815 = vst [vmem:[#allocation206_spill] sm:$0xff] %v14578_v3  ;;  %8734 = vperm.xlu1 %10730, %v14472_v55   ;;  %v6891_v60 = vrot.slane %v17819_v44, %v13472_v24  ;;  %v6898_v20 = vrot.slane %v17820_v46, %v13472_v24  ;;  %v4737_v0 = vrot.slane %v17816_v13, %v13456_v28 }
 0x3c2   : > { %17818 = vst [vmem:[#allocation79_spill] sm:$0xff] %v14591_v11  ;;  %v4744_v56 = vrot.slane %v17816_v13, %v13465_v7  ;;  %v4583_v3 = vrot.slane %v17821_v45, %v13417_v29  ;;  %v4590_v55 = vrot.slane %v17821_v45, %v13444_v52  ;;  %v4597_v44 = vrot.slane %v17821_v45, %v13456_v28 }
 0x3c3   : > { %v4604_v46 = vrot.slane %v17821_v45, %v13465_v7  ;;  %v6865_v18 = vcombine.low %v6857_v2, %v6864_v61  ;;  %v7188_v8 = vcombine.low %v7180_v39, %v7187_v9  ;;  %v4779_v54 = vrot.slane %v14069_v27, %v13417_v29  ;;  %v14622_v5 = vpop.xlane.xlu0 %2733  ;;  %v14624_v2 = vpop.xlane.xlu1 %2723  ;;  %8791 = vperm.xlu0 %10729, %v14485_v4  }
 0x3c4   : > { %v4786_v13 = vrot.slane %v14069_v27, %v13444_v52  ;;  %v4793_v10 = vrot.slane %v14069_v27, %v13456_v28  ;;  %v4800_v12 = vrot.slane %v14069_v27, %v13465_v7  ;;  %v14618_v36 = vcombine.low %v4527_v34, %v4534_v19  ;;  %17822 = vst [vmem:[#allocation134_spill] sm:$0xff] %v14622_v5  ;;  %v17840_v5 = vld [vmem:[#allocation60_spill] sm:$0xff] }
 0x3c5   : > { %v14620_v50 = vcombine.low %v4541_v16, %v4548_v14  ;;  %8740 = vperm.xlu1 %10730, %v6831_v6   ;;  %17823 = vst [vmem:[#allocation116_spill] sm:$0xff] %v14624_v2  ;;  %v7214_v61 = vrot.slane %v14344_v41, %v13472_v24  ;;  %v7221_v39 = vrot.slane %v14346_v22, %v13472_v24  ;;  %v17826_v6 = vld [vmem:[#allocation179_spill] sm:$0xff]  ;;  %v17827_v14 = vld [vmem:[#allocation173_spill] sm:$0xff] }
 0x3c6   : > { %v14630_v9 = vcombine.low %v4723_v40, %v4730_v33  ;;  %v14632_v45 = vcombine.low %v4737_v0, %v4744_v56  ;;  %v14634_v27 = vcombine.low %v4583_v3, %v4590_v55  ;;  %v6899_v34 = vcombine.low %v6891_v60, %v6898_v20  ;;  %v17832_v56 = vld [vmem:[#allocation43_spill] sm:$0xff] }
 0x3c7   : > { %v14637_v19 = vcombine.low %v4597_v44, %v4604_v46  ;;  %v4639_v16 = vrot.slane %v17826_v6, %v13417_v29  ;;  %v4646_v41 = vrot.slane %v17826_v6, %v13444_v52  ;;  %v6925_v22 = vrot.slane %v17827_v14, %v13472_v24  ;;  %v14653_v60 = vpop.xlane.xlu0 %2737  ;;  %v14655_v20 = vpop.xlane.xlu1 %2727  ;;  %v17833_v44 = vld [vmem:[#allocation64_spill] sm:$0xff]  ;;  %8797 = vperm.xlu0 %10729, %v7154_v62   ;;  %v17835_v14 = vld [vmem:[#allocation190_spill] sm:$0xff] }
 0x3c8   : > { %17824 = vst [vmem:[#allocation112_spill] sm:$0xff] %v14630_v9  ;;  %17825 = vst [vmem:[#allocation207_spill] sm:$0xff] %v14632_v45  ;;  %v14645_v40 = vcombine.low %v4779_v54, %v4786_v13  ;;  %v14647_v33 = vcombine.low %v4793_v10, %v4800_v12  ;;  %v4653_v3 = vrot.slane %v17826_v6, %v13456_v28 }
 0x3c9   : > { %v4660_v4 = vrot.slane %v17826_v6, %v13465_v7  ;;  %17830 = vst [vmem:[#allocation87_spill] sm:$0xff] %v14653_v60  ;;  %8746 = vperm.xlu1 %10730, %v6865_v18   ;;  %17831 = vst [vmem:[#allocation123_spill] sm:$0xff] %v14655_v20  ;;  %v7222_v0 = vcombine.low %v7214_v61, %v7221_v39  ;;  %v6932_v55 = vrot.slane %v17832_v56, %v13472_v24  ;;  %v17834_v61 = vld [vmem:[#allocation181_spill] sm:$0xff]  ;;  %v17839_v60 = vld [vmem:[#allocation182_spill] sm:$0xff] }
 0x3ca   : > { %17828 = vst [vmem:[#allocation208_spill] sm:$0xff] %v14645_v40  ;;  %17829 = vst [vmem:[#allocation33_spill] sm:$0xff] %v14647_v33  ;;  %v7248_v54 = vrot.slane %v14354_v48, %v13472_v24  ;;  %v7255_v10 = vrot.slane %v14356_v15, %v13472_v24  ;;  %v4835_v46 = vrot.slane %v17833_v44, %v13417_v29  ;;  %v17836_v40 = vld [vmem:[#allocation56_spill] sm:$0xff] }
 0x3cb   : > { %v4842_v13 = vrot.slane %v17833_v44, %v13444_v52  ;;  %v4849_v18 = vrot.slane %v17833_v44, %v13456_v28  ;;  %v4856_v12 = vrot.slane %v17833_v44, %v13465_v7  ;;  %v4695_v39 = vrot.slane %v17834_v61, %v13417_v29  ;;  %v14691_v20 = vpop.xlane.xlu0 %2741  ;;  %8803 = vperm.xlu0 %10729, %v7188_v8  }
 0x3cc   : > { %v4702_v48 = vrot.slane %v17834_v61, %v13444_v52  ;;  %v4709_v15 = vrot.slane %v17834_v61, %v13456_v28  ;;  %v4716_v6 = vrot.slane %v17834_v61, %v13465_v7  ;;  %v4891_v56 = vrot.slane %v17835_v14, %v13417_v29  ;;  %17837 = vst [vmem:[#allocation59_spill] sm:$0xff] %v14691_v20  ;;  %v14693_v61 = vpop.xlane.xlu1 %2731 }
 0x3cd   : > { %v4898_v33 = vrot.slane %v17835_v14, %v13444_v52  ;;  %v4905_v62 = vrot.slane %v17835_v14, %v13456_v28  ;;  %v4912_v44 = vrot.slane %v17835_v14, %v13465_v7  ;;  %v4751_v45 = vrot.slane %v17836_v40, %v13417_v29  ;;  %8752 = vperm.xlu1 %10730, %v6899_v34  }
 0x3ce   : > { %v4758_v9 = vrot.slane %v17836_v40, %v13444_v52  ;;  %17838 = vst [vmem:[#allocation209_spill] sm:$0xff] %v14693_v61  ;;  %v6959_v2 = vrot.slane %v17839_v60, %v13472_v24  ;;  %v6966_v11 = vrot.slane %v17840_v5, %v13472_v24  ;;  %v14699_v35 = vcombine.low %v4639_v16, %v4646_v41 }
 0x3cf   : > { %v14701_v14 = vcombine.low %v4653_v3, %v4660_v4  ;;  %v14703_v42 = vcombine.low %v4835_v46, %v4842_v13  ;;  %v14705_v49 = vcombine.low %v4849_v18, %v4856_v12  ;;  %v14707_v43 = vcombine.low %v4695_v39, %v4702_v48  ;;  %v14721_v3 = vpop.xlane.xlu0 %2745  ;;  %8809 = vperm.xlu0 %10729, %v7222_v0   ;;  %v17848_v46 = vld [vmem:[#allocation105_spill] sm:$0xff]  ;;  %v17849_v48 = vld [vmem:[#allocation100_spill] sm:$0xff] }
 0x3d0   : > { %v14709_v34 = vcombine.low %v4709_v15, %v4716_v6  ;;  %v6933_v61 = vcombine.low %v6925_v22, %v6932_v55  ;;  %v7256_v20 = vcombine.low %v7248_v54, %v7255_v10  ;;  %v14711_v32 = vcombine.low %v4891_v56, %v4898_v33  ;;  %v14723_v8 = vpop.xlane.xlu1 %2735  ;;  %v17845_v55 = vld [vmem:[#allocation65_spill] sm:$0xff] }
 0x3d1   : > { %17841 = vst [vmem:[#allocation213_spill] sm:$0xff] %v14703_v42  ;;  %17842 = vst [vmem:[#allocation114_spill] sm:$0xff] %v14705_v49  ;;  %v14713_v60 = vcombine.low %v4905_v62, %v4912_v44  ;;  %v4765_v5 = vrot.slane %v17836_v40, %v13456_v28  ;;  %v4772_v16 = vrot.slane %v17836_v40, %v13465_v7 }
 0x3d2   : > { %17843 = vst [vmem:[#allocation90_spill] sm:$0xff] %v14711_v32  ;;  %v14719_v41 = vcombine.low %v4751_v45, %v4758_v9  ;;  %8758 = vperm.xlu1 %10730, %v6933_v61   ;;  %v6967_v4 = vcombine.low %v6959_v2, %v6966_v11  ;;  %v7282_v22 = vrot.slane %v14373_v30, %v13472_v24  ;;  %v17846_v45 = vld [vmem:[#allocation175_spill] sm:$0xff]  ;;  %v17847_v30 = vld [vmem:[#allocation128_spill] sm:$0xff] }
 0x3d3   : > { %17844 = vst [vmem:[#allocation125_spill] sm:$0xff] %v14713_v60  ;;  %v7289_v33 = vrot.slane %v14449_v53, %v13472_v24  ;;  %v4947_v54 = vrot.slane %v17845_v55, %v13417_v29  ;;  %v4954_v40 = vrot.slane %v17845_v55, %v13444_v52  ;;  %v4961_v9 = vrot.slane %v17845_v55, %v13456_v28  ;;  %v14761_v44 = vpop.xlane.xlu0 %2749 }
 0x3d4   : > { %v6993_v10 = vrot.slane %v17846_v45, %v13472_v24  ;;  %v4968_v11 = vrot.slane %v17845_v55, %v13465_v7  ;;  %v4807_v2 = vrot.slane %v17847_v30, %v13417_v29  ;;  %v4814_v53 = vrot.slane %v17847_v30, %v13444_v52  ;;  %17850 = vst [vmem:[#allocation42_spill] sm:$0xff] %v14761_v44  ;;  %v14763_v61 = vpop.xlane.xlu1 %2739  ;;  %v17853_v55 = vld [vmem:[#allocation187_spill] sm:$0xff] }
 0x3d5   : > { %v7000_v13 = vrot.slane %v17848_v46, %v13472_v24  ;;  %v4821_v18 = vrot.slane %v17847_v30, %v13456_v28  ;;  %v4828_v0 = vrot.slane %v17847_v30, %v13465_v7  ;;  %v7316_v12 = vrot.slane %v14458_v37, %v13472_v24  ;;  %17851 = vst [vmem:[#allocation136_spill] sm:$0xff] %v14763_v61 }
 0x3d6   : > { %v7323_v39 = vrot.slane %v14460_v25, %v13472_v24  ;;  %v5003_v15 = vrot.slane %v17849_v48, %v13417_v29  ;;  %v5010_v6 = vrot.slane %v17849_v48, %v13444_v52  ;;  %v5017_v56 = vrot.slane %v17849_v48, %v13456_v28  ;;  %8764 = vperm.xlu1 %10730, %v6967_v4   ;;  %v17856_v4 = vld [vmem:[#allocation186_spill] sm:$0xff] }
 0x3d7   : > { %v5024_v62 = vrot.slane %v17849_v48, %v13465_v7  ;;  %v14765_v37 = vcombine.low %v4765_v5, %v4772_v16  ;;  %v14767_v25 = vcombine.low %v4947_v54, %v4954_v40  ;;  %v4863_v45 = vrot.slane %v17853_v55, %v13417_v29  ;;  %8815 = vperm.xlu0 %10729, %v7256_v20   ;;  %v17855_v48 = vld [vmem:[#allocation52_spill] sm:$0xff] }
 0x3d8   : > { %v4870_v30 = vrot.slane %v17853_v55, %v13444_v52  ;;  %v14773_v46 = vcombine.low %v4961_v9, %v4968_v11  ;;  %v7001_v60 = vcombine.low %v6993_v10, %v7000_v13  ;;  %v7027_v32 = vrot.slane %v17855_v48, %v13472_v24  ;;  %v14791_v10 = vpop.xlane.xlu0 %2753  ;;  %v14793_v11 = vpop.xlane.xlu1 %2743  ;;  %v17861_v13 = vld [vmem:[#allocation67_spill] sm:$0xff]  ;;  %v17865_v48 = vld [vmem:[#allocation222_spill] sm:$0xff] }
 0x3d9   : > { %17852 = vst [vmem:[#allocation89_spill] sm:$0xff] %v14767_v25  ;;  %v7034_v49 = vrot.slane %v17856_v4, %v13472_v24  ;;  %v14779_v5 = vcombine.low %v4807_v2, %v4814_v53  ;;  %v14781_v16 = vcombine.low %v4821_v18, %v4828_v0  ;;  %v4877_v54 = vrot.slane %v17853_v55, %v13456_v28 }
 0x3da   : > { %17854 = vst [vmem:[#allocation39_spill] sm:$0xff] %v14773_v46  ;;  %v7290_v40 = vcombine.low %v7282_v22, %v7289_v33  ;;  %v14785_v25 = vcombine.low %v5003_v15, %v5010_v6  ;;  %v14787_v20 = vcombine.low %v5017_v56, %v5024_v62  ;;  %v4884_v9 = vrot.slane %v17853_v55, %v13465_v7  ;;  %v17864_v56 = vld [vmem:[#allocation53_spill] sm:$0xff]  ;;  %v17870_v46 = vld [vmem:[#allocation107_spill] sm:$0xff] }
 0x3db   : > { %17859 = vst [vmem:[#allocation198_spill] sm:$0xff] %v14791_v10  ;;  %8770 = vperm.xlu1 %10730, %v7001_v60   ;;  %17860 = vst [vmem:[#allocation127_spill] sm:$0xff] %v14793_v11  ;;  %v7324_v2 = vcombine.low %v7316_v12, %v7323_v39  ;;  %v14795_v53 = vcombine.low %v4863_v45, %v4870_v30  ;;  %v5059_v18 = vrot.slane %v17861_v13, %v13417_v29  ;;  %v17862_v60 = vld [vmem:[#allocation61_spill] sm:$0xff]  ;;  %v17863_v12 = vld [vmem:[#allocation54_spill] sm:$0xff] }
 0x3dc   : > { %17857 = vst [vmem:[#allocation85_spill] sm:$0xff] %v14785_v25  ;;  %17858 = vst [vmem:[#allocation124_spill] sm:$0xff] %v14787_v20  ;;  %v5066_v22 = vrot.slane %v17861_v13, %v13444_v52  ;;  %v5073_v33 = vrot.slane %v17861_v13, %v13456_v28  ;;  %8821 = vperm.xlu0 %10729, %v7290_v40   ;;  %v5080_v0 = vrot.slane %v17861_v13, %v13465_v7  ;;  %v14825_v13 = vpop.xlane.xlu0 %2757 }
 0x3dd   : > { %v7035_v15 = vcombine.low %v7027_v32, %v7034_v49  ;;  %v7061_v6 = vrot.slane %v17862_v60, %v13472_v24  ;;  %v7068_v39 = vrot.slane %v17863_v12, %v13472_v24  ;;  %v4919_v62 = vrot.slane %v17864_v56, %v13417_v29  ;;  %17866 = vst [vmem:[#allocation46_spill] sm:$0xff] %v14825_v13  ;;  %v14827_v60 = vpop.xlane.xlu1 %2747  ;;  %v17868_v12 = vld [vmem:[#allocation113_spill] sm:$0xff] }
 0x3de   : > { %v4926_v55 = vrot.slane %v17864_v56, %v13444_v52  ;;  %v7350_v45 = vrot.slane %v14466_v47, %v13472_v24  ;;  %v7357_v30 = vrot.slane %v14468_v38, %v13472_v24  ;;  %v4933_v49 = vrot.slane %v17864_v56, %v13456_v28  ;;  %17867 = vst [vmem:[#allocation129_spill] sm:$0xff] %v14827_v60 }
 0x3df   : > { %v4940_v32 = vrot.slane %v17864_v56, %v13465_v7  ;;  %v5115_v4 = vrot.slane %v17865_v48, %v13417_v29  ;;  %v5122_v40 = vrot.slane %v17865_v48, %v13444_v52  ;;  %8776 = vperm.xlu1 %10730, %v7035_v15   ;;  %v5129_v47 = vrot.slane %v17865_v48, %v13456_v28  ;;  %v17869_v15 = vld [vmem:[#allocation188_spill] sm:$0xff] }
 0x3e0   : > { %v5136_v38 = vrot.slane %v17865_v48, %v13465_v7  ;;  %v4975_v56 = vrot.slane %v17868_v12, %v13417_v29  ;;  %v4982_v10 = vrot.slane %v17868_v12, %v13444_v52  ;;  %8827 = vperm.xlu0 %10729, %v7324_v2   ;;  %v14837_v20 = vcombine.low %v4877_v54, %v4884_v9 }
 0x3e1   : > { %v7069_v25 = vcombine.low %v7061_v6, %v7068_v39  ;;  %v7095_v13 = vrot.slane %v17869_v15, %v13472_v24  ;;  %v7102_v60 = vrot.slane %v17870_v46, %v13472_v24  ;;  %v14843_v42 = vcombine.low %v5059_v18, %v5066_v22  ;;  %v14857_v6 = vpop.xlane.xlu0 %2761  ;;  %v14859_v46 = vpop.xlane.xlu1 %2751 }
 0x3e2   : > { %v7358_v11 = vcombine.low %v7350_v45, %v7357_v30  ;;  %v7384_v48 = vrot.slane %v14476_v63, %v13472_v24  ;;  %v7391_v61 = vrot.slane %v14478_v59, %v13472_v24  ;;  %v14849_v44 = vcombine.low %v5073_v33, %v5080_v0  ;;  %17873 = vst [vmem:[#allocation120_spill] sm:$0xff] %v14857_v6  ;;  %v17877_v33 = vld [vmem:[#allocation63_spill] sm:$0xff] }
 0x3e3   : > { %17871 = vst [vmem:[#allocation118_spill] sm:$0xff] %v14843_v42  ;;  %v14851_v54 = vcombine.low %v4919_v62, %v4926_v55  ;;  %v14853_v9 = vcombine.low %v4933_v49, %v4940_v32  ;;  %v4989_v2 = vrot.slane %v17868_v12, %v13456_v28  ;;  %8782 = vperm.xlu1 %10730, %v7069_v25   ;;  %17874 = vst [vmem:[#allocation47_spill] sm:$0xff] %v14859_v46  ;;  %v17878_v62 = vld [vmem:[#allocation98_spill] sm:$0xff]  ;;  %v17879_v25 = vld [vmem:[#allocation183_spill] sm:$0xff] }
 0x3e4   : > { %17872 = vst [vmem:[#allocation48_spill] sm:$0xff] %v14849_v44  ;;  %v14861_v18 = vcombine.low %v5115_v4, %v5122_v40  ;;  %v14863_v63 = vcombine.low %v5129_v47, %v5136_v38  ;;  %v4996_v59 = vrot.slane %v17868_v12, %v13465_v7  ;;  %v14867_v22 = vcombine.low %v4975_v56, %v4982_v10  ;;  %v17880_v40 = vld [vmem:[#allocation72_spill] sm:$0xff]  ;;  %v17883_v38 = vld [vmem:[#allocation75_spill] sm:$0xff] }
 0x3e5   : > { %8833 = vperm.xlu0 %10729, %v7358_v11   ;;  %v5171_v0 = vrot.slane %v17877_v33, %v13417_v29  ;;  %v7103_v39 = vcombine.low %v7095_v13, %v7102_v60  ;;  %v7129_v55 = vrot.slane %v17878_v62, %v13472_v24  ;;  %v7136_v45 = vrot.slane %v17879_v25, %v13472_v24  ;;  %v14889_v47 = vpop.xlane.xlu0 %2765  ;;  %v17885_v62 = vld [vmem:[#allocation109_spill] sm:$0xff] }
 0x3e6   : > { %17875 = vst [vmem:[#allocation223_spill] sm:$0xff] %v14861_v18  ;;  %17876 = vst [vmem:[#allocation131_spill] sm:$0xff] %v14863_v63  ;;  %v5178_v30 = vrot.slane %v17877_v33, %v13444_v52  ;;  %v7392_v49 = vcombine.low %v7384_v48, %v7391_v61  ;;  %v7418_v32 = vrot.slane %v14538_v31, %v13472_v24  ;;  %v14891_v61 = vpop.xlane.xlu1 %2755  ;;  %v17886_v63 = vld [vmem:[#allocation69_spill] sm:$0xff] }
 0x3e7   : > { %v7425_v10 = vrot.slane %v14548_v51, %v13472_v24  ;;  %v5185_v11 = vrot.slane %v17877_v33, %v13456_v28  ;;  %v5192_v4 = vrot.slane %v17877_v33, %v13465_v7  ;;  %v5031_v13 = vrot.slane %v17880_v40, %v13417_v29  ;;  %17881 = vst [vmem:[#allocation214_spill] sm:$0xff] %v14889_v47  ;;  %v17884_v33 = vld [vmem:[#allocation219_spill] sm:$0xff]  ;;  %v17890_v47 = vld [vmem:[#allocation185_spill] sm:$0xff] }
 0x3e8   : > { %v5038_v60 = vrot.slane %v17880_v40, %v13444_v52  ;;  %8788 = vperm.xlu1 %10730, %v7103_v39   ;;  %17882 = vst [vmem:[#allocation133_spill] sm:$0xff] %v14891_v61  ;;  %v5045_v31 = vrot.slane %v17880_v40, %v13456_v28  ;;  %v5052_v51 = vrot.slane %v17880_v40, %v13465_v7 }
 0x3e9   : > { %v5227_v12 = vrot.slane %v17883_v38, %v13417_v29  ;;  %v5234_v56 = vrot.slane %v17883_v38, %v13444_v52  ;;  %8839 = vperm.xlu0 %10729, %v7392_v49   ;;  %v5241_v15 = vrot.slane %v17883_v38, %v13456_v28  ;;  %v7137_v48 = vcombine.low %v7129_v55, %v7136_v45 }
 0x3ea   : > { %v7163_v39 = vrot.slane %v17884_v33, %v13472_v24  ;;  %v7170_v25 = vrot.slane %v17885_v62, %v13472_v24  ;;  %v5248_v40 = vrot.slane %v17883_v38, %v13465_v7  ;;  %v7426_v6 = vcombine.low %v7418_v32, %v7425_v10  ;;  %v14921_v38 = vpop.xlane.xlu0 %2769  ;;  %v14923_v32 = vpop.xlane.xlu1 %2759 }
 0x3eb   : > { %v7452_v61 = vrot.slane %v14561_v21, %v13472_v24  ;;  %v7459_v49 = vrot.slane %v14563_v26, %v13472_v24  ;;  %v5087_v18 = vrot.slane %v17886_v63, %v13417_v29  ;;  %v5094_v55 = vrot.slane %v17886_v63, %v13444_v52  ;;  %17887 = vst [vmem:[#allocation94_spill] sm:$0xff] %v14921_v38  ;;  %v17891_v38 = vld [vmem:[#allocation58_spill] sm:$0xff] }
 0x3ec   : > { %v5101_v45 = vrot.slane %v17886_v63, %v13456_v28  ;;  %v5108_v33 = vrot.slane %v17886_v63, %v13465_v7  ;;  %8794 = vperm.xlu1 %10730, %v7137_v48   ;;  %17888 = vst [vmem:[#allocation200_spill] sm:$0xff] %v14923_v32  ;;  %v14925_v21 = vcombine.low %v4989_v2, %v4996_v59 }
 0x3ed   : > { %v14927_v26 = vcombine.low %v5171_v0, %v5178_v30  ;;  %v14929_v10 = vcombine.low %v5185_v11, %v5192_v4  ;;  %v14931_v62 = vcombine.low %v5031_v13, %v5038_v60  ;;  %8845 = vperm.xlu0 %10729, %v7426_v6   ;;  %v14933_v44 = vcombine.low %v5045_v31, %v5052_v51  ;;  %v17894_v4 = vld [vmem:[#allocation117_spill] sm:$0xff] }
 0x3ee   : > { %v7171_v42 = vcombine.low %v7163_v39, %v7170_v25  ;;  %v7197_v63 = vrot.slane %v17890_v47, %v13472_v24  ;;  %v7204_v48 = vrot.slane %v17891_v38, %v13472_v24  ;;  %v14939_v46 = vcombine.low %v5227_v12, %v5234_v56  ;;  %v14953_v60 = vpop.xlane.xlu0 %2773  ;;  %v14955_v47 = vpop.xlane.xlu1 %2763 }
 0x3ef   : > { %17889 = vst [vmem:[#allocation122_spill] sm:$0xff] %v14929_v10  ;;  %v7460_v2 = vcombine.low %v7452_v61, %v7459_v49  ;;  %v7486_v59 = vrot.slane %v14618_v36, %v13472_v24  ;;  %v7493_v0 = vrot.slane %v14620_v50, %v13472_v24  ;;  %v14945_v30 = vcombine.low %v5241_v15, %v5248_v40  ;;  %v17896_v61 = vld [vmem:[#allocation108_spill] sm:$0xff]  ;;  %v17898_v15 = vld [vmem:[#allocation111_spill] sm:$0xff] }
 0x3f0   : > { %17892 = vst [vmem:[#allocation96_spill] sm:$0xff] %v14939_v46  ;;  %v14947_v6 = vcombine.low %v5087_v18, %v5094_v55  ;;  %v14949_v11 = vcombine.low %v5101_v45, %v5108_v33  ;;  %v5283_v13 = vrot.slane %v17894_v4, %v13417_v29  ;;  %8800 = vperm.xlu1 %10730, %v7171_v42   ;;  %17895 = vst [vmem:[#allocation92_spill] sm:$0xff] %v14955_v47  ;;  %v17897_v42 = vld [vmem:[#allocation220_spill] sm:$0xff]  ;;  %v17899_v33 = vld [vmem:[#allocation57_spill] sm:$0xff] }
 0x3f1   : > { %17893 = vst [vmem:[#allocation135_spill] sm:$0xff] %v14945_v30  ;;  %v5290_v36 = vrot.slane %v17894_v4, %v13444_v52  ;;  %v5297_v50 = vrot.slane %v17894_v4, %v13456_v28  ;;  %v5304_v18 = vrot.slane %v17894_v4, %v13465_v7  ;;  %v5143_v31 = vrot.slane %v17896_v61, %v13417_v29  ;;  %v17902_v47 = vld [vmem:[#allocation102_spill] sm:$0xff] }
 0x3f2   : > { %8851 = vperm.xlu0 %10729, %v7460_v2   ;;  %v5150_v51 = vrot.slane %v17896_v61, %v13444_v52  ;;  %v7205_v12 = vcombine.low %v7197_v63, %v7204_v48  ;;  %v7231_v56 = vrot.slane %v17897_v42, %v13472_v24  ;;  %v7238_v39 = vrot.slane %v17898_v15, %v13472_v24  ;;  %v14985_v2 = vpop.xlane.xlu0 %2777 }
 0x3f3   : > { %v5157_v25 = vrot.slane %v17896_v61, %v13456_v28  ;;  %v7494_v40 = vcombine.low %v7486_v59, %v7493_v0  ;;  %v7520_v49 = vrot.slane %v14634_v27, %v13472_v24  ;;  %v7527_v55 = vrot.slane %v14637_v19, %v13472_v24  ;;  %17900 = vst [vmem:[#allocation137_spill] sm:$0xff] %v14985_v2  ;;  %v14987_v59 = vpop.xlane.xlu1 %2767 }
 0x3f4   : > { %v5164_v45 = vrot.slane %v17896_v61, %v13465_v7  ;;  %v5339_v38 = vrot.slane %v17899_v33, %v13417_v29  ;;  %v5346_v63 = vrot.slane %v17899_v33, %v13444_v52  ;;  %v5353_v48 = vrot.slane %v17899_v33, %v13456_v28  ;;  %8806 = vperm.xlu1 %10730, %v7205_v12   ;;  %v17901_v12 = vld [vmem:[#allocation62_spill] sm:$0xff] }
 0x3f5   : > { %v5360_v27 = vrot.slane %v17899_v33, %v13465_v7  ;;  %v5199_v19 = vrot.slane %v14447_v58, %v13417_v29  ;;  %v5206_v0 = vrot.slane %v14447_v58, %v13444_v52  ;;  %v5213_v4 = vrot.slane %v14447_v58, %v13456_v28 }
 0x3f6   : > { %8857 = vperm.xlu0 %10729, %v7494_v40   ;;  %v5220_v61 = vrot.slane %v14447_v58, %v13465_v7  ;;  %v7239_v42 = vcombine.low %v7231_v56, %v7238_v39  ;;  %v7265_v15 = vrot.slane %v17901_v12, %v13472_v24  ;;  %v7272_v33 = vrot.slane %v17902_v47, %v13472_v24  ;;  %v15017_v39 = vpop.xlane.xlu0 %2781 }
 0x3f7   : > { %v15003_v32 = vcombine.low %v5283_v13, %v5290_v36  ;;  %v7528_v2 = vcombine.low %v7520_v49, %v7527_v55  ;;  %v7554_v30 = vrot.slane %v14699_v35, %v13472_v24  ;;  %v7561_v46 = vrot.slane %v14701_v14, %v13472_v24  ;;  %17904 = vst [vmem:[#allocation224_spill] sm:$0xff] %v15017_v39  ;;  %v15019_v13 = vpop.xlane.xlu1 %2771 }
 0x3f8   : > { %v15009_v40 = vcombine.low %v5297_v50, %v5304_v18  ;;  %v15011_v10 = vcombine.low %v5143_v31, %v5150_v51  ;;  %v15013_v58 = vcombine.low %v5157_v25, %v5164_v45  ;;  %v15015_v56 = vcombine.low %v5339_v38, %v5346_v63  ;;  %8812 = vperm.xlu1 %10730, %v7239_v42   ;;  %v17906_v31 = vld [vmem:[#allocation70_spill] sm:$0xff]  ;;  %v17907_v25 = vld [vmem:[#allocation55_spill] sm:$0xff] }
 0x3f9   : > { %v15021_v47 = vcombine.low %v5353_v48, %v5360_v27  ;;  %v15023_v36 = vcombine.low %v5199_v19, %v5206_v0  ;;  %v5395_v35 = vrot.slane %v14480_v17, %v13417_v29  ;;  %v5402_v14 = vrot.slane %v14480_v17, %v13444_v52  ;;  %v17909_v42 = vld [vmem:[#allocation66_spill] sm:$0xff] }
 0x3fa   : > { %17903 = vst [vmem:[#allocation192_spill] sm:$0xff] %v15015_v56  ;;  %8863 = vperm.xlu0 %10729, %v7528_v2   ;;  %v15029_v50 = vcombine.low %v5213_v4, %v5220_v61  ;;  %v7273_v18 = vcombine.low %v7265_v15, %v7272_v33  ;;  %v7299_v51 = vrot.slane %v17906_v31, %v13472_v24  ;;  %v15049_v0 = vpop.xlane.xlu0 %2785  ;;  %v17910_v15 = vld [vmem:[#allocation115_spill] sm:$0xff] }
 0x3fb   : > { %17905 = vst [vmem:[#allocation139_spill] sm:$0xff] %v15021_v47  ;;  %v7306_v49 = vrot.slane %v17907_v25, %v13472_v24  ;;  %v5409_v55 = vrot.slane %v14480_v17, %v13456_v28  ;;  %v7562_v45 = vcombine.low %v7554_v30, %v7561_v46  ;;  %v7588_v38 = vrot.slane %v14707_v43, %v13472_v24  ;;  %v15051_v46 = vpop.xlane.xlu1 %2775 }
 0x3fc   : > { %v7595_v63 = vrot.slane %v14709_v34, %v13472_v24  ;;  %v5416_v48 = vrot.slane %v14480_v17, %v13465_v7  ;;  %v5255_v2 = vrot.slane %v14483_v57, %v13417_v29  ;;  %v5262_v27 = vrot.slane %v14483_v57, %v13444_v52  ;;  %8818 = vperm.xlu1 %10730, %v7273_v18  }
 0x3fd   : > { %v5269_v19 = vrot.slane %v14483_v57, %v13456_v28  ;;  %v15053_v43 = vcombine.low %v5395_v35, %v5402_v14  ;;  %v5276_v34 = vrot.slane %v14483_v57, %v13465_v7  ;;  %v5451_v17 = vrot.slane %v14520_v23, %v13417_v29 }
 0x3fe   : > { %v5458_v30 = vrot.slane %v14520_v23, %v13444_v52  ;;  %8869 = vperm.xlu0 %10729, %v7562_v45   ;;  %v5465_v4 = vrot.slane %v14520_v23, %v13456_v28  ;;  %v7307_v61 = vcombine.low %v7299_v51, %v7306_v49  ;;  %v7333_v12 = vrot.slane %v17909_v42, %v13472_v24 }
 0x3ff   : > { %17908 = vst [vmem:[#allocation225_spill] sm:$0xff] %v15053_v43  ;;  %v7340_v33 = vrot.slane %v17910_v15, %v13472_v24  ;;  %v5472_v57 = vrot.slane %v14520_v23, %v13465_v7  ;;  %v7596_v35 = vcombine.low %v7588_v38, %v7595_v63  ;;  %v7622_v14 = vrot.slane %v14719_v41, %v13472_v24  ;;  %v15081_v23 = vpop.xlane.xlu1 %2779  ;;  %v17913_v63 = vld [vmem:[#allocation82_spill] sm:$0xff]  ;;  %v15093_v15 = vpop.xlane.xlu0 %2789  ;;  %v17915_v43 = vld [vmem:[#allocation132_spill] sm:$0xff] }
 0x400   : > { %v7629_v18 = vrot.slane %v14765_v37, %v13472_v24  ;;  %v5311_v31 = vrot.slane %v14523_v1, %v13417_v29  ;;  %v5318_v51 = vrot.slane %v14523_v1, %v13444_v52  ;;  %v5325_v25 = vrot.slane %v14523_v1, %v13456_v28  ;;  %8824 = vperm.xlu1 %10730, %v7307_v61  }
 0x401   : > { %v5332_v49 = vrot.slane %v14523_v1, %v13465_v7  ;;  %v15083_v45 = vcombine.low %v5409_v55, %v5416_v48  ;;  %v15085_v41 = vcombine.low %v5255_v2, %v5262_v27  ;;  %v15087_v37 = vcombine.low %v5269_v19, %v5276_v34  ;;  %v17914_v1 = vld [vmem:[#allocation106_spill] sm:$0xff] }
 0x402   : > { %v15089_v38 = vcombine.low %v5451_v17, %v5458_v30  ;;  %8875 = vperm.xlu0 %10729, %v7596_v35   ;;  %v5507_v42 = vrot.slane %v17913_v63, %v13417_v29  ;;  %v7341_v39 = vcombine.low %v7333_v12, %v7340_v33  ;;  %v7367_v61 = vrot.slane %v17914_v1, %v13472_v24 }
 0x403   : > { %17911 = vst [vmem:[#allocation141_spill] sm:$0xff] %v15083_v45  ;;  %v7374_v55 = vrot.slane %v17915_v43, %v13472_v24  ;;  %v5514_v48 = vrot.slane %v17913_v63, %v13444_v52  ;;  %v7630_v2 = vcombine.low %v7622_v14, %v7629_v18  ;;  %v7656_v27 = vrot.slane %v14779_v5, %v13472_v24  ;;  %v15113_v43 = vpop.xlane.xlu1 %2783  ;;  %v17918_v5 = vld [vmem:[#allocation31_spill] sm:$0xff] }
 0x404   : > { %17912 = vst [vmem:[#allocation196_spill] sm:$0xff] %v15089_v38  ;;  %v7663_v19 = vrot.slane %v14781_v16, %v13472_v24  ;;  %v15105_v34 = vcombine.low %v5465_v4, %v5472_v57  ;;  %v15107_v17 = vcombine.low %v5311_v31, %v5318_v51  ;;  %v15109_v30 = vcombine.low %v5325_v25, %v5332_v49  ;;  %v17920_v31 = vld [vmem:[#allocation73_spill] sm:$0xff] }
 0x405   : > { %v5521_v12 = vrot.slane %v17913_v63, %v13456_v28  ;;  %8830 = vperm.xlu1 %10730, %v7341_v39   ;;  %17917 = vst [vmem:[#allocation195_spill] sm:$0xff] %v15113_v43  ;;  %v5528_v33 = vrot.slane %v17913_v63, %v13465_v7  ;;  %v5367_v35 = vrot.slane %v17918_v5, %v13417_v29  ;;  %v17919_v39 = vld [vmem:[#allocation104_spill] sm:$0xff] }
 0x406   : > { %17916 = vst [vmem:[#allocation30_spill] sm:$0xff] %v15105_v34  ;;  %v5374_v16 = vrot.slane %v17918_v5, %v13444_v52  ;;  %v5381_v4 = vrot.slane %v17918_v5, %v13456_v28  ;;  %8881 = vperm.xlu0 %10729, %v7630_v2   ;;  %v5388_v57 = vrot.slane %v17918_v5, %v13465_v7  ;;  %v17922_v2 = vld [vmem:[#allocation121_spill] sm:$0xff] }
 0x407   : > { %v7375_v14 = vcombine.low %v7367_v61, %v7374_v55  ;;  %v7401_v18 = vrot.slane %v17919_v39, %v13472_v24  ;;  %v7408_v51 = vrot.slane %v17920_v31, %v13472_v24  ;;  %v15129_v25 = vcombine.low %v5507_v42, %v5514_v48  ;;  %v15143_v48 = vpop.xlane.xlu0 %2793 }
 0x408   : > { %v7664_v49 = vcombine.low %v7656_v27, %v7663_v19  ;;  %v7690_v63 = vrot.slane %v14795_v53, %v13472_v24  ;;  %v7697_v1 = vrot.slane %v14837_v20, %v13472_v24  ;;  %v5563_v43 = vrot.slane %v17922_v2, %v13417_v29  ;;  %17923 = vst [vmem:[#allocation130_spill] sm:$0xff] %v15143_v48  ;;  %v15145_v27 = vpop.xlane.xlu1 %2787  ;;  %v17925_v53 = vld [vmem:[#allocation79_spill] sm:$0xff] }
 0x409   : > { %17921 = vst [vmem:[#allocation95_spill] sm:$0xff] %v15129_v25  ;;  %v5570_v61 = vrot.slane %v17922_v2, %v13444_v52  ;;  %v5577_v55 = vrot.slane %v17922_v2, %v13456_v28  ;;  %v5584_v42 = vrot.slane %v17922_v2, %v13465_v7  ;;  %8836 = vperm.xlu1 %10730, %v7375_v14   ;;  %17924 = vst [vmem:[#allocation143_spill] sm:$0xff] %v15145_v27  ;;  %v17927_v14 = vld [vmem:[#allocation76_spill] sm:$0xff] }
 0x40a   : > { %v5423_v20 = vrot.slane %v17925_v53, %v13417_v29  ;;  %v5430_v19 = vrot.slane %v17925_v53, %v13444_v52  ;;  %v5437_v5 = vrot.slane %v17925_v53, %v13456_v28  ;;  %v5444_v39 = vrot.slane %v17925_v53, %v13465_v7  ;;  %8887 = vperm.xlu0 %10729, %v7664_v49   ;;  %v17928_v27 = vld [vmem:[#allocation204_spill] sm:$0xff] }
 0x40b   : > { %v15155_v31 = vcombine.low %v5521_v12, %v5528_v33  ;;  %v7409_v2 = vcombine.low %v7401_v18, %v7408_v51  ;;  %v7435_v48 = vrot.slane %v17927_v14, %v13472_v24  ;;  %v7442_v25 = vrot.slane %v17928_v27, %v13472_v24  ;;  %v17930_v33 = vld [vmem:[#allocation134_spill] sm:$0xff]  ;;  %v15175_v49 = vpop.permute.xlu0 %8686 }
 0x40c   : > { %v15161_v34 = vcombine.low %v5367_v35, %v5374_v16  ;;  %v7698_v38 = vcombine.low %v7690_v63, %v7697_v1  ;;  %v7724_v45 = vrot.slane %v14851_v54, %v13472_v24  ;;  %v7731_v47 = vrot.slane %v14853_v9, %v13472_v24  ;;  %17931 = vst [vmem:[#allocation193_spill] sm:$0xff] %v15175_v49  ;;  %v15177_v35 = vpop.xlane.xlu1 %2791  ;;  %v17934_v63 = vld [vmem:[#allocation110_spill] sm:$0xff] }
 0x40d   : > { %17926 = vst [vmem:[#allocation140_spill] sm:$0xff] %v15155_v31  ;;  %v15167_v53 = vcombine.low %v5381_v4, %v5388_v57  ;;  %v15169_v12 = vcombine.low %v5563_v43, %v5570_v61  ;;  %v5619_v18 = vrot.slane %v17930_v33, %v13417_v29  ;;  %v5626_v51 = vrot.slane %v17930_v33, %v13444_v52  ;;  %v17935_v61 = vld [vmem:[#allocation119_spill] sm:$0xff] }
 0x40e   : > { %8842 = vperm.xlu1 %10730, %v7409_v2   ;;  %17932 = vst [vmem:[#allocation197_spill] sm:$0xff] %v15177_v35  ;;  %v15179_v16 = vcombine.low %v5577_v55, %v5584_v42  ;;  %v15181_v54 = vcombine.low %v5423_v20, %v5430_v19  ;;  %v15183_v9 = vcombine.low %v5437_v5, %v5444_v39  ;;  %v17936_v55 = vld [vmem:[#allocation116_spill] sm:$0xff]  ;;  %v17991_v31 = vld [vmem:[#allocation39_spill] sm:$0xff] }
 0x40f   : > { %17929 = vst [vmem:[#allocation194_spill] sm:$0xff] %v15169_v12  ;;  %v5633_v43 = vrot.slane %v17930_v33, %v13456_v28  ;;  %8893 = vperm.xlu0 %10729, %v7698_v38   ;;  %v5640_v4 = vrot.slane %v17930_v33, %v13465_v7  ;;  %v7443_v57 = vcombine.low %v7435_v48, %v7442_v25  ;;  %v15207_v2 = vpop.permute.xlu0 %8713 }
 0x410   : > { %17933 = vst [vmem:[#allocation202_spill] sm:$0xff] %v15179_v16  ;;  %v7469_v1 = vrot.slane %v17934_v63, %v13472_v24  ;;  %v7476_v27 = vrot.slane %v17935_v61, %v13472_v24  ;;  %v5479_v42 = vrot.slane %v17936_v55, %v13417_v29  ;;  %v7732_v20 = vcombine.low %v7724_v45, %v7731_v47  ;;  %v15209_v47 = vpop.xlane.xlu1 %2795 }
 0x411   : > { %v7758_v19 = vrot.slane %v14867_v22, %v13472_v24  ;;  %v7765_v38 = vrot.slane %v14925_v21, %v13472_v24  ;;  %v15199_v5 = vcombine.low %v5619_v18, %v5626_v51  ;;  %v5486_v25 = vrot.slane %v17936_v55, %v13444_v52  ;;  %17938 = vst [vmem:[#allocation191_spill] sm:$0xff] %v15207_v2  ;;  %v17940_v22 = vld [vmem:[#allocation87_spill] sm:$0xff] }
 0x412   : > { %v5493_v48 = vrot.slane %v17936_v55, %v13456_v28  ;;  %v5500_v39 = vrot.slane %v17936_v55, %v13465_v7  ;;  %8848 = vperm.xlu1 %10730, %v7443_v57   ;;  %17939 = vst [vmem:[#allocation142_spill] sm:$0xff] %v15209_v47  ;;  %v5675_v45 = vrot.slane %v17940_v22, %v13417_v29  ;;  %v17941_v18 = vld [vmem:[#allocation123_spill] sm:$0xff]  ;;  %v17942_v57 = vld [vmem:[#allocation78_spill] sm:$0xff]  ;;  %v17943_v55 = vld [vmem:[#allocation189_spill] sm:$0xff] }
 0x413   : > { %17937 = vst [vmem:[#allocation145_spill] sm:$0xff] %v15199_v5  ;;  %v5682_v21 = vrot.slane %v17940_v22, %v13444_v52  ;;  %v5689_v14 = vrot.slane %v17940_v22, %v13456_v28  ;;  %v5696_v33 = vrot.slane %v17940_v22, %v13465_v7  ;;  %8899 = vperm.xlu0 %10729, %v7732_v20  }
 0x414   : > { %v5535_v51 = vrot.slane %v17941_v18, %v13417_v29  ;;  %v7477_v63 = vcombine.low %v7469_v1, %v7476_v27  ;;  %v7503_v61 = vrot.slane %v17942_v57, %v13472_v24  ;;  %v7510_v2 = vrot.slane %v17943_v55, %v13472_v24  ;;  %v15239_v57 = vpop.permute.xlu0 %8719 }
 0x415   : > { %v5542_v49 = vrot.slane %v17941_v18, %v13444_v52  ;;  %v7766_v47 = vcombine.low %v7758_v19, %v7765_v38  ;;  %v7792_v35 = vrot.slane %v14931_v62, %v13472_v24  ;;  %v7799_v20 = vrot.slane %v14933_v44, %v13472_v24  ;;  %17945 = vst [vmem:[#allocation147_spill] sm:$0xff] %v15239_v57  ;;  %v15241_v19 = vpop.permute.xlu1 %8689  ;;  %v17948_v44 = vld [vmem:[#allocation59_spill] sm:$0xff] }
 0x416   : > { %v15231_v22 = vcombine.low %v5633_v43, %v5640_v4  ;;  %v15233_v5 = vcombine.low %v5479_v42, %v5486_v25  ;;  %v5549_v1 = vrot.slane %v17941_v18, %v13456_v28  ;;  %v5556_v27 = vrot.slane %v17941_v18, %v13465_v7  ;;  %8854 = vperm.xlu1 %10730, %v7477_v63   ;;  %v17950_v18 = vld [vmem:[#allocation81_spill] sm:$0xff]  ;;  %v17951_v63 = vld [vmem:[#allocation83_spill] sm:$0xff] }
 0x417   : > { %17946 = vst [vmem:[#allocation138_spill] sm:$0xff] %v15241_v19  ;;  %v15243_v38 = vcombine.low %v5493_v48, %v5500_v39  ;;  %v15245_v62 = vcombine.low %v5675_v45, %v5682_v21  ;;  %v5731_v43 = vrot.slane %v17948_v44, %v13417_v29  ;;  %v5738_v4 = vrot.slane %v17948_v44, %v13444_v52 }
 0x418   : > { %17944 = vst [vmem:[#allocation68_spill] sm:$0xff] %v15231_v22  ;;  %8905 = vperm.xlu0 %10729, %v7766_v47   ;;  %v15251_v42 = vcombine.low %v5689_v14, %v5696_v33  ;;  %v7511_v25 = vcombine.low %v7503_v61, %v7510_v2  ;;  %v7537_v55 = vrot.slane %v17950_v18, %v13472_v24  ;;  %v17952_v14 = vld [vmem:[#allocation209_spill] sm:$0xff] }
 0x419   : > { %17947 = vst [vmem:[#allocation149_spill] sm:$0xff] %v15245_v62  ;;  %v7544_v57 = vrot.slane %v17951_v63, %v13472_v24  ;;  %v15257_v48 = vcombine.low %v5535_v51, %v5542_v49  ;;  %v7800_v39 = vcombine.low %v7792_v35, %v7799_v20  ;;  %v7826_v45 = vrot.slane %v14947_v6, %v13472_v24  ;;  %v15271_v49 = vpop.permute.xlu0 %8725  ;;  %v15273_v35 = vpop.permute.xlu1 %8692 }
 0x41a   : > { %17949 = vst [vmem:[#allocation199_spill] sm:$0xff] %v15251_v42  ;;  %v7833_v21 = vrot.slane %v14949_v11, %v13472_v24  ;;  %v15263_v19 = vcombine.low %v5549_v1, %v5556_v27  ;;  %v5745_v2 = vrot.slane %v17948_v44, %v13456_v28  ;;  %v5752_v47 = vrot.slane %v17948_v44, %v13465_v7  ;;  %v17956_v27 = vld [vmem:[#allocation205_spill] sm:$0xff] }
 0x41b   : > { %v5591_v33 = vrot.slane %v17952_v14, %v13417_v29  ;;  %17953 = vst [vmem:[#allocation201_spill] sm:$0xff] %v15271_v49  ;;  %8860 = vperm.xlu1 %10730, %v7511_v25   ;;  %17954 = vst [vmem:[#allocation203_spill] sm:$0xff] %v15273_v35  ;;  %v15275_v6 = vcombine.low %v5731_v43, %v5738_v4  ;;  %v5598_v11 = vrot.slane %v17952_v14, %v13444_v52  ;;  %v17957_v43 = vld [vmem:[#allocation206_spill] sm:$0xff] }
 0x41c   : > { %v5605_v51 = vrot.slane %v17952_v14, %v13456_v28  ;;  %v5612_v61 = vrot.slane %v17952_v14, %v13465_v7  ;;  %8911 = vperm.xlu0 %10729, %v7800_v39   ;;  %v5787_v20 = vrot.slane %v14721_v3, %v13417_v29  ;;  %v7545_v1 = vcombine.low %v7537_v55, %v7544_v57 }
 0x41d   : > { %17955 = vst [vmem:[#allocation144_spill] sm:$0xff] %v15275_v6  ;;  %v7571_v44 = vrot.slane %v17956_v27, %v13472_v24  ;;  %v7578_v4 = vrot.slane %v17957_v43, %v13472_v24  ;;  %v5794_v25 = vrot.slane %v14721_v3, %v13444_v52  ;;  %v7834_v18 = vcombine.low %v7826_v45, %v7833_v21  ;;  %v15303_v43 = vpop.permute.xlu0 %8731  ;;  %v15305_v45 = vpop.permute.xlu1 %8695  ;;  %v17961_v6 = vld [vmem:[#allocation112_spill] sm:$0xff] }
 0x41e   : > { %v7860_v63 = vrot.slane %v15011_v10, %v13472_v24  ;;  %v7867_v39 = vrot.slane %v15013_v58, %v13472_v24  ;;  %v5801_v14 = vrot.slane %v14721_v3, %v13456_v28  ;;  %v5808_v57 = vrot.slane %v14721_v3, %v13465_v7  ;;  %17958 = vst [vmem:[#allocation226_spill] sm:$0xff] %v15303_v43 }
 0x41f   : > { %v5647_v55 = vrot.slane %v14723_v8, %v13417_v29  ;;  %v5654_v27 = vrot.slane %v14723_v8, %v13444_v52  ;;  %8866 = vperm.xlu1 %10730, %v7545_v1   ;;  %17959 = vst [vmem:[#allocation71_spill] sm:$0xff] %v15305_v45  ;;  %v15307_v10 = vcombine.low %v5745_v2, %v5752_v47  ;;  %v17962_v1 = vld [vmem:[#allocation207_spill] sm:$0xff] }
 0x420   : > { %v15309_v58 = vcombine.low %v5591_v33, %v5598_v11  ;;  %v15311_v21 = vcombine.low %v5605_v51, %v5612_v61  ;;  %v5661_v3 = vrot.slane %v14723_v8, %v13456_v28  ;;  %8917 = vperm.xlu0 %10729, %v7834_v18   ;;  %v5668_v49 = vrot.slane %v14723_v8, %v13465_v7  ;;  %v17965_v8 = vld [vmem:[#allocation42_spill] sm:$0xff] }
 0x421   : > { %17960 = vst [vmem:[#allocation146_spill] sm:$0xff] %v15307_v10  ;;  %v7579_v35 = vcombine.low %v7571_v44, %v7578_v4  ;;  %v7605_v43 = vrot.slane %v17961_v6, %v13472_v24  ;;  %v7612_v45 = vrot.slane %v17962_v1, %v13472_v24  ;;  %v15321_v2 = vcombine.low %v5787_v20, %v5794_v25  ;;  %v15335_v4 = vpop.permute.xlu0 %8737  ;;  %v15337_v20 = vpop.permute.xlu1 %8698  ;;  %v17967_v25 = vld [vmem:[#allocation136_spill] sm:$0xff] }
 0x422   : > { %v7868_v47 = vcombine.low %v7860_v63, %v7867_v39  ;;  %v7894_v33 = vrot.slane %v15023_v36, %v13472_v24  ;;  %v7901_v11 = vrot.slane %v15029_v50, %v13472_v24  ;;  %v15327_v51 = vcombine.low %v5801_v14, %v5808_v57  ;;  %17966 = vst [vmem:[#allocation153_spill] sm:$0xff] %v15337_v20 }
 0x423   : > { %17963 = vst [vmem:[#allocation151_spill] sm:$0xff] %v15321_v2  ;;  %v15329_v61 = vcombine.low %v5647_v55, %v5654_v27  ;;  %v5843_v44 = vrot.slane %v17965_v8, %v13417_v29  ;;  %v5850_v6 = vrot.slane %v17965_v8, %v13444_v52  ;;  %8872 = vperm.xlu1 %10730, %v7579_v35   ;;  %v17968_v35 = vld [vmem:[#allocation208_spill] sm:$0xff]  ;;  %v17969_v55 = vld [vmem:[#allocation33_spill] sm:$0xff] }
 0x424   : > { %17964 = vst [vmem:[#allocation227_spill] sm:$0xff] %v15327_v51  ;;  %v5857_v36 = vrot.slane %v17965_v8, %v13456_v28  ;;  %v5864_v50 = vrot.slane %v17965_v8, %v13465_v7  ;;  %v5703_v18 = vrot.slane %v17967_v25, %v13417_v29  ;;  %v5710_v63 = vrot.slane %v17967_v25, %v13444_v52  ;;  %v17970_v51 = vld [vmem:[#allocation127_spill] sm:$0xff] }
 0x425   : > { %8923 = vperm.xlu0 %10729, %v7868_v47   ;;  %v5717_v39 = vrot.slane %v17967_v25, %v13456_v28  ;;  %v7613_v14 = vcombine.low %v7605_v43, %v7612_v45  ;;  %v7639_v57 = vrot.slane %v17968_v35, %v13472_v24  ;;  %v7646_v27 = vrot.slane %v17969_v55, %v13472_v24 }
 0x426   : > { %v5724_v1 = vrot.slane %v17967_v25, %v13465_v7  ;;  %v7902_v8 = vcombine.low %v7894_v33, %v7901_v11  ;;  %v7928_v20 = vrot.slane %v15085_v41, %v13472_v24  ;;  %v7935_v47 = vrot.slane %v15087_v37, %v13472_v24  ;;  %v15367_v25 = vpop.permute.xlu0 %8743  ;;  %v15369_v33 = vpop.permute.xlu1 %8701 }
 0x427   : > { %v5759_v2 = vrot.slane %v17970_v51, %v13417_v29  ;;  %v5766_v43 = vrot.slane %v17970_v51, %v13444_v52  ;;  %v5773_v45 = vrot.slane %v17970_v51, %v13456_v28  ;;  %v5780_v35 = vrot.slane %v17970_v51, %v13465_v7  ;;  %17971 = vst [vmem:[#allocation155_spill] sm:$0xff] %v15367_v25  ;;  %v17976_v51 = vld [vmem:[#allocation213_spill] sm:$0xff] }
 0x428   : > { %8878 = vperm.xlu1 %10730, %v7613_v14   ;;  %17972 = vst [vmem:[#allocation74_spill] sm:$0xff] %v15369_v33  ;;  %v15371_v41 = vcombine.low %v5661_v3, %v5668_v49  ;;  %v15373_v37 = vcombine.low %v5843_v44, %v5850_v6  ;;  %v15375_v11 = vcombine.low %v5857_v36, %v5864_v50  ;;  %v17975_v55 = vlaneseq  ;;  %v17977_v14 = vld [vmem:[#allocation114_spill] sm:$0xff]  ;;  %v17979_v50 = vld [vmem:[#allocation129_spill] sm:$0xff] }
 0x429   : > { %8929 = vperm.xlu0 %10729, %v7902_v8   ;;  %v15380_v42 = vcombine.low %v5703_v18, %v5710_v63  ;;  %v7647_v62 = vcombine.low %v7639_v57, %v7646_v27  ;;  %v7673_v22 = vrot.slane %v17976_v51, %v13472_v24  ;;  %v7680_v16 = vrot.slane %v17977_v14, %v13472_v24  ;;  %v17983_v27 = vld [vmem:[#allocation212_spill] sm:$0xff] }
 0x42a   : > { %17973 = vst [vmem:[#allocation77_spill] sm:$0xff] %v15373_v37  ;;  %17974 = vst [vmem:[#allocation154_spill] sm:$0xff] %v15375_v11  ;;  %v15378_v10 = vand.u32 127, %v17975_v55  ;;  %v15386_v33 = vcombine.low %v5717_v39, %v5724_v1  ;;  %v7936_v49 = vcombine.low %v7928_v20, %v7935_v47  ;;  %v7962_v3 = vrot.slane %v15107_v17, %v13472_v24  ;;  %v15400_v57 = vpop.permute.xlu0 %8749  ;;  %v15402_v20 = vpop.permute.xlu1 %8704  ;;  %v17984_v47 = vld [vmem:[#allocation90_spill] sm:$0xff] }
 0x42b   : > { %v7969_v44 = vrot.slane %v15109_v30, %v13472_v24  ;;  %v15392_v6 = vcombine.low %v5759_v2, %v5766_v43  ;;  %v15394_v36 = vcombine.low %v5773_v45, %v5780_v35  ;;  %v5815_v18 = vrot.slane %v17979_v50, %v13417_v29  ;;  %17980 = vst [vmem:[#allocation150_spill] sm:$0xff] %v15400_v57  ;;  %v17982_v2 = vld [vmem:[#allocation47_spill] sm:$0xff]  ;;  %v17985_v45 = vld [vmem:[#allocation125_spill] sm:$0xff] }
 0x42c   : > { %v5822_v63 = vrot.slane %v17979_v50, %v13444_v52  ;;  %8884 = vperm.xlu1 %10730, %v7647_v62   ;;  %17981 = vst [vmem:[#allocation152_spill] sm:$0xff] %v15402_v20  ;;  %v5829_v17 = vrot.slane %v17979_v50, %v13456_v28  ;;  %v5836_v30 = vrot.slane %v17979_v50, %v13465_v7 }
 0x42d   : > { %17978 = vst [vmem:[#allocation148_spill] sm:$0xff] %v15394_v36  ;;  %v5871_v39 = vrot.slane %v17982_v2, %v13417_v29  ;;  %v15412_v1 = vsub.s32 %v15378_v10, %v17983_v27  ;;  %8935 = vperm.xlu0 %10729, %v7936_v49   ;;  %v5878_v8 = vrot.slane %v17982_v2, %v13444_v52 }
 0x42e   : > { %v7681_v62 = vcombine.low %v7673_v22, %v7680_v16  ;;  %v7707_v43 = vrot.slane %v17984_v47, %v13472_v24  ;;  %v7714_v35 = vrot.slane %v17985_v45, %v13472_v24  ;;  %v5885_v55 = vrot.slane %v17982_v2, %v13456_v28  ;;  %v17986_v16 = vld [vmem:[#allocation214_spill] sm:$0xff]  ;;  %v15433_v20 = vpop.permute.xlu0 %8755 }
 0x42f   : > { %v7970_v51 = vcombine.low %v7962_v3, %v7969_v44  ;;  %v7996_v14 = vrot.slane %v15161_v34, %v13472_v24  ;;  %v8003_v49 = vrot.slane %v15167_v53, %v13472_v24  ;;  %v5892_v50 = vrot.slane %v17982_v2, %v13465_v7  ;;  %17987 = vst [vmem:[#allocation156_spill] sm:$0xff] %v15433_v20  ;;  %v15435_v3 = vpop.permute.xlu1 %8707  ;;  %v17989_v44 = vld [vmem:[#allocation94_spill] sm:$0xff] }
 0x430   : > { %v6067_v22 = vrot.slane %v17986_v16, %v13417_v29  ;;  %v6074_v47 = vrot.slane %v17986_v16, %v13444_v52  ;;  %v9131_v45 = vadd.s32 4294967224, %v15378_v10  ;;  %8890 = vperm.xlu1 %10730, %v7681_v62   ;;  %17988 = vst [vmem:[#allocation157_spill] sm:$0xff] %v15435_v3  ;;  %v6081_v34 = vrot.slane %v17986_v16, %v13456_v28  ;;  %v17990_v62 = vld [vmem:[#allocation89_spill] sm:$0xff] }
 0x431   : > { %v6088_v53 = vrot.slane %v17986_v16, %v13465_v7  ;;  %v6123_v2 = vrot.slane %v17989_v44, %v13417_v29  ;;  %v6130_v11 = vrot.slane %v17989_v44, %v13444_v52  ;;  %8941 = vperm.xlu0 %10729, %v7970_v51   ;;  %v6137_v37 = vrot.slane %v17989_v44, %v13456_v28 }
 0x432   : > { %v7715_v12 = vcombine.low %v7707_v43, %v7714_v35  ;;  %v7741_v3 = vrot.slane %v17990_v62, %v13472_v24  ;;  %v7748_v20 = vrot.slane %v17991_v31, %v13472_v24  ;;  %v6144_v16 = vrot.slane %v17989_v44, %v13465_v7  ;;  %v15465_v62 = vpop.permute.xlu0 %8761 }
 0x433   : > { %v8004_v57 = vcombine.low %v7996_v14, %v8003_v49  ;;  %v8030_v56 = vrot.slane %v15181_v54, %v13472_v24  ;;  %v8037_v51 = vrot.slane %v15183_v9, %v13472_v24  ;;  %v15457_v25 = vcombine.low %v5815_v18, %v5822_v63  ;;  %v15467_v31 = vpop.permute.xlu1 %8710 }
 0x434   : > { %v15459_v36 = vcombine.low %v5829_v17, %v5836_v30  ;;  %v15461_v43 = vcombine.low %v5871_v39, %v5878_v8  ;;  %v15463_v35 = vcombine.low %v5885_v55, %v5892_v50  ;;  %8896 = vperm.xlu1 %10730, %v7715_v12   ;;  %17992 = vst [vmem:[#allocation80_spill] sm:$0xff] %v15467_v31  ;;  %v9145_v18 = vadd.s32 4294967208, %v15378_v10  ;;  %v17995_v17 = vld [vmem:[#allocation85_spill] sm:$0xff]  ;;  %v17996_v12 = vld [vmem:[#allocation124_spill] sm:$0xff] }
 0x435   : > { %v15469_v14 = vcombine.low %v6067_v22, %v6074_v47  ;;  %v15471_v49 = vcombine.low %v6081_v34, %v6088_v53  ;;  %v15473_v54 = vcombine.low %v6123_v2, %v6130_v11  ;;  %v15476_v9 = vsub.s32 %v9131_v45, %v17983_v27  ;;  %8947 = vperm.xlu0 %10729, %v8004_v57   ;;  %v17999_v53 = vld [vmem:[#allocation118_spill] sm:$0xff]  ;;  %v18000_v2 = vld [vmem:[#allocation48_spill] sm:$0xff] }
 0x436   : > { %v7749_v63 = vcombine.low %v7741_v3, %v7748_v20  ;;  %v7775_v30 = vrot.slane %v17995_v17, %v13472_v24  ;;  %v7782_v39 = vrot.slane %v17996_v12, %v13472_v24  ;;  %v15483_v8 = vcombine.low %v6137_v37, %v6144_v16  ;;  %v15497_v47 = vpop.permute.xlu0 %8767 }
 0x437   : > { %17993 = vst [vmem:[#allocation215_spill] sm:$0xff] %v15471_v49  ;;  %17994 = vst [vmem:[#allocation159_spill] sm:$0xff] %v15473_v54  ;;  %v8038_v55 = vcombine.low %v8030_v56, %v8037_v51  ;;  %v8064_v11 = vrot.slane %v15233_v5, %v13472_v24  ;;  %v8071_v50 = vrot.slane %v15243_v38, %v13472_v24  ;;  %v15499_v56 = vpop.permute.xlu1 %8716  ;;  %v9075_v3 = vadd.s32 4294967288, %v15378_v10 }
 0x438   : > { %17997 = vst [vmem:[#allocation84_spill] sm:$0xff] %v15483_v8  ;;  %v6095_v57 = vrot.slane %v14987_v59, %v13417_v29  ;;  %v6102_v20 = vrot.slane %v14987_v59, %v13444_v52  ;;  %v6109_v22 = vrot.slane %v14987_v59, %v13456_v28  ;;  %v6116_v37 = vrot.slane %v14987_v59, %v13465_v7  ;;  %v18008_v8 = vld [vmem:[#allocation148_spill] sm:$0xff] }
 0x439   : > { %8902 = vperm.xlu1 %10730, %v7749_v63   ;;  %17998 = vst [vmem:[#allocation158_spill] sm:$0xff] %v15499_v56  ;;  %8953 = vperm.xlu0 %10729, %v8038_v55   ;;  %v15509_v34 = vsub.s32 %v9145_v18, %v17983_v27  ;;  %v7783_v59 = vcombine.low %v7775_v30, %v7782_v39  ;;  %v9159_v51 = vadd.s32 4294967192, %v15378_v10 }
 0x43a   : > { %v7809_v44 = vrot.slane %v17999_v53, %v13472_v24  ;;  %v7816_v16 = vrot.slane %v18000_v2, %v13472_v24  ;;  %v8072_v63 = vcombine.low %v8064_v11, %v8071_v50  ;;  %v8098_v17 = vrot.slane %v15257_v48, %v13472_v24  ;;  %v15528_v53 = vpop.permute.xlu0 %8773  ;;  %v18003_v2 = vld [vmem:[#allocation131_spill] sm:$0xff] }
 0x43b   : > { %v8105_v12 = vrot.slane %v15263_v19, %v13472_v24  ;;  %v15520_v55 = vcombine.low %v6095_v57, %v6102_v20  ;;  %v15522_v18 = vcombine.low %v6109_v22, %v6116_v37  ;;  %v6151_v30 = vrot.slane %v15019_v13, %v13417_v29  ;;  %v15530_v11 = vpop.permute.xlu1 %8722  ;;  %v18002_v37 = vld [vmem:[#allocation223_spill] sm:$0xff] }
 0x43c   : > { %v6158_v39 = vrot.slane %v15019_v13, %v13444_v52  ;;  %18001 = vst [vmem:[#allocation210_spill] sm:$0xff] %v15530_v11  ;;  %v6165_v48 = vrot.slane %v15019_v13, %v13456_v28  ;;  %v6172_v19 = vrot.slane %v15019_v13, %v13465_v7  ;;  %v6347_v50 = vrot.slane %v15049_v0, %v13417_v29 }
 0x43d   : > { %8908 = vperm.xlu1 %10730, %v7783_v59   ;;  %v15539_v57 = vsub.s32 %v9075_v3, %v17983_v27  ;;  %8959 = vperm.xlu0 %10729, %v8072_v63   ;;  %v6354_v20 = vrot.slane %v15049_v0, %v13444_v52  ;;  %v7817_v22 = vcombine.low %v7809_v44, %v7816_v16 }
 0x43e   : > { %v7843_v59 = vrot.slane %v18002_v37, %v13472_v24  ;;  %v7850_v45 = vrot.slane %v18003_v2, %v13472_v24  ;;  %v15548_v5 = vsub.s32 %v9159_v51, %v17983_v27  ;;  %v8106_v13 = vcombine.low %v8098_v17, %v8105_v12  ;;  %v15562_v37 = vpop.permute.xlu0 %8779 }
 0x43f   : > { %v8132_v38 = vrot.slane %v15309_v58, %v13472_v24  ;;  %v8139_v3 = vrot.slane %v15311_v21, %v13472_v24  ;;  %v6207_v63 = vrot.slane %v15051_v46, %v13417_v29  ;;  %v6214_v44 = vrot.slane %v15051_v46, %v13444_v52  ;;  %v15564_v17 = vpop.permute.xlu1 %8728 }
 0x440   : > { %v6221_v16 = vrot.slane %v15051_v46, %v13456_v28  ;;  %v6228_v51 = vrot.slane %v15051_v46, %v13465_v7  ;;  %18004 = vst [vmem:[#allocation23_spill] sm:$0xff] %v15564_v17  ;;  %v15566_v58 = vcombine.low %v6151_v30, %v6158_v39  ;;  %v15568_v21 = vcombine.low %v6165_v48, %v6172_v19  ;;  %v18005_v17 = vld [vmem:[#allocation122_spill] sm:$0xff] }
 0x441   : > { %8914 = vperm.xlu1 %10730, %v7817_v22   ;;  %8965 = vperm.xlu0 %10729, %v8106_v13   ;;  %v15574_v11 = vcombine.low %v6347_v50, %v6354_v20  ;;  %v7851_v46 = vcombine.low %v7843_v59, %v7850_v45  ;;  %v7877_v22 = vrot.slane %v14927_v26, %v13472_v24  ;;  %v9082_v39 = vadd.s32 4294967280, %v15378_v10 }
 0x442   : > { %v7884_v30 = vrot.slane %v18005_v17, %v13472_v24  ;;  %v8140_v48 = vcombine.low %v8132_v38, %v8139_v3  ;;  %v8166_v19 = vrot.slane %v15329_v61, %v13472_v24  ;;  %v8173_v12 = vrot.slane %v15371_v41, %v13472_v24  ;;  %v15592_v20 = vpop.permute.xlu0 %8785 }
 0x443   : > { %v15585_v2 = vcombine.low %v6207_v63, %v6214_v44  ;;  %v15587_v50 = vcombine.low %v6221_v16, %v6228_v51  ;;  %v9089_v26 = vadd.s32 4294967272, %v15378_v10  ;;  %v8735_v59 = vpop.permute.xlu1 %8734  ;;  %v6263_v38 = vrot.slane %v15081_v23, %v13417_v29  ;;  %v18006_v44 = vld [vmem:[#allocation96_spill] sm:$0xff]  ;;  %v18007_v51 = vld [vmem:[#allocation135_spill] sm:$0xff] }
 0x444   : > { %v6270_v61 = vrot.slane %v15081_v23, %v13444_v52  ;;  %v9096_v13 = vadd.s32 4294967264, %v15378_v10  ;;  %v9183_v3 = vrot.slane %v8735_v59, %v15412_v1  ;;  %v7885_v63 = vcombine.low %v7877_v22, %v7884_v30 }
 0x445   : > { %8920 = vperm.xlu1 %10730, %v7851_v46   ;;  %8971 = vperm.xlu0 %10729, %v8140_v48   ;;  %v7911_v16 = vrot.slane %v18006_v44, %v13472_v24  ;;  %v7918_v17 = vrot.slane %v18007_v51, %v13472_v24  ;;  %v15607_v46 = vsub.s32 %v9082_v39, %v17983_v27 }
 0x446   : > { %v8174_v45 = vcombine.low %v8166_v19, %v8173_v12  ;;  %v8200_v56 = vrot.slane %v15380_v42, %v13472_v24  ;;  %v8207_v41 = vrot.slane %v15386_v33, %v13472_v24  ;;  %v6284_v48 = vrot.slane %v15081_v23, %v13465_v7  ;;  %v15620_v59 = vpop.permute.xlu0 %8791 }
 0x447   : > { %v15616_v22 = vsub.s32 %v9089_v26, %v17983_v27  ;;  %v9187_v30 = vrot.slane %v15335_v4, %v15539_v57  ;;  %v8741_v12 = vpop.permute.xlu1 %8740  ;;  %v15623_v39 = vsub.s32 %v9096_v13, %v17983_v27  ;;  %v9103_v42 = vadd.s32 4294967256, %v15378_v10 }
 0x448   : > { %v9110_v33 = vadd.s32 4294967248, %v15378_v10  ;;  %v9192_v19 = vrot.slane %v8741_v12, %v15607_v46  ;;  %v7919_v44 = vcombine.low %v7911_v16, %v7918_v17  ;;  %v7945_v4 = vrot.slane %v15003_v32, %v13472_v24 }
 0x449   : > { %8926 = vperm.xlu1 %10730, %v7885_v63   ;;  %8977 = vperm.xlu0 %10729, %v8174_v45   ;;  %v9188_v26 = vsel %vm9080_vm0, %v9187_v30, %v9183_v3  ;;  %v7952_v63 = vrot.slane %v15009_v40, %v13472_v24  ;;  %v8208_v13 = vcombine.low %v8200_v56, %v8207_v41  ;;  %v18009_v3 = vld [vmem:[#allocation155_spill] sm:$0xff]  ;;  %v9117_v17 = vadd.s32 4294967240, %v15378_v10 }
 0x44a   : > { %v9193_v51 = vsel %vm9087_vm1, %v9192_v19, %v9188_v26  ;;  %v8234_v31 = vrot.slane %v15392_v6, %v13472_v24  ;;  %v8241_v45 = vrot.slane %v18008_v8, %v13472_v24  ;;  %v9197_v16 = vrot.slane %v18009_v3, %v15616_v22  ;;  %v15641_v32 = vpop.permute.xlu0 %8797  ;;  %v18010_v19 = vld [vmem:[#allocation192_spill] sm:$0xff] }
 0x44b   : > { %v8747_v40 = vpop.permute.xlu1 %8746  ;;  %v15644_v30 = vsub.s32 %v9103_v42, %v17983_v27  ;;  %v15647_v56 = vsub.s32 %v9110_v33, %v17983_v27  ;;  %v9124_v6 = vadd.s32 4294967232, %v15378_v10  ;;  %v7953_v12 = vcombine.low %v7945_v4, %v7952_v63  ;;  %v18012_v4 = vld [vmem:[#allocation150_spill] sm:$0xff] }
 0x44c   : > { %v9202_v8 = vrot.slane %v8747_v40, %v15623_v39  ;;  %v9198_v41 = vsel %vm9094_vm2, %v9197_v16, %v9193_v51  ;;  %v7979_v26 = vrot.slane %v18010_v19, %v13472_v24  ;;  %v8242_v54 = vcombine.low %v8234_v31, %v8241_v45  ;;  %v18013_v45 = vld [vmem:[#allocation225_spill] sm:$0xff] }
 0x44d   : > { %8932 = vperm.xlu1 %10730, %v7919_v44   ;;  %8983 = vperm.xlu0 %10729, %v8208_v13   ;;  %v18011_v44 = vld [vmem:[#allocation139_spill] sm:$0xff]  ;;  %v8268_v33 = vrot.slane %v15457_v25, %v13472_v24  ;;  %v8275_v13 = vrot.slane %v15459_v36, %v13472_v24  ;;  %v15661_v49 = vcombine.low %v6263_v38, %v6270_v61  ;;  %v9138_v25 = vadd.s32 4294967216, %v15378_v10 }
 0x44e   : > { %v7986_v3 = vrot.slane %v18011_v44, %v13472_v24  ;;  %v9203_v42 = vsel %vm9101_vm3, %v9202_v8, %v9198_v41  ;;  %v9207_v63 = vrot.slane %v18012_v4, %v15644_v30  ;;  %v15666_v51 = vsub.s32 %v9117_v17, %v17983_v27  ;;  %v15668_v16 = vpop.permute.xlu0 %8803  ;;  %v18014_v8 = vld [vmem:[#allocation141_spill] sm:$0xff] }
 0x44f   : > { %v8753_v40 = vpop.permute.xlu1 %8752  ;;  %v15671_v31 = vsub.s32 %v9124_v6, %v17983_v27  ;;  %v8013_v17 = vrot.slane %v18013_v45, %v13472_v24  ;;  %v8020_v41 = vrot.slane %v18014_v8, %v13472_v24  ;;  %v8276_v19 = vcombine.low %v8268_v33, %v8275_v13 }
 0x450   : > { %v9212_v36 = vrot.slane %v8753_v40, %v15647_v56  ;;  %v9208_v38 = vsel %vm9108_vm4, %v9207_v63, %v9203_v42  ;;  %v7987_v61 = vcombine.low %v7979_v26, %v7986_v3  ;;  %v8302_v6 = vrot.slane %v15461_v43, %v13472_v24  ;;  %v18016_v3 = vld [vmem:[#allocation156_spill] sm:$0xff] }
 0x451   : > { %8938 = vperm.xlu1 %10730, %v7953_v12   ;;  %8989 = vperm.xlu0 %10729, %v8242_v54   ;;  %v8309_v54 = vrot.slane %v15463_v35, %v13472_v24  ;;  %v18015_v44 = vrot.slane %v15081_v23, %v13456_v28  ;;  %v9173_v26 = vadd.s32 4294967176, %v15378_v10  ;;  %v9217_v4 = vrot.slane %v18016_v3, %v15666_v51  ;;  %v18017_v40 = vld [vmem:[#allocation196_spill] sm:$0xff] }
 0x452   : > { %v9213_v12 = vsel %vm9115_vm5, %v9212_v36, %v9208_v38  ;;  %v15693_v63 = vpop.permute.xlu0 %8809  ;;  %v15696_v43 = vsub.s32 %v9138_v25, %v17983_v27  ;;  %v9152_v35 = vadd.s32 4294967200, %v15378_v10  ;;  %v8021_v13 = vcombine.low %v8013_v17, %v8020_v41  ;;  %v18018_v38 = vld [vmem:[#allocation30_spill] sm:$0xff] }
 0x453   : > { %v15688_v42 = vcombine.low %v18015_v44, %v6284_v48  ;;  %v8759_v33 = vpop.permute.xlu1 %8758  ;;  %v9218_v48 = vsel %vm9122_vm6, %v9217_v4, %v9213_v12  ;;  %v8047_v36 = vrot.slane %v18017_v40, %v13472_v24  ;;  %v8054_v45 = vrot.slane %v18018_v38, %v13472_v24  ;;  %v18019_v44 = vld [vmem:[#allocation195_spill] sm:$0xff] }
 0x454   : > { %v9222_v23 = vrot.slane %v8759_v33, %v15671_v31  ;;  %v8310_v8 = vcombine.low %v8302_v6, %v8309_v54  ;;  %v8438_v25 = vrot.slane %v15520_v55, %v13472_v24  ;;  %v6319_v3 = vrot.slane %v18019_v44, %v13417_v29 }
 0x455   : > { %8944 = vperm.xlu1 %10730, %v7987_v61   ;;  %8995 = vperm.xlu0 %10729, %v8276_v19   ;;  %v8445_v19 = vrot.slane %v15522_v18, %v13472_v24  ;;  %v6326_v17 = vrot.slane %v18019_v44, %v13444_v52  ;;  %v9227_v41 = vrot.slane %v15465_v62, %v15476_v9  ;;  %v9166_v18 = vadd.s32 4294967184, %v15378_v10 }
 0x456   : > { %v9223_v61 = vsel %vm9129_vm7, %v9222_v23, %v9218_v48  ;;  %v15716_v12 = vpop.permute.xlu0 %8815  ;;  %v15719_v55 = vsub.s32 %v9152_v35, %v17983_v27  ;;  %v8055_v33 = vcombine.low %v8047_v36, %v8054_v45  ;;  %v18020_v23 = vld [vmem:[#allocation95_spill] sm:$0xff]  ;;  %v18021_v48 = vld [vmem:[#allocation140_spill] sm:$0xff]  ;;  %v8472_v35 = vrot.slane %v15566_v58, %v13472_v24 }
 0x457   : > { %v8765_v6 = vpop.permute.xlu1 %8764  ;;  %v9228_v4 = vsel %vm9136_vm8, %v9227_v41, %v9223_v61  ;;  %v8081_v62 = vrot.slane %v18020_v23, %v13472_v24  ;;  %v8088_v40 = vrot.slane %v18021_v48, %v13472_v24  ;;  %v8446_v38 = vcombine.low %v8438_v25, %v8445_v19 }
 0x458   : > { %v9232_v54 = vrot.slane %v8765_v6, %v15696_v43  ;;  %v8479_v10 = vrot.slane %v15568_v21, %v13472_v24  ;;  %v6340_v36 = vrot.slane %v18019_v44, %v13465_v7  ;;  %v15738_v45 = vsub.s32 %v9173_v26, %v17983_v27  ;;  %v18022_v26 = vld [vmem:[#allocation194_spill] sm:$0xff] }
 0x459   : > { %8950 = vperm.xlu1 %10730, %v8021_v13   ;;  %9001 = vperm.xlu0 %10729, %v8310_v8   ;;  %v6333_v8 = vrot.slane %v18019_v44, %v13456_v28  ;;  %v9237_v61 = vrot.slane %v15497_v47, %v15509_v34  ;;  %v15745_v58 = vsub.s32 %v9166_v18, %v17983_v27  ;;  %v18023_v47 = vld [vmem:[#allocation202_spill] sm:$0xff] }
 0x45a   : > { %v9233_v13 = vsel %vm9143_vm9, %v9232_v54, %v9228_v4  ;;  %v15742_v41 = vpop.permute.xlu0 %8821  ;;  %v8089_v44 = vcombine.low %v8081_v62, %v8088_v40  ;;  %v8115_v6 = vrot.slane %v18022_v26, %v13472_v24  ;;  %v8122_v54 = vrot.slane %v18023_v47, %v13472_v24 }
 0x45b   : > { %v8771_v25 = vpop.permute.xlu1 %8770  ;;  %v9238_v19 = vsel %vm9150_vm10, %v9237_v61, %v9233_v13  ;;  %v8506_v23 = vrot.slane %v15585_v2, %v13472_v24  ;;  %v8513_v27 = vrot.slane %v15587_v50, %v13472_v24  ;;  %v8566_v18 = vcombine.low %v6319_v3, %v6326_v17  ;;  %v18024_v2 = vld [vmem:[#allocation145_spill] sm:$0xff] }
 0x45c   : > { %v9242_v21 = vrot.slane %v8771_v25, %v15719_v55  ;;  %v8567_v48 = vcombine.low %v6333_v8, %v6340_v36  ;;  %v9247_v62 = vrot.slane %v15528_v53, %v15548_v5  ;;  %v9257_v50 = vrot.slane %v15562_v37, %v15738_v45  ;;  %v18025_v53 = vld [vmem:[#allocation68_spill] sm:$0xff]  ;;  %v18026_v37 = vld [vmem:[#allocation143_spill] sm:$0xff] }
 0x45d   : > { %8956 = vperm.xlu1 %10730, %v8055_v33   ;;  %9025 = vperm.xlu0 %10729, %v8446_v38   ;;  %v8480_v33 = vcombine.low %v8472_v35, %v8479_v10  ;;  %v8149_v35 = vrot.slane %v18024_v2, %v13472_v24  ;;  %v8123_v17 = vcombine.low %v8115_v6, %v8122_v54  ;;  %v18030_v2 = vld [vmem:[#allocation199_spill] sm:$0xff] }
 0x45e   : > { %v9243_v4 = vsel %vm9157_vm11, %v9242_v21, %v9238_v19  ;;  %v15760_v40 = vpop.permute.xlu0 %8827  ;;  %v8156_v10 = vrot.slane %v18025_v53, %v13472_v24  ;;  %v8514_v36 = vcombine.low %v8506_v23, %v8513_v27  ;;  %v8540_v61 = vrot.slane %v15661_v49, %v13472_v24 }
 0x45f   : > { %v8777_v13 = vpop.permute.xlu1 %8776  ;;  %v9248_v3 = vsel %vm9164_vm12, %v9247_v62, %v9243_v4  ;;  %v8547_v25 = vrot.slane %v15688_v42, %v13472_v24  ;;  %v6410_v21 = vrot.slane %v15093_v15, %v13444_v52  ;;  %v6375_v19 = vrot.slane %v18026_v37, %v13417_v29 }
 0x460   : > { %v9252_v38 = vrot.slane %v8777_v13, %v15745_v58  ;;  %v6389_v49 = vrot.slane %v18026_v37, %v13456_v28  ;;  %v6396_v42 = vrot.slane %v18026_v37, %v13465_v7  ;;  %v9266_v54 = vrot.slane %v15592_v20, %v15539_v57  ;;  %v18029_v13 = vld [vmem:[#allocation149_spill] sm:$0xff] }
 0x461   : > { %8962 = vperm.xlu1 %10730, %v8089_v44   ;;  %9031 = vperm.xlu0 %10729, %v8480_v33   ;;  %v6382_v44 = vrot.slane %v18026_v37, %v13444_v52  ;;  %v18027_v33 = vrot.slane %v15049_v0, %v13465_v7  ;;  %v18028_v23 = vrot.slane %v15049_v0, %v13456_v28 }
 0x462   : > { %v9253_v8 = vsel %vm9171_vm13, %v9252_v38, %v9248_v3  ;;  %v15784_v6 = vpop.permute.xlu0 %8833  ;;  %v8157_v62 = vcombine.low %v8149_v35, %v8156_v10  ;;  %v8183_v38 = vrot.slane %v18029_v13, %v13472_v24  ;;  %v8548_v20 = vcombine.low %v8540_v61, %v8547_v25  ;;  %v18034_v13 = vld [vmem:[#allocation144_spill] sm:$0xff] }
 0x463   : > { %v15782_v26 = vsel %vm9178_vm14, %v9257_v50, %v9253_v8  ;;  %v8783_v47 = vpop.permute.xlu1 %8782  ;;  %v8584_v27 = vcombine.low %v18028_v23, %v18027_v33  ;;  %v8190_v50 = vrot.slane %v18030_v2, %v13472_v24  ;;  %v8581_v53 = vrot.slane %v8567_v48, %v13472_v24 }
 0x464   : > { %v9262_v4 = vrot.slane %v8783_v47, %v15412_v1  ;;  %v18031_v0 = vrot.slane %v14953_v60, %v13444_v52  ;;  %v18032_v35 = vrot.slane %v14953_v60, %v13417_v29  ;;  %v6424_v61 = vrot.slane %v15093_v15, %v13465_v7 }
 0x465   : > { %8968 = vperm.xlu1 %10730, %v8123_v17   ;;  %9037 = vperm.xlu0 %10729, %v8514_v36   ;;  %v8574_v17 = vrot.slane %v8566_v18, %v13472_v24  ;;  %v6417_v36 = vrot.slane %v15093_v15, %v13456_v28  ;;  %v18033_v25 = vrot.slane %v15093_v15, %v13417_v29 }
 0x466   : > { %v9267_v3 = vsel %vm9080_vm0, %v9266_v54, %v9262_v4  ;;  %v15814_v10 = vcombine.low %v18032_v35, %v18031_v0  ;;  %v15820_v18 = vpop.permute.xlu0 %8839  ;;  %v8600_v47 = vcombine.low %v6375_v19, %v6382_v44  ;;  %v8601_v54 = vcombine.low %v6389_v49, %v6396_v42  ;;  %v18036_v49 = vld [vmem:[#allocation130_spill] sm:$0xff] }
 0x467   : > { %v8789_v48 = vpop.permute.xlu1 %8788  ;;  %v15825_v37 = vcombine.low %v18033_v25, %v6410_v21  ;;  %v9276_v33 = vrot.slane %v15620_v59, %v15616_v22  ;;  %v8191_v23 = vcombine.low %v8183_v38, %v8190_v50  ;;  %v8217_v2 = vrot.slane %v18034_v13, %v13472_v24  ;;  %v18037_v59 = vld [vmem:[#allocation197_spill] sm:$0xff] }
 0x468   : > { %v9271_v4 = vrot.slane %v8789_v48, %v15607_v46  ;;  %v8582_v15 = vcombine.low %v8574_v17, %v8581_v53  ;;  %v8591_v21 = vrot.slane %v15574_v11, %v13472_v24  ;;  %v8598_v19 = vrot.slane %v8584_v27, %v13472_v24 }
 0x469   : > { %8974 = vperm.xlu1 %10730, %v8157_v62   ;;  %9043 = vperm.xlu0 %10729, %v8548_v20   ;;  %v18035_v62 = vld [vmem:[#allocation146_spill] sm:$0xff]  ;;  %v8618_v44 = vcombine.low %v6417_v36, %v6424_v61  ;;  %v6459_v42 = vrot.slane %v18036_v49, %v13417_v29  ;;  %v6431_v38 = vrot.slane %v18037_v59, %v13417_v29  ;;  %v18038_v61 = vld [vmem:[#allocation151_spill] sm:$0xff] }
 0x46a   : > { %v8224_v0 = vrot.slane %v18035_v62, %v13472_v24  ;;  %v9272_v35 = vsel %vm9087_vm1, %v9271_v4, %v9267_v3  ;;  %v15842_v50 = vpop.permute.xlu0 %8845  ;;  %v6438_v3 = vrot.slane %v18037_v59, %v13444_v52  ;;  %v6445_v11 = vrot.slane %v18037_v59, %v13456_v28  ;;  %v18039_v4 = vld [vmem:[#allocation227_spill] sm:$0xff] }
 0x46b   : > { %v9277_v20 = vsel %vm9094_vm2, %v9276_v33, %v9272_v35  ;;  %v8795_v48 = vpop.permute.xlu1 %8794  ;;  %v6452_v27 = vrot.slane %v18037_v59, %v13465_v7  ;;  %v9286_v53 = vrot.slane %v15641_v32, %v15644_v30  ;;  %v8251_v25 = vrot.slane %v18038_v61, %v13472_v24 }
 0x46c   : > { %v9281_v17 = vrot.slane %v8795_v48, %v15623_v39  ;;  %v8225_v36 = vcombine.low %v8217_v2, %v8224_v0  ;;  %v8258_v33 = vrot.slane %v18039_v4, %v13472_v24  ;;  %v8599_v13 = vcombine.low %v8591_v21, %v8598_v19  ;;  %v18040_v21 = vld [vmem:[#allocation137_spill] sm:$0xff] }
 0x46d   : > { %8980 = vperm.xlu1 %10730, %v8191_v23   ;;  %9049 = vperm.xlu0 %10729, %v8582_v15   ;;  %v8608_v62 = vrot.slane %v8600_v47, %v13472_v24  ;;  %v8615_v35 = vrot.slane %v8601_v54, %v13472_v24  ;;  %v6466_v15 = vrot.slane %v18036_v49, %v13444_v52 }
 0x46e   : > { %v9282_v23 = vsel %vm9101_vm3, %v9281_v17, %v9277_v20  ;;  %v6473_v32 = vrot.slane %v18036_v49, %v13456_v28  ;;  %v6480_v2 = vrot.slane %v18036_v49, %v13465_v7  ;;  %v15867_v0 = vpop.permute.xlu0 %8851  ;;  %v6235_v47 = vrot.slane %v18040_v21, %v13417_v29  ;;  %v18041_v49 = vld [vmem:[#allocation77_spill] sm:$0xff] }
 0x46f   : > { %v9287_v59 = vsel %vm9108_vm4, %v9286_v53, %v9282_v23  ;;  %v8801_v20 = vpop.permute.xlu1 %8800  ;;  %v8634_v19 = vcombine.low %v6431_v38, %v6438_v3  ;;  %v8635_v54 = vcombine.low %v6445_v11, %v6452_v27  ;;  %v9296_v17 = vrot.slane %v15668_v16, %v15666_v51 }
 0x470   : > { %v9291_v48 = vrot.slane %v8801_v20, %v15647_v56  ;;  %v8259_v61 = vcombine.low %v8251_v25, %v8258_v33  ;;  %v8285_v4 = vrot.slane %v18041_v49, %v13472_v24  ;;  %v8616_v23 = vcombine.low %v8608_v62, %v8615_v35 }
 0x471   : > { %8986 = vperm.xlu1 %10730, %v8225_v36   ;;  %9052 = vperm.xlu0 %10729, %v8599_v13   ;;  %v18042_v36 = vld [vmem:[#allocation154_spill] sm:$0xff]  ;;  %v8625_v38 = vrot.slane %v15825_v37, %v13472_v24  ;;  %v8632_v3 = vrot.slane %v8618_v44, %v13472_v24  ;;  %v8651_v11 = vcombine.low %v6459_v42, %v6466_v15 }
 0x472   : > { %v8292_v8 = vrot.slane %v18042_v36, %v13472_v24  ;;  %v9292_v53 = vsel %vm9115_vm5, %v9291_v48, %v9287_v59  ;;  %v8652_v27 = vcombine.low %v6473_v32, %v6480_v2  ;;  %v18043_v13 = vld [vmem:[#allocation142_spill] sm:$0xff]  ;;  %v15885_v25 = vpop.permute.xlu0 %8857  ;;  %v9306_v42 = vrot.slane %v15693_v63, %v15476_v9  ;;  %v18044_v32 = vld [vmem:[#allocation215_spill] sm:$0xff] }
 0x473   : > { %v6487_v16 = vrot.slane %v18043_v13, %v13417_v29  ;;  %v9297_v33 = vsel %vm9122_vm6, %v9296_v17, %v9292_v53  ;;  %v8807_v20 = vpop.permute.xlu1 %8806  ;;  %v6494_v59 = vrot.slane %v18043_v13, %v13444_v52  ;;  %v6501_v62 = vrot.slane %v18043_v13, %v13456_v28 }
 0x474   : > { %v6508_v37 = vrot.slane %v18043_v13, %v13465_v7  ;;  %v9301_v44 = vrot.slane %v8807_v20, %v15671_v31  ;;  %v8293_v35 = vcombine.low %v8285_v4, %v8292_v8  ;;  %v8421_v15 = vrot.slane %v15469_v14, %v13472_v24  ;;  %v18047_v20 = vld [vmem:[#allocation159_spill] sm:$0xff] }
 0x475   : > { %8992 = vperm.xlu1 %10730, %v8259_v61   ;;  %9055 = vperm.xlu0 %10729, %v8616_v23   ;;  %v8428_v2 = vrot.slane %v18044_v32, %v13472_v24  ;;  %v8633_v17 = vcombine.low %v8625_v38, %v8632_v3  ;;  %v8642_v61 = vrot.slane %v8634_v19, %v13472_v24 }
 0x476   : > { %v9302_v48 = vsel %vm9129_vm7, %v9301_v44, %v9297_v33  ;;  %v8649_v49 = vrot.slane %v8635_v54, %v13472_v24  ;;  %v6242_v36 = vrot.slane %v18040_v21, %v13444_v52  ;;  %v6249_v63 = vrot.slane %v18040_v21, %v13456_v28  ;;  %v15910_v14 = vpop.permute.xlu0 %8863 }
 0x477   : > { %v6256_v8 = vrot.slane %v18040_v21, %v13465_v7  ;;  %v9307_v4 = vsel %vm9136_vm8, %v9306_v42, %v9302_v48  ;;  %v8813_v53 = vpop.permute.xlu1 %8812  ;;  %v18045_v19 = vrot.slane %v14953_v60, %v13465_v7  ;;  %v18046_v54 = vrot.slane %v14953_v60, %v13456_v28  ;;  %v18048_v42 = vld [vmem:[#allocation84_spill] sm:$0xff] }
 0x478   : > { %v8668_v38 = vcombine.low %v6487_v16, %v6494_v59  ;;  %v8669_v3 = vcombine.low %v6501_v62, %v6508_v37  ;;  %v9311_v13 = vrot.slane %v8813_v53, %v15696_v43  ;;  %v9316_v21 = vrot.slane %v15716_v12, %v15509_v34  ;;  %v18049_v37 = vld [vmem:[#allocation224_spill] sm:$0xff] }
 0x479   : > { %8998 = vperm.xlu1 %10730, %v8293_v35   ;;  %v8482_v23 = vcombine.low %v18046_v54, %v18045_v19  ;;  %9058 = vperm.xlu0 %10729, %v8633_v17   ;;  %v8429_v33 = vcombine.low %v8421_v15, %v8428_v2  ;;  %v8455_v44 = vrot.slane %v18047_v20, %v13472_v24 }
 0x47a   : > { %v8462_v35 = vrot.slane %v18048_v42, %v13472_v24  ;;  %v9312_v32 = vsel %vm9143_vm9, %v9311_v13, %v9307_v4  ;;  %v8650_v48 = vcombine.low %v8642_v61, %v8649_v49  ;;  %v8659_v60 = vrot.slane %v8651_v11, %v13472_v24  ;;  %v15931_v12 = vpop.permute.xlu0 %8869  ;;  %v18050_v13 = vld [vmem:[#allocation198_spill] sm:$0xff] }
 0x47b   : > { %v8666_v16 = vrot.slane %v8652_v27, %v13472_v24  ;;  %v8515_v59 = vcombine.low %v6235_v47, %v6242_v36  ;;  %v8516_v62 = vcombine.low %v6249_v63, %v6256_v8  ;;  %v6291_v17 = vrot.slane %v18049_v37, %v13417_v29  ;;  %v8819_v2 = vpop.permute.xlu1 %8818 }
 0x47c   : > { %v9317_v15 = vsel %vm9150_vm10, %v9316_v21, %v9312_v32  ;;  %v6298_v53 = vrot.slane %v18049_v37, %v13444_v52  ;;  %v6305_v61 = vrot.slane %v18049_v37, %v13456_v28  ;;  %v6312_v11 = vrot.slane %v18049_v37, %v13465_v7 }
 0x47d   : > { %9022 = vperm.xlu1 %10730, %v8429_v33   ;;  %9061 = vperm.xlu0 %10729, %v8650_v48   ;;  %v9321_v47 = vrot.slane %v8819_v2, %v15719_v55  ;;  %v9326_v27 = vrot.slane %v15742_v41, %v15548_v5  ;;  %v8463_v49 = vcombine.low %v8455_v44, %v8462_v35  ;;  %v18051_v2 = vld [vmem:[#allocation133_spill] sm:$0xff] }
 0x47e   : > { %v8489_v36 = vrot.slane %v15814_v10, %v13472_v24  ;;  %v8496_v63 = vrot.slane %v8482_v23, %v13472_v24  ;;  %v8667_v4 = vcombine.low %v8659_v60, %v8666_v16  ;;  %v8676_v19 = vrot.slane %v8668_v38, %v13472_v24  ;;  %v15955_v20 = vpop.permute.xlu0 %8875 }
 0x47f   : > { %v9322_v8 = vsel %vm9157_vm11, %v9321_v47, %v9317_v15  ;;  %v8683_v54 = vrot.slane %v8669_v3, %v13472_v24  ;;  %v5899_v21 = vrot.slane %v18050_v13, %v13417_v29  ;;  %v5906_v33 = vrot.slane %v18050_v13, %v13444_v52  ;;  %v8825_v23 = vpop.permute.xlu1 %8824 }
 0x480   : > { %v5913_v41 = vrot.slane %v18050_v13, %v13456_v28  ;;  %v9327_v10 = vsel %vm9164_vm12, %v9326_v27, %v9322_v8  ;;  %v5920_v38 = vrot.slane %v18050_v13, %v13465_v7  ;;  %v8549_v44 = vcombine.low %v6291_v17, %v6298_v53 }
 0x481   : > { %9028 = vperm.xlu1 %10730, %v8463_v49   ;;  %v8550_v3 = vcombine.low %v6305_v61, %v6312_v11  ;;  %9064 = vperm.xlu0 %10729, %v8667_v4   ;;  %v9331_v42 = vrot.slane %v8825_v23, %v15745_v58  ;;  %v9336_v35 = vrot.slane %v15760_v40, %v15738_v45 }
 0x482   : > { %v8497_v32 = vcombine.low %v8489_v36, %v8496_v63  ;;  %v8523_v48 = vrot.slane %v8515_v59, %v13472_v24  ;;  %v8530_v60 = vrot.slane %v8516_v62, %v13472_v24  ;;  %v8684_v37 = vcombine.low %v8676_v19, %v8683_v54  ;;  %v15973_v61 = vpop.permute.xlu0 %8881  ;;  %v18052_v19 = vld [vmem:[#allocation46_spill] sm:$0xff] }
 0x483   : > { %v9332_v16 = vsel %vm9171_vm13, %v9331_v42, %v9327_v10  ;;  %v8311_v15 = vcombine.low %v5899_v21, %v5906_v33  ;;  %v5927_v47 = vrot.slane %v18051_v2, %v13417_v29  ;;  %v5934_v17 = vrot.slane %v18051_v2, %v13444_v52  ;;  %v8831_v40 = vpop.permute.xlu1 %8830 }
 0x484   : > { %v15971_v53 = vsel %vm9178_vm14, %v9336_v35, %v9332_v16  ;;  %v5941_v59 = vrot.slane %v18051_v2, %v13456_v28  ;;  %v5948_v62 = vrot.slane %v18051_v2, %v13465_v7  ;;  %v9345_v11 = vrot.slane %v15784_v6, %v15539_v57  ;;  %v18053_v16 = vld [vmem:[#allocation200_spill] sm:$0xff] }
 0x485   : > { %9034 = vperm.xlu1 %10730, %v8497_v32   ;;  %9067 = vperm.xlu0 %10729, %v8684_v37   ;;  %v9341_v27 = vrot.slane %v8831_v40, %v15412_v1  ;;  %v8312_v49 = vcombine.low %v5913_v41, %v5920_v38  ;;  %v8531_v36 = vcombine.low %v8523_v48, %v8530_v60 }
 0x486   : > { %v8557_v63 = vrot.slane %v8549_v44, %v13472_v24  ;;  %v8564_v8 = vrot.slane %v8550_v3, %v13472_v24  ;;  %v5955_v54 = vrot.slane %v18052_v19, %v13417_v29  ;;  %v5962_v13 = vrot.slane %v18052_v19, %v13444_v52  ;;  %v15993_v33 = vpop.permute.xlu0 %8887 }
 0x487   : > { %v9346_v4 = vsel %vm9080_vm0, %v9345_v11, %v9341_v27  ;;  %v5969_v6 = vrot.slane %v18052_v19, %v13456_v28  ;;  %v5976_v21 = vrot.slane %v18052_v19, %v13465_v7  ;;  %v8837_v41 = vpop.permute.xlu1 %8836  ;;  %v8328_v10 = vcombine.low %v5927_v47, %v5934_v17 }
 0x488   : > { %v8329_v23 = vcombine.low %v5941_v59, %v5948_v62  ;;  %v9350_v38 = vrot.slane %v8837_v41, %v15607_v46  ;;  %v9355_v44 = vrot.slane %v15820_v18, %v15616_v22  ;;  %v8565_v3 = vcombine.low %v8557_v63, %v8564_v8 }
 0x489   : > { %9040 = vperm.xlu1 %10730, %v8531_v36   ;;  %v8319_v42 = vrot.slane %v8311_v15, %v13472_v24  ;;  %v8326_v35 = vrot.slane %v8312_v49, %v13472_v24  ;;  %v8345_v48 = vcombine.low %v5955_v54, %v5962_v13  ;;  %v8346_v60 = vcombine.low %v5969_v6, %v5976_v21  ;;  %v18054_v36 = vld [vmem:[#allocation120_spill] sm:$0xff] }
 0x48a   : > { %v9351_v32 = vsel %vm9087_vm1, %v9350_v38, %v9346_v4  ;;  %v5983_v37 = vrot.slane %v18053_v16, %v13417_v29  ;;  %v16003_v2 = vpop.permute.xlu0 %8893  ;;  %v5990_v18 = vrot.slane %v18053_v16, %v13444_v52  ;;  %v5997_v15 = vrot.slane %v18053_v16, %v13456_v28 }
 0x48b   : > { %v9356_v47 = vsel %vm9094_vm2, %v9355_v44, %v9351_v32  ;;  %v8843_v17 = vpop.permute.xlu1 %8842  ;;  %v6004_v40 = vrot.slane %v18053_v16, %v13465_v7  ;;  %v9365_v62 = vrot.slane %v15842_v50, %v15644_v30  ;;  %v8327_v11 = vcombine.low %v8319_v42, %v8326_v35  ;;  %v18055_v16 = vld [vmem:[#allocation92_spill] sm:$0xff] }
 0x48c   : > { %v9360_v59 = vrot.slane %v8843_v17, %v15623_v39  ;;  %v8336_v27 = vrot.slane %v8328_v10, %v13472_v24  ;;  %v8343_v49 = vrot.slane %v8329_v23, %v13472_v24  ;;  %v6011_v63 = vrot.slane %v18054_v36, %v13417_v29 }
 0x48d   : > { %9046 = vperm.xlu1 %10730, %v8565_v3   ;;  %v6018_v4 = vrot.slane %v18054_v36, %v13444_v52  ;;  %v6025_v19 = vrot.slane %v18054_v36, %v13456_v28  ;;  %v6032_v54 = vrot.slane %v18054_v36, %v13465_v7  ;;  %v8362_v21 = vcombine.low %v5983_v37, %v5990_v18 }
 0x48e   : > { %v9361_v8 = vsel %vm9101_vm3, %v9360_v59, %v9356_v47  ;;  %v16026_v50 = vpop.permute.xlu0 %8899  ;;  %v8363_v41 = vcombine.low %v5997_v15, %v6004_v40  ;;  %v9375_v23 = vrot.slane %v15867_v0, %v15666_v51  ;;  %v8344_v38 = vcombine.low %v8336_v27, %v8343_v49 }
 0x48f   : > { %v9366_v13 = vsel %vm9108_vm4, %v9365_v62, %v9361_v8  ;;  %v8849_v6 = vpop.permute.xlu1 %8848  ;;  %v8353_v44 = vrot.slane %v8345_v48, %v13472_v24  ;;  %v8360_v3 = vrot.slane %v8346_v60, %v13472_v24  ;;  %v8379_v35 = vcombine.low %v6011_v63, %v6018_v4 }
 0x490   : > { %v9370_v10 = vrot.slane %v8849_v6, %v15647_v56  ;;  %v8380_v32 = vcombine.low %v6025_v19, %v6032_v54  ;;  %v6039_v47 = vrot.slane %v18055_v16, %v13417_v29  ;;  %v6046_v0 = vrot.slane %v18055_v16, %v13444_v52 }
 0x491   : > { %9004 = vperm.xlu1 %10730, %v8327_v11   ;;  %v6053_v48 = vrot.slane %v18055_v16, %v13456_v28  ;;  %v6060_v60 = vrot.slane %v18055_v16, %v13465_v7  ;;  %v9385_v29 = vrot.slane %v15885_v25, %v15476_v9  ;;  %v8361_v40 = vcombine.low %v8353_v44, %v8360_v3 }
 0x492   : > { %v9371_v42 = vsel %vm9115_vm5, %v9370_v10, %v9366_v13  ;;  %v8370_v59 = vrot.slane %v8362_v21, %v13472_v24  ;;  %v8377_v62 = vrot.slane %v8363_v41, %v13472_v24  ;;  %v8396_v49 = vcombine.low %v6039_v47, %v6046_v0 }
 0x493   : > { %v16037_v17 = vpop.permute.xlu0 %8905  ;;  %v9376_v37 = vsel %vm9122_vm6, %v9375_v23, %v9371_v42  ;;  %v8855_v18 = vpop.permute.xlu1 %8854  ;;  %v8397_v7 = vcombine.low %v6053_v48, %v6060_v60  ;;  %v9395_v25 = vrot.slane %v15910_v14, %v15509_v34  ;;  %v8387_v8 = vrot.slane %v8379_v35, %v13472_v24 }
 0x494   : > { %v9380_v15 = vrot.slane %v8855_v18, %v15671_v31  ;;  %v8378_v63 = vcombine.low %v8370_v59, %v8377_v62  ;;  %v8394_v4 = vrot.slane %v8380_v32, %v13472_v24  ;;  %v9405_v41 = vrot.slane %v15931_v12, %v15548_v5 }
 0x495   : > { %9007 = vperm.xlu1 %10730, %v8344_v38   ;;  %v8404_v14 = vrot.slane %v8396_v49, %v13472_v24  ;;  %v8411_v23 = vrot.slane %v8397_v7, %v13472_v24  ;;  %v9415_v32 = vrot.slane %v15955_v20, %v15738_v45  ;;  %v9424_v0 = vrot.slane %v15973_v61, %v15539_v57 }
 0x496   : > { %v9381_v11 = vsel %vm9129_vm7, %v9380_v15, %v9376_v37  ;;  %v8395_v10 = vcombine.low %v8387_v8, %v8394_v4 }
 0x497   : > { %v16052_v27 = vpop.permute.xlu0 %8911  ;;  %v9386_v52 = vsel %vm9136_vm8, %v9385_v29, %v9381_v11  ;;  %v8861_v28 = vpop.permute.xlu1 %8860  ;;  %v8412_v16 = vcombine.low %v8404_v14, %v8411_v23 }
 0x498   : > { %v9390_v36 = vrot.slane %v8861_v28, %v15696_v43  ;;  %v9444_v28 = vrot.slane %v16003_v2, %v15644_v30  ;;  %v9474_v23 = vrot.slane %v16052_v27, %v15509_v34 }
 0x499   : > { %9010 = vperm.xlu1 %10730, %v8361_v40   ;;  %v9434_v40 = vrot.slane %v15993_v33, %v15616_v22 }
 0x49a   : > { %v9391_v19 = vsel %vm9143_vm9, %v9390_v36, %v9386_v52 }
 0x49b   : > { %v16061_v54 = vpop.permute.xlu0 %8917  ;;  %v9396_v13 = vsel %vm9150_vm10, %v9395_v25, %v9391_v19  ;;  %v8867_v6 = vpop.permute.xlu1 %8866 }
 0x49c   : > { %v9400_v21 = vrot.slane %v8867_v6, %v15719_v55  ;;  %v9464_v6 = vrot.slane %v16037_v17, %v15476_v9 }
 0x49d   : > { %9013 = vperm.xlu1 %10730, %v8378_v63   ;;  %v9454_v63 = vrot.slane %v16026_v50, %v15666_v51 }
 0x49e   : > { %v9401_v38 = vsel %vm9157_vm11, %v9400_v21, %v9396_v13 }
 0x49f   : > { %v9406_v3 = vsel %vm9164_vm12, %v9405_v41, %v9401_v38  ;;  %v8873_v42 = vpop.permute.xlu1 %8872 }
 0x4a0   : > { %v8924_v44 = vpop.permute.xlu0 %8923  ;;  %v9410_v35 = vrot.slane %v8873_v42, %v15745_v58 }
 0x4a1   : > { %9016 = vperm.xlu1 %10730, %v8395_v10  }
 0x4a2   : > { %v9411_v12 = vsel %vm9171_vm13, %v9410_v35, %v9406_v3 }
 0x4a3   : > { %v16076_v47 = vsel %vm9178_vm14, %v9415_v32, %v9411_v12  ;;  %v8879_v18 = vpop.permute.xlu1 %8878  ;;  %v9484_v32 = vrot.slane %v16061_v54, %v15548_v5 }
 0x4a4   : > { %v8930_v37 = vpop.permute.xlu0 %8929  ;;  %v9420_v48 = vrot.slane %v8879_v18, %v15412_v1 }
 0x4a5   : > { %9019 = vperm.xlu1 %10730, %v8412_v16   ;;  %v9503_v54 = vrot.slane %v8930_v37, %v15539_v57  ;;  %v18058_v37 = vld [vmem:[#allocation193_spill] sm:$0xff] }
 0x4a6   : > { %v9425_v60 = vsel %vm9080_vm0, %v9424_v0, %v9420_v48  ;;  %v9494_v48 = vrot.slane %v8924_v44, %v15738_v45  ;;  %v18056_v44 = vld [vmem:[#allocation138_spill] sm:$0xff] }
 0x4a7   : > { %v8885_v29 = vpop.permute.xlu1 %8884 }
 0x4a8   : > { %v8936_v15 = vpop.permute.xlu0 %8935  ;;  %v9429_v20 = vrot.slane %v8885_v29, %v15607_v46 }
 0x4aa   : > { %v9430_v59 = vsel %vm9087_vm1, %v9429_v20, %v9425_v60 }
 0x4ab   : > { %v9435_v11 = vsel %vm9094_vm2, %v9434_v40, %v9430_v59  ;;  %v8891_v52 = vpop.permute.xlu1 %8890 }
 0x4ac   : > { %v16086_v62 = vpop.permute.xlu0 %8941  ;;  %v9439_v61 = vrot.slane %v8891_v52, %v15623_v39 }
 0x4ae   : > { %v9440_v49 = vsel %vm9101_vm3, %v9439_v61, %v9435_v11 }
 0x4af   : > { %v9445_v36 = vsel %vm9108_vm4, %v9444_v28, %v9440_v49  ;;  %v8897_v33 = vpop.permute.xlu1 %8896  ;;  %v9079_v49 = vrot.slane %v18056_v44, %v15539_v57 }
 0x4b0   : > { %v16094_v7 = vpop.permute.xlu0 %8947  ;;  %v9449_v25 = vrot.slane %v8897_v33, %v15647_v56  ;;  %v18057_v33 = vld [vmem:[#allocation203_spill] sm:$0xff] }
 0x4b2   : > { %v9450_v8 = vsel %vm9115_vm5, %v9449_v25, %v9445_v36  ;;  %v9513_v36 = vrot.slane %v8936_v15, %v15616_v22  ;;  %v9086_v25 = vrot.slane %v18057_v33, %v15607_v46 }
 0x4b3   : > { %v9455_v19 = vsel %vm9122_vm6, %v9454_v63, %v9450_v8  ;;  %v9074_v8 = vrot.slane %v18058_v37, %v15412_v1  ;;  %v18065_v37 = vld [vmem:[#allocation158_spill] sm:$0xff] }
 0x4b4   : > { %v16101_v4 = vpop.permute.xlu0 %8953  ;;  %v8903_v13 = vpop.permute.xlu1 %8902 }
 0x4b5   : > { %v9459_v2 = vrot.slane %v8903_v13, %v15671_v31  ;;  %v9081_v15 = vsel %vm9080_vm0, %v9079_v49, %v9074_v8  ;;  %v9142_v8 = vrot.slane %v18065_v37, %v15696_v43 }
 0x4b7   : > { %v9460_v21 = vsel %vm9129_vm7, %v9459_v2, %v9455_v19  ;;  %v18059_v19 = vld [vmem:[#allocation71_spill] sm:$0xff] }
 0x4b8   : > { %v16108_v41 = vpop.permute.xlu0 %8959  ;;  %v9465_v10 = vsel %vm9136_vm8, %v9464_v6, %v9460_v21  ;;  %v8909_v14 = vpop.permute.xlu1 %8908  ;;  %v9093_v13 = vrot.slane %v18059_v19, %v15616_v22  ;;  %v18060_v21 = vld [vmem:[#allocation153_spill] sm:$0xff] }
 0x4b9   : > { %v9469_v50 = vrot.slane %v8909_v14, %v15696_v43 }
 0x4bb   : > { %v9470_v38 = vsel %vm9143_vm9, %v9469_v50, %v9465_v10  ;;  %v9100_v10 = vrot.slane %v18060_v21, %v15623_v39  ;;  %v18061_v50 = vld [vmem:[#allocation74_spill] sm:$0xff] }
 0x4bc   : > { %v16115_v3 = vpop.permute.xlu0 %8965  ;;  %v9475_v42 = vsel %vm9150_vm10, %v9474_v23, %v9470_v38  ;;  %v8915_v35 = vpop.permute.xlu1 %8914  ;;  %v9107_v23 = vrot.slane %v18061_v50, %v15644_v30  ;;  %v9523_v38 = vrot.slane %v16086_v62, %v15644_v30  ;;  %v18064_v62 = vld [vmem:[#allocation80_spill] sm:$0xff]  ;;  %v18067_v50 = vld [vmem:[#allocation210_spill] sm:$0xff] }
 0x4bd   : > { %v9479_v17 = vrot.slane %v8915_v35, %v15719_v55  ;;  %v9088_v35 = vsel %vm9087_vm1, %v9086_v25, %v9081_v15 }
 0x4bf   : > { %v9480_v16 = vsel %vm9157_vm11, %v9479_v17, %v9475_v42  ;;  %v18062_v17 = vld [vmem:[#allocation152_spill] sm:$0xff] }
 0x4c0   : > { %v16122_v12 = vpop.permute.xlu0 %8971  ;;  %v9485_v18 = vsel %vm9164_vm12, %v9484_v32, %v9480_v16  ;;  %v8921_v0 = vpop.permute.xlu1 %8920  ;;  %v9114_v32 = vrot.slane %v18062_v17, %v15647_v56 }
 0x4c1   : > { %v9489_v27 = vrot.slane %v8921_v0, %v15745_v58  ;;  %v18063_v0 = vld [vmem:[#allocation157_spill] sm:$0xff] }
 0x4c3   : > { %v9490_v60 = vsel %vm9171_vm13, %v9489_v27, %v9485_v18  ;;  %v9095_v18 = vsel %vm9094_vm2, %v9093_v13, %v9088_v35  ;;  %v9121_v27 = vrot.slane %v18063_v0, %v15666_v51  ;;  %v18068_v35 = vld [vmem:[#allocation147_spill] sm:$0xff] }
 0x4c4   : > { %v16129_v29 = vsel %vm9178_vm14, %v9494_v48, %v9490_v60  ;;  %v16131_v20 = vpop.permute.xlu0 %8977  ;;  %v8927_v40 = vpop.permute.xlu1 %8926  ;;  %v9149_v17 = vrot.slane %v18068_v35, %v15509_v34 }
 0x4c5   : > { %v9499_v59 = vrot.slane %v8927_v40, %v15412_v1  ;;  %v9102_v40 = vsel %vm9101_vm3, %v9100_v10, %v9095_v18 }
 0x4c7   : > { %v9504_v11 = vsel %vm9080_vm0, %v9503_v54, %v9499_v59  ;;  %v9128_v54 = vrot.slane %v18064_v62, %v15671_v31 }
 0x4c8   : > { %v16136_v52 = vpop.permute.xlu0 %8983  ;;  %v8933_v61 = vpop.permute.xlu1 %8932 }
 0x4c9   : > { %v9508_v28 = vrot.slane %v8933_v61, %v15607_v46  ;;  %v9533_v61 = vrot.slane %v16094_v7, %v15666_v51  ;;  %v18066_v7 = vld [vmem:[#allocation191_spill] sm:$0xff] }
 0x4ca   : > { %v9135_v13 = vrot.slane %v18066_v7, %v15476_v9 }
 0x4cb   : > { %v9509_v63 = vsel %vm9087_vm1, %v9508_v28, %v9504_v11  ;;  %v9109_v11 = vsel %vm9108_vm4, %v9107_v23, %v9102_v40  ;;  %v9156_v23 = vrot.slane %v18067_v50, %v15719_v55 }
 0x4cc   : > { %v9514_v2 = vsel %vm9094_vm2, %v9513_v36, %v9509_v63  ;;  %v8939_v6 = vpop.permute.xlu1 %8938  ;;  %v16158_v42 = vpop.permute.xlu0 %8989  ;;  %v9116_v28 = vsel %vm9115_vm5, %v9114_v32, %v9109_v11 }
 0x4cd   : > { %v9518_v14 = vrot.slane %v8939_v6, %v15623_v39  ;;  %v9123_v49 = vsel %vm9122_vm6, %v9121_v27, %v9116_v28 }
 0x4ce   : > { %v9130_v63 = vsel %vm9129_vm7, %v9128_v54, %v9123_v49  ;;  %v18070_v54 = vld [vmem:[#allocation201_spill] sm:$0xff] }
 0x4cf   : > { %v9519_v16 = vsel %vm9101_vm3, %v9518_v14, %v9514_v2  ;;  %v9543_v2 = vrot.slane %v16101_v4, %v15476_v9  ;;  %v9137_v21 = vsel %vm9136_vm8, %v9135_v13, %v9130_v63  ;;  %v9553_v4 = vrot.slane %v16108_v41, %v15509_v34  ;;  %v18071_v63 = vld [vmem:[#allocation226_spill] sm:$0xff] }
 0x4d0   : > { %v9524_v48 = vsel %vm9108_vm4, %v9523_v38, %v9519_v16  ;;  %v8945_v60 = vpop.permute.xlu1 %8944  ;;  %v16178_v36 = vpop.permute.xlu0 %8995  ;;  %v9144_v15 = vsel %vm9143_vm9, %v9142_v8, %v9137_v21  ;;  %v9563_v41 = vrot.slane %v16115_v3, %v15548_v5  ;;  %v9177_v37 = vrot.slane %v18071_v63, %v15738_v45 }
 0x4d1   : > { %v9528_v59 = vrot.slane %v8945_v60, %v15647_v56  ;;  %v9151_v18 = vsel %vm9150_vm10, %v9149_v17, %v9144_v15  ;;  %v18069_v60 = vld [vmem:[#allocation23_spill] sm:$0xff]  ;;  %v9573_v8 = vrot.slane %v16122_v12, %v15738_v45 }
 0x4d2   : > { %v9170_v40 = vrot.slane %v18069_v60, %v15745_v58 }
 0x4d3   : > { %v9529_v44 = vsel %vm9115_vm5, %v9528_v59, %v9524_v48  ;;  %v9158_v48 = vsel %vm9157_vm11, %v9156_v23, %v9151_v18  ;;  %v9163_v59 = vrot.slane %v18070_v54, %v15548_v5 }
 0x4d4   : > { %v9534_v33 = vsel %vm9122_vm6, %v9533_v61, %v9529_v44  ;;  %v8951_v25 = vpop.permute.xlu1 %8950  ;;  %v16200_v32 = vpop.permute.xlu0 %9001 }
 0x4d5   : > { %v9538_v19 = vrot.slane %v8951_v25, %v15671_v31  ;;  %v9165_v61 = vsel %vm9164_vm12, %v9163_v59, %v9158_v48 }
 0x4d7   : > { %v9539_v6 = vsel %vm9129_vm7, %v9538_v19, %v9534_v33  ;;  %v9172_v33 = vsel %vm9171_vm13, %v9170_v40, %v9165_v61 }
 0x4d8   : > { %v9544_v10 = vsel %vm9136_vm8, %v9543_v2, %v9539_v6  ;;  %v8957_v14 = vpop.permute.xlu1 %8956  ;;  %v9026_v28 = vpop.permute.xlu0 %9025  ;;  %v9179_v19 = vsel %vm9178_vm14, %v9177_v37, %v9172_v33 }
 0x4d9   : > { %v9548_v38 = vrot.slane %v8957_v14, %v15696_v43  ;;  %v16227_v2 = vsel %vm9733_vm15, %v16129_v29, %v9179_v19 }
 0x4db   : > { %v9549_v16 = vsel %vm9143_vm9, %v9548_v38, %v9544_v10 }
 0x4dc   : > { %v9554_v0 = vsel %vm9150_vm10, %v9553_v4, %v9549_v16  ;;  %v8963_v27 = vpop.permute.xlu1 %8962  ;;  %v9032_v21 = vpop.permute.xlu0 %9031  ;;  %v9661_v16 = vrot.slane %v9026_v28, %v15539_v57 }
 0x4dd   : > { %v9558_v62 = vrot.slane %v8963_v27, %v15719_v55  ;;  %v9671_v60 = vrot.slane %v9032_v21, %v15616_v22 }
 0x4df   : > { %v9559_v11 = vsel %vm9157_vm11, %v9558_v62, %v9554_v0 }
 0x4e0   : > { %v9564_v44 = vsel %vm9164_vm12, %v9563_v41, %v9559_v11  ;;  %v8969_v49 = vpop.permute.xlu1 %8968  ;;  %v9038_v14 = vpop.permute.xlu0 %9037 }
 0x4e1   : > { %v9568_v25 = vrot.slane %v8969_v49, %v15745_v58  ;;  %v9681_v11 = vrot.slane %v9038_v14, %v15644_v30 }
 0x4e3   : > { %v9569_v3 = vsel %vm9171_vm13, %v9568_v25, %v9564_v44 }
 0x4e4   : > { %v9574_v7 = vsel %vm9178_vm14, %v9573_v8, %v9569_v3  ;;  %v8975_v13 = vpop.permute.xlu1 %8974  ;;  %v9044_v23 = vpop.permute.xlu0 %9043  ;;  %v9582_v3 = vrot.slane %v16131_v20, %v15539_v57 }
 0x4e5   : > { %v16231_v6 = vsel %vm9733_vm15, %v9574_v7, %v15782_v26  ;;  %v9691_v33 = vrot.slane %v9044_v23, %v15666_v51  ;;  %v9578_v25 = vrot.slane %v8975_v13, %v15412_v1 }
 0x4e6   : > { %v9738_v12 = vcombine.low %v16227_v2, %v16231_v6 }
 0x4e7   : > { %v9583_v14 = vsel %vm9080_vm0, %v9582_v3, %v9578_v25 }
 0x4e8   : > { %v8981_v10 = vpop.permute.xlu1 %8980  ;;  %v9050_v35 = vpop.permute.xlu0 %9049  ;;  %v9746_v3 = vrot.slane %v9738_v12, %v13472_v24 }
 0x4e9   : > { %v9587_v37 = vrot.slane %v8981_v10, %v15607_v46 }
 0x4eb   : > { %v9588_v23 = vsel %vm9087_vm1, %v9587_v37, %v9583_v14 }
 0x4ec   : > { %v8987_v15 = vpop.permute.xlu1 %8986  ;;  %v9053_v18 = vpop.permute.xlu0 %9052 }
 0x4ed   : > { %v9706_v57 = vrot.slane %v9053_v18, %v15696_v43 }
 0x4f0   : > { %v8993_v50 = vpop.permute.xlu1 %8992  ;;  %v9056_v54 = vpop.permute.xlu0 %9055 }
 0x4f4   : > { %v8999_v38 = vpop.permute.xlu1 %8998  ;;  %v9059_v8 = vpop.permute.xlu0 %9058 }
 0x4f8   : > { %v9023_v17 = vpop.permute.xlu1 %9022  ;;  %v9062_v20 = vpop.permute.xlu0 %9061 }
 0x4f9   : > { %v9657_v4 = vrot.slane %v9023_v17, %v15412_v1  ;;  %v9701_v17 = vrot.slane %v9050_v35, %v15476_v9  ;;  %v9597_v1 = vrot.slane %v8987_v15, %v15623_v39  ;;  %v9711_v15 = vrot.slane %v9056_v54, %v15509_v34 }
 0x4fa   : > { %v9622_v54 = vrot.slane %v16200_v32, %v15476_v9 }
 0x4fb   : > { %v9662_v0 = vsel %vm9080_vm0, %v9661_v16, %v9657_v4  ;;  %v9607_v16 = vrot.slane %v8993_v50, %v15647_v56 }
 0x4fc   : > { %v9029_v29 = vpop.permute.xlu1 %9028 }
 0x4fd   : > { %v9666_v26 = vrot.slane %v9029_v29, %v15607_v46  ;;  %v9592_v46 = vrot.slane %v16136_v52, %v15616_v22 }
 0x4ff   : > { %v9667_v27 = vsel %vm9087_vm1, %v9666_v26, %v9662_v0  ;;  %v9593_v4 = vsel %vm9094_vm2, %v9592_v46, %v9588_v23  ;;  %v9716_v0 = vrot.slane %v9059_v8, %v15719_v55 }
 0x500   : > { %v9035_v48 = vpop.permute.xlu1 %9034  ;;  %v9672_v62 = vsel %vm9094_vm2, %v9671_v60, %v9667_v27  ;;  %v9598_v29 = vsel %vm9101_vm3, %v9597_v1, %v9593_v4  ;;  %v9617_v27 = vrot.slane %v8999_v38, %v15671_v31  ;;  %v9721_v60 = vrot.slane %v9062_v20, %v15548_v5 }
 0x501   : > { %v9676_v40 = vrot.slane %v9035_v48, %v15623_v39  ;;  %v9602_v39 = vrot.slane %v16158_v42, %v15644_v30  ;;  %v9065_v48 = vpop.permute.xlu0 %9064 }
 0x503   : > { %v9677_v59 = vsel %vm9101_vm3, %v9676_v40, %v9672_v62  ;;  %v9603_v52 = vsel %vm9108_vm4, %v9602_v39, %v9598_v29 }
 0x504   : > { %v9041_v41 = vpop.permute.xlu1 %9040  ;;  %v9682_v28 = vsel %vm9108_vm4, %v9681_v11, %v9677_v59  ;;  %v9608_v18 = vsel %vm9115_vm5, %v9607_v16, %v9603_v52 }
 0x505   : > { %v9686_v61 = vrot.slane %v9041_v41, %v15647_v56  ;;  %v9612_v56 = vrot.slane %v16178_v36, %v15666_v51  ;;  %v9726_v51 = vrot.slane %v9065_v48, %v15745_v58  ;;  %v9068_v36 = vpop.permute.xlu0 %9067 }
 0x507   : > { %v9687_v44 = vsel %vm9115_vm5, %v9686_v61, %v9682_v28  ;;  %v9613_v42 = vsel %vm9122_vm6, %v9612_v56, %v9608_v18 }
 0x508   : > { %v9047_v49 = vpop.permute.xlu1 %9046  ;;  %v9692_v19 = vsel %vm9122_vm6, %v9691_v33, %v9687_v44  ;;  %v9618_v40 = vsel %vm9129_vm7, %v9617_v27, %v9613_v42 }
 0x509   : > { %v9696_v63 = vrot.slane %v9047_v49, %v15671_v31  ;;  %v9623_v11 = vsel %vm9136_vm8, %v9622_v54, %v9618_v40 }
 0x50b   : > { %v9697_v7 = vsel %vm9129_vm7, %v9696_v63, %v9692_v19 }
 0x50c   : > { %v9005_v21 = vpop.permute.xlu1 %9004  ;;  %v9702_v13 = vsel %vm9136_vm8, %v9701_v17, %v9697_v7  ;;  %v2540_v7 = vld [vmem:[#allocation2] sm:$0xff] }
 0x50d   : > { %v9707_v35 = vsel %vm9143_vm9, %v9706_v57, %v9702_v13  ;;  %v9627_v62 = vrot.slane %v9005_v21, %v15696_v43 }
 0x50e   : > { %v9712_v26 = vsel %vm9150_vm10, %v9711_v15, %v9707_v35 }
 0x50f   : > { %v9717_v50 = vsel %vm9157_vm11, %v9716_v0, %v9712_v26  ;;  %v9628_v28 = vsel %vm9143_vm9, %v9627_v62, %v9623_v11 }
 0x510   : > { %v9008_v10 = vpop.permute.xlu1 %9007  ;;  %v9722_v38 = vsel %vm9164_vm12, %v9721_v60, %v9717_v50 }
 0x511   : > { %v9632_v31 = vrot.slane %v9008_v10, %v15509_v34  ;;  %v9727_v9 = vsel %vm9171_vm13, %v9726_v51, %v9722_v38  ;;  %v9731_v34 = vrot.slane %v9068_v36, %v15738_v45 }
 0x513   : > { %v9633_v32 = vsel %vm9150_vm10, %v9632_v31, %v9628_v28  ;;  %v9732_v33 = vsel %vm9178_vm14, %v9731_v34, %v9727_v9 }
 0x514   : > { %v9011_v22 = vpop.permute.xlu1 %9010 }
 0x515   : > { %v9637_v59 = vrot.slane %v9011_v22, %v15719_v55 }
 0x517   : > { %v9638_v44 = vsel %vm9157_vm11, %v9637_v59, %v9633_v32 }
 0x518   : > { %v9014_v30 = vpop.permute.xlu1 %9013 }
 0x519   : > { %v9642_v61 = vrot.slane %v9014_v30, %v15548_v5 }
 0x51b   : > { %v9643_v55 = vsel %vm9164_vm12, %v9642_v61, %v9638_v44 }
 0x51c   : > { %v9017_v41 = vpop.permute.xlu1 %9016 }
 0x51d   : > { %v9647_v43 = vrot.slane %v9017_v41, %v15745_v58  ;;  %v9737_v58 = vsel %vm9733_vm15, %v9732_v33, %v16076_v47 }
 0x51f   : > { %v9648_v5 = vsel %vm9171_vm13, %v9647_v43, %v9643_v55 }
 0x520   : > { %v9020_v49 = vpop.permute.xlu1 %9019 }
 0x521   : > { %v9652_v25 = vrot.slane %v9020_v49, %v15738_v45 }
 0x523   : > { %v9653_v63 = vsel %vm9178_vm14, %v9652_v25, %v9648_v5 }
 0x524   : > { %v9736_v37 = vsel %vm9733_vm15, %v9653_v63, %v15971_v53 }
 0x525   : > { %v9739_v8 = vcombine.low %v9736_v37, %v9737_v58 }
 0x527   : > { %v9753_v19 = vrot.slane %v9739_v8, %v13472_v24 }
 0x529   : > { %v9754_v45 = vcombine.low %v9746_v3, %v9753_v19  ;;  %9761 = sbr.rel (%p10511_p11) target bundleno = 2075 (0x81b), region = 101 }
 0x52b   : > { %v9756_v21 = vadd.f32 %v9754_v45, %v2540_v7 }
 0x52d   : > { %9757 = vst [vmem:[#allocation2] sm:$0xff] %v9756_v21 }
 0x52e   : > { %v10731_v53 = vld [vmem:[%s11123_s18 + $0x78] sm:$0xff]   ;;  %v10735_v12 = vld [vmem:[%s11123_s18 + $0x70] sm:$0xff]   ;;  %v10739_v1 = vld [vmem:[%s11123_s18 + $0x68] sm:$0xff]   ;;  %v10944_v3 = vmov 0   ;;  %vm10279_vm0 = vcmask 1041408  }
 0x52f   : > { %v10732_v47 = vld [vmem:[%s11123_s18 + $0xf8] sm:$0xff]   ;;  %10572 = vmatprep.subr.bf16.mxu0 %v10731_v53  ;;  %v10736_v14 = vld [vmem:[%s11123_s18 + $0xf0] sm:$0xff]   ;;  %v10740_v46 = vld [vmem:[%s11123_s18 + $0xe8] sm:$0xff]  }
 0x530   : > { %v10733_v2 = vld [vmem:[%s11123_s18 + $0x38] sm:$0xff]   ;;  %10594 = vmatprep.subr.bf16.mxu1 %v10732_v47  ;;  %v10737_v17 = vld [vmem:[%s11123_s18 + $0x30] sm:$0xff]   ;;  %v10741_v13 = vld [vmem:[%s11123_s18 + $0x28] sm:$0xff]  }
 0x531   : > { %v10734_v6 = vld [vmem:[%s11123_s18 + $0xb8] sm:$0xff]   ;;  %10573 = vmatpush3.bf16.msra.mxu0 %v10733_v2  ;;  %v10738_v23 = vld [vmem:[%s11123_s18 + $0xb0] sm:$0xff]   ;;  %v10742_v57 = vld [vmem:[%s11123_s18 + $0xa8] sm:$0xff]  }
 0x532   : > { %10595 = vmatpush3.bf16.msra.mxu1 %v10734_v6  ;;  %10574 = vmatprep.subr.bf16.mxu0 %v10735_v12  ;;  %v10743_v20 = vld [vmem:[%s11123_s18 + $0x60] sm:$0xff]   ;;  %v10747_v16 = vld [vmem:[%s11123_s18 + $0x58] sm:$0xff]   ;;  %v10751_v22 = vld [vmem:[%s11123_s18 + $0x50] sm:$0xff]  }
 0x533   : > { %10596 = vmatprep.subr.bf16.mxu1 %v10736_v14  ;;  %v10744_v10 = vld [vmem:[%s11123_s18 + $0xe0] sm:$0xff]   ;;  %v10748_v35 = vld [vmem:[%s11123_s18 + $0xd8] sm:$0xff]   ;;  %v10752_v52 = vld [vmem:[%s11123_s18 + $0xd0] sm:$0xff]  }
 0x534   : > { %v10745_v4 = vld [vmem:[%s11123_s18 + $0x20] sm:$0xff]   ;;  %v10749_v39 = vld [vmem:[%s11123_s18 + $0x18] sm:$0xff]   ;;  %v10753_v26 = vld [vmem:[%s11123_s18 + $0x10] sm:$0xff]  }
 0x535   : > { %10575 = vmatpush3.bf16.msra.mxu0 %v10737_v17  ;;  %v10746_v29 = vld [vmem:[%s11123_s18 + $0xa0] sm:$0xff]   ;;  %v10750_v15 = vld [vmem:[%s11123_s18 + $0x98] sm:$0xff]   ;;  %v10754_v18 = vld [vmem:[%s11123_s18 + $0x90] sm:$0xff]  }
 0x536   : > { %10597 = vmatpush3.bf16.msra.mxu1 %v10738_v23  ;;  %10576 = vmatprep.subr.bf16.mxu0 %v10739_v1  ;;  %v10755_v0 = vld [vmem:[%s11123_s18 + $0x48] sm:$0xff]   ;;  %v10759_v50 = vld [vmem:[%s11123_s18 + $0x40] sm:$0xff]   ;;  %v10765_v54 = vld [vmem:[%s11133_s29 + $0x74] ss:$8 sps:$4 sm:$0xff]  }
 0x537   : > { %10598 = vmatprep.subr.bf16.mxu1 %v10740_v46  ;;  %v10756_v27 = vld [vmem:[%s11123_s18 + $0xc8] sm:$0xff]   ;;  %v10760_v30 = vld [vmem:[%s11123_s18 + $0xc0] sm:$0xff]   ;;  %v10763_v61 = vld [vmem:[%s11133_s29 + $0x70] ss:$8 sps:$4 sm:$0xff]  }
 0x538   : > { %v10757_v48 = vld [vmem:[%s11123_s18 + $0x8] sm:$0xff]   ;;  %v10761_v42 = vld [vmem:[%s11123_s18] sm:$0xff]   ;;  %v10769_v32 = vld [vmem:[%s11133_s29 + $0x50] ss:$8 sps:$4 sm:$0xff]  }
 0x539   : > { %10577 = vmatpush3.bf16.msra.mxu0 %v10741_v13  ;;  %v10758_v56 = vld [vmem:[%s11123_s18 + $0x88] sm:$0xff]   ;;  %v10762_v60 = vld [vmem:[%s11123_s18 + $0x80] sm:$0xff]   ;;  %v10777_v55 = vld [vmem:[%s11133_s29 + $0x34] ss:$8 sps:$4 sm:$0xff]  }
 0x53a   : > { %10599 = vmatpush3.bf16.msra.mxu1 %v10742_v57  ;;  %10578 = vmatprep.subr.bf16.mxu0 %v10743_v20  ;;  %v9762_v40 = vld [vmem:[#allocation2] sm:$0xff]  ;;  %v10775_v33 = vld [vmem:[%s11133_s29 + $0x30] ss:$8 sps:$4 sm:$0xff]   ;;  %v10783_v63 = vld [vmem:[%s11133_s29 + $0x14] ss:$8 sps:$4 sm:$0xff]  }
 0x53b   : > { %10600 = vmatprep.subr.bf16.mxu1 %v10744_v10  ;;  %v9763_v62 = vmul.f32 0.00390625, %v9762_v40  ;;  %v10768_v43 = vld [vmem:[%s11133_s29 + $0x64] ss:$8 sps:$4 sm:$0xff]   ;;  %v10766_v34 = vld [vmem:[%s11133_s29 + $0x60] ss:$8 sps:$4 sm:$0xff]  }
 0x53c   : > { %v10774_v44 = vld [vmem:[%s11133_s29 + $0x44] ss:$8 sps:$4 sm:$0xff]   ;;  %v10772_v49 = vld [vmem:[%s11133_s29 + $0x40] ss:$8 sps:$4 sm:$0xff]   ;;  %v10781_v58 = vld [vmem:[%s11133_s29 + $0x10] ss:$8 sps:$4 sm:$0xff]  }
 0x53d   : > { %10579 = vmatpush3.bf16.msra.mxu0 %v10745_v4  ;;  %v9772_v31 = vrot.slane %v9763_v62, %v13472_v24  ;;  %v9765_v38 = vcombine.high %v9763_v62, %v9763_v62  ;;  %v10780_v25 = vld [vmem:[%s11133_s29 + $0x24] ss:$8 sps:$4 sm:$0xff]   ;;  %v10778_v5 = vld [vmem:[%s11133_s29 + $0x20] ss:$8 sps:$4 sm:$0xff]   ;;  %v10294_v20 = vld [vmem:[#allocation6] sm:$0x3] }
 0x53e   : > { %10601 = vmatpush3.bf16.msra.mxu1 %v10746_v29  ;;  %10580 = vmatprep.subr.bf16.mxu0 %v10747_v16  ;;  %v10786_v37 = vld [vmem:[%s11133_s29 + $0x4] ss:$8 sps:$4 sm:$0xff]   ;;  %v10784_v8 = vld [vmem:[%s11133_s29] ss:$8 sps:$4 sm:$0xff]  }
 0x53f   : > { %10602 = vmatprep.subr.bf16.mxu1 %v10748_v35  ;;  %v9780_v51 = vcombine.high %v9772_v31, %v9772_v31  ;;  %v9779_v36 = vrot.slane %v9765_v38, %v13472_v24  ;;  %v9786_v59 = vpack.c.bf16 %v9772_v31, %v9772_v31  ;;  %v10771_v24 = vld [vmem:[%s11133_s29 + $0x54] ss:$8 sps:$4 sm:$0xff]   ;;  %v10512_v45 = vld [vmem:[%s445_s12] ss:$0 sm:$0xff] }
 0x540   : > { %v10561_v13 = vld [vmem:[%s453_s30] ss:$0 sm:$0xff] }
 0x541   : > { %10581 = vmatpush3.bf16.msra.mxu0 %v10749_v39  ;;  %v9787_v41 = vpack.c.bf16 %v9780_v51, %v9780_v51  ;;  %v9781_v11 = vcombine.high %v9779_v36, %v9779_v36  ;;  %v9788_v28 = vpack.c.bf16 %v9779_v36, %v9779_v36 }
 0x542   : > { %10603 = vmatpush3.bf16.msra.mxu1 %v10750_v15  ;;  %10582 = vmatprep.subr.bf16.mxu0 %v10751_v22 }
 0x543   : > { %10604 = vmatprep.subr.bf16.mxu1 %v10752_v52  ;;  %10085 = vmatprep.mubr.bf16.mxu0 %v9787_v41  ;;  %v9789_v9 = vpack.c.bf16 %v9781_v11, %v9781_v11 }
 0x545   : > { %10583 = vmatpush3.bf16.msra.mxu0 %v10753_v26  ;;  %10125 = vmatprep.mubr.bf16.mxu1 %v9789_v9 }
 0x546   : > { %10605 = vmatpush3.bf16.msra.mxu1 %v10754_v18  ;;  %10584 = vmatprep.subr.bf16.mxu0 %v10755_v0 }
 0x547   : > { %10606 = vmatprep.subr.bf16.mxu1 %v10756_v27 }
 0x549   : > { %10585 = vmatpush3.bf16.msra.mxu0 %v10757_v48 }
 0x54a   : > { %10607 = vmatpush3.bf16.msra.mxu1 %v10758_v56  ;;  %10586 = vmatprep.subr.bf16.mxu0 %v10759_v50 }
 0x54b   : > { %10608 = vmatprep.subr.bf16.mxu1 %v10760_v30 }
 0x54d   : > { %10587 = vmatpush3.bf16.msra.mxu0 %v10761_v42 }
 0x54e   : > { %10609 = vmatpush3.bf16.msra.mxu1 %v10762_v60  ;;  %10230 = vmatprep.subr.bf16.mxu0 %v10765_v54 }
 0x550   : > { %10086 = vmatmul.mubr.bf16.vlgmr.msra.gmra.mxu0 %v9786_v59 }
 0x551   : > { %10231 = vmatpush1.bf16.msra.mxu0 %v10763_v61  ;;  %10126 = vmatmul.mubr.bf16.vlgmr.msra.gmra.mxu1 %v9788_v28 }
 0x552   : > { %10232 = vmatprep.subr.bf16.mxu0 %v10768_v43  ;;  %10262 = vmatprep.mubr.bf16.mxu0 %v10944_v3 }
 0x555   : > { %10233 = vmatpush1.bf16.msra.mxu0 %v10766_v34 }
 0x556   : > { %10234 = vmatprep.subr.bf16.mxu0 %v10771_v24 }
 0x559   : > { %10235 = vmatpush1.bf16.msra.mxu0 %v10769_v32 }
 0x55a   : > { %10236 = vmatprep.subr.bf16.mxu0 %v10774_v44 }
 0x55d   : > { %10237 = vmatpush1.bf16.msra.mxu0 %v10772_v49 }
 0x55e   : > { %10238 = vmatprep.subr.bf16.mxu0 %v10777_v55 }
 0x561   : > { %10239 = vmatpush1.bf16.msra.mxu0 %v10775_v33 }
 0x562   : > { %10240 = vmatprep.subr.bf16.mxu0 %v10780_v25 }
 0x565   : > { %10241 = vmatpush1.bf16.msra.mxu0 %v10778_v5 }
 0x566   : > { %10242 = vmatprep.subr.bf16.mxu0 %v10783_v63 }
 0x569   : > { %10243 = vmatpush1.bf16.msra.mxu0 %v10781_v58 }
 0x56a   : > { %10244 = vmatprep.subr.bf16.mxu0 %v10786_v37 }
 0x56d   : > { %10245 = vmatpush1.bf16.msra.mxu0 %v10784_v8 }
 0x610   : > { %v10588_v19 = vpop.f32.mrf.mxu0 }
 0x611   : > { %v10610_v7 = vpop.f32.mrf.mxu1 }
 0x612   : > { %v10589_v21 = vpop.f32.mrf.mxu0 }
 0x613   : > { %v10590_v53 = vadd.f32 %v10589_v21, %v10588_v19  ;;  %v10611_v47 = vpop.f32.mrf.mxu1 }
 0x614   : > { %v10591_v2 = vpop.f32.mrf.mxu0  ;;  %v10612_v12 = vadd.f32 %v10611_v47, %v10610_v7 }
 0x615   : > { %v10088_v6 = vadd.f32 %v10590_v53, %v10512_v45  ;;  %v10613_v14 = vpop.f32.mrf.mxu1 }
 0x616   : > { %v10592_v17 = vpop.f32.mrf.mxu0 }
 0x617   : > { %v10128_v23 = vadd.f32 %v10612_v12, %v10088_v6  ;;  %v10614_v1 = vpop.f32.mrf.mxu1 }
 0x619   : > { %v10133_v46 = vpack.c.bf16 %v10128_v23, %v10128_v23 }
 0x61b   : > { %10263 = vmatmul.mubr.bf16.vlgmr.msra.gmra.mxu0 %v10133_v46 }
 0x6db   : > { %v10264_v57 = vpop.f32.mrf.mxu0 }
 0x6dc   : > { %v10278_v10 = vadd.f32 %v10561_v13, %v10264_v57 }
 0x6dd   : > { %v10266_v4 = vpop.f32.mrf.mxu0 }
 0x6de   : > { %v10295_v29 = vadd.f32 %v10294_v20, %v10266_v4  ;;  %v10280_v16 = vsel %vm10279_vm0, %v10278_v10, -inf }
 0x6df   : > { %10281 = vmax.xlane.f32.xlu0 %v10280_v16  ;;  %v10268_v35 = vpop.f32.mrf.mxu0 }
 0x6e0   : > { %10296 = vst [vmem:[#allocation6] sm:$0x3] %v10295_v29 }
 0x6e1   : > { %v10269_v39 = vpop.f32.mrf.mxu0 }
 0x768   : > { %v10282_v15 = vpop.xlane.xlu0 %10281 }
 0x769   : > { %v10283_v22 = vsub.f32 %v10278_v10, %v10282_v15 }
 0x76b   : > { %v10284_v52 = vmul.f32 1.442695, %v10283_v22 }
 0x76d   : > { %10787 = vpow2.f32 %v10284_v52 }
 0x77a   : > { %v10788_v26 = vpop.eup %10787 }
 0x77b   : > { %v10286_v18 = vsel %vm10279_vm0, %v10788_v26, 0.0 }
 0x77c   : > { %10287 = vadd.xlane.f32.xlu0 %v10286_v18 }
 0x805   : > { %v10288_v0 = vpop.xlane.xlu0 %10287 }
 0x806   : > { %10789 = vrcp.f32 %v10288_v0 }
 0x813   : > { %v10790_v27 = vpop.eup %10789 }
 0x814   : > { %v10290_v48 = vmul.f32 %v10790_v27, %v10788_v26 }
 0x816   : > { %v10291_v56 = vmax.f32 %v10290_v48, 1e-07 }
 0x818   : > { %v10292_v50 = vmin.f32 %v10291_v56, 0.9999999 }
 0x81a   : > { %10293 = vst [vmem:[%s430_s26] sm:$0x3] %v10292_v50 }
 0x81b PF: > { %p10297_p13 = scmp.eq.s32.totalorder %s10919_s11, 1 }
 0x81d   : > { %p10298_p0 = pnand %p10297_p13, %p9758_p10 }
 0x81f   : > { %10301 = sbr.rel (%p10298_p0) target bundleno = 2404 (0x964), region = 105 }
 0x824   : > { %v10302_v30 = vld [vmem:[#allocation6] sm:$0x3]  ;;  %v10562_v42 = vld [vmem:[%s16451_s6] ss:$0 sm:$0xff]  ;;  %vm10311_vm1 = vcmask 1041408  }
 0x825   : > { %v10310_v60 = vadd.f32 %v10562_v42, %v10302_v30 }
 0x827   : > { %v10312_v40 = vsel %vm10311_vm1, %v10310_v60, -inf }
 0x828   : > { %10313 = vmax.xlane.f32.xlu0 %v10312_v40 }
 0x8b1   : > { %v10314_v62 = vpop.xlane.xlu0 %10313 }
 0x8b2   : > { %v10315_v54 = vsub.f32 %v10310_v60, %v10314_v62 }
 0x8b4   : > { %v10316_v31 = vmul.f32 1.442695, %v10315_v54 }
 0x8b6   : > { %10791 = vpow2.f32 %v10316_v31 }
 0x8c3   : > { %v10792_v38 = vpop.eup %10791 }
 0x8c4   : > { %v10318_v51 = vsel %vm10311_vm1, %v10792_v38, 0.0 }
 0x8c5   : > { %10319 = vadd.xlane.f32.xlu0 %v10318_v51 }
 0x94e   : > { %v10320_v36 = vpop.xlane.xlu0 %10319 }
 0x94f   : > { %10793 = vrcp.f32 %v10320_v36 }
 0x95c   : > { %v10794_v59 = vpop.eup %10793 }
 0x95d   : > { %v10322_v41 = vmul.f32 %v10794_v59, %v10792_v38 }
 0x95f   : > { %v10323_v11 = vmax.f32 %v10322_v41, 1e-07 }
 0x961   : > { %v10324_v61 = vmin.f32 %v10323_v11, 0.9999999 }
 0x963   : > { %10325 = vst [vmem:[#allocation6] sm:$0x3] %v10324_v61 }
 0x964 PF: > { %s10564_s10 = sshll.u32 %s10919_s11, 5  ;;  %s10340_s18 = sshll.u32 %s430_s26, 4  ;;  %s10341_s18 = int_to_ptr.vmem [resolvable:$true] %s10340_s18 }
 0x965   : > { %s10338_s23 = scalar_lea.hbm %s16452_s7, %s10564_s10  ;;  %s18072_s21 = sand.u32 1, %s10899_s28  }
 0x966   : > { %s10327_s16 = scalar_lea.sflag [#allocation5], %s18072_s21  ;;  %s10795_s20 = scalar_lea.vmem %s10341_s18, 32 }
 0x967   : > { %p10796_p1 = scmp.ne.s32.totalorder %s10341_s18, %s10795_s20  ;;  %s10945_s22 = smov [#allocation4]  }
 0x968   : > { %s10799_s19 = sshll.u32 %s10945_s22, 4  ;;  %s10800_s19 = int_to_ptr.vmem [resolvable:$false] %s10799_s19 }
 0x969   : > { %p10797_p2 = pnand %p10796_p1, %p11070_p7  ;;  %s10801_s27 = scalar_lea.vmem %s10800_s19, 64 }
 0x96a   : > { %p10802_p4 = scmp.lt.s32.totalorder %s10341_s18, %s10800_s19  ;;  %p10803_p5 = scmp.lt.s32.totalorder %s10801_s27, %s10795_s20 }
 0x96b   : > { %p10798_p3 = pneg %p10797_p2 }
 0x96c   : > { %p10804_p8 = por %p10803_p5, %p10802_p4 }
 0x96e   : > { %p10805_p9 = pnand %p10804_p8, %p10798_p3 }
 0x970   : > { %10808 = shalt.err (!%p10805_p9)
}
 0x971   : > { %s10809_s11 = scalar_lea.hbm %s10338_s23, 32  ;;  %s10813_s25 = scalar_lea.hbm %s16452_s7, 64 }
 0x972   : > { %p10810_p10 = scmp.ne.s32.totalorder %s10338_s23, %s10809_s11  ;;  %p10814_p0 = scmp.lt.s32.totalorder %s10338_s23, %s16452_s7 }
 0x973   : > { %p10815_p1 = scmp.lt.s32.totalorder %s10813_s25, %s10809_s11 }
 0x974   : > { %p10811_p11 = pnand %p10810_p10, %p11070_p7 }
 0x975   : > { %p10816_p2 = por %p10815_p1, %p10814_p0 }
 0x976   : > { %p10812_p13 = pneg %p10811_p11 }
 0x978   : > { %p10817_p12 = pnand %p10816_p2, %p10812_p13 }
 0x97a   : > { %10820 = shalt.err (!%p10817_p12)
}
 0x97b   : > { %10616 = dma.vmem_to_hbm [thread:$0]  (%p11070_p7), %s10341_s18, 32, %s10338_s23, %s10327_s16  }
 0x97c   : > { %s10946_s29 = smov [#allocation6]  }
 0x97d   : > { %s10351_s9 = sshll.u32 %s10946_s29, 4  ;;  %s10352_s9 = int_to_ptr.vmem [resolvable:$true] %s10351_s9 }
 0x97e   : > { %s10821_s12 = scalar_lea.vmem %s10352_s9, 32  ;;  %p10828_p8 = scmp.lt.s32.totalorder %s10352_s9, %s10352_s9 }
 0x97f   : > { %p10822_p3 = scmp.ne.s32.totalorder %s10352_s9, %s10821_s12  ;;  %p10829_p9 = scmp.lt.s32.totalorder %s10821_s12, %s10821_s12 }
 0x981   : > { %p10823_p4 = pnand %p10822_p3, %p11062_p6  ;;  %p10830_p10 = por %p10829_p9, %p10828_p8 }
 0x983   : > { %p10824_p5 = pneg %p10823_p4 }
 0x985   : > { %p10831_p11 = pnand %p10830_p10, %p10824_p5 }
 0x987   : > { %10834 = shalt.err (!%p10831_p11)
}
 0x988   : > { %s18074_s24 = sld [smem:[#allocation229_spill]] }
 0x98e   : > { %10618 = dma.vmem_to_hbm [thread:$0]  (%p11062_p6), %s10352_s9, 32, %s18074_s24, [#allocation7]  }
 0x98f   : > { %10886 = dma.done.wait (%p11062_p6), [#allocation7], 32  }
 0x990   : > { %10888 = vsyncadd (%p11062_p6), [#allocation7], 4294967264 }
 0x991 PF: > { %s18075_s14 = sld [smem:[#allocation15_spill]] }
 0x992   : > { %s18076_s17 = sld [smem:[#allocation10_spill]] }
 0x993   : > { %s18077_s23 = sld [smem:[#allocation19_spill]] }
 0x997   : > { %p10628_p7 = scmp.ge.s32.totalorder %s18075_s14, 2 }
 0x998   : > { %s10367_s18 = sand.u32 1, %s18076_s17  }
 0x999   : > { %p18078_p12 = scmp.ne.s32.totalorder %s18077_s23, 0  ;;  %s10368_s21 = scalar_lea.sflag [#allocation5], %s10367_s18 }
 0x99b   : > { %p10623_p13 = pnand %p10628_p7, %p18078_p12 }
 0x99d   : > { %p10624_p0 = pneg %p10623_p13 }
 0x99f   : > { %10890 = dma.done.wait (%p10624_p0), %s10368_s21, 32  }
 0x9a0   : > { %10892 = vsyncadd (%p10624_p0), %s10368_s21, 4294967264  ;;  %s23_s14 = sadd.s32 1, %s18075_s14   ;;  %s18079_s16 = sld [smem:[#allocation11_spill]] }
 0x9a1   : > { %p20_p1 = scmp.ge.s32.totalorder %s23_s14, 6   ;;  %s18080_s29 = sld [smem:[#allocation20_spill]] }
 0x9a2   : > { %s18081_s30 = sld [smem:[#allocation12_spill]]  ;;  %s18087_s27 = smov %s10899_s28 }
 0x9a3   : > { %s18082_s9 = sld [smem:[#allocation21_spill]]  ;;  %22 = sbr.rel (!%p20_p1) target bundleno = 10 (0xa), region = 168 }
 0x9a4   : > { %s18083_s10 = sld [smem:[#allocation13_spill]] }
 0x9a5   : > { %s18084_s11 = sld [smem:[#allocation14_spill]] }
 0x9a6   : > { %s18085_s12 = sld [smem:[#allocation16_spill]]  ;;  %s18088_s28 = smov %s18079_s16 }
 0x9a7   : > { %s18086_s13 = sld [smem:[#allocation18_spill]] }
 0x9a8   :  { %10373 = vsyncpa [#allocation5], 1 }
 0x9a9   :  { %10375 = vsyncpa [#allocation5 + $0x1], 1 }
 0x9aa   :  { %10376 = vsyncpa [#allocation7], 1 }

</bundles_post_ra>
